<compile_context>
chip_gen: v5e
topology: v5e:2x2
jax: 0.10.0
libtpu: 0.0.40
codegen_flags: <defaults>
</compile_context>

<pallas_src>
import functools

import jax
import jax.numpy as jnp
from jax.experimental import pallas as pl
from jax.experimental.pallas import tpu as pltpu

_LANE = 128   # channels padded to a multiple of the lane width
_PW = 16      # mid-scratch left pad, aligned to the bf16 (16,128) sublane tile


def _round_up(v, m):
    return ((v + m - 1) // m) * m


def _basic_block_kernel(stride, x_ref, w1_ref, b1_ref, w2_ref, b2_ref,
                        out_ref, mid_ref):
    """One batch element per grid step.

    x_ref   : (1, s*s*Hph, Wph, Cin_p) bf16  stride phases stacked along rows
                                             (s==1 -> plain padded NHWC tile)
    w1_ref  : (9*Cin_p, Cout_p)  bf16        conv1 weights (BN1 scale folded)
    b1_ref  : (1, Cout_p)        f32         folded BN1 bias
    w2_ref  : (9*Cout_p, Cout_p) bf16        conv2 weights (BN2 scale folded)
    b2_ref  : (1, Cout_p)        f32         folded BN2 bias
    out_ref : (1, Ho, Wo, Cout_p) f32
    mid_ref : (Ho+2, Ws, Cout_p)  bf16       conv1 output staged at column _PW
                                             with a zero border for conv2 pad=1
    """
    _, Ho, Wo, Cp = out_ref.shape
    Cin_p = x_ref.shape[3]
    Hph = x_ref.shape[1] // (stride * stride)
    Ws = mid_ref.shape[1]

    # ---- conv1: accumulate over the 3 kernel rows (K = 3*Cin_p per matmul) ----
    def tap1(dy, dx):
        # phase layout: phase (dy%s, dx%s) lives at rows [phase*Hph, ...)
        row = ((dy % stride) * stride + (dx % stride)) * Hph + dy // stride
        col = dx // stride
        return x_ref[0, row:row + Ho, col:col + Wo, :]          # bf16

    acc1 = None
    for dy in range(3):
        slab = jnp.concatenate([tap1(dy, dx) for dx in range(3)], axis=-1)
        slab = slab.reshape(Ho * Wo, 3 * Cin_p)
        part = jnp.dot(slab, w1_ref[dy * 3 * Cin_p:(dy + 1) * 3 * Cin_p, :],
                       preferred_element_type=jnp.float32)
        acc1 = part if acc1 is None else acc1 + part
    h = jnp.maximum(acc1 + b1_ref[...], 0.0)        # bn1 (scale folded) + relu

    # ---- stage conv1 output (bf16) with a zero border for conv2's padding=1 ----
    # Border is zeroed once (scratch persists across grid steps); the interior
    # store rewrites every column the right zero block can overlap, so the
    # border stays valid on later steps.  Requires the grid axis to be
    # "arbitrary" so one core owns this scratch and visits step 0 first.
    @pl.when(pl.program_id(0) == 0)
    def _init_border():
        mid_ref[0:1, :, :] = jnp.zeros((1, Ws, Cp), jnp.bfloat16)
        mid_ref[Ho + 1:Ho + 2, :, :] = jnp.zeros((1, Ws, Cp), jnp.bfloat16)
        mid_ref[1:Ho + 1, 0:_PW, :] = jnp.zeros((Ho, _PW, Cp), jnp.bfloat16)
        c0 = ((_PW + Wo) // _PW) * _PW   # aligned start of right zero block
        mid_ref[1:Ho + 1, c0:c0 + _PW, :] = jnp.zeros((Ho, _PW, Cp),
                                                      jnp.bfloat16)

    mid_ref[1:Ho + 1, _PW:_PW + Wo, :] = (
        h.reshape(Ho, Wo, Cp).astype(jnp.bfloat16))

    # ---- conv2: 3x3/1, same row-slab K-accumulation (K = 3*Cout_p) ----
    acc2 = None
    for dy in range(3):
        slab = jnp.concatenate(
            [mid_ref[dy:dy + Ho, _PW - 1 + dx:_PW - 1 + dx + Wo, :]
             for dx in range(3)], axis=-1)
        slab = slab.reshape(Ho * Wo, 3 * Cp)
        part = jnp.dot(slab, w2_ref[dy * 3 * Cp:(dy + 1) * 3 * Cp, :],
                       preferred_element_type=jnp.float32)
        acc2 = part if acc2 is None else acc2 + part
    out = acc2 + b2_ref[...]                        # bn2 (scale folded)
    out_ref[...] = out.reshape(1, Ho, Wo, Cp).astype(out_ref.dtype)


def _vmem_limit_bytes():
    # 3/4 of physical VMEM, capped at 96 MiB: ~96 MiB on v5e/v6e (128 MiB
    # physical), ~48 MiB on v7x (64 MiB physical per TensorCore).
    try:
        cap = int(pltpu.get_tpu_info().vmem_capacity_bytes)
    except Exception:
        cap = 128 * 1024 * 1024
    return int(min(cap * 3 // 4, 96 * 1024 * 1024))


def basic_block_forward(x_nchw, params, stride=1):
    (w1, g1, be1, m1, v1, w2, g2, be2, m2, v2) = params  # PyTorch-shaped params
    eps = 1e-5
    N, Cin, H, W = x_nchw.shape
    Cout = w1.shape[0]
    Ho = (H + 2 - 3) // stride + 1
    Wo = (W + 2 - 3) // stride + 1
    Hp, Wp = H + 2, W + 2
    Cin_p = _round_up(Cin, _LANE)
    Cout_p = _round_up(Cout, _LANE)

    # ---- glue: NHWC, bf16, spatial + channel (lane) zero padding ----
    # TODO(synk): keep activations NHWC/bf16 end-to-end (and fuse a residual
    #             add, if the surrounding ResNet needs one) when the caller
    #             allows, to drop the two full-tensor transposes.
    x = jnp.transpose(x_nchw, (0, 2, 3, 1)).astype(jnp.bfloat16)     # NHWC bf16
    xpad = jnp.pad(x, ((0, 0), (1, 1), (1, 1), (0, Cin_p - Cin)))

    # ---- glue: stride phase split so in-kernel taps are contiguous slices ----
    if stride == 1:
        Hph, Wph = Hp, Wp
        xph = xpad                                   # (N, Hp, Wp, Cin_p)
    else:
        Hph = Ho + 2 // stride
        Wph = Wo + 2 // stride
        blocks = []
        for py in range(stride):
            for px in range(stride):
                ph = xpad[:, py::stride, px::stride, :]
                ph = ph[:, :Hph, :Wph, :]
                ph = jnp.pad(ph, ((0, 0), (0, Hph - ph.shape[1]),
                                  (0, Wph - ph.shape[2]), (0, 0)))
                blocks.append(ph)
        xph = jnp.concatenate(blocks, axis=1)        # (N, s*s*Hph, Wph, Cin_p)
    Hx = xph.shape[1]

    # ---- glue: eval-mode BN folding (scale into weights, bias kept) ----
    s1 = g1 / jnp.sqrt(v1 + eps)
    s2 = g2 / jnp.sqrt(v2 + eps)
    b1 = be1 - m1 * s1
    b2 = be2 - m2 * s2

    def conv_mat(w, s, cin, cin_p):
        # OIHW -> (3,3,cin,cout), fold BN scale per output channel, pad channels
        # to lane multiples, flatten to (9*cin_p, Cout_p); row order (dy, dx, ci)
        # matches the kernel's per-row-slab concat + slice.
        wk = jnp.transpose(w * s[:, None, None, None], (2, 3, 1, 0))
        wk = jnp.pad(wk, ((0, 0), (0, 0), (0, cin_p - cin), (0, Cout_p - Cout)))
        return wk.reshape(9 * cin_p, Cout_p).astype(jnp.bfloat16)

    w1m = conv_mat(w1, s1, Cin, Cin_p)
    w2m = conv_mat(w2, s2, Cout, Cout_p)
    b1p = jnp.pad(b1, (0, Cout_p - Cout)).reshape(1, Cout_p).astype(jnp.float32)
    b2p = jnp.pad(b2, (0, Cout_p - Cout)).reshape(1, Cout_p).astype(jnp.float32)

    # mid scratch width: 16 left pad + Wo (rounded to the bf16 tile) + 16 right
    Ws = _PW + _round_up(Wo, _PW) + _PW

    flops = 2 * N * Ho * Wo * (9 * Cin_p + 9 * Cout_p) * Cout_p
    bytes_accessed = (xph.size * 2 + w1m.size * 2 + w2m.size * 2 +
                      b1p.size * 4 + b2p.size * 4 + N * Ho * Wo * Cout_p * 4)

    kernel = functools.partial(_basic_block_kernel, stride)
    out_nhwc = pl.pallas_call(
        kernel,
        out_shape=jax.ShapeDtypeStruct((N, Ho, Wo, Cout_p), jnp.float32),
        grid_spec=pltpu.PrefetchScalarGridSpec(
            num_scalar_prefetch=0,
            grid=(N,),
            in_specs=[
                pl.BlockSpec((1, Hx, Wph, Cin_p), lambda n: (n, 0, 0, 0)),
                pl.BlockSpec((9 * Cin_p, Cout_p), lambda n: (0, 0)),
                pl.BlockSpec((1, Cout_p), lambda n: (0, 0)),
                pl.BlockSpec((9 * Cout_p, Cout_p), lambda n: (0, 0)),
                pl.BlockSpec((1, Cout_p), lambda n: (0, 0)),
            ],
            out_specs=pl.BlockSpec((1, Ho, Wo, Cout_p), lambda n: (n, 0, 0, 0)),
            scratch_shapes=[pltpu.VMEM((Ho + 2, Ws, Cout_p), jnp.bfloat16)],
        ),
        # "arbitrary": the hoisted border-zero init relies on one core visiting
        # program_id 0 before the other steps (scratch is per-core).
        compiler_params=pltpu.CompilerParams(
            dimension_semantics=("arbitrary",),
            vmem_limit_bytes=_vmem_limit_bytes()),
        cost_estimate=pl.CostEstimate(
            flops=flops, transcendentals=0, bytes_accessed=bytes_accessed),
    )(xph, w1m, b1p, w2m, b2p)

    out = out_nhwc[:, :, :, :Cout]                    # drop lane padding
    return jnp.transpose(out, (0, 3, 1, 2))           # back to NCHW


def ref_forward(x, params, stride=1):
    """Pure-JAX reference of the PyTorch BasicBlock forward (eval-mode BN)."""
    (w1, g1, be1, m1, v1, w2, g2, be2, m2, v2) = params
    eps = 1e-5

    def conv(x, w, s):
        return jax.lax.conv_general_dilated(
            x, w, window_strides=(s, s), padding=((1, 1), (1, 1)),
            dimension_numbers=("NCHW", "OIHW", "NCHW"))

    def bn(x, g, b, m, v):
        return (x - m[None, :, None, None]) / jnp.sqrt(
            v[None, :, None, None] + eps) * g[None, :, None, None] \
            + b[None, :, None, None]

    h = jnp.maximum(bn(conv(x, w1, stride), g1, be1, m1, v1), 0.0)
    return bn(conv(h, w2, 1), g2, be2, m2, v2)


def make_params(key, in_channels, out_channels):
    ks = jax.random.split(key, 10)
    w1 = jax.random.normal(ks[0], (out_channels, in_channels, 3, 3),
                           jnp.float32) * 0.1
    g1 = jax.random.uniform(ks[1], (out_channels,), jnp.float32, 0.5, 1.5)
    be1 = jax.random.normal(ks[2], (out_channels,), jnp.float32) * 0.1
    m1 = jax.random.normal(ks[3], (out_channels,), jnp.float32) * 0.1
    v1 = jax.random.uniform(ks[4], (out_channels,), jnp.float32, 0.5, 1.5)
    w2 = jax.random.normal(ks[5], (out_channels, out_channels, 3, 3),
                           jnp.float32) * 0.1
    g2 = jax.random.uniform(ks[6], (out_channels,), jnp.float32, 0.5, 1.5)
    be2 = jax.random.normal(ks[7], (out_channels,), jnp.float32) * 0.1
    m2 = jax.random.normal(ks[8], (out_channels,), jnp.float32) * 0.1
    v2 = jax.random.uniform(ks[9], (out_channels,), jnp.float32, 0.5, 1.5)
    return (w1, g1, be1, m1, v1, w2, g2, be2, m2, v2)


if __name__ == "__main__":
    key = jax.random.PRNGKey(0)
    k_x, k_p = jax.random.split(key)

    N, Cin, H, W = 2, 4, 16, 16
    Cout = 8

    x = jax.random.normal(k_x, (N, Cin, H, W), jnp.float32)
    params = make_params(k_p, Cin, Cout)

    for stride in (1, 2):
        out = jax.block_until_ready(basic_block_forward(x, params,
                                                        stride=stride))
        ref = jax.block_until_ready(ref_forward(x, params, stride=stride))
        assert out.shape == ref.shape, (stride, out.shape, ref.shape)
        # bf16 input + bf16 MXU operands -> compare at bf16 tolerance.
        assert jnp.allclose(out, ref, rtol=2e-2, atol=2e-2), (
            stride, float(jnp.max(jnp.abs(out - ref))))

    print("KERNEL_OK")
</pallas_src>

<mosaic_0001>
module attributes {stable_mosaic.version = 11 : i64} {
  func.func @_basic_block_kernel(%arg0: i32, %arg1: memref<1x18x18x128xbf16, #tpu.memory_space<vmem>>, %arg2: memref<1152x128xbf16, #tpu.memory_space<vmem>>, %arg3: memref<1x128xf32, #tpu.memory_space<vmem>>, %arg4: memref<1152x128xbf16, #tpu.memory_space<vmem>>, %arg5: memref<1x128xf32, #tpu.memory_space<vmem>>, %arg6: memref<1x16x16x128xf32, #tpu.memory_space<vmem>>, %arg7: memref<18x48x128xbf16, #tpu.memory_space<vmem>>) attributes {dimension_semantics = [#tpu.dimension_semantics<arbitrary>], iteration_bounds = array<i64: 2>, scalar_prefetch = 0 : i64, scratch_operands = 1 : i64, tpu.core_type = #tpu.core_type<tc>, window_params = [{transform_indices = @transform_0, window_bounds = array<i64: 1, 18, 18, 128>}, {pipeline_mode = #tpu.pipeline_mode<synchronous>, transform_indices = @transform_1, window_bounds = array<i64: 1152, 128>}, {pipeline_mode = #tpu.pipeline_mode<synchronous>, transform_indices = @transform_2, window_bounds = array<i64: 1, 128>}, {pipeline_mode = #tpu.pipeline_mode<synchronous>, transform_indices = @transform_3, window_bounds = array<i64: 1152, 128>}, {pipeline_mode = #tpu.pipeline_mode<synchronous>, transform_indices = @transform_4, window_bounds = array<i64: 1, 128>}, {transform_indices = @transform_5, window_bounds = array<i64: 1, 16, 16, 128>}]} {
    %c0 = arith.constant 0 : index
    %c0_0 = arith.constant 0 : index
    %c0_1 = arith.constant 0 : index
    %c0_2 = arith.constant 0 : index
    %0 = vector.load %arg1[%c0, %c0_0, %c0_1, %c0_2] : memref<1x18x18x128xbf16, #tpu.memory_space<vmem>>, vector<1x16x16x128xbf16>
    %1 = vector.shape_cast %0 : vector<1x16x16x128xbf16> to vector<16x16x128xbf16>
    %c0_3 = arith.constant 0 : index
    %c0_4 = arith.constant 0 : index
    %c1 = arith.constant 1 : index
    %c0_5 = arith.constant 0 : index
    %2 = vector.load %arg1[%c0_3, %c0_4, %c1, %c0_5] : memref<1x18x18x128xbf16, #tpu.memory_space<vmem>>, vector<1x16x16x128xbf16>
    %3 = vector.shape_cast %2 : vector<1x16x16x128xbf16> to vector<16x16x128xbf16>
    %c0_6 = arith.constant 0 : index
    %c0_7 = arith.constant 0 : index
    %c2 = arith.constant 2 : index
    %c0_8 = arith.constant 0 : index
    %4 = vector.load %arg1[%c0_6, %c0_7, %c2, %c0_8] : memref<1x18x18x128xbf16, #tpu.memory_space<vmem>>, vector<1x16x16x128xbf16>
    %5 = vector.shape_cast %4 : vector<1x16x16x128xbf16> to vector<16x16x128xbf16>
    %6 = tpu.concatenate %1, %3, %5 in 2 : vector<16x16x128xbf16>, vector<16x16x128xbf16>, vector<16x16x128xbf16> -> vector<16x16x384xbf16>
    %7 = vector.shape_cast %6 : vector<16x16x384xbf16> to vector<256x384xbf16>
    %c0_9 = arith.constant 0 : index
    %c0_10 = arith.constant 0 : index
    %8 = vector.load %arg2[%c0_9, %c0_10] : memref<1152x128xbf16, #tpu.memory_space<vmem>>, vector<384x128xbf16>
    %cst = arith.constant dense<0.000000e+00> : vector<256x128xf32>
    %9 = tpu.matmul %7, %8, %cst {dimension_numbers = #tpu.dot_dimension_numbers<[1], [0], [0], [1], [0, 0, 1, 1], [], []>} : vector<256x384xbf16>, vector<384x128xbf16>, vector<256x128xf32> -> vector<256x128xf32>
    %c0_11 = arith.constant 0 : index
    %c1_12 = arith.constant 1 : index
    %c0_13 = arith.constant 0 : index
    %c0_14 = arith.constant 0 : index
    %10 = vector.load %arg1[%c0_11, %c1_12, %c0_13, %c0_14] : memref<1x18x18x128xbf16, #tpu.memory_space<vmem>>, vector<1x16x16x128xbf16>
    %11 = vector.shape_cast %10 : vector<1x16x16x128xbf16> to vector<16x16x128xbf16>
    %c0_15 = arith.constant 0 : index
    %c1_16 = arith.constant 1 : index
    %c1_17 = arith.constant 1 : index
    %c0_18 = arith.constant 0 : index
    %12 = vector.load %arg1[%c0_15, %c1_16, %c1_17, %c0_18] : memref<1x18x18x128xbf16, #tpu.memory_space<vmem>>, vector<1x16x16x128xbf16>
    %13 = vector.shape_cast %12 : vector<1x16x16x128xbf16> to vector<16x16x128xbf16>
    %c0_19 = arith.constant 0 : index
    %c1_20 = arith.constant 1 : index
    %c2_21 = arith.constant 2 : index
    %c0_22 = arith.constant 0 : index
    %14 = vector.load %arg1[%c0_19, %c1_20, %c2_21, %c0_22] : memref<1x18x18x128xbf16, #tpu.memory_space<vmem>>, vector<1x16x16x128xbf16>
    %15 = vector.shape_cast %14 : vector<1x16x16x128xbf16> to vector<16x16x128xbf16>
    %16 = tpu.concatenate %11, %13, %15 in 2 : vector<16x16x128xbf16>, vector<16x16x128xbf16>, vector<16x16x128xbf16> -> vector<16x16x384xbf16>
    %17 = vector.shape_cast %16 : vector<16x16x384xbf16> to vector<256x384xbf16>
    %c384 = arith.constant 384 : index
    %c0_23 = arith.constant 0 : index
    %18 = vector.load %arg2[%c384, %c0_23] : memref<1152x128xbf16, #tpu.memory_space<vmem>>, vector<384x128xbf16>
    %cst_24 = arith.constant dense<0.000000e+00> : vector<256x128xf32>
    %19 = tpu.matmul %17, %18, %cst_24 {dimension_numbers = #tpu.dot_dimension_numbers<[1], [0], [0], [1], [0, 0, 1, 1], [], []>} : vector<256x384xbf16>, vector<384x128xbf16>, vector<256x128xf32> -> vector<256x128xf32>
    %20 = arith.addf %9, %19 : vector<256x128xf32>
    %c0_25 = arith.constant 0 : index
    %c2_26 = arith.constant 2 : index
    %c0_27 = arith.constant 0 : index
    %c0_28 = arith.constant 0 : index
    %21 = vector.load %arg1[%c0_25, %c2_26, %c0_27, %c0_28] : memref<1x18x18x128xbf16, #tpu.memory_space<vmem>>, vector<1x16x16x128xbf16>
    %22 = vector.shape_cast %21 : vector<1x16x16x128xbf16> to vector<16x16x128xbf16>
    %c0_29 = arith.constant 0 : index
    %c2_30 = arith.constant 2 : index
    %c1_31 = arith.constant 1 : index
    %c0_32 = arith.constant 0 : index
    %23 = vector.load %arg1[%c0_29, %c2_30, %c1_31, %c0_32] : memref<1x18x18x128xbf16, #tpu.memory_space<vmem>>, vector<1x16x16x128xbf16>
    %24 = vector.shape_cast %23 : vector<1x16x16x128xbf16> to vector<16x16x128xbf16>
    %c0_33 = arith.constant 0 : index
    %c2_34 = arith.constant 2 : index
    %c2_35 = arith.constant 2 : index
    %c0_36 = arith.constant 0 : index
    %25 = vector.load %arg1[%c0_33, %c2_34, %c2_35, %c0_36] : memref<1x18x18x128xbf16, #tpu.memory_space<vmem>>, vector<1x16x16x128xbf16>
    %26 = vector.shape_cast %25 : vector<1x16x16x128xbf16> to vector<16x16x128xbf16>
    %27 = tpu.concatenate %22, %24, %26 in 2 : vector<16x16x128xbf16>, vector<16x16x128xbf16>, vector<16x16x128xbf16> -> vector<16x16x384xbf16>
    %28 = vector.shape_cast %27 : vector<16x16x384xbf16> to vector<256x384xbf16>
    %c768 = arith.constant 768 : index
    %c0_37 = arith.constant 0 : index
    %29 = vector.load %arg2[%c768, %c0_37] : memref<1152x128xbf16, #tpu.memory_space<vmem>>, vector<384x128xbf16>
    %cst_38 = arith.constant dense<0.000000e+00> : vector<256x128xf32>
    %30 = tpu.matmul %28, %29, %cst_38 {dimension_numbers = #tpu.dot_dimension_numbers<[1], [0], [0], [1], [0, 0, 1, 1], [], []>} : vector<256x384xbf16>, vector<384x128xbf16>, vector<256x128xf32> -> vector<256x128xf32>
    %31 = arith.addf %20, %30 : vector<256x128xf32>
    %c0_39 = arith.constant 0 : index
    %c0_40 = arith.constant 0 : index
    %32 = vector.load %arg3[%c0_39, %c0_40] : memref<1x128xf32, #tpu.memory_space<vmem>>, vector<1x128xf32>
    %33 = vector.broadcast %32 : vector<1x128xf32> to vector<256x128xf32>
    %34 = arith.addf %31, %33 : vector<256x128xf32>
    %cst_41 = arith.constant 0.000000e+00 : f32
    %35 = vector.broadcast %cst_41 : f32 to vector<256x128xf32>
    %36 = arith.maximumf %34, %35 : vector<256x128xf32>
    %c0_i32 = arith.constant 0 : i32
    %37 = arith.cmpi eq, %arg0, %c0_i32 : i32
    %38 = arith.extui %37 : i1 to i32
    %c0_i32_42 = arith.constant 0 : i32
    %39 = arith.cmpi ne, %38, %c0_i32_42 : i32
    scf.if %39 {
      %cst_85 = arith.constant 0.000000e+00 : bf16
      %71 = vector.broadcast %cst_85 : bf16 to vector<1x48x128xbf16>
      %c0_86 = arith.constant 0 : index
      %c0_87 = arith.constant 0 : index
      %c0_88 = arith.constant 0 : index
      %72 = vector.load %arg7[%c0_86, %c0_87, %c0_88] : memref<18x48x128xbf16, #tpu.memory_space<vmem>>, vector<1x48x128xbf16>
      tpu.vector_store %arg7[%c0_86, %c0_87, %c0_88], %71 {strides = array<i32>} : memref<18x48x128xbf16, #tpu.memory_space<vmem>>, vector<1x48x128xbf16>,
      %cst_89 = arith.constant 0.000000e+00 : bf16
      %73 = vector.broadcast %cst_89 : bf16 to vector<1x48x128xbf16>
      %c17_90 = arith.constant 17 : index
      %c0_91 = arith.constant 0 : index
      %c0_92 = arith.constant 0 : index
      %74 = vector.load %arg7[%c17_90, %c0_91, %c0_92] : memref<18x48x128xbf16, #tpu.memory_space<vmem>>, vector<1x48x128xbf16>
      tpu.vector_store %arg7[%c17_90, %c0_91, %c0_92], %73 {strides = array<i32>} : memref<18x48x128xbf16, #tpu.memory_space<vmem>>, vector<1x48x128xbf16>,
      %cst_93 = arith.constant 0.000000e+00 : bf16
      %75 = vector.broadcast %cst_93 : bf16 to vector<16x16x128xbf16>
      %c1_94 = arith.constant 1 : index
      %c0_95 = arith.constant 0 : index
      %c0_96 = arith.constant 0 : index
      %76 = vector.load %arg7[%c1_94, %c0_95, %c0_96] : memref<18x48x128xbf16, #tpu.memory_space<vmem>>, vector<16x16x128xbf16>
      tpu.vector_store %arg7[%c1_94, %c0_95, %c0_96], %75 {strides = array<i32>} : memref<18x48x128xbf16, #tpu.memory_space<vmem>>, vector<16x16x128xbf16>,
      %cst_97 = arith.constant 0.000000e+00 : bf16
      %77 = vector.broadcast %cst_97 : bf16 to vector<16x16x128xbf16>
      %c1_98 = arith.constant 1 : index
      %c32 = arith.constant 32 : index
      %c0_99 = arith.constant 0 : index
      %78 = vector.load %arg7[%c1_98, %c32, %c0_99] : memref<18x48x128xbf16, #tpu.memory_space<vmem>>, vector<16x16x128xbf16>
      tpu.vector_store %arg7[%c1_98, %c32, %c0_99], %77 {strides = array<i32>} : memref<18x48x128xbf16, #tpu.memory_space<vmem>>, vector<16x16x128xbf16>,
    } else {
    }
    %40 = vector.shape_cast %36 : vector<256x128xf32> to vector<16x16x128xf32>
    %41 = arith.truncf %40 : vector<16x16x128xf32> to vector<16x16x128xbf16>
    %c1_43 = arith.constant 1 : index
    %c16 = arith.constant 16 : index
    %c0_44 = arith.constant 0 : index
    %42 = vector.load %arg7[%c1_43, %c16, %c0_44] : memref<18x48x128xbf16, #tpu.memory_space<vmem>>, vector<16x16x128xbf16>
    tpu.vector_store %arg7[%c1_43, %c16, %c0_44], %41 {strides = array<i32>} : memref<18x48x128xbf16, #tpu.memory_space<vmem>>, vector<16x16x128xbf16>,
    %c0_45 = arith.constant 0 : index
    %c15 = arith.constant 15 : index
    %c0_46 = arith.constant 0 : index
    %43 = vector.load %arg7[%c0_45, %c15, %c0_46] : memref<18x48x128xbf16, #tpu.memory_space<vmem>>, vector<16x16x128xbf16>
    %c0_47 = arith.constant 0 : index
    %c16_48 = arith.constant 16 : index
    %c0_49 = arith.constant 0 : index
    %44 = vector.load %arg7[%c0_47, %c16_48, %c0_49] : memref<18x48x128xbf16, #tpu.memory_space<vmem>>, vector<16x16x128xbf16>
    %c0_50 = arith.constant 0 : index
    %c17 = arith.constant 17 : index
    %c0_51 = arith.constant 0 : index
    %45 = vector.load %arg7[%c0_50, %c17, %c0_51] : memref<18x48x128xbf16, #tpu.memory_space<vmem>>, vector<16x16x128xbf16>
    %46 = tpu.concatenate %43, %44, %45 in 2 : vector<16x16x128xbf16>, vector<16x16x128xbf16>, vector<16x16x128xbf16> -> vector<16x16x384xbf16>
    %47 = vector.shape_cast %46 : vector<16x16x384xbf16> to vector<256x384xbf16>
    %c0_52 = arith.constant 0 : index
    %c0_53 = arith.constant 0 : index
    %48 = vector.load %arg4[%c0_52, %c0_53] : memref<1152x128xbf16, #tpu.memory_space<vmem>>, vector<384x128xbf16>
    %cst_54 = arith.constant dense<0.000000e+00> : vector<256x128xf32>
    %49 = tpu.matmul %47, %48, %cst_54 {dimension_numbers = #tpu.dot_dimension_numbers<[1], [0], [0], [1], [0, 0, 1, 1], [], []>} : vector<256x384xbf16>, vector<384x128xbf16>, vector<256x128xf32> -> vector<256x128xf32>
    %c1_55 = arith.constant 1 : index
    %c15_56 = arith.constant 15 : index
    %c0_57 = arith.constant 0 : index
    %50 = vector.load %arg7[%c1_55, %c15_56, %c0_57] : memref<18x48x128xbf16, #tpu.memory_space<vmem>>, vector<16x16x128xbf16>
    %c1_58 = arith.constant 1 : index
    %c16_59 = arith.constant 16 : index
    %c0_60 = arith.constant 0 : index
    %51 = vector.load %arg7[%c1_58, %c16_59, %c0_60] : memref<18x48x128xbf16, #tpu.memory_space<vmem>>, vector<16x16x128xbf16>
    %c1_61 = arith.constant 1 : index
    %c17_62 = arith.constant 17 : index
    %c0_63 = arith.constant 0 : index
    %52 = vector.load %arg7[%c1_61, %c17_62, %c0_63] : memref<18x48x128xbf16, #tpu.memory_space<vmem>>, vector<16x16x128xbf16>
    %53 = tpu.concatenate %50, %51, %52 in 2 : vector<16x16x128xbf16>, vector<16x16x128xbf16>, vector<16x16x128xbf16> -> vector<16x16x384xbf16>
    %54 = vector.shape_cast %53 : vector<16x16x384xbf16> to vector<256x384xbf16>
    %c384_64 = arith.constant 384 : index
    %c0_65 = arith.constant 0 : index
    %55 = vector.load %arg4[%c384_64, %c0_65] : memref<1152x128xbf16, #tpu.memory_space<vmem>>, vector<384x128xbf16>
    %cst_66 = arith.constant dense<0.000000e+00> : vector<256x128xf32>
    %56 = tpu.matmul %54, %55, %cst_66 {dimension_numbers = #tpu.dot_dimension_numbers<[1], [0], [0], [1], [0, 0, 1, 1], [], []>} : vector<256x384xbf16>, vector<384x128xbf16>, vector<256x128xf32> -> vector<256x128xf32>
    %57 = arith.addf %49, %56 : vector<256x128xf32>
    %c2_67 = arith.constant 2 : index
    %c15_68 = arith.constant 15 : index
    %c0_69 = arith.constant 0 : index
    %58 = vector.load %arg7[%c2_67, %c15_68, %c0_69] : memref<18x48x128xbf16, #tpu.memory_space<vmem>>, vector<16x16x128xbf16>
    %c2_70 = arith.constant 2 : index
    %c16_71 = arith.constant 16 : index
    %c0_72 = arith.constant 0 : index
    %59 = vector.load %arg7[%c2_70, %c16_71, %c0_72] : memref<18x48x128xbf16, #tpu.memory_space<vmem>>, vector<16x16x128xbf16>
    %c2_73 = arith.constant 2 : index
    %c17_74 = arith.constant 17 : index
    %c0_75 = arith.constant 0 : index
    %60 = vector.load %arg7[%c2_73, %c17_74, %c0_75] : memref<18x48x128xbf16, #tpu.memory_space<vmem>>, vector<16x16x128xbf16>
    %61 = tpu.concatenate %58, %59, %60 in 2 : vector<16x16x128xbf16>, vector<16x16x128xbf16>, vector<16x16x128xbf16> -> vector<16x16x384xbf16>
    %62 = vector.shape_cast %61 : vector<16x16x384xbf16> to vector<256x384xbf16>
    %c768_76 = arith.constant 768 : index
    %c0_77 = arith.constant 0 : index
    %63 = vector.load %arg4[%c768_76, %c0_77] : memref<1152x128xbf16, #tpu.memory_space<vmem>>, vector<384x128xbf16>
    %cst_78 = arith.constant dense<0.000000e+00> : vector<256x128xf32>
    %64 = tpu.matmul %62, %63, %cst_78 {dimension_numbers = #tpu.dot_dimension_numbers<[1], [0], [0], [1], [0, 0, 1, 1], [], []>} : vector<256x384xbf16>, vector<384x128xbf16>, vector<256x128xf32> -> vector<256x128xf32>
    %65 = arith.addf %57, %64 : vector<256x128xf32>
    %c0_79 = arith.constant 0 : index
    %c0_80 = arith.constant 0 : index
    %66 = vector.load %arg5[%c0_79, %c0_80] : memref<1x128xf32, #tpu.memory_space<vmem>>, vector<1x128xf32>
    %67 = vector.broadcast %66 : vector<1x128xf32> to vector<256x128xf32>
    %68 = arith.addf %65, %67 : vector<256x128xf32>
    %69 = vector.shape_cast %68 : vector<256x128xf32> to vector<1x16x16x128xf32>
    %c0_81 = arith.constant 0 : index
    %c0_82 = arith.constant 0 : index
    %c0_83 = arith.constant 0 : index
    %c0_84 = arith.constant 0 : index
    %70 = vector.load %arg6[%c0_81, %c0_82, %c0_83, %c0_84] : memref<1x16x16x128xf32, #tpu.memory_space<vmem>>, vector<1x16x16x128xf32>
    tpu.vector_store %arg6[%c0_81, %c0_82, %c0_83, %c0_84], %69 {strides = array<i32>} : memref<1x16x16x128xf32, #tpu.memory_space<vmem>>, vector<1x16x16x128xf32>,
    return
  }
  func.func @transform_0(%arg0: i32) -> (i32, i32, i32, i32) {
    %c0_i32 = arith.constant 0 : i32
    %c0_i32_0 = arith.constant 0 : i32
    %c0_i32_1 = arith.constant 0 : i32
    %c0_i32_2 = arith.constant 0 : i32
    return %arg0, %c0_i32, %c0_i32_0, %c0_i32_1 : i32, i32, i32, i32
  }
  func.func @transform_1(%arg0: i32) -> (i32, i32) {
    %c0_i32 = arith.constant 0 : i32
    %c0_i32_0 = arith.constant 0 : i32
    %c0_i32_1 = arith.constant 0 : i32
    return %c0_i32, %c0_i32_0 : i32, i32
  }
  func.func @transform_2(%arg0: i32) -> (i32, i32) {
    %c0_i32 = arith.constant 0 : i32
    %c0_i32_0 = arith.constant 0 : i32
    %c0_i32_1 = arith.constant 0 : i32
    return %c0_i32, %c0_i32_0 : i32, i32
  }
  func.func @transform_3(%arg0: i32) -> (i32, i32) {
    %c0_i32 = arith.constant 0 : i32
    %c0_i32_0 = arith.constant 0 : i32
    %c0_i32_1 = arith.constant 0 : i32
    return %c0_i32, %c0_i32_0 : i32, i32
  }
  func.func @transform_4(%arg0: i32) -> (i32, i32) {
    %c0_i32 = arith.constant 0 : i32
    %c0_i32_0 = arith.constant 0 : i32
    %c0_i32_1 = arith.constant 0 : i32
    return %c0_i32, %c0_i32_0 : i32, i32
  }
  func.func @transform_5(%arg0: i32) -> (i32, i32, i32, i32) {
    %c0_i32 = arith.constant 0 : i32
    %c0_i32_0 = arith.constant 0 : i32
    %c0_i32_1 = arith.constant 0 : i32
    %c0_i32_2 = arith.constant 0 : i32
    return %arg0, %c0_i32, %c0_i32_0, %c0_i32_1 : i32, i32, i32, i32
  }
}

</mosaic_0001>

<bundles_post_ra>
// kernel: tpu_custom_call.1
= control target key start
LH: loop header
LB: loop body
LE: loop exit
PB: predicated region body
PF: predicated region fallthrough
CT: control target
= control target key end

     0   :  { %10 = vsyncpa [#allocation4], 0  ;;  %s12483_s0 = inlined_call_operand.vmem [shape: bf16[2,18,18,128], index: 0, kind: input, shape index: {}]   ;;  %s12484_s1 = inlined_call_operand.vmem [shape: bf16[1152,128], index: 1, kind: input, shape index: {}]   ;;  %s12485_s2 = inlined_call_operand.vmem [shape: f32[1,128], index: 2, kind: input, shape index: {}]   ;;  %s12486_s3 = inlined_call_operand.hbm [shape: bf16[1152,128], index: 3, kind: input, shape index: {}]   ;;  %s12487_s4 = inlined_call_operand.vmem [shape: f32[1,128], index: 4, kind: input, shape index: {}]   ;;  %s12488_s5 = inlined_call_operand.hbm [shape: f32[2,16,16,128], index: 5, kind: output, shape index: {}]  }
   0x1   :  { %11 = vsyncpa [#allocation5], 0 }
   0x2   :  { %13 = vsyncpa [#allocation5 + $0x1], 0  ;;  %s10454_s18 = smov 0   ;;  %s10456_s19 = smov 0  }
   0x3   :  { %s10458_s20 = smov 0   ;;  %s10460_s21 = smov 0  }
   0x4 LB: > { %s10475_s22 = sadd.s32 4294967295, %s10416_s21   ;;  %s8527_s23 = sadd.s32 4294967294, %s10416_s21   ;;  %s10416_s21 = sphi %s10460_s21, %s12576_s21   ;;  %s10412_s20 = sphi %s10458_s20, %s12575_s20   ;;  %s10408_s19 = sphi %s10456_s19, %s12574_s19   ;;  %s10404_s18 = sphi %s10454_s18, %s12573_s18  }
   0x5   : > { %s10479_s24 = sadd.s32 1, %s10416_s21   ;;  %s136_s25 = sadd.s32 1, %s10412_s20 }
   0x6   : > { %s133_s26 = ssub.s32 %s10416_s21, %s10479_s24  ;;  %p146_p0 = scmp.ne.s32.totalorder %s10412_s20, %s10408_s19 }
   0x7   : > { %p134_p1 = scmp.eq.s32.totalorder %s133_s26, 0  ;;  %p147_p2 = scmp.eq.s32.totalorder %s10475_s22, 1 }
   0x8   : > { %p152_p3 = scmp.ne.s32.totalorder %s10408_s19, %s10404_s18  ;;  %p153_p4 = scmp.eq.s32.totalorder %s8527_s23, 1 }
   0x9   : > { %s10490_s27 = scalar_select %p134_p1, %s10412_s20, %s136_s25  }
   0xa   : > { %p10492_p5 = por %p147_p2, %p146_p0  ;;  %p10496_p6 = por %p153_p4, %p152_p3 }
   0xb   : > { %p8528_p7 = scmp.ge.s32.totalorder %s10416_s21, 1  ;;  %p160_p8 = scmp.lt.s32.totalorder %s10416_s21, 3 }
   0xc   : > { %p8529_p9 = scmp.ne.s32.totalorder %s10475_s22, 0  ;;  %p10188_p10 = scmp.eq.s32.totalorder %s10475_s22, 0 }
   0xd   : > { %p161_p11 = pnand %p8528_p7, %p160_p8  ;;  %s177_s7 = sshll.u32 %s12486_s3, 4  ;;  %s178_s7 = int_to_ptr.hbm [resolvable:$true] %s177_s7 }
   0xe   : > { %s10418_s8 = smov [#allocation3]   ;;  %s10419_s10 = smov 64  }
   0xf   : > { %p10180_p12 = pneg %p161_p11  ;;  %s179_s9 = sshll.u32 %s10418_s8, 4  ;;  %s180_s9 = int_to_ptr.vmem [resolvable:$true] %s179_s9 }
  0x10   : > { %s10420_s11 = smov 4   ;;  %206 = sbr.rel (%p161_p11) target bundleno = 1799 (0x707), region = 40 }
  0x11   : > { %p10181_p13 = pnand %p10188_p10, %p10180_p12 }
  0x13   : > { %10183 = dma.hbm_to_vmem [thread:$0]  (!%p10181_p13), %s178_s7, 9216, %s180_s9, [#allocation4], %s10419_s10, %s10419_s10, %s10420_s11  }
  0x15   : > { %10395 = dma.done.wait (%p10188_p10), [#allocation4], 9216  }
  0x16   : > { %10397 = vsyncadd (%p10188_p10), [#allocation4], 4294958080  ;;  %s232_s12 = sand.u32 1, %s10408_s19   ;;  %p235_p0 = scmp.lt.s32.totalorder %s10475_s22, 1  ;;  %v9276_v0 = vld [vmem:[%s12484_s1 + $0xf8] sm:$0xff]  ;;  %v9275_v2 = vld [vmem:[%s12484_s1 + $0xf0] sm:$0xff] }
  0x17   : > { %s10517_s13 = sshll.u32 %s232_s12, 8  ;;  %v9284_v1 = vld [vmem:[%s12484_s1 + $0x138] sm:$0xff]  ;;  %1540 = vmatpush.bf16.msra.mxu0 %v9276_v0  ;;  %10109 = vmatpush.bf16.msra.mxu2 %v9276_v0  ;;  %v9283_v3 = vld [vmem:[%s12484_s1 + $0x130] sm:$0xff]  ;;  %v9274_v4 = vld [vmem:[%s12484_s1 + $0xe8] sm:$0xff]  ;;  %vm449_vm0 = vsmask.f32 7424 }
  0x18   : > { %s236_s14 = scalar_select %p235_p0, %s10475_s22, 1  ;;  %1629 = vmatpush.bf16.msra.mxu1 %v9284_v1  ;;  %10117 = vmatpush.bf16.msra.mxu3 %v9284_v1  ;;  %v9282_v5 = vld [vmem:[%s12484_s1 + $0x128] sm:$0xff]  ;;  %v9273_v10 = vld [vmem:[%s12484_s1 + $0xe0] sm:$0xff]  ;;  %v9272_v14 = vld [vmem:[%s12484_s1 + $0xd8] sm:$0xff]  ;;  %vm706_vm1 = vcmask 1046528  }
  0x19   : > { %v9281_v11 = vld [vmem:[%s12484_s1 + $0x120] sm:$0xff]  ;;  %v9280_v15 = vld [vmem:[%s12484_s1 + $0x118] sm:$0xff]  ;;  %v9271_v18 = vld [vmem:[%s12484_s1 + $0xd0] sm:$0xff] }
  0x1a   : > { %s10173_s25 = smul.u32 216, %s236_s14  ;;  %v9279_v19 = vld [vmem:[%s12484_s1 + $0x110] sm:$0xff]  ;;  %v9270_v24 = vld [vmem:[%s12484_s1 + $0xc8] sm:$0xff]  ;;  %v9269_v32 = vld [vmem:[%s12484_s1 + $0xc0] sm:$0xff] }
  0x1b   : > { %1541 = vmatpush.bf16.msra.mxu0 %v9275_v2  ;;  %10110 = vmatpush.bf16.msra.mxu2 %v9275_v2  ;;  %v9278_v27 = vld [vmem:[%s12484_s1 + $0x108] sm:$0xff]  ;;  %v9277_v33 = vld [vmem:[%s12484_s1 + $0x100] sm:$0xff]  ;;  %v9292_v39 = vld [vmem:[%s12484_s1 + $0x178] sm:$0xff] }
  0x1c   : > { %s10535_s10 = scalar_lea.vmem %s12483_s0, %s10173_s25  ;;  %1630 = vmatpush.bf16.msra.mxu1 %v9283_v3  ;;  %10118 = vmatpush.bf16.msra.mxu3 %v9283_v3  ;;  %v9252_v40 = vld [vmem:[%s12484_s1 + $0x38] sm:$0xff]  ;;  %v9291_v49 = vld [vmem:[%s12484_s1 + $0x170] sm:$0xff]  ;;  %v9290_v56 = vld [vmem:[%s12484_s1 + $0x168] sm:$0xff] }
  0x1d   : > { %v10544_v6 = vld [vmem:[%s10535_s10 + $0xc] sm:$0xff]   ;;  %v8567_v12 = vld [vmem:[%s10535_s10 + $0x14] sm:$0x1]  ;;  %v8568_v38 = vld [vmem:[%s10535_s10 + $0x20] sm:$0x1] }
  0x1e   : > { %v10547_v7 = vld [vmem:[%s10535_s10 + $0xc] sm:$0xf0]  ;;  %v8575_v13 = vld [vmem:[%s10535_s10 + $0x74] sm:$0x1]  ;;  %v996_v16 = vunpack.c.l.b16 %v8567_v12  ;;  %v1031_v21 = vshll.u32 %v10544_v6, 16  ;;  %v1029_v25 = vshrl.u32 %v10544_v6, 16  ;;  %v997_v42 = vunpack.c.l.b16 %v8568_v38 }
  0x1f   : > { %v10550_v8 = vld [vmem:[%s10535_s10 + $0x6c] sm:$0xff]   ;;  %1542 = vmatpush.bf16.msra.mxu0 %v9274_v4  ;;  %10111 = vmatpush.bf16.msra.mxu2 %v9274_v4  ;;  %v1004_v17 = vunpack.c.l.b16 %v8575_v13  ;;  %v8576_v41 = vld [vmem:[%s10535_s10 + $0x80] sm:$0x1]  ;;  %v9260_v45 = vld [vmem:[%s12484_s1 + $0x78] sm:$0xff] }
  0x20   : > { %v10553_v9 = vld [vmem:[%s10535_s10 + $0x6c] sm:$0xf0]  ;;  %1631 = vmatpush.bf16.msra.mxu1 %v9282_v5  ;;  %10119 = vmatpush.bf16.msra.mxu3 %v9282_v5  ;;  %v10575_v20 = vpack.c.b16 %v996_v16, %v996_v16  ;;  %v1127_v23 = vshll.u32 %v10550_v8, 16  ;;  %v1125_v26 = vshrl.u32 %v10550_v8, 16  ;;  %v1033_v28 = vrot.slane %v1031_v21, 1  ;;  %v10611_v46 = vld [vmem:[%s10535_s10 + $0x18] sm:$0xff]  }
  0x21   : > { %v10578_v22 = vpack.c.b16 %v1004_v17, %v1004_v17  ;;  %v1005_v47 = vunpack.c.l.b16 %v8576_v41  ;;  %v9793_v48 = vld [vmem:[%s10535_s10 + $0x78] sm:$0xff]   ;;  %v9251_v50 = vld [vmem:[%s12484_s1 + $0x30] sm:$0xff]  ;;  %v1043_v51 = vshll.u32 %v10611_v46, 16  ;;  %v10623_v52 = vpack.c.b16 %v997_v42, %v997_v42  ;;  %v9250_v57 = vld [vmem:[%s12484_s1 + $0x28] sm:$0xff] }
  0x22   : > { %v1036_v29 = vshll.u32 %v10575_v20, 16  ;;  %v1129_v30 = vrot.slane %v1127_v23, 1  ;;  %v1034_v34 = vor.u32 %v1033_v28, %v1029_v25  ;;  %v1139_v53 = vshll.u32 %v9793_v48, 16  ;;  %v9259_v55 = vld [vmem:[%s12484_s1 + $0x70] sm:$0xff]  ;;  %v8539_v0 = vld [vmem:[%s10535_s10 + $0x24] sm:$0xff]  }
  0x23   : > { %1543 = vmatpush.bf16.msra.mxu0 %v9273_v10  ;;  %10112 = vmatpush.bf16.msra.mxu2 %v9273_v10  ;;  %v1132_v31 = vshll.u32 %v10578_v22, 16  ;;  %v10625_v54 = vpack.c.b16 %v1005_v47, %v1005_v47  ;;  %v1041_v58 = vshrl.u32 %v10611_v46, 16  ;;  %v1045_v59 = vrot.slane %v1043_v51, 1  ;;  %v10641_v1 = vld [vmem:[%s10535_s10 + $0x24] sm:$0xf0]  ;;  %v9257_v21 = vld [vmem:[%s12484_s1 + $0x60] sm:$0xff] }
  0x24   : > { %1632 = vmatpush.bf16.msra.mxu1 %v9281_v11  ;;  %10120 = vmatpush.bf16.msra.mxu3 %v9281_v11  ;;  %v1038_v35 = vrot.slane %v1036_v29, 1  ;;  %v1130_v36 = vor.u32 %v1129_v30, %v1125_v26  ;;  %v1048_v60 = vshll.u32 %v10623_v52, 16  ;;  %v1137_v61 = vshrl.u32 %v9793_v48, 16  ;;  %v9258_v2 = vld [vmem:[%s12484_s1 + $0x68] sm:$0xff]  ;;  %v10678_v41 = vld [vmem:[%s10535_s10 + $0x30] sm:$0xff]   ;;  %v9288_v47 = vld [vmem:[%s12484_s1 + $0x158] sm:$0xff] }
  0x25   : > { %v1134_v37 = vrot.slane %v1132_v31, 1  ;;  %v1141_v62 = vrot.slane %v1139_v53, 1  ;;  %v1144_v63 = vshll.u32 %v10625_v54, 16  ;;  %v8555_v3 = vld [vmem:[%s10535_s10 + $0x84] sm:$0xff]   ;;  %v10650_v5 = vor.u32 %v1045_v59, %v1041_v58  ;;  %v8569_v11 = vld [vmem:[%s10535_s10 + $0x2c] sm:$0x1] }
  0x26   : > { %v1039_v43 = vsel %vm449_vm0, %v1034_v34, %v1038_v35  ;;  %v10648_v4 = vld [vmem:[%s10535_s10 + $0x84] sm:$0xf0]  ;;  %v8577_v12 = vld [vmem:[%s10535_s10 + $0x8c] sm:$0x1]  ;;  %v1055_v17 = vshll.u32 %v8539_v0, 16  ;;  %v1151_v25 = vshll.u32 %v8555_v3, 16 }
  0x27   : > { %1544 = vmatpush.bf16.msra.mxu0 %v9272_v14  ;;  %10113 = vmatpush.bf16.msra.mxu2 %v9272_v14  ;;  %v1135_v44 = vsel %vm449_vm0, %v1130_v36, %v1134_v37  ;;  %v1146_v10 = vrot.slane %v1144_v63, 1  ;;  %v1006_v16 = vunpack.c.l.b16 %v8577_v12  ;;  %v1053_v26 = vshrl.u32 %v8539_v0, 16  ;;  %v8570_v36 = vld [vmem:[%s10535_s10 + $0x38] sm:$0x1]  ;;  %v10704_v63 = vld [vmem:[%s10535_s10 + $0x9c] sm:$0xf0] }
  0x28   : > { %1633 = vmatpush.bf16.msra.mxu1 %v9280_v15  ;;  %10121 = vmatpush.bf16.msra.mxu3 %v9280_v15  ;;  %v998_v15 = vunpack.c.l.b16 %v8569_v11  ;;  %v1149_v29 = vshrl.u32 %v8555_v3, 16  ;;  %v1153_v30 = vrot.slane %v1151_v25, 1  ;;  %v8578_v37 = vld [vmem:[%s10535_s10 + $0x98] sm:$0x1]  ;;  %v999_v38 = vunpack.c.l.b16 %v8570_v36  ;;  %v8572_v36 = vld [vmem:[%s10535_s10 + $0x50] sm:$0x1] }
  0x29   : > { %v1007_v42 = vunpack.c.l.b16 %v8578_v37  ;;  %v1065_v53 = vshrl.u32 %v10678_v41, 16  ;;  %v8580_v37 = vld [vmem:[%s10535_s10 + $0xb0] sm:$0x1] }
  0x2a   : > { %v10667_v23 = vpack.c.b16 %v998_v15, %v998_v15  ;;  %v1154_v34 = vor.u32 %v1153_v30, %v1149_v29 }
  0x2b   : > { %1545 = vmatpush.bf16.msra.mxu0 %v9271_v18  ;;  %10114 = vmatpush.bf16.msra.mxu2 %v9271_v18  ;;  %v9289_v18 = vld [vmem:[%s12484_s1 + $0x160] sm:$0xff]  ;;  %v10693_v51 = vpack.c.b16 %v1007_v42, %v1007_v42  ;;  %v10734_v42 = vld [vmem:[%s10535_s10 + $0x48] sm:$0xff]  }
  0x2c   : > { %1634 = vmatpush.bf16.msra.mxu1 %v9279_v19  ;;  %10122 = vmatpush.bf16.msra.mxu3 %v9279_v19  ;;  %v9249_v19 = vld [vmem:[%s12484_s1 + $0x20] sm:$0xff]  ;;  %v1060_v28 = vshll.u32 %v10667_v23, 16 }
  0x2d   : > { %v1168_v59 = vshll.u32 %v10693_v51, 16 }
  0x2f   : > { %1546 = vmatpush.bf16.msra.mxu0 %v9270_v24  ;;  %10115 = vmatpush.bf16.msra.mxu2 %v9270_v24  ;;  %v10669_v24 = vpack.c.b16 %v1006_v16, %v1006_v16  ;;  %v9287_v16 = vld [vmem:[%s12484_s1 + $0x150] sm:$0xff] }
  0x30   : > { %1635 = vmatpush.bf16.msra.mxu1 %v9278_v27  ;;  %10123 = vmatpush.bf16.msra.mxu3 %v9278_v27  ;;  %v1057_v27 = vrot.slane %v1055_v17, 1  ;;  %v9247_v17 = vld [vmem:[%s12484_s1 + $0x10] sm:$0xff] }
  0x31   : > { %v1156_v31 = vshll.u32 %v10669_v24, 16 }
  0x33   : > { %1547 = vmatpush.bf16.msra.mxu0 %v9269_v32  ;;  %10116 = vmatpush.bf16.msra.mxu2 %v9269_v32  ;;  %v1058_v32 = vor.u32 %v1057_v27, %v1053_v26  ;;  %v1158_v35 = vrot.slane %v1156_v31, 1 }
  0x34   : > { %1636 = vmatpush.bf16.msra.mxu1 %v9277_v33  ;;  %10124 = vmatpush.bf16.msra.mxu3 %v9277_v33  ;;  %v1062_v33 = vrot.slane %v1060_v28, 1 }
  0x36   : > { %1548 = vmatmul.bf16.vlgmr.msra.gmra.mxu0 %v10544_v6  ;;  %1588 = vmatmul.bf16.vlgmr.msra.gmra.mxu2 %v10550_v8  ;;  %v1050_v6 = vrot.slane %v1048_v60, 1  ;;  %v1142_v8 = vor.u32 %v1141_v62, %v1137_v61  ;;  %v8543_v60 = vld [vmem:[%s10535_s10 + $0x3c] sm:$0xff]  }
  0x37   : > { %1718 = vmatpush.bf16.msrb.mxu2 %v9292_v39  ;;  %1637 = vmatmul.bf16.vlgmr.msra.gmra.mxu1 %v1039_v43  ;;  %v1063_v39 = vsel %vm449_vm0, %v1058_v32, %v1062_v33  ;;  %v9794_v43 = vld [vmem:[%s10535_s10 + $0x90] sm:$0xff]   ;;  %v10700_v61 = vld [vmem:[%s10535_s10 + $0x3c] sm:$0xf0]  ;;  %v1079_v15 = vshll.u32 %v8543_v60, 16  ;;  %v1077_v26 = vshrl.u32 %v8543_v60, 16 }
  0x38   : > { %1951 = vmatpush.bf16.msrb.mxu3 %v9252_v40  ;;  %2040 = vmatpush.bf16.msrb.mxu0 %v9260_v45  ;;  %v1051_v13 = vsel %vm449_vm0, %v10650_v5, %v1050_v6  ;;  %v1147_v14 = vsel %vm449_vm0, %v1142_v8, %v1146_v10  ;;  %v1159_v40 = vsel %vm449_vm0, %v1154_v34, %v1158_v35  ;;  %v8559_v62 = vld [vmem:[%s10535_s10 + $0x9c] sm:$0xff]   ;;  %v1170_v6 = vrot.slane %v1168_v59, 1  ;;  %v8571_v8 = vld [vmem:[%s10535_s10 + $0x44] sm:$0x1] }
  0x39   : > { %1677 = vmatmul.bf16.vlgmr.msra.gmra.mxu3 %v1135_v44  ;;  %v1067_v44 = vshll.u32 %v10678_v41, 16  ;;  %v10682_v45 = vpack.c.b16 %v999_v38, %v999_v38  ;;  %v8579_v10 = vld [vmem:[%s10535_s10 + $0xa4] sm:$0x1]  ;;  %v1175_v25 = vshll.u32 %v8559_v62, 16  ;;  %v1081_v27 = vrot.slane %v1079_v15, 1 }
  0x3a   : > { %v1173_v29 = vshrl.u32 %v8559_v62, 16  ;;  %v1001_v38 = vunpack.c.l.b16 %v8572_v36  ;;  %v9253_v36 = vld [vmem:[%s12484_s1 + $0x40] sm:$0xff] }
  0x3b   : > { %1719 = vmatpush.bf16.msrb.mxu2 %v9291_v49  ;;  %v9256_v49 = vld [vmem:[%s12484_s1 + $0x58] sm:$0xff]  ;;  %v1177_v30 = vrot.slane %v1175_v25, 1  ;;  %v1082_v32 = vor.u32 %v1081_v27, %v1077_v26 }
  0x3c   : > { %1952 = vmatpush.bf16.msrb.mxu3 %v9251_v50  ;;  %2041 = vmatpush.bf16.msrb.mxu0 %v9259_v55  ;;  %v1163_v50 = vshll.u32 %v9794_v43, 16  ;;  %v1069_v55 = vrot.slane %v1067_v44, 1  ;;  %v9795_v44 = vld [vmem:[%s10535_s10 + $0xa8] sm:$0xff]  }
  0x3d   : > { %v1178_v34 = vor.u32 %v1177_v30, %v1173_v29  ;;  %v9285_v30 = vld [vmem:[%s12484_s1 + $0x140] sm:$0xff] }
  0x3e   : > { %v1165_v58 = vrot.slane %v1163_v50, 1  ;;  %v9246_v50 = vld [vmem:[%s12484_s1 + $0x8] sm:$0xff] }
  0x3f   : > { %1720 = vmatpush.bf16.msrb.mxu2 %v9290_v56  ;;  %v1072_v56 = vshll.u32 %v10682_v45, 16 }
  0x40   : > { %1953 = vmatpush.bf16.msrb.mxu3 %v9250_v57  ;;  %2042 = vmatpush.bf16.msrb.mxu0 %v9258_v2  ;;  %v1161_v57 = vshrl.u32 %v9794_v43, 16 }
  0x41   : > { %v1074_v2 = vrot.slane %v1072_v56, 1 }
  0x43   : > { %1721 = vmatpush.bf16.msrb.mxu2 %v9289_v18  ;;  %v9255_v18 = vld [vmem:[%s12484_s1 + $0x50] sm:$0xff] }
  0x44   : > { %1954 = vmatpush.bf16.msrb.mxu3 %v9249_v19  ;;  %2043 = vmatpush.bf16.msrb.mxu0 %v9257_v21 }
  0x46   : > { %1553 = vmatmul.bf16.gmra.mxu0 %v10611_v46  ;;  %1593 = vmatmul.bf16.gmra.mxu2 %v9793_v48  ;;  %v9248_v48 = vld [vmem:[%s12484_s1 + $0x18] sm:$0xff] }
  0x47   : > { %1642 = vmatmul.bf16.gmra.mxu1 %v1051_v13  ;;  %1722 = vmatpush.bf16.msrb.mxu2 %v9288_v47  ;;  %v1000_v13 = vunpack.c.l.b16 %v8571_v8  ;;  %v1091_v47 = vshll.u32 %v10734_v42, 16  ;;  %v10759_v8 = vld [vmem:[%s10535_s10 + $0x54] sm:$0xf0] }
  0x48   : > { %1955 = vmatpush.bf16.msrb.mxu3 %v9248_v48  ;;  %2044 = vmatpush.bf16.msrb.mxu0 %v9256_v49  ;;  %v10738_v48 = vpack.c.b16 %v1001_v38, %v1001_v38  ;;  %v9286_v49 = vld [vmem:[%s12484_s1 + $0x148] sm:$0xff] }
  0x49   : > { %1682 = vmatmul.bf16.gmra.mxu3 %v1147_v14  ;;  %v1008_v14 = vunpack.c.l.b16 %v8579_v10  ;;  %v10723_v19 = vpack.c.b16 %v1000_v13, %v1000_v13  ;;  %v1093_v59 = vrot.slane %v1091_v47, 1  ;;  %v8563_v10 = vld [vmem:[%s10535_s10 + $0xb4] sm:$0xff]   ;;  %v9265_v47 = vld [vmem:[%s12484_s1 + $0xa0] sm:$0xff] }
  0x4b   : > { %v10725_v21 = vpack.c.b16 %v1008_v14, %v1008_v14  ;;  %1723 = vmatpush.bf16.msrb.mxu2 %v9287_v16  ;;  %v1084_v28 = vshll.u32 %v10723_v19, 16  ;;  %v8573_v16 = vld [vmem:[%s10535_s10 + $0x5c] sm:$0x1] }
  0x4c   : > { %1956 = vmatpush.bf16.msrb.mxu3 %v9247_v17  ;;  %2045 = vmatpush.bf16.msrb.mxu0 %v9255_v18  ;;  %v8581_v17 = vld [vmem:[%s10535_s10 + $0xbc] sm:$0x1]  ;;  %v1002_v26 = vunpack.c.l.b16 %v8573_v16 }
  0x4d   : > { %v1180_v31 = vshll.u32 %v10725_v21, 16  ;;  %v1086_v33 = vrot.slane %v1084_v28, 1  ;;  %v1010_v27 = vunpack.c.l.b16 %v8581_v17  ;;  %v9267_v28 = vld [vmem:[%s12484_s1 + $0xb0] sm:$0xff]  ;;  %v9300_v17 = vld [vmem:[%s12484_s1 + $0x1b8] sm:$0xff] }
  0x4f   : > { %v1182_v35 = vrot.slane %v1180_v31, 1  ;;  %1724 = vmatpush.bf16.msrb.mxu2 %v9286_v49  ;;  %v9245_v31 = vld [vmem:[%s12484_s1] sm:$0xff] }
  0x50   : > { %1957 = vmatpush.bf16.msrb.mxu3 %v9246_v50 }
  0x53   : > { %1725 = vmatpush.bf16.msrb.mxu2 %v9285_v30 }
  0x54   : > { %1958 = vmatpush.bf16.msrb.mxu3 %v9245_v31 }
  0x56   : > { %1558 = vmatmul.bf16.gmra.mxu0 %v8539_v0  ;;  %1598 = vmatmul.bf16.gmra.mxu2 %v8555_v3  ;;  %v10706_v0 = vor.u32 %v1069_v55, %v1065_v53  ;;  %v1166_v3 = vor.u32 %v1165_v58, %v1161_v57  ;;  %v9254_v53 = vld [vmem:[%s12484_s1 + $0x48] sm:$0xff]  ;;  %v1187_v55 = vshll.u32 %v9795_v44, 16  ;;  %v9268_v57 = vld [vmem:[%s12484_s1 + $0xb8] sm:$0xff]  ;;  %v1089_v58 = vshrl.u32 %v10734_v42, 16 }
  0x57   : > { %1647 = vmatmul.bf16.gmra.mxu1 %v1063_v39  ;;  %v1087_v39 = vsel %vm449_vm0, %v1082_v32, %v1086_v33  ;;  %2046 = vmatpush.bf16.msrb.mxu0 %v9254_v53  ;;  %v10782_v32 = vpack.c.b16 %v1002_v26, %v1002_v26  ;;  %v10784_v33 = vpack.c.b16 %v1010_v27, %v1010_v27 }
  0x58   : > { %v1075_v11 = vsel %vm449_vm0, %v10706_v0, %v1074_v2  ;;  %v1171_v12 = vsel %vm449_vm0, %v1166_v3, %v1170_v6  ;;  %2129 = vmatpush.bf16.msrb.mxu1 %v9268_v57  ;;  %v1189_v2 = vrot.slane %v1187_v55, 1  ;;  %v8547_v6 = vld [vmem:[%s10535_s10 + $0x54] sm:$0xff]   ;;  %v8574_v57 = vld [vmem:[%s10535_s10 + $0x68] sm:$0x1]  ;;  %2939 = vmatpush.bf16.msra.mxu2 %v9300_v17  ;;  %v10251_v17 = vld [vmem:[%s10535_s10 + $0xc] sm:$0xf0] }
  0x59   : > { %1687 = vmatmul.bf16.gmra.mxu3 %v1159_v40  ;;  %v1183_v40 = vsel %vm449_vm0, %v1178_v34, %v1182_v35  ;;  %v1103_v29 = vshll.u32 %v8547_v6, 16  ;;  %v1199_v34 = vshll.u32 %v8563_v10, 16  ;;  %v9266_v35 = vld [vmem:[%s12484_s1 + $0xa8] sm:$0xff] }
  0x5b   : > { %2047 = vmatpush.bf16.msrb.mxu0 %v9253_v36  ;;  %v1105_v38 = vrot.slane %v1103_v29, 1  ;;  %v9261_v36 = vld [vmem:[%s12484_s1 + $0x80] sm:$0xff] }
  0x5c   : > { %2130 = vmatpush.bf16.msrb.mxu1 %v9267_v28 }
  0x60   : > { %2131 = vmatpush.bf16.msrb.mxu1 %v9266_v35  ;;  %v9316_v35 = vld [vmem:[%s12484_s1 + $0x238] sm:$0xff] }
  0x61   : > { %3117 = vmatpush.bf16.msra.mxu0 %v9316_v35 }
  0x64   : > { %2132 = vmatpush.bf16.msrb.mxu1 %v9265_v47 }
  0x66   : > { %1563 = vmatmul.bf16.gmra.mxu0 %v10678_v41  ;;  %1603 = vmatmul.bf16.gmra.mxu2 %v9794_v43  ;;  %v1009_v43 = vunpack.c.l.b16 %v8580_v37  ;;  %v1101_v37 = vshrl.u32 %v8547_v6, 16 }
  0x67   : > { %1652 = vmatmul.bf16.gmra.mxu1 %v1075_v11  ;;  %v10763_v11 = vld [vmem:[%s10535_s10 + $0xb4] sm:$0xf0] }
  0x68   : > { %v10749_v56 = vpack.c.b16 %v1009_v43, %v1009_v43  ;;  %v1201_v43 = vrot.slane %v1199_v34, 1  ;;  %v1106_v49 = vor.u32 %v1105_v38, %v1101_v37 }
  0x69   : > { %1692 = vmatmul.bf16.gmra.mxu3 %v1171_v12  ;;  %v10765_v12 = vor.u32 %v1093_v59, %v1089_v58  ;;  %v8582_v58 = vld [vmem:[%s10535_s10 + $0xc8] sm:$0x1]  ;;  %v9264_v59 = vld [vmem:[%s12484_s1 + $0x98] sm:$0xff] }
  0x6a   : > { %v1192_v3 = vshll.u32 %v10749_v56, 16  ;;  %2133 = vmatpush.bf16.msrb.mxu1 %v9264_v59  ;;  %v9766_v59 = vld [vmem:[%s10535_s10] sm:$0xe] }
  0x6c   : > { %v1194_v15 = vrot.slane %v1192_v3, 1  ;;  %v1003_v3 = vunpack.c.l.b16 %v8574_v57 }
  0x6e   : > { %v10818_v26 = vpack.c.b16 %v1003_v3, %v1003_v3 }
  0x70   : > { %v1120_v31 = vshll.u32 %v10818_v26, 16 }
  0x72   : > { %v1122_v38 = vrot.slane %v1120_v31, 1 }
  0x76   : > { %1568 = vmatmul.bf16.gmra.mxu0 %v8543_v60  ;;  %1608 = vmatmul.bf16.gmra.mxu2 %v8559_v62  ;;  %v1096_v60 = vshll.u32 %v10738_v48, 16  ;;  %v1185_v62 = vshrl.u32 %v9795_v44, 16 }
  0x77   : > { %1657 = vmatmul.bf16.gmra.mxu1 %v1087_v39  ;;  %v1108_v39 = vshll.u32 %v10782_v32, 16 }
  0x78   : > { %v1098_v13 = vrot.slane %v1096_v60, 1  ;;  %v1190_v14 = vor.u32 %v1189_v2, %v1185_v62  ;;  %v10805_v2 = vld [vmem:[%s10535_s10 + $0x60] sm:$0xff]  }
  0x79   : > { %1697 = vmatmul.bf16.gmra.mxu3 %v1183_v40  ;;  %v1197_v40 = vshrl.u32 %v8563_v10, 16  ;;  %v1110_v50 = vrot.slane %v1108_v39, 1  ;;  %v1115_v16 = vshll.u32 %v10805_v2, 16  ;;  %v1113_v27 = vshrl.u32 %v10805_v2, 16 }
  0x7a   : > { %v1099_v18 = vsel %vm449_vm0, %v10765_v12, %v1098_v13  ;;  %v1195_v25 = vsel %vm449_vm0, %v1190_v14, %v1194_v15  ;;  %v1011_v13 = vunpack.c.l.b16 %v8582_v58  ;;  %v9796_v14 = vld [vmem:[%s10535_s10 + $0xc0] sm:$0xff]   ;;  %v9263_v15 = vld [vmem:[%s12484_s1 + $0x90] sm:$0xff] }
  0x7b   : > { %v1202_v53 = vor.u32 %v1201_v43, %v1197_v40  ;;  %v1111_v60 = vsel %vm449_vm0, %v1106_v49, %v1110_v50  ;;  %2134 = vmatpush.bf16.msrb.mxu1 %v9263_v15  ;;  %v1117_v28 = vrot.slane %v1115_v16, 1  ;;  %v1209_v29 = vshrl.u32 %v9796_v14, 16  ;;  %v273_v43 = vld [vmem:[%s10535_s10 + $0x8] sm:$0x1]  ;;  %v9765_v58 = vld [vmem:[%s10535_s10] sm:$0xf0] }
  0x7c   : > { %v417_v47 = vunpack.c.l.b16 %v273_v43  ;;  %v9767_v15 = vor.u32 %v9766_v59, %v9765_v58  ;;  %v243_v16 = vld [vmem:[%s10535_s10 + $0xc] sm:$0xff]  }
  0x7d   : > { %v10834_v37 = vor.u32 %v1117_v28, %v1113_v27  ;;  %v463_v59 = vshrl.u32 %v243_v16, 16 }
  0x7e   : > { %v433_v57 = vpack.c.b16 %v417_v47, %v417_v47  ;;  %v707_v27 = vrot.slane %v9767_v15, 1  ;;  %v9299_v47 = vld [vmem:[%s12484_s1 + $0x1b0] sm:$0xff] }
  0x7f   : > { %v1123_v49 = vsel %vm449_vm0, %v10834_v37, %v1122_v38  ;;  %2940 = vmatpush.bf16.msra.mxu2 %v9299_v47 }
  0x80   : > { %v708_v28 = vrot.slane %v433_v57, 1 }
  0x86   : > { %1573 = vmatmul.bf16.gmra.mxu0 %v10734_v42  ;;  %1613 = vmatmul.bf16.gmra.mxu2 %v9795_v44  ;;  %v1204_v44 = vshll.u32 %v10784_v33, 16 }
  0x87   : > { %1662 = vmatmul.bf16.gmra.mxu1 %v1099_v18  ;;  %v9308_v18 = vld [vmem:[%s12484_s1 + $0x1f8] sm:$0xff] }
  0x88   : > { %v1206_v55 = vrot.slane %v1204_v44, 1  ;;  %3028 = vmatpush.bf16.msra.mxu3 %v9308_v18  ;;  %v10249_v44 = vld [vmem:[%s10535_s10 + $0xc] sm:$0xe] }
  0x89   : > { %1702 = vmatmul.bf16.gmra.mxu3 %v1195_v25  ;;  %v1211_v25 = vshll.u32 %v9796_v14, 16 }
  0x8a   : > { %v1207_v62 = vsel %vm449_vm0, %v1202_v53, %v1206_v55  ;;  %v9391_v53 = vld [vmem:[%s10535_s10] sm:$0xff]  }
  0x8b   : > { %v1213_v30 = vrot.slane %v1211_v25, 1  ;;  %v453_v55 = vshll.u32 %v9391_v53, 16  ;;  %v1285_v25 = vrot.slane %v10575_v20, 1  ;;  %v10252_v20 = vld [vmem:[%s10535_s10 + $0xc] sm:$0xe] }
  0x8d   : > { %v1214_v39 = vor.u32 %v1213_v30, %v1209_v29  ;;  %v455_v3 = vrot.slane %v453_v55, 1  ;;  %v274_v29 = vld [vmem:[%s10535_s10 + $0x14] sm:$0x1] }
  0x96   : > { %1578 = vmatmul.bf16.gmra.mxu0 %v8547_v6  ;;  %1618 = vmatmul.bf16.gmra.mxu2 %v8563_v10  ;;  %v10820_v6 = vpack.c.b16 %v1011_v13, %v1011_v13  ;;  %v9262_v10 = vld [vmem:[%s12484_s1 + $0x88] sm:$0xff]  ;;  %v458_v13 = vshll.u32 %v433_v57, 16 }
  0x97   : > { %1667 = vmatmul.bf16.gmra.mxu1 %v1111_v60  ;;  %v10250_v60 = vor.u32 %v10249_v44, %v10547_v7  ;;  %v465_v44 = vshll.u32 %v243_v16, 16 }
  0x98   : > { %v1216_v34 = vshll.u32 %v10820_v6, 16  ;;  %2135 = vmatpush.bf16.msrb.mxu1 %v9262_v10  ;;  %v460_v10 = vrot.slane %v458_v13, 1  ;;  %v10253_v13 = vor.u32 %v10252_v20, %v10251_v17  ;;  %v10255_v20 = vld [vmem:[%s10535_s10 + $0x24] sm:$0xe] }
  0x99   : > { %1707 = vmatmul.bf16.gmra.mxu3 %v1207_v62  ;;  %v451_v62 = vshrl.u32 %v9391_v53, 16  ;;  %v1284_v18 = vrot.slane %v10250_v60, 1  ;;  %v467_v60 = vrot.slane %v465_v44, 1 }
  0x9a   : > { %v1218_v40 = vrot.slane %v1216_v34, 1  ;;  %v418_v34 = vunpack.c.l.b16 %v274_v29 }
  0x9b   : > { %v1286_v7 = vsel %vm706_vm1, %v1284_v18, %v1285_v25  ;;  %v9315_v18 = vld [vmem:[%s12484_s1 + $0x230] sm:$0xff] }
  0x9c   : > { %2136 = vmatpush.bf16.msrb.mxu1 %v9261_v36  ;;  %v1219_v50 = vsel %vm449_vm0, %v1214_v39, %v1218_v40  ;;  %v709_v36 = vsel %vm706_vm1, %v707_v27, %v708_v28  ;;  %v9797_v39 = vld [vmem:[%s10535_s10 + $0x18] sm:$0xf0]  ;;  %v9798_v40 = vld [vmem:[%s10535_s10 + $0x18] sm:$0xe]  ;;  %v434_v43 = vpack.c.b16 %v418_v34, %v418_v34  ;;  %3118 = vmatpush.bf16.msra.mxu0 %v9315_v18  ;;  %v710_v28 = vrot.slane %v10253_v13, 1  ;;  %v10887_v13 = vld [vmem:[%s10535_s10 + $0x24] sm:$0xff]  }
  0x9d   : > { %v9799_v57 = vor.u32 %v9798_v40, %v9797_v39  ;;  %v10257_v18 = vld [vmem:[%s10535_s10 + $0x24] sm:$0xf0] }
  0x9e   : > { %v711_v29 = vrot.slane %v434_v43, 1 }
  0x9f   : > { %v1287_v25 = vrot.slane %v9799_v57, 1  ;;  %v10256_v57 = vor.u32 %v10255_v20, %v10641_v1  ;;  %v276_v1 = vld [vmem:[%s10535_s10 + $0x2c] sm:$0x1] }
  0xa0   : > { %v712_v40 = vsel %vm706_vm1, %v710_v28, %v711_v29 }
  0xa6   : > { %1583 = vmatmul.bf16.gmra.mxu0 %v10805_v2  ;;  %1623 = vmatmul.bf16.gmra.mxu2 %v9796_v14  ;;  %v456_v14 = vor.u32 %v455_v3, %v451_v62  ;;  %v470_v62 = vshll.u32 %v434_v43, 16 }
  0xa7   : > { %1672 = vmatmul.bf16.gmra.mxu1 %v1123_v49  ;;  %v9307_v49 = vld [vmem:[%s12484_s1 + $0x1f0] sm:$0xff] }
  0xa8   : > { %v461_v31 = vsel %vm449_vm0, %v456_v14, %v460_v10  ;;  %3029 = vmatpush.bf16.msra.mxu3 %v9307_v49  ;;  %v1288_v14 = vrot.slane %v10623_v52, 1  ;;  %v468_v10 = vor.u32 %v467_v60, %v463_v59  ;;  %v472_v27 = vrot.slane %v470_v62, 1  ;;  %v9768_v49 = vld [vmem:[%s10535_s10 + $0x18] sm:$0xf0] }
  0xa9   : > { %1712 = vmatmul.bf16.gmra.mxu3 %v1219_v50 }
  0xb3   : > { %v1549_v30 = vpop.f32.mrf.mxu0 }
  0xb4   : > { %v1638_v35 = vpop.f32.mrf.mxu1 }
  0xb5   : > { %v10853_v38 = vadd.f32 %v1638_v35, %v1549_v30  ;;  %v275_v30 = vld [vmem:[%s10535_s10 + $0x20] sm:$0x1]  ;;  %v1289_v35 = vsel %vm706_vm1, %v1287_v25, %v1288_v14  ;;  %v1291_v14 = vrot.slane %v10667_v23, 1 }
  0xb6   : > { %1726 = vmatmul.bf16.vlgmr.msrb.gmra.mxu2 %v1286_v7  ;;  %2048 = vmatmul.bf16.vlgmr.msrb.gmra.mxu0 %v461_v31  ;;  %v419_v39 = vunpack.c.l.b16 %v275_v30 }
  0xb7   : > { %2137 = vmatmul.bf16.vlgmr.msrb.gmra.mxu1 %v709_v36  ;;  %v473_v36 = vsel %vm449_vm0, %v468_v10, %v472_v27 }
  0xb8   : > { %v435_v43 = vpack.c.b16 %v419_v39, %v419_v39 }
  0xb9   : > { %1959 = vmatmul.bf16.vlgmr.msrb.gmra.mxu3 %v9391_v53  ;;  %v1589_v50 = vpop.f32.mrf.mxu2 }
  0xba   : > { %v482_v60 = vshll.u32 %v435_v43, 16  ;;  %v714_v28 = vrot.slane %v435_v43, 1  ;;  %v9801_v43 = vld [vmem:[%s10535_s10 + $0x30] sm:$0xe] }
  0xbb   : > { %v1551_v53 = vpop.f32.mrf.mxu0 }
  0xbc   : > { %v1678_v55 = vpop.f32.mrf.mxu3  ;;  %v1640_v3 = vpop.f32.mrf.mxu1  ;;  %v484_v10 = vrot.slane %v482_v60, 1 }
  0xbd   : > { %v10864_v58 = vadd.f32 %v1678_v55, %v1589_v50  ;;  %v10866_v15 = vadd.f32 %v1640_v3, %v1551_v53  ;;  %v9769_v50 = vld [vmem:[%s10535_s10 + $0x18] sm:$0xe] }
  0xbe   : > { %v9770_v3 = vor.u32 %v9769_v50, %v9768_v49  ;;  %v489_v49 = vshll.u32 %v10887_v13, 16  ;;  %v9306_v50 = vld [vmem:[%s12484_s1 + $0x1e8] sm:$0xff] }
  0xbf   : > { %3030 = vmatpush.bf16.msra.mxu3 %v9306_v50 }
  0xc0   : > { %v713_v27 = vrot.slane %v9770_v3, 1  ;;  %v491_v3 = vrot.slane %v489_v49, 1  ;;  %v10261_v49 = vld [vmem:[%s10535_s10 + $0x3c] sm:$0xe] }
  0xc1   : > { %v1591_v7 = vpop.f32.mrf.mxu2 }
  0xc2   : > { %v715_v23 = vsel %vm706_vm1, %v713_v27, %v714_v28  ;;  %v9314_v28 = vld [vmem:[%s12484_s1 + $0x228] sm:$0xff] }
  0xc3   : > { %v1554_v34 = vpop.f32.mrf.mxu0  ;;  %3119 = vmatpush.bf16.msra.mxu0 %v9314_v28 }
  0xc4   : > { %v1680_v31 = vpop.f32.mrf.mxu3  ;;  %v1643_v52 = vpop.f32.mrf.mxu1 }
  0xc5   : > { %v10873_v17 = vadd.f32 %v1680_v31, %v1591_v7  ;;  %v10879_v44 = vadd.f32 %v1643_v52, %v1554_v34  ;;  %v10258_v52 = vld [vmem:[%s10535_s10 + $0x24] sm:$0xe] }
  0xc6   : > { %1731 = vmatmul.bf16.gmra.mxu2 %v1289_v35  ;;  %2053 = vmatmul.bf16.gmra.mxu0 %v473_v36  ;;  %v485_v35 = vsel %vm449_vm0, %v10650_v5, %v484_v10  ;;  %v420_v36 = vunpack.c.l.b16 %v276_v1  ;;  %v9298_v5 = vld [vmem:[%s12484_s1 + $0x1a8] sm:$0xff]  ;;  %v10259_v10 = vor.u32 %v10258_v52, %v10257_v18 }
  0xc7   : > { %2142 = vmatmul.bf16.gmra.mxu1 %v712_v40  ;;  %v9800_v40 = vld [vmem:[%s10535_s10 + $0x30] sm:$0xf0]  ;;  %2941 = vmatpush.bf16.msra.mxu2 %v9298_v5 }
  0xc9   : > { %1964 = vmatmul.bf16.gmra.mxu3 %v243_v16  ;;  %v1594_v47 = vpop.f32.mrf.mxu2  ;;  %v1290_v16 = vrot.slane %v10256_v57, 1 }
  0xcb   : > { %v1556_v59 = vpop.f32.mrf.mxu0  ;;  %v1292_v7 = vsel %vm706_vm1, %v1290_v16, %v1291_v14 }
  0xcc   : > { %v1683_v55 = vpop.f32.mrf.mxu3  ;;  %v1645_v62 = vpop.f32.mrf.mxu1 }
  0xcd   : > { %v10884_v53 = vadd.f32 %v1683_v55, %v1594_v47  ;;  %v10890_v25 = vadd.f32 %v1645_v62, %v1556_v59  ;;  %v436_v47 = vpack.c.b16 %v420_v36, %v420_v36  ;;  %v9802_v59 = vor.u32 %v9801_v43, %v9800_v40  ;;  %v277_v36 = vld [vmem:[%s10535_s10 + $0x38] sm:$0x1] }
  0xce   : > { %v487_v62 = vshrl.u32 %v10887_v13, 16  ;;  %v421_v5 = vunpack.c.l.b16 %v277_v36 }
  0xcf   : > { %v494_v16 = vshll.u32 %v436_v47, 16  ;;  %v1293_v1 = vrot.slane %v9802_v59, 1  ;;  %v9771_v59 = vld [vmem:[%s10535_s10 + $0x30] sm:$0xf0] }
  0xd1   : > { %v1596_v29 = vpop.f32.mrf.mxu2 }
  0xd3   : > { %v1559_v34 = vpop.f32.mrf.mxu0 }
  0xd4   : > { %v1685_v30 = vpop.f32.mrf.mxu3  ;;  %v1648_v20 = vpop.f32.mrf.mxu1 }
  0xd5   : > { %v10895_v31 = vadd.f32 %v1685_v30, %v1596_v29  ;;  %v10900_v39 = vadd.f32 %v1648_v20, %v1559_v34  ;;  %v1294_v29 = vrot.slane %v10682_v45, 1  ;;  %v492_v30 = vor.u32 %v491_v3, %v487_v62 }
  0xd6   : > { %1736 = vmatmul.bf16.gmra.mxu2 %v1292_v7  ;;  %2058 = vmatmul.bf16.gmra.mxu0 %v485_v35  ;;  %v496_v7 = vrot.slane %v494_v16, 1  ;;  %v716_v34 = vrot.slane %v10259_v10, 1  ;;  %v717_v35 = vrot.slane %v436_v47, 1  ;;  %v437_v47 = vpack.c.b16 %v421_v5, %v421_v5 }
  0xd7   : > { %2147 = vmatmul.bf16.gmra.mxu1 %v715_v23  ;;  %v1295_v40 = vsel %vm706_vm1, %v1293_v1, %v1294_v29  ;;  %v10262_v3 = vor.u32 %v10261_v49, %v10700_v61  ;;  %v10938_v29 = vld [vmem:[%s10535_s10 + $0x3c] sm:$0xff]   ;;  %v278_v61 = vld [vmem:[%s10535_s10 + $0x44] sm:$0x1] }
  0xd8   : > { %v497_v43 = vsel %vm449_vm0, %v492_v30, %v496_v7  ;;  %v718_v50 = vsel %vm706_vm1, %v716_v34, %v717_v35  ;;  %v506_v10 = vshll.u32 %v437_v47, 16  ;;  %v10263_v30 = vld [vmem:[%s10535_s10 + $0x3c] sm:$0xf0]  ;;  %v1297_v34 = vrot.slane %v10723_v19, 1 }
  0xd9   : > { %1969 = vmatmul.bf16.gmra.mxu3 %v10611_v46  ;;  %v1599_v55 = vpop.f32.mrf.mxu2 }
  0xda   : > { %v508_v35 = vrot.slane %v506_v10, 1 }
  0xdb   : > { %v1561_v46 = vpop.f32.mrf.mxu0 }
  0xdc   : > { %v1688_v57 = vpop.f32.mrf.mxu3  ;;  %v1650_v14 = vpop.f32.mrf.mxu1  ;;  %v509_v5 = vsel %vm449_vm0, %v10706_v0, %v508_v35  ;;  %v9297_v0 = vld [vmem:[%s12484_s1 + $0x1a0] sm:$0xff] }
  0xdd   : > { %v10913_v60 = vadd.f32 %v1688_v57, %v1599_v55  ;;  %v10916_v27 = vadd.f32 %v1650_v14, %v1561_v46  ;;  %v9772_v46 = vld [vmem:[%s10535_s10 + $0x30] sm:$0xe]  ;;  %2942 = vmatpush.bf16.msra.mxu2 %v9297_v0 }
  0xde   : > { %v9773_v1 = vor.u32 %v9772_v46, %v9771_v59  ;;  %v10264_v59 = vld [vmem:[%s10535_s10 + $0x3c] sm:$0xe]  ;;  %v9804_v46 = vld [vmem:[%s10535_s10 + $0x48] sm:$0xe] }
  0xe0   : > { %v719_v36 = vrot.slane %v9773_v1, 1 }
  0xe1   : > { %v1601_v20 = vpop.f32.mrf.mxu2 }
  0xe3   : > { %v1564_v52 = vpop.f32.mrf.mxu0 }
  0xe4   : > { %v1690_v23 = vpop.f32.mrf.mxu3  ;;  %v1653_v45 = vpop.f32.mrf.mxu1 }
  0xe5   : > { %v10923_v18 = vadd.f32 %v1690_v23, %v1601_v20  ;;  %v10929_v55 = vadd.f32 %v1653_v45, %v1564_v52  ;;  %v720_v20 = vrot.slane %v437_v47, 1  ;;  %v422_v45 = vunpack.c.l.b16 %v278_v61  ;;  %v9803_v47 = vld [vmem:[%s10535_s10 + $0x48] sm:$0xf0] }
  0xe6   : > { %1741 = vmatmul.bf16.gmra.mxu2 %v1295_v40  ;;  %2063 = vmatmul.bf16.gmra.mxu0 %v497_v43  ;;  %v9805_v1 = vor.u32 %v9804_v46, %v9803_v47  ;;  %v10265_v61 = vor.u32 %v10264_v59, %v10263_v30  ;;  %v279_v47 = vld [vmem:[%s10535_s10 + $0x50] sm:$0x1] }
  0xe7   : > { %2152 = vmatmul.bf16.gmra.mxu1 %v718_v50  ;;  %v721_v19 = vsel %vm706_vm1, %v719_v36, %v720_v20 }
  0xe9   : > { %1974 = vmatmul.bf16.gmra.mxu3 %v10887_v13  ;;  %v1604_v57 = vpop.f32.mrf.mxu2  ;;  %v1296_v13 = vrot.slane %v10262_v3, 1  ;;  %v438_v3 = vpack.c.b16 %v422_v45, %v422_v45 }
  0xeb   : > { %v1566_v14 = vpop.f32.mrf.mxu0  ;;  %v1298_v40 = vsel %vm706_vm1, %v1296_v13, %v1297_v34  ;;  %v511_v34 = vshrl.u32 %v10938_v29, 16  ;;  %v518_v36 = vshll.u32 %v438_v3, 16 }
  0xec   : > { %v1693_v62 = vpop.f32.mrf.mxu3  ;;  %v1655_v28 = vpop.f32.mrf.mxu1 }
  0xed   : > { %v10935_v16 = vadd.f32 %v1693_v62, %v1604_v57  ;;  %v10941_v7 = vadd.f32 %v1655_v28, %v1566_v14  ;;  %v513_v62 = vshll.u32 %v10938_v29, 16  ;;  %v9305_v14 = vld [vmem:[%s12484_s1 + $0x1e0] sm:$0xff]  ;;  %v520_v45 = vrot.slane %v518_v36, 1  ;;  %v9775_v36 = vld [vmem:[%s10535_s10 + $0x48] sm:$0xe] }
  0xee   : > { %3031 = vmatpush.bf16.msra.mxu3 %v9305_v14 }
  0xef   : > { %v515_v35 = vrot.slane %v513_v62, 1 }
  0xf1   : > { %v1606_v23 = vpop.f32.mrf.mxu2 }
  0xf3   : > { %v1569_v49 = vpop.f32.mrf.mxu0 }
  0xf4   : > { %v1695_v52 = vpop.f32.mrf.mxu3  ;;  %v1658_v50 = vpop.f32.mrf.mxu1 }
  0xf5   : > { %v10946_v43 = vadd.f32 %v1695_v52, %v1606_v23  ;;  %v10951_v57 = vadd.f32 %v1658_v50, %v1569_v49  ;;  %v9313_v52 = vld [vmem:[%s12484_s1 + $0x220] sm:$0xff]  ;;  %v1300_v49 = vrot.slane %v10738_v48, 1  ;;  %v722_v50 = vrot.slane %v10265_v61, 1 }
  0xf6   : > { %1746 = vmatmul.bf16.gmra.mxu2 %v1298_v40  ;;  %2068 = vmatmul.bf16.gmra.mxu0 %v509_v5  ;;  %v1299_v40 = vrot.slane %v9805_v1, 1  ;;  %v516_v5 = vor.u32 %v515_v35, %v511_v34  ;;  %v9774_v35 = vld [vmem:[%s10535_s10 + $0x48] sm:$0xf0] }
  0xf7   : > { %2157 = vmatmul.bf16.gmra.mxu1 %v721_v19  ;;  %3120 = vmatpush.bf16.msra.mxu0 %v9313_v52  ;;  %v723_v19 = vrot.slane %v438_v3, 1 }
  0xf8   : > { %v1301_v0 = vsel %vm706_vm1, %v1299_v40, %v1300_v49  ;;  %v521_v14 = vsel %vm449_vm0, %v516_v5, %v520_v45  ;;  %v9776_v45 = vor.u32 %v9775_v36, %v9774_v35 }
  0xf9   : > { %1979 = vmatmul.bf16.gmra.mxu3 %v10678_v41  ;;  %v1609_v10 = vpop.f32.mrf.mxu2  ;;  %v724_v1 = vsel %vm706_vm1, %v722_v50, %v723_v19  ;;  %v10989_v50 = vld [vmem:[%s10535_s10 + $0x54] sm:$0xff]  }
  0xfa   : > { %v10269_v19 = vld [vmem:[%s10535_s10 + $0x54] sm:$0xf0] }
  0xfb   : > { %v1571_v41 = vpop.f32.mrf.mxu0 }
  0xfc   : > { %v1698_v28 = vpop.f32.mrf.mxu3  ;;  %v1660_v20 = vpop.f32.mrf.mxu1 }
  0xfd   : > { %v10964_v13 = vadd.f32 %v1698_v28, %v1609_v10  ;;  %v10967_v23 = vadd.f32 %v1660_v20, %v1571_v41  ;;  %v10267_v10 = vld [vmem:[%s10535_s10 + $0x54] sm:$0xe]  ;;  %v423_v28 = vunpack.c.l.b16 %v279_v47 }
  0xfe   : > { %v10268_v61 = vor.u32 %v10267_v10, %v10759_v8  ;;  %v280_v8 = vld [vmem:[%s10535_s10 + $0x5c] sm:$0x1] }
  0xff   : > { %v439_v3 = vpack.c.b16 %v423_v28, %v423_v28  ;;  %v424_v35 = vunpack.c.l.b16 %v280_v8 }
 0x101   : > { %v1611_v46 = vpop.f32.mrf.mxu2  ;;  %v530_v49 = vshll.u32 %v439_v3, 16 }
 0x103   : > { %v1574_v59 = vpop.f32.mrf.mxu0 }
 0x104   : > { %v1700_v62 = vpop.f32.mrf.mxu3  ;;  %v1663_v48 = vpop.f32.mrf.mxu1 }
 0x105   : > { %v10974_v30 = vadd.f32 %v1700_v62, %v1611_v46  ;;  %v10980_v41 = vadd.f32 %v1663_v48, %v1574_v59  ;;  %v1303_v46 = vrot.slane %v10782_v32, 1  ;;  %v532_v62 = vrot.slane %v530_v49, 1 }
 0x106   : > { %1751 = vmatmul.bf16.gmra.mxu2 %v1301_v0  ;;  %2073 = vmatmul.bf16.gmra.mxu0 %v521_v14  ;;  %v725_v59 = vrot.slane %v9776_v45, 1  ;;  %v726_v0 = vrot.slane %v439_v3, 1  ;;  %v9806_v3 = vld [vmem:[%s10535_s10 + $0x60] sm:$0xf0]  ;;  %v537_v49 = vshll.u32 %v10989_v50, 16  ;;  %v9304_v45 = vld [vmem:[%s12484_s1 + $0x1d8] sm:$0xff] }
 0x107   : > { %2162 = vmatmul.bf16.gmra.mxu1 %v724_v1  ;;  %3032 = vmatpush.bf16.msra.mxu3 %v9304_v45  ;;  %v281_v45 = vld [vmem:[%s10535_s10 + $0x68] sm:$0x1] }
 0x108   : > { %v727_v32 = vsel %vm706_vm1, %v725_v59, %v726_v0  ;;  %v535_v0 = vshrl.u32 %v10989_v50, 16  ;;  %v539_v8 = vrot.slane %v537_v49, 1 }
 0x109   : > { %1984 = vmatmul.bf16.gmra.mxu3 %v10938_v29  ;;  %v1614_v34 = vpop.f32.mrf.mxu2  ;;  %v1302_v29 = vrot.slane %v10268_v61, 1  ;;  %v10270_v61 = vld [vmem:[%s10535_s10 + $0x54] sm:$0xe] }
 0x10b   : > { %v1576_v40 = vpop.f32.mrf.mxu0  ;;  %v1304_v28 = vsel %vm706_vm1, %v1302_v29, %v1303_v46 }
 0x10c   : > { %v1703_v20 = vpop.f32.mrf.mxu3  ;;  %v1665_v5 = vpop.f32.mrf.mxu1 }
 0x10d   : > { %v10986_v52 = vadd.f32 %v1703_v20, %v1614_v34  ;;  %v10992_v47 = vadd.f32 %v1665_v5, %v1576_v40  ;;  %v533_v34 = vsel %vm449_vm0, %v10765_v12, %v532_v62  ;;  %v9807_v40 = vld [vmem:[%s10535_s10 + $0x60] sm:$0xe]  ;;  %v440_v5 = vpack.c.b16 %v424_v35, %v424_v35  ;;  %v9296_v12 = vld [vmem:[%s12484_s1 + $0x198] sm:$0xff] }
 0x10e   : > { %2943 = vmatpush.bf16.msra.mxu2 %v9296_v12  ;;  %v9808_v62 = vor.u32 %v9807_v40, %v9806_v3 }
 0x10f   : > { %v729_v12 = vrot.slane %v440_v5, 1 }
 0x110   : > { %v1305_v35 = vrot.slane %v9808_v62, 1  ;;  %v425_v62 = vunpack.c.l.b16 %v281_v45 }
 0x111   : > { %v1616_v14 = vpop.f32.mrf.mxu2 }
 0x113   : > { %v1579_v1 = vpop.f32.mrf.mxu0 }
 0x114   : > { %v1705_v10 = vpop.f32.mrf.mxu3  ;;  %v1668_v36 = vpop.f32.mrf.mxu1 }
 0x115   : > { %v10997_v48 = vadd.f32 %v1705_v10, %v1616_v14  ;;  %v11002_v20 = vadd.f32 %v1668_v36, %v1579_v1  ;;  %v542_v14 = vshll.u32 %v440_v5, 16  ;;  %v9312_v1 = vld [vmem:[%s12484_s1 + $0x218] sm:$0xff]  ;;  %v1306_v36 = vrot.slane %v10818_v26, 1 }
 0x116   : > { %1756 = vmatmul.bf16.gmra.mxu2 %v1304_v28  ;;  %2078 = vmatmul.bf16.gmra.mxu0 %v533_v34  ;;  %v10271_v28 = vor.u32 %v10270_v61, %v10269_v19  ;;  %v441_v5 = vpack.c.b16 %v425_v62, %v425_v62 }
 0x117   : > { %2167 = vmatmul.bf16.gmra.mxu1 %v727_v32  ;;  %3121 = vmatpush.bf16.msra.mxu0 %v9312_v1  ;;  %v540_v32 = vor.u32 %v539_v8, %v535_v0  ;;  %v544_v3 = vrot.slane %v542_v14, 1  ;;  %v9777_v14 = vld [vmem:[%s10535_s10 + $0x60] sm:$0xf0] }
 0x118   : > { %v728_v40 = vrot.slane %v10271_v28, 1  ;;  %v9778_v28 = vld [vmem:[%s10535_s10 + $0x60] sm:$0xe] }
 0x119   : > { %1989 = vmatmul.bf16.gmra.mxu3 %v10734_v42  ;;  %v1619_v29 = vpop.f32.mrf.mxu2  ;;  %v9779_v45 = vor.u32 %v9778_v28, %v9777_v14 }
 0x11a   : > { %v730_v26 = vsel %vm706_vm1, %v728_v40, %v729_v12  ;;  %v554_v40 = vshll.u32 %v441_v5, 16 }
 0x11b   : > { %v1581_v42 = vpop.f32.mrf.mxu0  ;;  %v731_v62 = vrot.slane %v9779_v45, 1  ;;  %v9295_v45 = vld [vmem:[%s12484_s1 + $0x190] sm:$0xff] }
 0x11c   : > { %v1708_v46 = vpop.f32.mrf.mxu3  ;;  %v1670_v10 = vpop.f32.mrf.mxu1  ;;  %2944 = vmatpush.bf16.msra.mxu2 %v9295_v45 }
 0x11d   : > { %v11015_v59 = vadd.f32 %v1708_v46, %v1619_v29  ;;  %v11021_v34 = vadd.f32 %v1670_v10, %v1581_v42  ;;  %v1307_v46 = vsel %vm706_vm1, %v1305_v35, %v1306_v36  ;;  %v545_v42 = vsel %vm449_vm0, %v540_v32, %v544_v3  ;;  %v10273_v10 = vld [vmem:[%s10535_s10 + $0x6c] sm:$0xe] }
 0x11e   : > { %v10274_v36 = vor.u32 %v10273_v10, %v10553_v9 }
 0x121   : > { %v1621_v49 = vpop.f32.mrf.mxu2 }
 0x123   : > { %v1584_v61 = vpop.f32.mrf.mxu0 }
 0x124   : > { %v1710_v29 = vpop.f32.mrf.mxu3  ;;  %v1673_v1 = vpop.f32.mrf.mxu1 }
 0x125   : > { %v11025_v19 = vadd.f32 %v1710_v29, %v1621_v49  ;;  %v11031_v0 = vadd.f32 %v1673_v1, %v1584_v61  ;;  %v11040_v49 = vld [vmem:[%s10535_s10 + $0x6c] sm:$0xff]   ;;  %v732_v1 = vrot.slane %v441_v5, 1 }
 0x126   : > { %1761 = vmatmul.bf16.gmra.mxu2 %v1307_v46  ;;  %2083 = vmatmul.bf16.gmra.mxu0 %v545_v42  ;;  %v10275_v29 = vld [vmem:[%s10535_s10 + $0x6c] sm:$0xf0]  ;;  %v1309_v46 = vrot.slane %v10578_v22, 1  ;;  %v556_v42 = vrot.slane %v554_v40, 1  ;;  %v10276_v40 = vld [vmem:[%s10535_s10 + $0x6c] sm:$0xe] }
 0x127   : > { %12493 = vst [vmem:[#allocation9_spill] sm:$0xff] %v11025_v19  ;;  %2172 = vmatmul.bf16.gmra.mxu1 %v730_v26  ;;  %v282_v26 = vld [vmem:[%s10535_s10 + $0x74] sm:$0x1]  ;;  %v733_v22 = vsel %vm706_vm1, %v731_v62, %v732_v1  ;;  %v561_v5 = vshll.u32 %v11040_v49, 16 }
 0x128   : > { %v557_v28 = vsel %vm449_vm0, %v10834_v37, %v556_v42  ;;  %v9303_v37 = vld [vmem:[%s12484_s1 + $0x1d0] sm:$0xff] }
 0x129   : > { %1994 = vmatmul.bf16.gmra.mxu3 %v10989_v50  ;;  %v1624_v8 = vpop.f32.mrf.mxu2  ;;  %v1308_v50 = vrot.slane %v10274_v36, 1 }
 0x12a   : > { %3033 = vmatpush.bf16.msra.mxu3 %v9303_v37 }
 0x12b   : > { %v1586_v3 = vpop.f32.mrf.mxu0 }
 0x12c   : > { %v1713_v35 = vpop.f32.mrf.mxu3  ;;  %v1675_v12 = vpop.f32.mrf.mxu1 }
 0x12d   : > { %v11037_v32 = vadd.f32 %v1713_v35, %v1624_v8  ;;  %v11043_v61 = vadd.f32 %v1675_v12, %v1586_v3  ;;  %v1310_v8 = vsel %vm706_vm1, %v1308_v50, %v1309_v46  ;;  %v426_v3 = vunpack.c.l.b16 %v282_v26  ;;  %v9809_v50 = vld [vmem:[%s10535_s10 + $0x78] sm:$0xf0]  ;;  %v9810_v46 = vld [vmem:[%s10535_s10 + $0x78] sm:$0xe] }
 0x12e   : > { %v9811_v26 = vor.u32 %v9810_v46, %v9809_v50 }
 0x12f   : > { %12494 = vst [vmem:[#allocation10_spill] sm:$0xff] %v11037_v32  ;;  %v442_v12 = vpack.c.b16 %v426_v3, %v426_v3 }
 0x130   : > { %v1311_v45 = vrot.slane %v9811_v26, 1  ;;  %v10279_v26 = vld [vmem:[%s10535_s10 + $0x84] sm:$0xe] }
 0x131   : > { %v1626_v9 = vpop.f32.mrf.mxu2 }
 0x133   : > { %v2049_v14 = vpop.f32.mrf.mxu0 }
 0x134   : > { %v1715_v10 = vpop.f32.mrf.mxu3  ;;  %v2138_v36 = vpop.f32.mrf.mxu1 }
 0x135   : > { %v11048_v35 = vadd.f32 %v1715_v10, %v1626_v9  ;;  %v559_v9 = vshrl.u32 %v11040_v49, 16  ;;  %v563_v10 = vrot.slane %v561_v5, 1 }
 0x136   : > { %1766 = vmatmul.bf16.gmra.mxu2 %v1310_v8  ;;  %2088 = vmatmul.bf16.gmra.mxu0 %v557_v28  ;;  %v566_v8 = vshll.u32 %v442_v12, 16 }
 0x137   : > { %12495 = vst [vmem:[#allocation11_spill] sm:$0xff] %v11048_v35  ;;  %2177 = vmatmul.bf16.gmra.mxu1 %v733_v22  ;;  %v10277_v22 = vor.u32 %v10276_v40, %v10275_v29  ;;  %v9311_v35 = vld [vmem:[%s12484_s1 + $0x210] sm:$0xff]  ;;  %v564_v37 = vor.u32 %v563_v10, %v559_v9 }
 0x138   : > { %3122 = vmatpush.bf16.msra.mxu0 %v9311_v35  ;;  %v568_v50 = vrot.slane %v566_v8, 1 }
 0x139   : > { %1999 = vmatmul.bf16.gmra.mxu3 %v10805_v2  ;;  %v1727_v42 = vpop.f32.mrf.mxu2  ;;  %v734_v5 = vrot.slane %v10277_v22, 1 }
 0x13a   : > { %v1728_v62 = vadd.f32 %v1727_v42, %v10853_v38  ;;  %v1312_v38 = vrot.slane %v10625_v54, 1  ;;  %v735_v42 = vrot.slane %v442_v12, 1  ;;  %v569_v35 = vsel %vm449_vm0, %v564_v37, %v568_v50 }
 0x13b   : > { %v2051_v1 = vpop.f32.mrf.mxu0 }
 0x13c   : > { %v1960_v2 = vpop.f32.mrf.mxu3  ;;  %v2140_v3 = vpop.f32.mrf.mxu1 }
 0x13d   : > { %v1961_v28 = vadd.f32 %v1960_v2, %v1728_v62  ;;  %v283_v62 = vld [vmem:[%s10535_s10 + $0x80] sm:$0x1] }
 0x13e   : > { %v427_v54 = vunpack.c.l.b16 %v283_v62 }
 0x13f   : > { %v2050_v32 = vadd.f32 %v2049_v14, %v1961_v28  ;;  %v1313_v14 = vsel %vm706_vm1, %v1311_v45, %v1312_v38  ;;  %v9780_v45 = vld [vmem:[%s10535_s10 + $0x78] sm:$0xf0]  ;;  %v9781_v38 = vld [vmem:[%s10535_s10 + $0x78] sm:$0xe] }
 0x140   : > { %v443_v8 = vpack.c.b16 %v427_v54, %v427_v54 }
 0x141   : > { %v11070_v46 = vadd.f32 %v2138_v36, %v2050_v32  ;;  %v1729_v2 = vpop.f32.mrf.mxu2  ;;  %v736_v32 = vsel %vm706_vm1, %v734_v5, %v735_v42  ;;  %v9762_v36 = vld [vmem:[%s10535_s10 + $0x78] sm:$0xff]   ;;  %v10280_v5 = vor.u32 %v10279_v26, %v10648_v4 }
 0x142   : > { %v1730_v29 = vadd.f32 %v1729_v2, %v10866_v15  ;;  %v573_v15 = vshll.u32 %v9762_v36, 16  ;;  %v571_v62 = vshrl.u32 %v9762_v36, 16  ;;  %v738_v26 = vrot.slane %v443_v8, 1 }
 0x143   : > { %v2054_v19 = vpop.f32.mrf.mxu0  ;;  %v1314_v54 = vrot.slane %v10280_v5, 1 }
 0x144   : > { %v1962_v40 = vpop.f32.mrf.mxu3  ;;  %v2143_v10 = vpop.f32.mrf.mxu1 }
 0x145   : > { %v1963_v9 = vadd.f32 %v1962_v40, %v1730_v29  ;;  %v9782_v40 = vor.u32 %v9781_v38, %v9780_v45 }
 0x146   : > { %1771 = vmatmul.bf16.gmra.mxu2 %v1313_v14  ;;  %2093 = vmatmul.bf16.gmra.mxu0 %v569_v35  ;;  %v11087_v14 = vld [vmem:[%s10535_s10 + $0x84] sm:$0xff]  }
 0x147   : > { %v2052_v12 = vadd.f32 %v2051_v1, %v1963_v9  ;;  %2182 = vmatmul.bf16.gmra.mxu1 %v736_v32  ;;  %v575_v1 = vrot.slane %v573_v15, 1  ;;  %v1315_v9 = vrot.slane %v10669_v24, 1  ;;  %v737_v4 = vrot.slane %v9782_v40, 1  ;;  %v9302_v40 = vld [vmem:[%s12484_s1 + $0x1c8] sm:$0xff] }
 0x148   : > { %3034 = vmatpush.bf16.msra.mxu3 %v9302_v40  ;;  %v285_v40 = vld [vmem:[%s10535_s10 + $0x98] sm:$0x1] }
 0x149   : > { %2004 = vmatmul.bf16.gmra.mxu3 %v11040_v49  ;;  %v11080_v28 = vadd.f32 %v2140_v3, %v2052_v12  ;;  %v1732_v22 = vpop.f32.mrf.mxu2  ;;  %v578_v49 = vshll.u32 %v443_v8, 16  ;;  %v10281_v3 = vld [vmem:[%s10535_s10 + $0x84] sm:$0xf0]  ;;  %v576_v32 = vor.u32 %v575_v1, %v571_v62  ;;  %v1316_v38 = vsel %vm706_vm1, %v1314_v54, %v1315_v9  ;;  %v10282_v1 = vld [vmem:[%s10535_s10 + $0x84] sm:$0xe] }
 0x14a   : > { %v1733_v37 = vadd.f32 %v1732_v22, %v10879_v44  ;;  %v284_v22 = vld [vmem:[%s10535_s10 + $0x8c] sm:$0x1]  ;;  %v9812_v54 = vld [vmem:[%s10535_s10 + $0x90] sm:$0xf0]  ;;  %v9813_v9 = vld [vmem:[%s10535_s10 + $0x90] sm:$0xe] }
 0x14b   : > { %v2056_v42 = vpop.f32.mrf.mxu0  ;;  %v580_v44 = vrot.slane %v578_v49, 1  ;;  %v428_v5 = vunpack.c.l.b16 %v284_v22 }
 0x14c   : > { %v1965_v50 = vpop.f32.mrf.mxu3  ;;  %v2145_v29 = vpop.f32.mrf.mxu1 }
 0x14d   : > { %v1966_v2 = vadd.f32 %v1965_v50, %v1733_v37  ;;  %v444_v49 = vpack.c.b16 %v428_v5, %v428_v5 }
 0x14f   : > { %v2055_v35 = vadd.f32 %v2054_v19, %v1966_v2  ;;  %v581_v19 = vsel %vm449_vm0, %v576_v32, %v580_v44  ;;  %v9294_v2 = vld [vmem:[%s12484_s1 + $0x188] sm:$0xff] }
 0x150   : > { %2945 = vmatpush.bf16.msra.mxu2 %v9294_v2  ;;  %v741_v2 = vrot.slane %v444_v49, 1 }
 0x151   : > { %v11091_v12 = vadd.f32 %v2143_v10, %v2055_v35  ;;  %v1734_v15 = vpop.f32.mrf.mxu2  ;;  %v739_v10 = vsel %vm706_vm1, %v737_v4, %v738_v26  ;;  %v9814_v4 = vor.u32 %v9813_v9, %v9812_v54  ;;  %v583_v26 = vshrl.u32 %v11087_v14, 16 }
 0x152   : > { %v1735_v37 = vadd.f32 %v1734_v15, %v10890_v25  ;;  %v585_v25 = vshll.u32 %v11087_v14, 16  ;;  %v590_v15 = vshll.u32 %v444_v49, 16 }
 0x153   : > { %v2059_v45 = vpop.f32.mrf.mxu0  ;;  %v1317_v5 = vrot.slane %v9814_v4, 1 }
 0x154   : > { %v1967_v50 = vpop.f32.mrf.mxu3  ;;  %v2148_v62 = vpop.f32.mrf.mxu1  ;;  %v587_v22 = vrot.slane %v585_v25, 1 }
 0x155   : > { %v1968_v24 = vadd.f32 %v1967_v50, %v1735_v37 }
 0x156   : > { %1776 = vmatmul.bf16.gmra.mxu2 %v1316_v38  ;;  %2098 = vmatmul.bf16.gmra.mxu0 %v581_v19  ;;  %v10283_v38 = vor.u32 %v10282_v1, %v10281_v3 }
 0x157   : > { %v2057_v8 = vadd.f32 %v2056_v42, %v1968_v24  ;;  %2187 = vmatmul.bf16.gmra.mxu1 %v739_v10  ;;  %v588_v24 = vor.u32 %v587_v22, %v583_v26  ;;  %v592_v10 = vrot.slane %v590_v15, 1  ;;  %v9763_v26 = vld [vmem:[%s10535_s10 + $0x90] sm:$0xff]  }
 0x158   : > { %v740_v25 = vrot.slane %v10283_v38, 1  ;;  %v9783_v38 = vld [vmem:[%s10535_s10 + $0x90] sm:$0xf0] }
 0x159   : > { %2009 = vmatmul.bf16.gmra.mxu3 %v9762_v36  ;;  %v11106_v35 = vadd.f32 %v2145_v29, %v2057_v8  ;;  %v1737_v32 = vpop.f32.mrf.mxu2  ;;  %v9310_v29 = vld [vmem:[%s12484_s1 + $0x208] sm:$0xff] }
 0x15a   : > { %v1738_v36 = vadd.f32 %v1737_v32, %v10900_v39  ;;  %3123 = vmatpush.bf16.msra.mxu0 %v9310_v29  ;;  %v1318_v39 = vrot.slane %v10693_v51, 1  ;;  %v593_v32 = vsel %vm449_vm0, %v588_v24, %v592_v10  ;;  %v429_v51 = vunpack.c.l.b16 %v285_v40  ;;  %v9784_v29 = vld [vmem:[%s10535_s10 + $0x90] sm:$0xe] }
 0x15b   : > { %v2061_v44 = vpop.f32.mrf.mxu0  ;;  %v595_v10 = vshrl.u32 %v9763_v26, 16  ;;  %v9785_v40 = vor.u32 %v9784_v29, %v9783_v38 }
 0x15c   : > { %v1970_v42 = vpop.f32.mrf.mxu3  ;;  %v2150_v50 = vpop.f32.mrf.mxu1  ;;  %v445_v22 = vpack.c.b16 %v429_v51, %v429_v51 }
 0x15d   : > { %v1971_v37 = vadd.f32 %v1970_v42, %v1738_v36  ;;  %v10285_v36 = vld [vmem:[%s10535_s10 + $0x9c] sm:$0xe] }
 0x15f   : > { %v2060_v19 = vadd.f32 %v2059_v45, %v1971_v37  ;;  %v1319_v45 = vsel %vm706_vm1, %v1317_v5, %v1318_v39  ;;  %v10286_v39 = vor.u32 %v10285_v36, %v10704_v63  ;;  %v743_v63 = vrot.slane %v9785_v40, 1  ;;  %v9816_v40 = vld [vmem:[%s10535_s10 + $0xa8] sm:$0xe] }
 0x160   : > { %v744_v36 = vrot.slane %v445_v22, 1 }
 0x161   : > { %v11116_v8 = vadd.f32 %v2148_v62, %v2060_v19  ;;  %v1739_v54 = vpop.f32.mrf.mxu2  ;;  %v742_v62 = vsel %vm706_vm1, %v740_v25, %v741_v2 }
 0x162   : > { %v1740_v3 = vadd.f32 %v1739_v54, %v10916_v27  ;;  %v597_v27 = vshll.u32 %v9763_v26, 16  ;;  %v11133_v54 = vld [vmem:[%s10535_s10 + $0x9c] sm:$0xff]  }
 0x163   : > { %v2064_v9 = vpop.f32.mrf.mxu0 }
 0x164   : > { %v1972_v1 = vpop.f32.mrf.mxu3  ;;  %v2153_v4 = vpop.f32.mrf.mxu1 }
 0x165   : > { %v1973_v42 = vadd.f32 %v1972_v1, %v1740_v3  ;;  %v1320_v1 = vrot.slane %v10286_v39, 1 }
 0x166   : > { %1781 = vmatmul.bf16.gmra.mxu2 %v1319_v45  ;;  %2103 = vmatmul.bf16.gmra.mxu0 %v593_v32  ;;  %v1321_v45 = vrot.slane %v10725_v21, 1 }
 0x167   : > { %v2062_v49 = vadd.f32 %v2061_v44, %v1973_v42  ;;  %2192 = vmatmul.bf16.gmra.mxu1 %v742_v62  ;;  %v599_v44 = vrot.slane %v597_v27, 1  ;;  %v286_v42 = vld [vmem:[%s10535_s10 + $0xa4] sm:$0x1] }
 0x168   : > { %v1322_v38 = vsel %vm706_vm1, %v1320_v1, %v1321_v45  ;;  %v430_v29 = vunpack.c.l.b16 %v286_v42 }
 0x169   : > { %2014 = vmatmul.bf16.gmra.mxu3 %v11087_v14  ;;  %v11126_v15 = vadd.f32 %v2150_v50, %v2062_v49  ;;  %v1742_v37 = vpop.f32.mrf.mxu2  ;;  %v602_v14 = vshll.u32 %v445_v22, 16  ;;  %v10287_v50 = vld [vmem:[%s10535_s10 + $0x9c] sm:$0xf0]  ;;  %v600_v32 = vor.u32 %v599_v44, %v595_v10 }
 0x16a   : > { %v1743_v19 = vadd.f32 %v1742_v37, %v10929_v55  ;;  %v446_v39 = vpack.c.b16 %v430_v29, %v430_v29  ;;  %v9293_v10 = vld [vmem:[%s12484_s1 + $0x180] sm:$0xff] }
 0x16b   : > { %v2066_v24 = vpop.f32.mrf.mxu0  ;;  %v604_v55 = vrot.slane %v602_v14, 1  ;;  %v9301_v44 = vld [vmem:[%s12484_s1 + $0x1c0] sm:$0xff]  ;;  %2946 = vmatpush.bf16.msra.mxu2 %v9293_v10 }
 0x16c   : > { %v1975_v5 = vpop.f32.mrf.mxu3  ;;  %v2155_v2 = vpop.f32.mrf.mxu1  ;;  %3035 = vmatpush.bf16.msra.mxu3 %v9301_v44 }
 0x16d   : > { %v1976_v25 = vadd.f32 %v1975_v5, %v1743_v19  ;;  %v10288_v5 = vld [vmem:[%s10535_s10 + $0x9c] sm:$0xe] }
 0x16f   : > { %v2065_v3 = vadd.f32 %v2064_v9, %v1976_v25  ;;  %v605_v9 = vsel %vm449_vm0, %v600_v32, %v604_v55  ;;  %v9815_v25 = vld [vmem:[%s10535_s10 + $0xa8] sm:$0xf0]  ;;  %v607_v32 = vshrl.u32 %v11133_v54, 16 }
 0x170   : > { %v9817_v45 = vor.u32 %v9816_v40, %v9815_v25  ;;  %v10291_v25 = vld [vmem:[%s10535_s10 + $0xb4] sm:$0xe] }
 0x171   : > { %v11137_v51 = vadd.f32 %v2153_v4, %v2065_v3  ;;  %v1744_v62 = vpop.f32.mrf.mxu2  ;;  %v745_v4 = vsel %vm706_vm1, %v743_v63, %v744_v36  ;;  %v614_v63 = vshll.u32 %v446_v39, 16 }
 0x172   : > { %v1745_v49 = vadd.f32 %v1744_v62, %v10941_v7  ;;  %v609_v7 = vshll.u32 %v11133_v54, 16  ;;  %v10289_v62 = vor.u32 %v10288_v5, %v10287_v50 }
 0x173   : > { %v2069_v37 = vpop.f32.mrf.mxu0 }
 0x174   : > { %v1977_v27 = vpop.f32.mrf.mxu3  ;;  %v2158_v19 = vpop.f32.mrf.mxu1  ;;  %v611_v55 = vrot.slane %v609_v7, 1 }
 0x175   : > { %v1978_v21 = vadd.f32 %v1977_v27, %v1745_v49  ;;  %v1323_v27 = vrot.slane %v9817_v45, 1 }
 0x176   : > { %1786 = vmatmul.bf16.gmra.mxu2 %v1322_v38  ;;  %2108 = vmatmul.bf16.gmra.mxu0 %v605_v9  ;;  %v612_v38 = vor.u32 %v611_v55, %v607_v32  ;;  %v616_v9 = vrot.slane %v614_v63, 1  ;;  %v9786_v55 = vld [vmem:[%s10535_s10 + $0xa8] sm:$0xf0]  ;;  %v9787_v63 = vld [vmem:[%s10535_s10 + $0xa8] sm:$0xe] }
 0x177   : > { %v2067_v22 = vadd.f32 %v2066_v24, %v1978_v21  ;;  %2197 = vmatmul.bf16.gmra.mxu1 %v745_v4  ;;  %v746_v21 = vrot.slane %v10289_v62, 1  ;;  %v747_v4 = vrot.slane %v446_v39, 1 }
 0x178   : > { %v617_v44 = vsel %vm449_vm0, %v612_v38, %v616_v9  ;;  %v9788_v9 = vor.u32 %v9787_v63, %v9786_v55  ;;  %v10294_v55 = vld [vmem:[%s10535_s10 + $0xb4] sm:$0xe] }
 0x179   : > { %2019 = vmatmul.bf16.gmra.mxu3 %v9763_v26  ;;  %v11152_v14 = vadd.f32 %v2155_v2, %v2067_v22  ;;  %v1747_v3 = vpop.f32.mrf.mxu2  ;;  %v9309_v2 = vld [vmem:[%s12484_s1 + $0x200] sm:$0xff]  ;;  %v287_v22 = vld [vmem:[%s10535_s10 + $0xb0] sm:$0x1] }
 0x17a   : > { %v1748_v26 = vadd.f32 %v1747_v3, %v10951_v57  ;;  %3124 = vmatpush.bf16.msra.mxu0 %v9309_v2  ;;  %v1324_v57 = vrot.slane %v10749_v56, 1  ;;  %v431_v56 = vunpack.c.l.b16 %v287_v22  ;;  %v10292_v2 = vor.u32 %v10291_v25, %v10763_v11 }
 0x17b   : > { %v2071_v1 = vpop.f32.mrf.mxu0  ;;  %v749_v11 = vrot.slane %v9788_v9, 1 }
 0x17c   : > { %v1980_v24 = vpop.f32.mrf.mxu3  ;;  %v2160_v42 = vpop.f32.mrf.mxu1  ;;  %v1326_v22 = vrot.slane %v10292_v2, 1  ;;  %v9819_v2 = vld [vmem:[%s10535_s10 + $0xc0] sm:$0xe] }
 0x17d   : > { %v1981_v36 = vadd.f32 %v1980_v24, %v1748_v26  ;;  %v9764_v26 = vld [vmem:[%s10535_s10 + $0xa8] sm:$0xff]   ;;  %v447_v24 = vpack.c.b16 %v431_v56, %v431_v56 }
 0x17f   : > { %v2070_v49 = vadd.f32 %v2069_v37, %v1981_v36  ;;  %v1325_v37 = vsel %vm706_vm1, %v1323_v27, %v1324_v57  ;;  %v619_v27 = vshrl.u32 %v9764_v26, 16 }
 0x181   : > { %v11162_v29 = vadd.f32 %v2158_v19, %v2070_v49  ;;  %v1749_v7 = vpop.f32.mrf.mxu2  ;;  %v748_v19 = vsel %vm706_vm1, %v746_v21, %v747_v4  ;;  %v11179_v21 = vld [vmem:[%s10535_s10 + $0xb4] sm:$0xff]  }
 0x182   : > { %v1750_v50 = vadd.f32 %v1749_v7, %v10967_v23  ;;  %v621_v23 = vshll.u32 %v9764_v26, 16  ;;  %v1327_v7 = vrot.slane %v10784_v33, 1 }
 0x183   : > { %v2074_v10 = vpop.f32.mrf.mxu0 }
 0x184   : > { %v1982_v5 = vpop.f32.mrf.mxu3  ;;  %v2163_v3 = vpop.f32.mrf.mxu1 }
 0x185   : > { %v1983_v40 = vadd.f32 %v1982_v5, %v1750_v50 }
 0x186   : > { %1791 = vmatmul.bf16.gmra.mxu2 %v1325_v37  ;;  %2113 = vmatmul.bf16.gmra.mxu0 %v617_v44  ;;  %v750_v37 = vrot.slane %v447_v24, 1  ;;  %v288_v44 = vld [vmem:[%s10535_s10 + $0xbc] sm:$0x1] }
 0x187   : > { %v2072_v39 = vadd.f32 %v2071_v1, %v1983_v40  ;;  %2202 = vmatmul.bf16.gmra.mxu1 %v748_v19  ;;  %v623_v1 = vrot.slane %v621_v23, 1  ;;  %v432_v33 = vunpack.c.l.b16 %v288_v44 }
 0x189   : > { %2024 = vmatmul.bf16.gmra.mxu3 %v11133_v54  ;;  %v11172_v45 = vadd.f32 %v2160_v42, %v2072_v39  ;;  %v1752_v32 = vpop.f32.mrf.mxu2  ;;  %v626_v54 = vshll.u32 %v447_v24, 16  ;;  %v10293_v42 = vld [vmem:[%s10535_s10 + $0xb4] sm:$0xf0]  ;;  %v624_v50 = vor.u32 %v623_v1, %v619_v27  ;;  %v1328_v39 = vsel %vm706_vm1, %v1326_v22, %v1327_v7 }
 0x18a   : > { %v1753_v36 = vadd.f32 %v1752_v32, %v10980_v41  ;;  %v448_v63 = vpack.c.b16 %v432_v33, %v432_v33 }
 0x18b   : > { %v2076_v49 = vpop.f32.mrf.mxu0  ;;  %v628_v41 = vrot.slane %v626_v54, 1 }
 0x18c   : > { %v1985_v62 = vpop.f32.mrf.mxu3  ;;  %v2165_v38 = vpop.f32.mrf.mxu1 }
 0x18d   : > { %v1986_v57 = vadd.f32 %v1985_v62, %v1753_v36  ;;  %v9818_v62 = vld [vmem:[%s10535_s10 + $0xc0] sm:$0xf0] }
 0x18e   : > { %v9820_v9 = vor.u32 %v9819_v2, %v9818_v62  ;;  %v9829_v2 = vld [vmem:[%s10535_s10 + $0x18] sm:$0xf0] }
 0x18f   : > { %v2075_v4 = vadd.f32 %v2074_v10, %v1986_v57  ;;  %v629_v10 = vsel %vm449_vm0, %v624_v50, %v628_v41  ;;  %v10295_v50 = vor.u32 %v10294_v55, %v10293_v42 }
 0x191   : > { %v11183_v5 = vadd.f32 %v2163_v3, %v2075_v4  ;;  %v1754_v25 = vpop.f32.mrf.mxu2  ;;  %v751_v3 = vsel %vm706_vm1, %v749_v11, %v750_v37  ;;  %v631_v4 = vshrl.u32 %v11179_v21, 16  ;;  %v1329_v11 = vrot.slane %v9820_v9, 1 }
 0x192   : > { %v1755_v56 = vadd.f32 %v1754_v25, %v10992_v47  ;;  %v633_v47 = vshll.u32 %v11179_v21, 16 }
 0x193   : > { %v2079_v19 = vpop.f32.mrf.mxu0 }
 0x194   : > { %v1987_v40 = vpop.f32.mrf.mxu3  ;;  %v2168_v32 = vpop.f32.mrf.mxu1  ;;  %v635_v22 = vrot.slane %v633_v47, 1 }
 0x195   : > { %v1988_v23 = vadd.f32 %v1987_v40, %v1755_v56  ;;  %v753_v56 = vrot.slane %v448_v63, 1 }
 0x196   : > { %1796 = vmatmul.bf16.gmra.mxu2 %v1328_v39  ;;  %2118 = vmatmul.bf16.gmra.mxu0 %v629_v10  ;;  %v636_v37 = vor.u32 %v635_v22, %v631_v4  ;;  %v8823_v39 = vld [vmem:[%s10535_s10 + $0x20] sm:$0x1] }
 0x197   : > { %v2077_v24 = vadd.f32 %v2076_v49, %v1988_v23  ;;  %2207 = vmatmul.bf16.gmra.mxu1 %v751_v3  ;;  %v638_v49 = vshll.u32 %v448_v63, 16 }
 0x199   : > { %2029 = vmatmul.bf16.gmra.mxu3 %v9764_v26  ;;  %v11192_v36 = vadd.f32 %v2165_v38, %v2077_v24  ;;  %v1757_v27 = vpop.f32.mrf.mxu2  ;;  %v1330_v38 = vrot.slane %v10820_v6, 1  ;;  %v640_v44 = vrot.slane %v638_v49, 1  ;;  %v2395_v24 = vunpack.c.l.b16 %v8823_v39 }
 0x19a   : > { %v1758_v1 = vadd.f32 %v1757_v27, %v11002_v20  ;;  %v752_v20 = vrot.slane %v10295_v50, 1  ;;  %v9830_v27 = vld [vmem:[%s10535_s10 + $0x18] sm:$0xe] }
 0x19b   : > { %v2081_v57 = vpop.f32.mrf.mxu0  ;;  %v1331_v42 = vsel %vm706_vm1, %v1329_v11, %v1330_v38  ;;  %v2411_v62 = vpack.c.b16 %v2395_v24, %v2395_v24  ;;  %v10296_v11 = vld [vmem:[%s10535_s10 + $0x24] sm:$0xf0]  ;;  %v10297_v24 = vld [vmem:[%s10535_s10 + $0x24] sm:$0xe] }
 0x19c   : > { %v1990_v54 = vpop.f32.mrf.mxu3  ;;  %v2170_v7 = vpop.f32.mrf.mxu1  ;;  %v754_v55 = vsel %vm706_vm1, %v752_v20, %v753_v56 }
 0x19d   : > { %v1991_v26 = vadd.f32 %v1990_v54, %v1758_v1 }
 0x19f   : > { %v2080_v41 = vadd.f32 %v2079_v19, %v1991_v26  ;;  %v641_v19 = vsel %vm449_vm0, %v636_v37, %v640_v44  ;;  %v2684_v44 = vrot.slane %v2411_v62, 1 }
 0x1a1   : > { %v11199_v25 = vadd.f32 %v2168_v32, %v2080_v41  ;;  %v1759_v40 = vpop.f32.mrf.mxu2  ;;  %v9821_v32 = vld [vmem:[%s10535_s10 + $0x18] sm:$0xff]   ;;  %v8793_v41 = vld [vmem:[%s10535_s10 + $0x24] sm:$0xff]  }
 0x1a2   : > { %v1760_v10 = vadd.f32 %v1759_v40, %v11021_v34  ;;  %v2430_v34 = vshll.u32 %v9821_v32, 16  ;;  %v2428_v22 = vshrl.u32 %v9821_v32, 16  ;;  %v8824_v40 = vld [vmem:[%s10535_s10 + $0x2c] sm:$0x1] }
 0x1a3   : > { %v2084_v23 = vpop.f32.mrf.mxu0 }
 0x1a4   : > { %v1992_v33 = vpop.f32.mrf.mxu3  ;;  %v2173_v3 = vpop.f32.mrf.mxu1  ;;  %v2432_v49 = vrot.slane %v2430_v34, 1  ;;  %v2442_v34 = vshll.u32 %v8793_v41, 16 }
 0x1a5   : > { %v1993_v6 = vadd.f32 %v1992_v33, %v1760_v10 }
 0x1a6   : > { %1801 = vmatmul.bf16.gmra.mxu2 %v1331_v42  ;;  %2123 = vmatmul.bf16.gmra.mxu0 %v641_v19 }
 0x1a7   : > { %v2082_v47 = vadd.f32 %v2081_v57, %v1993_v6  ;;  %2212 = vmatmul.bf16.gmra.mxu1 %v754_v55  ;;  %v9831_v57 = vor.u32 %v9830_v27, %v9829_v2 }
 0x1a9   : > { %2034 = vmatmul.bf16.gmra.mxu3 %v11179_v21  ;;  %v11208_v63 = vadd.f32 %v2170_v7, %v2082_v47  ;;  %v1762_v1 = vpop.f32.mrf.mxu2  ;;  %v2435_v21 = vshll.u32 %v2411_v62, 16  ;;  %v2433_v7 = vor.u32 %v2432_v49, %v2428_v22  ;;  %v2683_v37 = vrot.slane %v9831_v57, 1 }
 0x1aa   : > { %v1763_v54 = vadd.f32 %v1762_v1, %v11031_v0  ;;  %v2440_v22 = vshrl.u32 %v8793_v41, 16  ;;  %v2444_v49 = vrot.slane %v2442_v34, 1 }
 0x1ab   : > { %v2086_v4 = vpop.f32.mrf.mxu0  ;;  %v2437_v56 = vrot.slane %v2435_v21, 1  ;;  %v2685_v42 = vsel %vm706_vm1, %v2683_v37, %v2684_v44  ;;  %v8825_v44 = vld [vmem:[%s10535_s10 + $0x38] sm:$0x1] }
 0x1ac   : > { %v1995_v9 = vpop.f32.mrf.mxu3  ;;  %v2175_v50 = vpop.f32.mrf.mxu1 }
 0x1ad   : > { %v1996_v26 = vadd.f32 %v1995_v9, %v1763_v54  ;;  %v2438_v6 = vsel %vm449_vm0, %v2433_v7, %v2437_v56  ;;  %v10298_v54 = vor.u32 %v10297_v24, %v10296_v11  ;;  %v9833_v24 = vld [vmem:[%s10535_s10 + $0x30] sm:$0xe] }
 0x1af   : > { %v2085_v38 = vadd.f32 %v2084_v23, %v1996_v26  ;;  %v2396_v23 = vunpack.c.l.b16 %v8824_v40 }
 0x1b1   : > { %v11215_v20 = vadd.f32 %v2173_v3, %v2085_v38  ;;  %v1764_v0 = vpop.f32.mrf.mxu2  ;;  %v2412_v62 = vpack.c.b16 %v2396_v23, %v2396_v23  ;;  %v2445_v38 = vor.u32 %v2444_v49, %v2440_v22  ;;  %v9832_v23 = vld [vmem:[%s10535_s10 + $0x30] sm:$0xf0]  ;;  %v8797_v22 = vld [vmem:[%s10535_s10 + $0x3c] sm:$0xff]  }
 0x1b2   : > { %v1765_v39 = vadd.f32 %v1764_v0, %v11043_v61  ;;  %v10299_v49 = vld [vmem:[%s10535_s10 + $0x3c] sm:$0xf0] }
 0x1b3   : > { %v2089_v33 = vpop.f32.mrf.mxu0  ;;  %v2447_v57 = vshll.u32 %v2412_v62, 16  ;;  %v2687_v21 = vrot.slane %v2412_v62, 1 }
 0x1b4   : > { %v1997_v10 = vpop.f32.mrf.mxu3  ;;  %v2178_v55 = vpop.f32.mrf.mxu1 }
 0x1b5   : > { %v1998_v19 = vadd.f32 %v1997_v10, %v1765_v39  ;;  %v2449_v7 = vrot.slane %v2447_v57, 1 }
 0x1b6   : > { %2947 = vmatmul.bf16.vlgmr.msra.gmra.mxu2 %v9821_v32  ;;  %3125 = vmatmul.bf16.vlgmr.msra.gmra.mxu0 %v2685_v42  ;;  %v2397_v42 = vunpack.c.l.b16 %v8825_v44 }
 0x1b7   : > { %v2087_v47 = vadd.f32 %v2086_v4, %v1998_v19  ;;  %v2686_v4 = vrot.slane %v10298_v54, 1  ;;  %v2450_v39 = vsel %vm449_vm0, %v2445_v38, %v2449_v7  ;;  %v8826_v7 = vld [vmem:[%s10535_s10 + $0x44] sm:$0x1] }
 0x1b9   : > { %3036 = vmatmul.bf16.vlgmr.msra.gmra.mxu3 %v2438_v6  ;;  %v11222_v3 = vadd.f32 %v2175_v50, %v2087_v47  ;;  %v1767_v2 = vpop.f32.mrf.mxu2  ;;  %v2688_v0 = vsel %vm706_vm1, %v2686_v4, %v2687_v21 }
 0x1ba   : > { %v1768_v61 = vadd.f32 %v1767_v2, %v10864_v58 }
 0x1bb   : > { %v2091_v1 = vpop.f32.mrf.mxu0 }
 0x1bc   : > { %v2000_v27 = vpop.f32.mrf.mxu3  ;;  %v2180_v26 = vpop.f32.mrf.mxu1 }
 0x1bd   : > { %v2001_v9 = vadd.f32 %v2000_v27, %v1768_v61 }
 0x1bf   : > { %v2090_v32 = vadd.f32 %v2089_v33, %v2001_v9  ;;  %v9822_v33 = vld [vmem:[%s10535_s10 + $0x30] sm:$0xff]  }
 0x1c0   : > { %v2454_v6 = vshll.u32 %v9822_v33, 16  ;;  %v2452_v61 = vshrl.u32 %v9822_v33, 16 }
 0x1c1   : > { %v11225_v50 = vadd.f32 %v2178_v55, %v2090_v32  ;;  %v1769_v37 = vpop.f32.mrf.mxu2  ;;  %v2413_v55 = vpack.c.b16 %v2397_v42, %v2397_v42  ;;  %v10300_v42 = vld [vmem:[%s10535_s10 + $0x3c] sm:$0xe] }
 0x1c2   : > { %v1770_v58 = vadd.f32 %v1769_v37, %v10873_v17  ;;  %v2456_v27 = vrot.slane %v2454_v6, 1  ;;  %v2466_v6 = vshll.u32 %v8797_v22, 16 }
 0x1c3   : > { %v2094_v11 = vpop.f32.mrf.mxu0  ;;  %v2690_v4 = vrot.slane %v2413_v55, 1 }
 0x1c4   : > { %v2002_v56 = vpop.f32.mrf.mxu3  ;;  %v2183_v10 = vpop.f32.mrf.mxu1 }
 0x1c5   : > { %v2003_v40 = vadd.f32 %v2002_v56, %v1770_v58 }
 0x1c6   : > { %2952 = vmatmul.bf16.gmra.mxu2 %v8793_v41  ;;  %3130 = vmatmul.bf16.gmra.mxu0 %v2688_v0  ;;  %v9834_v41 = vor.u32 %v9833_v24, %v9832_v23 }
 0x1c7   : > { %v2092_v19 = vadd.f32 %v2091_v1, %v2003_v40  ;;  %v2459_v1 = vshll.u32 %v2413_v55, 16 }
 0x1c8   : > { %v2689_v32 = vrot.slane %v9834_v41, 1 }
 0x1c9   : > { %3041 = vmatmul.bf16.gmra.mxu3 %v2450_v39  ;;  %v11232_v17 = vadd.f32 %v2180_v26, %v2092_v19  ;;  %v1772_v47 = vpop.f32.mrf.mxu2  ;;  %v2457_v26 = vor.u32 %v2456_v27, %v2452_v61  ;;  %v2461_v38 = vrot.slane %v2459_v1, 1  ;;  %v2398_v39 = vunpack.c.l.b16 %v8826_v7 }
 0x1ca   : > { %v1773_v34 = vadd.f32 %v1772_v47, %v10884_v53  ;;  %v2691_v56 = vsel %vm706_vm1, %v2689_v32, %v2690_v4  ;;  %v2464_v61 = vshrl.u32 %v8797_v22, 16  ;;  %v2468_v27 = vrot.slane %v2466_v6, 1  ;;  %v8827_v4 = vld [vmem:[%s10535_s10 + $0x50] sm:$0x1] }
 0x1cb   : > { %v2096_v2 = vpop.f32.mrf.mxu0  ;;  %v2462_v40 = vsel %vm449_vm0, %v2457_v26, %v2461_v38  ;;  %v2414_v55 = vpack.c.b16 %v2398_v39, %v2398_v39  ;;  %v9835_v39 = vld [vmem:[%s10535_s10 + $0x48] sm:$0xf0] }
 0x1cc   : > { %v2005_v62 = vpop.f32.mrf.mxu3  ;;  %v2185_v9 = vpop.f32.mrf.mxu1 }
 0x1cd   : > { %v2006_v54 = vadd.f32 %v2005_v62, %v1773_v34  ;;  %v10301_v34 = vor.u32 %v10300_v42, %v10299_v49  ;;  %v2471_v41 = vshll.u32 %v2414_v55, 16  ;;  %v9836_v42 = vld [vmem:[%s10535_s10 + $0x48] sm:$0xe] }
 0x1cf   : > { %v2095_v57 = vadd.f32 %v2094_v11, %v2006_v54  ;;  %v2693_v54 = vrot.slane %v2414_v55, 1 }
 0x1d1   : > { %v11239_v21 = vadd.f32 %v2183_v10, %v2095_v57  ;;  %v1774_v53 = vpop.f32.mrf.mxu2  ;;  %v2473_v57 = vrot.slane %v2471_v41, 1 }
 0x1d2   : > { %v1775_v37 = vadd.f32 %v1774_v53, %v10895_v31 }
 0x1d3   : > { %v2099_v58 = vpop.f32.mrf.mxu0 }
 0x1d4   : > { %v2007_v44 = vpop.f32.mrf.mxu3  ;;  %v2188_v10 = vpop.f32.mrf.mxu1 }
 0x1d5   : > { %v2008_v0 = vadd.f32 %v2007_v44, %v1775_v37  ;;  %v9823_v44 = vld [vmem:[%s10535_s10 + $0x48] sm:$0xff]  }
 0x1d6   : > { %2957 = vmatmul.bf16.gmra.mxu2 %v9822_v33  ;;  %3135 = vmatmul.bf16.gmra.mxu0 %v2691_v56 }
 0x1d7   : > { %v2097_v11 = vadd.f32 %v2096_v2, %v2008_v0  ;;  %v2692_v2 = vrot.slane %v10301_v34, 1  ;;  %v2478_v0 = vshll.u32 %v9823_v44, 16 }
 0x1d9   : > { %3046 = vmatmul.bf16.gmra.mxu3 %v2462_v40  ;;  %v11246_v19 = vadd.f32 %v2185_v9, %v2097_v11  ;;  %v1777_v23 = vpop.f32.mrf.mxu2  ;;  %v2469_v9 = vor.u32 %v2468_v27, %v2464_v61  ;;  %v2694_v53 = vsel %vm706_vm1, %v2692_v2, %v2693_v54  ;;  %v10302_v61 = vld [vmem:[%s10535_s10 + $0x54] sm:$0xf0] }
 0x1da   : > { %v1778_v31 = vadd.f32 %v1777_v23, %v10913_v60 }
 0x1db   : > { %v2101_v47 = vpop.f32.mrf.mxu0  ;;  %v2474_v37 = vsel %vm449_vm0, %v2469_v9, %v2473_v57  ;;  %v8828_v57 = vld [vmem:[%s10535_s10 + $0x5c] sm:$0x1] }
 0x1dc   : > { %v2010_v24 = vpop.f32.mrf.mxu3  ;;  %v2190_v32 = vpop.f32.mrf.mxu1 }
 0x1dd   : > { %v2011_v62 = vadd.f32 %v2010_v24, %v1778_v31  ;;  %v2476_v31 = vshrl.u32 %v9823_v44, 16  ;;  %v9837_v24 = vor.u32 %v9836_v42, %v9835_v39 }
 0x1df   : > { %v2100_v33 = vadd.f32 %v2099_v58, %v2011_v62  ;;  %v2399_v58 = vunpack.c.l.b16 %v8827_v4  ;;  %v8801_v62 = vld [vmem:[%s10535_s10 + $0x54] sm:$0xff]  }
 0x1e1   : > { %v11249_v1 = vadd.f32 %v2188_v10, %v2100_v33  ;;  %v1779_v26 = vpop.f32.mrf.mxu2  ;;  %v2695_v33 = vrot.slane %v9837_v24, 1 }
 0x1e2   : > { %v1780_v60 = vadd.f32 %v1779_v26, %v10923_v18  ;;  %v2415_v18 = vpack.c.b16 %v2399_v58, %v2399_v58 }
 0x1e3   : > { %v2104_v38 = vpop.f32.mrf.mxu0 }
 0x1e4   : > { %v2012_v49 = vpop.f32.mrf.mxu3  ;;  %v2193_v23 = vpop.f32.mrf.mxu1  ;;  %v2483_v34 = vshll.u32 %v2415_v18, 16  ;;  %v2696_v2 = vrot.slane %v2415_v18, 1 }
 0x1e5   : > { %v2013_v7 = vadd.f32 %v2012_v49, %v1780_v60 }
 0x1e6   : > { %2962 = vmatmul.bf16.gmra.mxu2 %v8797_v22  ;;  %3140 = vmatmul.bf16.gmra.mxu0 %v2694_v53  ;;  %v2480_v22 = vrot.slane %v2478_v0, 1  ;;  %v2485_v9 = vrot.slane %v2483_v34, 1  ;;  %v2697_v60 = vsel %vm706_vm1, %v2695_v33, %v2696_v2  ;;  %v2490_v0 = vshll.u32 %v8801_v62, 16 }
 0x1e7   : > { %v2102_v56 = vadd.f32 %v2101_v47, %v2013_v7  ;;  %v2400_v7 = vunpack.c.l.b16 %v8828_v57 }
 0x1e8   : > { %v2481_v41 = vor.u32 %v2480_v22, %v2476_v31  ;;  %v2492_v31 = vrot.slane %v2490_v0, 1 }
 0x1e9   : > { %3051 = vmatmul.bf16.gmra.mxu3 %v2474_v37  ;;  %v11256_v40 = vadd.f32 %v2190_v32, %v2102_v56  ;;  %v1782_v11 = vpop.f32.mrf.mxu2  ;;  %v10303_v37 = vld [vmem:[%s10535_s10 + $0x54] sm:$0xe]  ;;  %v2416_v18 = vpack.c.b16 %v2400_v7, %v2400_v7 }
 0x1ea   : > { %v1783_v10 = vadd.f32 %v1782_v11, %v10935_v16  ;;  %v2486_v53 = vsel %vm449_vm0, %v2481_v41, %v2485_v9  ;;  %v8829_v41 = vld [vmem:[%s10535_s10 + $0x68] sm:$0x1] }
 0x1eb   : > { %v2106_v55 = vpop.f32.mrf.mxu0  ;;  %v2495_v22 = vshll.u32 %v2416_v18, 16  ;;  %v2699_v24 = vrot.slane %v2416_v18, 1  ;;  %v2401_v57 = vunpack.c.l.b16 %v8829_v41 }
 0x1ec   : > { %v2015_v6 = vpop.f32.mrf.mxu3 }
 0x1ed   : > { %v2016_v47 = vadd.f32 %v2015_v6, %v1783_v10  ;;  %v10304_v10 = vor.u32 %v10303_v37, %v10302_v61  ;;  %v2497_v34 = vrot.slane %v2495_v22, 1 }
 0x1ef   : > { %v2105_v27 = vadd.f32 %v2104_v38, %v2016_v47  ;;  %v2195_v38 = vpop.f32.mrf.mxu1 }
 0x1f1   : > { %v11263_v54 = vadd.f32 %v2193_v23, %v2105_v27  ;;  %v1784_v16 = vpop.f32.mrf.mxu2  ;;  %v2488_v23 = vshrl.u32 %v8801_v62, 16 }
 0x1f2   : > { %v1785_v26 = vadd.f32 %v1784_v16, %v10946_v43 }
 0x1f3   : > { %v2109_v4 = vpop.f32.mrf.mxu0  ;;  %v2493_v47 = vor.u32 %v2492_v31, %v2488_v23 }
 0x1f4   : > { %v2017_v32 = vpop.f32.mrf.mxu3 }
 0x1f5   : > { %v2018_v49 = vadd.f32 %v2017_v32, %v1785_v26  ;;  %v2498_v16 = vsel %vm449_vm0, %v2493_v47, %v2497_v34  ;;  %v9824_v26 = vld [vmem:[%s10535_s10 + $0x60] sm:$0xff]  }
 0x1f6   : > { %2967 = vmatmul.bf16.gmra.mxu2 %v9823_v44  ;;  %3145 = vmatmul.bf16.gmra.mxu0 %v2697_v60  ;;  %v2417_v60 = vpack.c.b16 %v2401_v57, %v2401_v57  ;;  %v2500_v18 = vshrl.u32 %v9824_v26, 16 }
 0x1f7   : > { %v2107_v58 = vadd.f32 %v2106_v55, %v2018_v49  ;;  %v2698_v55 = vrot.slane %v10304_v10, 1  ;;  %v9838_v49 = vld [vmem:[%s10535_s10 + $0x60] sm:$0xf0] }
 0x1f9   : > { %3056 = vmatmul.bf16.gmra.mxu3 %v2486_v53  ;;  %v11270_v56 = vadd.f32 %v2195_v38, %v2107_v58  ;;  %v1787_v43 = vpop.f32.mrf.mxu2  ;;  %v2700_v61 = vsel %vm706_vm1, %v2698_v55, %v2699_v24  ;;  %v8830_v55 = vld [vmem:[%s10535_s10 + $0x74] sm:$0x1] }
 0x1fa   : > { %v1788_v39 = vadd.f32 %v1787_v43, %v10964_v13  ;;  %v2507_v43 = vshll.u32 %v2417_v60, 16 }
 0x1fb   : > { %v2111_v11 = vpop.f32.mrf.mxu0 }
 0x1fc   : > { %v2020_v42 = vpop.f32.mrf.mxu3  ;;  %v2509_v31 = vrot.slane %v2507_v43, 1  ;;  %v12496_v43 = vld [vmem:[#allocation9_spill] sm:$0xff] }
 0x1fd   : > { %v2021_v6 = vadd.f32 %v2020_v42, %v1788_v39  ;;  %v8805_v39 = vld [vmem:[%s10535_s10 + $0x6c] sm:$0xff]  }
 0x1fe   : > { %v10305_v42 = vld [vmem:[%s10535_s10 + $0x6c] sm:$0xf0] }
 0x1ff   : > { %v11273_v44 = vadd.f32 %v2109_v4, %v2021_v6  ;;  %v2502_v4 = vshll.u32 %v9824_v26, 16  ;;  %v2702_v6 = vrot.slane %v2417_v60, 1 }
 0x201   : > { %v1789_v27 = vpop.f32.mrf.mxu2 }
 0x202   : > { %v1790_v13 = vadd.f32 %v1789_v27, %v10974_v30  ;;  %v9839_v30 = vld [vmem:[%s10535_s10 + $0x60] sm:$0xe] }
 0x203   : > { %v2114_v2 = vpop.f32.mrf.mxu0  ;;  %v9840_v58 = vor.u32 %v9839_v30, %v9838_v49  ;;  %v2512_v30 = vshrl.u32 %v8805_v39, 16 }
 0x204   : > { %v2022_v33 = vpop.f32.mrf.mxu3 }
 0x205   : > { %v2023_v9 = vadd.f32 %v2022_v33, %v1790_v13  ;;  %v2701_v10 = vrot.slane %v9840_v58, 1  ;;  %v2402_v13 = vunpack.c.l.b16 %v8830_v55  ;;  %v10306_v33 = vld [vmem:[%s10535_s10 + $0x6c] sm:$0xe]  ;;  %v9825_v55 = vld [vmem:[%s10535_s10 + $0x78] sm:$0xff]  }
 0x206   : > { %2972 = vmatmul.bf16.gmra.mxu2 %v8801_v62  ;;  %3150 = vmatmul.bf16.gmra.mxu0 %v2700_v61  ;;  %v2504_v62 = vrot.slane %v2502_v4, 1  ;;  %v2514_v61 = vshll.u32 %v8805_v39, 16  ;;  %v10307_v60 = vor.u32 %v10306_v33, %v10305_v42 }
 0x207   : > { %v11280_v32 = vadd.f32 %v2111_v11, %v2023_v9  ;;  %v2703_v34 = vsel %vm706_vm1, %v2701_v10, %v2702_v6  ;;  %v2418_v9 = vpack.c.b16 %v2402_v13, %v2402_v13  ;;  %v12497_v13 = vld [vmem:[#allocation10_spill] sm:$0xff] }
 0x208   : > { %v2505_v23 = vor.u32 %v2504_v62, %v2500_v18  ;;  %v8831_v62 = vld [vmem:[%s10535_s10 + $0x80] sm:$0x1] }
 0x209   : > { %3061 = vmatmul.bf16.gmra.mxu3 %v2498_v16  ;;  %v1792_v53 = vpop.f32.mrf.mxu2 }
 0x20a   : > { %v1793_v7 = vadd.f32 %v1792_v53, %v10986_v52  ;;  %v2510_v41 = vsel %vm449_vm0, %v2505_v23, %v2509_v31  ;;  %v2516_v53 = vrot.slane %v2514_v61, 1 }
 0x20b   : > { %v2116_v38 = vpop.f32.mrf.mxu0 }
 0x20c   : > { %v2025_v37 = vpop.f32.mrf.mxu3  ;;  %v2517_v58 = vor.u32 %v2516_v53, %v2512_v30 }
 0x20d   : > { %v2026_v0 = vadd.f32 %v2025_v37, %v1793_v7  ;;  %v2519_v7 = vshll.u32 %v2418_v9, 16 }
 0x20f   : > { %v11287_v11 = vadd.f32 %v2114_v2, %v2026_v0  ;;  %v2521_v0 = vrot.slane %v2519_v7, 1 }
 0x211   : > { %v1794_v22 = vpop.f32.mrf.mxu2  ;;  %v2522_v31 = vsel %vm449_vm0, %v2517_v58, %v2521_v0  ;;  %v8832_v0 = vld [vmem:[%s10535_s10 + $0x8c] sm:$0x1] }
 0x212   : > { %v1795_v52 = vadd.f32 %v1794_v22, %v10997_v48  ;;  %v2403_v22 = vunpack.c.l.b16 %v8831_v62 }
 0x213   : > { %v2119_v47 = vpop.f32.mrf.mxu0 }
 0x214   : > { %v2027_v24 = vpop.f32.mrf.mxu3 }
 0x215   : > { %v2028_v27 = vadd.f32 %v2027_v24, %v1795_v52  ;;  %v2526_v24 = vshll.u32 %v9825_v55, 16 }
 0x216   : > { %2977 = vmatmul.bf16.gmra.mxu2 %v9824_v26  ;;  %3155 = vmatmul.bf16.gmra.mxu0 %v2703_v34  ;;  %v2704_v26 = vrot.slane %v10307_v60, 1  ;;  %v9841_v34 = vld [vmem:[%s10535_s10 + $0x78] sm:$0xf0] }
 0x217   : > { %v11294_v2 = vadd.f32 %v2116_v38, %v2028_v27  ;;  %v2705_v38 = vrot.slane %v2418_v9, 1  ;;  %v9842_v27 = vld [vmem:[%s10535_s10 + $0x78] sm:$0xe] }
 0x219   : > { %3066 = vmatmul.bf16.gmra.mxu3 %v2510_v41  ;;  %v1797_v16 = vpop.f32.mrf.mxu2  ;;  %v2706_v42 = vsel %vm706_vm1, %v2704_v26, %v2705_v38 }
 0x21a   : > { %v1798_v48 = vadd.f32 %v1797_v16, %v11015_v59  ;;  %v9843_v16 = vor.u32 %v9842_v27, %v9841_v34 }
 0x21b   : > { %v2121_v4 = vpop.f32.mrf.mxu0 }
 0x21c   : > { %v2030_v57 = vpop.f32.mrf.mxu3  ;;  %v2707_v53 = vrot.slane %v9843_v16, 1 }
 0x21d   : > { %v2031_v49 = vadd.f32 %v2030_v57, %v1798_v48  ;;  %v2524_v57 = vshrl.u32 %v9825_v55, 16 }
 0x21f   : > { %v11297_v37 = vadd.f32 %v2119_v47, %v2031_v49  ;;  %v2419_v47 = vpack.c.b16 %v2403_v22, %v2403_v22  ;;  %v8809_v49 = vld [vmem:[%s10535_s10 + $0x84] sm:$0xff]  }
 0x220   : > { %v10309_v22 = vld [vmem:[%s10535_s10 + $0x84] sm:$0xe] }
 0x221   : > { %v1799_v18 = vpop.f32.mrf.mxu2  ;;  %v2531_v60 = vshll.u32 %v2419_v47, 16  ;;  %v2708_v7 = vrot.slane %v2419_v47, 1 }
 0x222   : > { %v1800_v59 = vadd.f32 %v1799_v18, %v12496_v43  ;;  %v12498_v18 = vld [vmem:[#allocation11_spill] sm:$0xff] }
 0x223   : > { %v2124_v6 = vpop.f32.mrf.mxu0  ;;  %v2533_v38 = vrot.slane %v2531_v60, 1 }
 0x224   : > { %v2032_v10 = vpop.f32.mrf.mxu3 }
 0x225   : > { %v2033_v23 = vadd.f32 %v2032_v10, %v1800_v59  ;;  %v2709_v10 = vsel %vm706_vm1, %v2707_v53, %v2708_v7 }
 0x226   : > { %2982 = vmatmul.bf16.gmra.mxu2 %v8805_v39  ;;  %3160 = vmatmul.bf16.gmra.mxu0 %v2706_v42  ;;  %v2528_v39 = vrot.slane %v2526_v24, 1  ;;  %v2538_v24 = vshll.u32 %v8809_v49, 16 }
 0x227   : > { %v11304_v52 = vadd.f32 %v2121_v4, %v2033_v23  ;;  %v10308_v4 = vld [vmem:[%s10535_s10 + $0x84] sm:$0xf0] }
 0x228   : > { %v2529_v26 = vor.u32 %v2528_v39, %v2524_v57  ;;  %v2540_v16 = vrot.slane %v2538_v24, 1  ;;  %v9844_v24 = vld [vmem:[%s10535_s10 + $0x90] sm:$0xf0] }
 0x229   : > { %3071 = vmatmul.bf16.gmra.mxu3 %v2522_v31  ;;  %v1802_v41 = vpop.f32.mrf.mxu2  ;;  %v2404_v31 = vunpack.c.l.b16 %v8832_v0 }
 0x22a   : > { %v1803_v33 = vadd.f32 %v1802_v41, %v12497_v13  ;;  %v2534_v23 = vsel %vm449_vm0, %v2529_v26, %v2533_v38  ;;  %v8833_v38 = vld [vmem:[%s10535_s10 + $0x98] sm:$0x1] }
 0x22b   : > { %v2126_v9 = vpop.f32.mrf.mxu0  ;;  %v2420_v47 = vpack.c.b16 %v2404_v31, %v2404_v31 }
 0x22c   : > { %v2035_v61 = vpop.f32.mrf.mxu3 }
 0x22d   : > { %v2036_v48 = vadd.f32 %v2035_v61, %v1803_v33  ;;  %v10310_v33 = vor.u32 %v10309_v22, %v10308_v4  ;;  %v2536_v61 = vshrl.u32 %v8809_v49, 16  ;;  %v2711_v60 = vrot.slane %v2420_v47, 1 }
 0x22f   : > { %v11311_v30 = vadd.f32 %v2124_v6, %v2036_v48  ;;  %v2543_v48 = vshll.u32 %v2420_v47, 16  ;;  %v2710_v39 = vrot.slane %v10310_v33, 1  ;;  %v2541_v53 = vor.u32 %v2540_v16, %v2536_v61  ;;  %v9845_v47 = vld [vmem:[%s10535_s10 + $0x90] sm:$0xe] }
 0x230   : > { %v9846_v61 = vor.u32 %v9845_v47, %v9844_v24 }
 0x231   : > { %v1804_v58 = vpop.f32.mrf.mxu2  ;;  %v2545_v7 = vrot.slane %v2543_v48, 1 }
 0x232   : > { %v1805_v62 = vadd.f32 %v1804_v58, %v12498_v18 }
 0x233   : > { %v3126_v59 = vpop.f32.mrf.mxu0 }
 0x234   : > { %v2037_v43 = vpop.f32.mrf.mxu3 }
 0x235   : > { %v2038_v42 = vadd.f32 %v2037_v43, %v1805_v62  ;;  %v2712_v43 = vsel %vm706_vm1, %v2710_v39, %v2711_v60  ;;  %v10311_v39 = vld [vmem:[%s10535_s10 + $0x9c] sm:$0xf0] }
 0x236   : > { %2987 = vmatmul.bf16.gmra.mxu2 %v9825_v55  ;;  %3165 = vmatmul.bf16.gmra.mxu0 %v2709_v10  ;;  %v11323_v55 = vld [vmem:[%s12485_s2] ss:$0 sm:$0xff] }
 0x237   : > { %v11318_v6 = vadd.f32 %v2126_v9, %v2038_v42  ;;  %v9826_v42 = vld [vmem:[%s10535_s10 + $0x90] sm:$0xff]  }
 0x238   : > { %v2550_v31 = vshll.u32 %v9826_v42, 16  ;;  %v2548_v16 = vshrl.u32 %v9826_v42, 16 }
 0x239   : > { %3076 = vmatmul.bf16.gmra.mxu3 %v2534_v23  ;;  %v2948_v34 = vpop.f32.mrf.mxu2 }
 0x23b   : > { %v3128_v13 = vpop.f32.mrf.mxu0 }
 0x23c   : > { %v3037_v27 = vpop.f32.mrf.mxu3 }
 0x23d   : > { %v3038_v41 = vadd.f32 %v3037_v27, %v2948_v34 }
 0x23f   : > { %v3127_v57 = vadd.f32 %v3126_v59, %v3038_v41  ;;  %v2405_v59 = vunpack.c.l.b16 %v8833_v38 }
 0x241   : > { %v3206_v9 = vadd.f32 %v3127_v57, %v11070_v46  ;;  %v2950_v4 = vpop.f32.mrf.mxu2  ;;  %v2546_v46 = vsel %vm449_vm0, %v2541_v53, %v2545_v7  ;;  %v2421_v22 = vpack.c.b16 %v2405_v59, %v2405_v59  ;;  %v2713_v53 = vrot.slane %v9846_v61, 1 }
 0x243   : > { %v11327_v26 = vadd.f32 %v11323_v55, %v3206_v9  ;;  %v3131_v62 = vpop.f32.mrf.mxu0  ;;  %v2555_v48 = vshll.u32 %v2421_v22, 16  ;;  %v8813_v9 = vld [vmem:[%s10535_s10 + $0x9c] sm:$0xff]   ;;  %v2714_v7 = vrot.slane %v2421_v22, 1 }
 0x244   : > { %v3039_v58 = vpop.f32.mrf.mxu3 }
 0x245   : > { %v3274_v0 = vmax.f32 %v11327_v26, 0.0  ;;  %v3040_v18 = vadd.f32 %v3039_v58, %v2950_v4  ;;  %v2557_v38 = vrot.slane %v2555_v48, 1 }
 0x246   : > { %2992 = vmatmul.bf16.gmra.mxu2 %v8809_v49  ;;  %3170 = vmatmul.bf16.gmra.mxu0 %v2712_v43  ;;  %v8834_v43 = vld [vmem:[%s10535_s10 + $0xa4] sm:$0x1] }
 0x247   : > { %v3129_v10 = vadd.f32 %v3128_v13, %v3040_v18  ;;  %v2406_v24 = vunpack.c.l.b16 %v8834_v43 }
 0x249   : > { %v3207_v23 = vadd.f32 %v3129_v10, %v11080_v28  ;;  %3081 = vmatmul.bf16.gmra.mxu3 %v2546_v46  ;;  %v2953_v27 = vpop.f32.mrf.mxu2  ;;  %v2552_v28 = vrot.slane %v2550_v31, 1 }
 0x24b   : > { %v11338_v34 = vadd.f32 %v11323_v55, %v3207_v23  ;;  %v3133_v49 = vpop.f32.mrf.mxu0  ;;  %v2553_v4 = vor.u32 %v2552_v28, %v2548_v16 }
 0x24c   : > { %v3042_v41 = vpop.f32.mrf.mxu3 }
 0x24d   : > { %v3275_v33 = vmax.f32 %v11338_v34, 0.0  ;;  %v3043_v13 = vadd.f32 %v3042_v41, %v2953_v27  ;;  %v2558_v31 = vsel %vm449_vm0, %v2553_v4, %v2557_v38  ;;  %v2562_v27 = vshll.u32 %v8813_v9, 16 }
 0x24e   : > { %v2422_v41 = vpack.c.b16 %v2406_v24, %v2406_v24 }
 0x24f   : > { %v3132_v57 = vadd.f32 %v3131_v62, %v3043_v13  ;;  %v2715_v62 = vsel %vm706_vm1, %v2713_v53, %v2714_v7  ;;  %v2560_v53 = vshrl.u32 %v8813_v9, 16 }
 0x250   : > { %v2717_v38 = vrot.slane %v2422_v41, 1 }
 0x251   : > { %v3208_v60 = vadd.f32 %v3132_v57, %v11091_v12  ;;  %v2955_v18 = vpop.f32.mrf.mxu2  ;;  %v10312_v12 = vld [vmem:[%s10535_s10 + $0x9c] sm:$0xe] }
 0x253   : > { %v11345_v58 = vadd.f32 %v11323_v55, %v3208_v60  ;;  %v3136_v23 = vpop.f32.mrf.mxu0  ;;  %v10313_v60 = vor.u32 %v10312_v12, %v10311_v39 }
 0x254   : > { %v3044_v46 = vpop.f32.mrf.mxu3 }
 0x255   : > { %v3276_v59 = vmax.f32 %v11345_v58, 0.0  ;;  %v3045_v10 = vadd.f32 %v3044_v46, %v2955_v18  ;;  %v2716_v4 = vrot.slane %v10313_v60, 1  ;;  %v9848_v60 = vld [vmem:[%s10535_s10 + $0xa8] sm:$0xe] }
 0x256   : > { %2997 = vmatmul.bf16.gmra.mxu2 %v9826_v42  ;;  %3175 = vmatmul.bf16.gmra.mxu0 %v2715_v62  ;;  %v2567_v42 = vshll.u32 %v2422_v41, 16  ;;  %v8835_v62 = vld [vmem:[%s10535_s10 + $0xb0] sm:$0x1] }
 0x257   : > { %v3134_v47 = vadd.f32 %v3133_v49, %v3045_v10  ;;  %v2564_v49 = vrot.slane %v2562_v27, 1  ;;  %v9827_v27 = vld [vmem:[%s10535_s10 + $0xa8] sm:$0xff]  }
 0x258   : > { %v2569_v43 = vrot.slane %v2567_v42, 1 }
 0x259   : > { %v3209_v22 = vadd.f32 %v3134_v47, %v11106_v35  ;;  %3086 = vmatmul.bf16.gmra.mxu3 %v2558_v31  ;;  %v2958_v61 = vpop.f32.mrf.mxu2  ;;  %v2565_v18 = vor.u32 %v2564_v49, %v2560_v53  ;;  %v2407_v47 = vunpack.c.l.b16 %v8835_v62 }
 0x25b   : > { %v11354_v13 = vadd.f32 %v11323_v55, %v3209_v22  ;;  %v3138_v57 = vpop.f32.mrf.mxu0 }
 0x25c   : > { %v3047_v16 = vpop.f32.mrf.mxu3 }
 0x25d   : > { %v3277_v28 = vmax.f32 %v11354_v13, 0.0  ;;  %v3048_v48 = vadd.f32 %v3047_v16, %v2958_v61  ;;  %v2574_v61 = vshll.u32 %v9827_v27, 16  ;;  %v2423_v16 = vpack.c.b16 %v2407_v47, %v2407_v47 }
 0x25f   : > { %v3137_v7 = vadd.f32 %v3136_v23, %v3048_v48  ;;  %v2718_v23 = vsel %vm706_vm1, %v2716_v4, %v2717_v38  ;;  %v9847_v48 = vld [vmem:[%s10535_s10 + $0xa8] sm:$0xf0]  ;;  %v2572_v4 = vshrl.u32 %v9827_v27, 16  ;;  %v2579_v38 = vshll.u32 %v2423_v16, 16 }
 0x261   : > { %v3210_v35 = vadd.f32 %v3137_v7, %v11116_v8  ;;  %v2960_v10 = vpop.f32.mrf.mxu2  ;;  %v2570_v8 = vsel %vm449_vm0, %v2565_v18, %v2569_v43  ;;  %v8817_v43 = vld [vmem:[%s10535_s10 + $0xb4] sm:$0xff]  }
 0x263   : > { %v11359_v46 = vadd.f32 %v11323_v55, %v3210_v35  ;;  %v3141_v12 = vpop.f32.mrf.mxu0  ;;  %v9849_v35 = vor.u32 %v9848_v60, %v9847_v48 }
 0x264   : > { %v3049_v31 = vpop.f32.mrf.mxu3 }
 0x265   : > { %v3050_v24 = vadd.f32 %v3049_v31, %v2960_v10  ;;  %v10314_v10 = vld [vmem:[%s10535_s10 + $0xb4] sm:$0xf0]  ;;  %v2719_v31 = vrot.slane %v9849_v35, 1 }
 0x266   : > { %3002 = vmatmul.bf16.gmra.mxu2 %v8813_v9  ;;  %3180 = vmatmul.bf16.gmra.mxu0 %v2718_v23 }
 0x267   : > { %v3139_v22 = vadd.f32 %v3138_v57, %v3050_v24  ;;  %v2720_v24 = vrot.slane %v2423_v16, 1 }
 0x269   : > { %v3211_v41 = vadd.f32 %v3139_v22, %v11126_v15  ;;  %3091 = vmatmul.bf16.gmra.mxu3 %v2570_v8  ;;  %v2963_v49 = vpop.f32.mrf.mxu2  ;;  %v2576_v15 = vrot.slane %v2574_v61, 1  ;;  %v2581_v8 = vrot.slane %v2579_v38, 1 }
 0x26b   : > { %v11370_v53 = vadd.f32 %v11323_v55, %v3211_v41  ;;  %v3143_v9 = vpop.f32.mrf.mxu0  ;;  %v2577_v23 = vor.u32 %v2576_v15, %v2572_v4  ;;  %v8836_v41 = vld [vmem:[%s10535_s10 + $0xbc] sm:$0x1]  ;;  %v2586_v4 = vshll.u32 %v8817_v43, 16 }
 0x26c   : > { %v3052_v42 = vpop.f32.mrf.mxu3 }
 0x26d   : > { %v3053_v57 = vadd.f32 %v3052_v42, %v2963_v49  ;;  %v2582_v42 = vsel %vm449_vm0, %v2577_v23, %v2581_v8 }
 0x26f   : > { %v3142_v18 = vadd.f32 %v3141_v12, %v3053_v57  ;;  %v2721_v12 = vsel %vm706_vm1, %v2719_v31, %v2720_v24  ;;  %v2408_v57 = vunpack.c.l.b16 %v8836_v41 }
 0x271   : > { %v3212_v62 = vadd.f32 %v3142_v18, %v11137_v51  ;;  %v2965_v22 = vpop.f32.mrf.mxu2  ;;  %v10315_v51 = vld [vmem:[%s10535_s10 + $0xb4] sm:$0xe]  ;;  %v2424_v15 = vpack.c.b16 %v2408_v57, %v2408_v57 }
 0x272   : > { %v10316_v8 = vor.u32 %v10315_v51, %v10314_v10 }
 0x273   : > { %v11377_v47 = vadd.f32 %v11323_v55, %v3212_v62  ;;  %v3146_v60 = vpop.f32.mrf.mxu0 }
 0x274   : > { %v3054_v49 = vpop.f32.mrf.mxu3 }
 0x275   : > { %v3055_v61 = vadd.f32 %v3054_v49, %v2965_v22  ;;  %v2584_v22 = vshrl.u32 %v8817_v43, 16  ;;  %v2722_v49 = vrot.slane %v10316_v8, 1 }
 0x276   : > { %3007 = vmatmul.bf16.gmra.mxu2 %v9827_v27  ;;  %3185 = vmatmul.bf16.gmra.mxu0 %v2721_v12  ;;  %v2591_v27 = vshll.u32 %v2424_v15, 16 }
 0x277   : > { %v3144_v35 = vadd.f32 %v3143_v9, %v3055_v61  ;;  %v2588_v9 = vrot.slane %v2586_v4, 1  ;;  %v2723_v61 = vrot.slane %v2424_v15, 1 }
 0x279   : > { %v3213_v16 = vadd.f32 %v3144_v35, %v11152_v14  ;;  %3096 = vmatmul.bf16.gmra.mxu3 %v2582_v42  ;;  %v2968_v18 = vpop.f32.mrf.mxu2  ;;  %v2589_v12 = vor.u32 %v2588_v9, %v2584_v22  ;;  %v2593_v42 = vrot.slane %v2591_v27, 1  ;;  %v9850_v27 = vld [vmem:[%s10535_s10 + $0xc0] sm:$0xf0] }
 0x27b   : > { %v11386_v38 = vadd.f32 %v11323_v55, %v3213_v16  ;;  %v3148_v23 = vpop.f32.mrf.mxu0  ;;  %v8837_v16 = vld [vmem:[%s10535_s10 + $0xc8] sm:$0x1] }
 0x27c   : > { %v3057_v62 = vpop.f32.mrf.mxu3 }
 0x27d   : > { %v3058_v24 = vadd.f32 %v3057_v62, %v2968_v18  ;;  %v2409_v62 = vunpack.c.l.b16 %v8837_v16 }
 0x27f   : > { %v3147_v41 = vadd.f32 %v3146_v60, %v3058_v24  ;;  %v2724_v60 = vsel %vm706_vm1, %v2722_v49, %v2723_v61  ;;  %v9828_v24 = vld [vmem:[%s10535_s10 + $0xc0] sm:$0xff]   ;;  %v2425_v9 = vpack.c.b16 %v2409_v62, %v2409_v62 }
 0x280   : > { %v2598_v22 = vshll.u32 %v9828_v24, 16 }
 0x281   : > { %v3214_v14 = vadd.f32 %v3147_v41, %v11162_v29  ;;  %v2970_v35 = vpop.f32.mrf.mxu2  ;;  %v2594_v29 = vsel %vm449_vm0, %v2589_v12, %v2593_v42  ;;  %v9851_v41 = vld [vmem:[%s10535_s10 + $0xc0] sm:$0xe]  ;;  %v2603_v16 = vshll.u32 %v2425_v9, 16 }
 0x282   : > { %v9852_v42 = vor.u32 %v9851_v41, %v9850_v27 }
 0x283   : > { %v11391_v57 = vadd.f32 %v11323_v55, %v3214_v14  ;;  %v3151_v4 = vpop.f32.mrf.mxu0  ;;  %v2605_v10 = vrot.slane %v2603_v16, 1 }
 0x284   : > { %v3059_v18 = vpop.f32.mrf.mxu3  ;;  %v2725_v62 = vrot.slane %v9852_v42, 1 }
 0x285   : > { %v3060_v51 = vadd.f32 %v3059_v18, %v2970_v35  ;;  %v2596_v35 = vshrl.u32 %v9828_v24, 16 }
 0x286   : > { %3012 = vmatmul.bf16.gmra.mxu2 %v8817_v43  ;;  %3190 = vmatmul.bf16.gmra.mxu0 %v2724_v60  ;;  %v10317_v60 = vld [vmem:[%s10535_s10 + $0xcc] sm:$0xf0] }
 0x287   : > { %v3149_v15 = vadd.f32 %v3148_v23, %v3060_v51  ;;  %v8821_v51 = vld [vmem:[%s10535_s10 + $0xcc] sm:$0xff]  }
 0x289   : > { %v3215_v8 = vadd.f32 %v3149_v15, %v11172_v45  ;;  %3101 = vmatmul.bf16.gmra.mxu3 %v2594_v29  ;;  %v2973_v49 = vpop.f32.mrf.mxu2  ;;  %v2600_v45 = vrot.slane %v2598_v22, 1  ;;  %v2726_v15 = vrot.slane %v2425_v9, 1 }
 0x28b   : > { %v11402_v14 = vadd.f32 %v11323_v55, %v3215_v8  ;;  %v3153_v43 = vpop.f32.mrf.mxu0  ;;  %v2601_v8 = vor.u32 %v2600_v45, %v2596_v35  ;;  %v2610_v35 = vshll.u32 %v8821_v51, 16 }
 0x28c   : > { %v3062_v61 = vpop.f32.mrf.mxu3 }
 0x28d   : > { %v3063_v23 = vadd.f32 %v3062_v61, %v2973_v49  ;;  %v8838_v61 = vld [vmem:[%s10535_s10 + $0xd4] sm:$0x1] }
 0x28e   : > { %v2410_v48 = vunpack.c.l.b16 %v8838_v61 }
 0x28f   : > { %v3152_v18 = vadd.f32 %v3151_v4, %v3063_v23  ;;  %v2727_v4 = vsel %vm706_vm1, %v2725_v62, %v2726_v15  ;;  %v2606_v23 = vsel %vm449_vm0, %v2601_v8, %v2605_v10  ;;  %v2608_v8 = vshrl.u32 %v8821_v51, 16 }
 0x290   : > { %v2426_v45 = vpack.c.b16 %v2410_v48, %v2410_v48 }
 0x291   : > { %v3216_v29 = vadd.f32 %v3152_v18, %v11183_v5  ;;  %v2975_v49 = vpop.f32.mrf.mxu2  ;;  %v10318_v5 = vld [vmem:[%s10535_s10 + $0xcc] sm:$0xe]  ;;  %s11524_s10 = scalar_lea.vmem [#allocation6], %s10517_s13 }
 0x292   : > { %v10319_v10 = vor.u32 %v10318_v5, %v10317_v60 }
 0x293   : > { %v11409_v31 = vadd.f32 %v11323_v55, %v3216_v29  ;;  %v3156_v41 = vpop.f32.mrf.mxu0 }
 0x294   : > { %v3064_v12 = vpop.f32.mrf.mxu3 }
 0x295   : > { %v3065_v22 = vadd.f32 %v3064_v12, %v2975_v49  ;;  %v2612_v49 = vrot.slane %v2610_v35, 1 }
 0x296   : > { %3017 = vmatmul.bf16.gmra.mxu2 %v9828_v24  ;;  %3195 = vmatmul.bf16.gmra.mxu0 %v2727_v4 }
 0x297   : > { %v3154_v42 = vadd.f32 %v3153_v43, %v3065_v22  ;;  %v2615_v43 = vshll.u32 %v2426_v45, 16  ;;  %v2729_v22 = vrot.slane %v2426_v45, 1  ;;  %v2613_v4 = vor.u32 %v2612_v49, %v2608_v8 }
 0x299   : > { %v3217_v9 = vadd.f32 %v3154_v42, %v11192_v36  ;;  %3106 = vmatmul.bf16.gmra.mxu3 %v2606_v23  ;;  %v2978_v18 = vpop.f32.mrf.mxu2  ;;  %v2728_v36 = vrot.slane %v10319_v10, 1  ;;  %v2617_v48 = vrot.slane %v2615_v43, 1 }
 0x29b   : > { %v11418_v16 = vadd.f32 %v11323_v55, %v3217_v9  ;;  %v3158_v15 = vpop.f32.mrf.mxu0  ;;  %v2730_v60 = vsel %vm706_vm1, %v2728_v36, %v2729_v22  ;;  %v2618_v5 = vsel %vm449_vm0, %v2613_v4, %v2617_v48 }
 0x29c   : > { %v3067_v12 = vpop.f32.mrf.mxu3 }
 0x29d   : > { %v3068_v62 = vadd.f32 %v3067_v12, %v2978_v18 }
 0x29f   : > { %v3157_v24 = vadd.f32 %v3156_v41, %v3068_v62 }
 0x2a1   : > { %v3218_v61 = vadd.f32 %v3157_v24, %v11199_v25  ;;  %v2980_v42 = vpop.f32.mrf.mxu2 }
 0x2a3   : > { %v11423_v23 = vadd.f32 %v11323_v55, %v3218_v61  ;;  %v3161_v12 = vpop.f32.mrf.mxu0 }
 0x2a4   : > { %v3069_v9 = vpop.f32.mrf.mxu3 }
 0x2a5   : > { %v3070_v18 = vadd.f32 %v3069_v9, %v2980_v42 }
 0x2a6   : > { %3022 = vmatmul.bf16.gmra.mxu2 %v8821_v51  ;;  %3200 = vmatmul.bf16.gmra.mxu0 %v2730_v60 }
 0x2a7   : > { %v3159_v41 = vadd.f32 %v3158_v15, %v3070_v18 }
 0x2a9   : > { %v3219_v25 = vadd.f32 %v3159_v41, %v11208_v63  ;;  %3111 = vmatmul.bf16.gmra.mxu3 %v2618_v5  ;;  %v2983_v45 = vpop.f32.mrf.mxu2 }
 0x2ab   : > { %v11430_v35 = vadd.f32 %v11323_v55, %v3219_v25  ;;  %v3163_v49 = vpop.f32.mrf.mxu0 }
 0x2ac   : > { %v3072_v62 = vpop.f32.mrf.mxu3 }
 0x2ad   : > { %v3073_v8 = vadd.f32 %v3072_v62, %v2983_v45 }
 0x2af   : > { %v3162_v43 = vadd.f32 %v3161_v12, %v3073_v8 }
 0x2b1   : > { %v3220_v24 = vadd.f32 %v3162_v43, %v11215_v20  ;;  %v2985_v51 = vpop.f32.mrf.mxu2 }
 0x2b3   : > { %v11435_v61 = vadd.f32 %v11323_v55, %v3220_v24  ;;  %v3166_v22 = vpop.f32.mrf.mxu0 }
 0x2b4   : > { %v3074_v15 = vpop.f32.mrf.mxu3 }
 0x2b5   : > { %v3075_v36 = vadd.f32 %v3074_v15, %v2985_v51 }
 0x2b7   : > { %v3164_v4 = vadd.f32 %v3163_v49, %v3075_v36 }
 0x2b9   : > { %v3221_v48 = vadd.f32 %v3164_v4, %v11222_v3  ;;  %v2988_v9 = vpop.f32.mrf.mxu2 }
 0x2bb   : > { %v11440_v42 = vadd.f32 %v11323_v55, %v3221_v48  ;;  %v3168_v60 = vpop.f32.mrf.mxu0 }
 0x2bc   : > { %v3077_v18 = vpop.f32.mrf.mxu3 }
 0x2bd   : > { %v3078_v20 = vadd.f32 %v3077_v18, %v2988_v9 }
 0x2bf   : > { %v3167_v5 = vadd.f32 %v3166_v22, %v3078_v20 }
 0x2c1   : > { %v3222_v41 = vadd.f32 %v3167_v5, %v11225_v50  ;;  %v2990_v45 = vpop.f32.mrf.mxu2 }
 0x2c3   : > { %v11445_v25 = vadd.f32 %v11323_v55, %v3222_v41  ;;  %v3171_v49 = vpop.f32.mrf.mxu0 }
 0x2c4   : > { %v3079_v62 = vpop.f32.mrf.mxu3 }
 0x2c5   : > { %v3080_v3 = vadd.f32 %v3079_v62, %v2990_v45 }
 0x2c7   : > { %v3169_v43 = vadd.f32 %v3168_v60, %v3080_v3 }
 0x2c9   : > { %v3223_v24 = vadd.f32 %v3169_v43, %v11232_v17  ;;  %v2993_v15 = vpop.f32.mrf.mxu2 }
 0x2cb   : > { %v11450_v51 = vadd.f32 %v11323_v55, %v3223_v24  ;;  %v3173_v4 = vpop.f32.mrf.mxu0 }
 0x2cc   : > { %v3082_v36 = vpop.f32.mrf.mxu3 }
 0x2cd   : > { %v3083_v50 = vadd.f32 %v3082_v36, %v2993_v15 }
 0x2cf   : > { %v3172_v48 = vadd.f32 %v3171_v49, %v3083_v50 }
 0x2d1   : > { %v3224_v9 = vadd.f32 %v3172_v48, %v11239_v21  ;;  %v2995_v20 = vpop.f32.mrf.mxu2 }
 0x2d3   : > { %v11455_v18 = vadd.f32 %v11323_v55, %v3224_v9  ;;  %v3176_v41 = vpop.f32.mrf.mxu0 }
 0x2d4   : > { %v3084_v5 = vpop.f32.mrf.mxu3 }
 0x2d5   : > { %v3085_v17 = vadd.f32 %v3084_v5, %v2995_v20 }
 0x2d7   : > { %v3174_v45 = vadd.f32 %v3173_v4, %v3085_v17 }
 0x2d9   : > { %v3225_v62 = vadd.f32 %v3174_v45, %v11246_v19  ;;  %v2998_v43 = vpop.f32.mrf.mxu2 }
 0x2db   : > { %v11460_v3 = vadd.f32 %v11323_v55, %v3225_v62  ;;  %v3178_v15 = vpop.f32.mrf.mxu0 }
 0x2dc   : > { %v3087_v24 = vpop.f32.mrf.mxu3 }
 0x2dd   : > { %v3088_v21 = vadd.f32 %v3087_v24, %v2998_v43 }
 0x2df   : > { %v3177_v36 = vadd.f32 %v3176_v41, %v3088_v21 }
 0x2e1   : > { %v3226_v50 = vadd.f32 %v3177_v36, %v11249_v1  ;;  %v3000_v9 = vpop.f32.mrf.mxu2  ;;  %v2198_v36 = vpop.f32.mrf.mxu1 }
 0x2e3   : > { %v11465_v48 = vadd.f32 %v11323_v55, %v3226_v50  ;;  %v3181_v5 = vpop.f32.mrf.mxu0 }
 0x2e4   : > { %v3089_v20 = vpop.f32.mrf.mxu3 }
 0x2e5   : > { %v3090_v19 = vadd.f32 %v3089_v20, %v3000_v9 }
 0x2e7   : > { %v3179_v17 = vadd.f32 %v3178_v15, %v3090_v19 }
 0x2e9   : > { %v3227_v45 = vadd.f32 %v3179_v17, %v11256_v40  ;;  %v3003_v43 = vpop.f32.mrf.mxu2 }
 0x2eb   : > { %v11470_v62 = vadd.f32 %v11323_v55, %v3227_v45  ;;  %v3183_v21 = vpop.f32.mrf.mxu0  ;;  %v2200_v45 = vpop.f32.mrf.mxu1 }
 0x2ec   : > { %v3092_v24 = vpop.f32.mrf.mxu3 }
 0x2ed   : > { %v3093_v1 = vadd.f32 %v3092_v24, %v3003_v43 }
 0x2ef   : > { %v3182_v50 = vadd.f32 %v3181_v5, %v3093_v1 }
 0x2f1   : > { %v3228_v49 = vadd.f32 %v3182_v50, %v11263_v54  ;;  %v3005_v9 = vpop.f32.mrf.mxu2  ;;  %v2199_v50 = vadd.f32 %v2198_v36, %v11273_v44 }
 0x2f3   : > { %v11475_v4 = vadd.f32 %v11323_v55, %v3228_v49  ;;  %v3186_v19 = vpop.f32.mrf.mxu0  ;;  %v2203_v40 = vpop.f32.mrf.mxu1 }
 0x2f4   : > { %v3094_v15 = vpop.f32.mrf.mxu3 }
 0x2f5   : > { %v3095_v20 = vadd.f32 %v3094_v15, %v3005_v9 }
 0x2f7   : > { %v3184_v17 = vadd.f32 %v3183_v21, %v3095_v20 }
 0x2f9   : > { %v3229_v60 = vadd.f32 %v3184_v17, %v11270_v56  ;;  %v3008_v24 = vpop.f32.mrf.mxu2  ;;  %v2201_v17 = vadd.f32 %v2200_v45, %v11280_v32 }
 0x2fb   : > { %v11480_v43 = vadd.f32 %v11323_v55, %v3229_v60  ;;  %v3188_v49 = vpop.f32.mrf.mxu0  ;;  %v2205_v36 = vpop.f32.mrf.mxu1 }
 0x2fc   : > { %v3097_v5 = vpop.f32.mrf.mxu3 }
 0x2fd   : > { %v3098_v1 = vadd.f32 %v3097_v5, %v3008_v24 }
 0x2ff   : > { %v3187_v41 = vadd.f32 %v3186_v19, %v3098_v1  ;;  %v2204_v1 = vadd.f32 %v2203_v40, %v11287_v11 }
 0x301   : > { %v3230_v22 = vadd.f32 %v3187_v41, %v2199_v50  ;;  %v3010_v21 = vpop.f32.mrf.mxu2 }
 0x303   : > { %v11485_v9 = vadd.f32 %v11323_v55, %v3230_v22  ;;  %v3191_v20 = vpop.f32.mrf.mxu0 }
 0x304   : > { %v3099_v15 = vpop.f32.mrf.mxu3 }
 0x305   : > { %v3100_v60 = vadd.f32 %v3099_v15, %v3010_v21  ;;  %v2206_v15 = vadd.f32 %v2205_v36, %v11294_v2 }
 0x307   : > { %v3189_v8 = vadd.f32 %v3188_v49, %v3100_v60  ;;  %v2208_v49 = vpop.f32.mrf.mxu1 }
 0x309   : > { %v3231_v54 = vadd.f32 %v3189_v8, %v2201_v17  ;;  %v3013_v44 = vpop.f32.mrf.mxu2 }
 0x30b   : > { %v11490_v24 = vadd.f32 %v11323_v55, %v3231_v54  ;;  %v3193_v5 = vpop.f32.mrf.mxu0 }
 0x30c   : > { %v3102_v41 = vpop.f32.mrf.mxu3 }
 0x30d   : > { %v3103_v22 = vadd.f32 %v3102_v41, %v3013_v44  ;;  %v2209_v41 = vadd.f32 %v2208_v49, %v11297_v37 }
 0x30f   : > { %v3192_v50 = vadd.f32 %v3191_v20, %v3103_v22 }
 0x311   : > { %v3232_v56 = vadd.f32 %v3192_v50, %v2204_v1  ;;  %v3015_v32 = vpop.f32.mrf.mxu2  ;;  %v2210_v1 = vpop.f32.mrf.mxu1 }
 0x313   : > { %v11495_v21 = vadd.f32 %v11323_v55, %v3232_v56  ;;  %v3196_v17 = vpop.f32.mrf.mxu0 }
 0x314   : > { %v3104_v45 = vpop.f32.mrf.mxu3 }
 0x315   : > { %v3105_v54 = vadd.f32 %v3104_v45, %v3015_v32 }
 0x317   : > { %v3194_v60 = vadd.f32 %v3193_v5, %v3105_v54  ;;  %v2211_v54 = vadd.f32 %v2210_v1, %v11304_v52 }
 0x319   : > { %v3233_v19 = vadd.f32 %v3194_v60, %v2206_v15  ;;  %v3018_v11 = vpop.f32.mrf.mxu2  ;;  %v2213_v20 = vpop.f32.mrf.mxu1 }
 0x31b   : > { %v11500_v44 = vadd.f32 %v11323_v55, %v3233_v19  ;;  %v3198_v32 = vpop.f32.mrf.mxu0 }
 0x31c   : > { %v3107_v40 = vpop.f32.mrf.mxu3 }
 0x31d   : > { %v3108_v56 = vadd.f32 %v3107_v40, %v3018_v11 }
 0x31f   : > { %v3197_v22 = vadd.f32 %v3196_v17, %v3108_v56 }
 0x321   : > { %v3234_v50 = vadd.f32 %v3197_v22, %v2209_v41  ;;  %v3020_v2 = vpop.f32.mrf.mxu2  ;;  %v2214_v41 = vadd.f32 %v2213_v20, %v11311_v30  ;;  %v2215_v1 = vpop.f32.mrf.mxu1 }
 0x323   : > { %v11505_v45 = vadd.f32 %v11323_v55, %v3234_v50  ;;  %v3201_v49 = vpop.f32.mrf.mxu0 }
 0x324   : > { %v3109_v36 = vpop.f32.mrf.mxu3 }
 0x325   : > { %v3110_v19 = vadd.f32 %v3109_v36, %v3020_v2 }
 0x327   : > { %v3199_v15 = vadd.f32 %v3198_v32, %v3110_v19 }
 0x329   : > { %v3235_v60 = vadd.f32 %v3199_v15, %v2211_v54  ;;  %v3023_v37 = vpop.f32.mrf.mxu2  ;;  %v2216_v15 = vadd.f32 %v2215_v1, %v11318_v6 }
 0x32b   : > { %v11510_v11 = vadd.f32 %v11323_v55, %v3235_v60  ;;  %v3203_v54 = vpop.f32.mrf.mxu0 }
 0x32c   : > { %v3112_v17 = vpop.f32.mrf.mxu3 }
 0x32d   : > { %v3113_v56 = vadd.f32 %v3112_v17, %v3023_v37 }
 0x32f   : > { %v3202_v22 = vadd.f32 %v3201_v49, %v3113_v56 }
 0x331   : > { %v3236_v50 = vadd.f32 %v3202_v22, %v2214_v41  ;;  %v3025_v52 = vpop.f32.mrf.mxu2 }
 0x333   : > { %v11515_v2 = vadd.f32 %v11323_v55, %v3236_v50 }
 0x334   : > { %v3114_v32 = vpop.f32.mrf.mxu3 }
 0x335   : > { %12499 = vst [vmem:[#allocation9_spill] sm:$0xff] %v11515_v2  ;;  %v3115_v19 = vadd.f32 %v3114_v32, %v3025_v52 }
 0x337   : > { %v3204_v60 = vadd.f32 %v3203_v54, %v3115_v19 }
 0x339   : > { %v3237_v40 = vadd.f32 %v3204_v60, %v2216_v15  ;;  %3309 = sbr.rel (%p8529_p9) target bundleno = 871 (0x367), region = 48 }
 0x33b   : > { %v11520_v37 = vadd.f32 %v11323_v55, %v3237_v40 }
 0x33d   : > { %12500 = vst [vmem:[#allocation10_spill] sm:$0xff] %v11520_v37 }
 0x33e   : > { %v10421_v20 = vmov 0  }
 0x33f   : > { %3311 = vst [vmem:[#allocation2 + $0x4] sm:$0xf] %v10421_v20 }
 0x340   : > { %3312 = vst [vmem:[#allocation2 + $0x8] sm:$0xf] %v10421_v20 }
 0x341   : > { %3313 = vst [vmem:[#allocation2 + $0xc] sm:$0xf] %v10421_v20 }
 0x342   : > { %3314 = vst [vmem:[#allocation2 + $0x10] sm:$0xf] %v10421_v20 }
 0x343   : > { %3318 = vst [vmem:[#allocation2 + $0x19c] sm:$0xf] %v10421_v20 }
 0x344   : > { %3319 = vst [vmem:[#allocation2 + $0x1a0] sm:$0xf] %v10421_v20 }
 0x345   : > { %3320 = vst [vmem:[#allocation2 + $0x1a4] sm:$0xf] %v10421_v20 }
 0x346   : > { %3321 = vst [vmem:[#allocation2 + $0x1a8] sm:$0xf] %v10421_v20 }
 0x347   : > { %3325 = vst [vmem:[#allocation2 + $0x1c] sm:$0xf] %v10421_v20 }
 0x348   : > { %3327 = vst [vmem:[#allocation2 + $0x34] sm:$0xf] %v10421_v20 }
 0x349   : > { %3329 = vst [vmem:[#allocation2 + $0x4c] sm:$0xf] %v10421_v20 }
 0x34a   : > { %3331 = vst [vmem:[#allocation2 + $0x64] sm:$0xf] %v10421_v20 }
 0x34b   : > { %3333 = vst [vmem:[#allocation2 + $0x7c] sm:$0xf] %v10421_v20 }
 0x34c   : > { %3335 = vst [vmem:[#allocation2 + $0x94] sm:$0xf] %v10421_v20 }
 0x34d   : > { %3337 = vst [vmem:[#allocation2 + $0xac] sm:$0xf] %v10421_v20 }
 0x34e   : > { %3339 = vst [vmem:[#allocation2 + $0xc4] sm:$0xf] %v10421_v20 }
 0x34f   : > { %3341 = vst [vmem:[#allocation2 + $0xdc] sm:$0xf] %v10421_v20 }
 0x350   : > { %3343 = vst [vmem:[#allocation2 + $0xf4] sm:$0xf] %v10421_v20 }
 0x351   : > { %3345 = vst [vmem:[#allocation2 + $0x10c] sm:$0xf] %v10421_v20 }
 0x352   : > { %3347 = vst [vmem:[#allocation2 + $0x124] sm:$0xf] %v10421_v20 }
 0x353   : > { %3349 = vst [vmem:[#allocation2 + $0x13c] sm:$0xf] %v10421_v20 }
 0x354   : > { %3351 = vst [vmem:[#allocation2 + $0x154] sm:$0xf] %v10421_v20 }
 0x355   : > { %3353 = vst [vmem:[#allocation2 + $0x16c] sm:$0xf] %v10421_v20 }
 0x356   : > { %3355 = vst [vmem:[#allocation2 + $0x184] sm:$0xf] %v10421_v20 }
 0x357   : > { %3356 = vst [vmem:[#allocation2 + $0x28] sm:$0xf] %v10421_v20 }
 0x358   : > { %3358 = vst [vmem:[#allocation2 + $0x40] sm:$0xf] %v10421_v20 }
 0x359   : > { %3360 = vst [vmem:[#allocation2 + $0x58] sm:$0xf] %v10421_v20 }
 0x35a   : > { %3362 = vst [vmem:[#allocation2 + $0x70] sm:$0xf] %v10421_v20 }
 0x35b   : > { %3364 = vst [vmem:[#allocation2 + $0x88] sm:$0xf] %v10421_v20 }
 0x35c   : > { %3366 = vst [vmem:[#allocation2 + $0xa0] sm:$0xf] %v10421_v20 }
 0x35d   : > { %3368 = vst [vmem:[#allocation2 + $0xb8] sm:$0xf] %v10421_v20 }
 0x35e   : > { %3370 = vst [vmem:[#allocation2 + $0xd0] sm:$0xf] %v10421_v20 }
 0x35f   : > { %3372 = vst [vmem:[#allocation2 + $0xe8] sm:$0xf] %v10421_v20 }
 0x360   : > { %3374 = vst [vmem:[#allocation2 + $0x100] sm:$0xf] %v10421_v20 }
 0x361   : > { %3376 = vst [vmem:[#allocation2 + $0x118] sm:$0xf] %v10421_v20 }
 0x362   : > { %3378 = vst [vmem:[#allocation2 + $0x130] sm:$0xf] %v10421_v20 }
 0x363   : > { %3380 = vst [vmem:[#allocation2 + $0x148] sm:$0xf] %v10421_v20 }
 0x364   : > { %3382 = vst [vmem:[#allocation2 + $0x160] sm:$0xf] %v10421_v20 }
 0x365   : > { %3384 = vst [vmem:[#allocation2 + $0x178] sm:$0xf] %v10421_v20 }
 0x366   : > { %3386 = vst [vmem:[#allocation2 + $0x190] sm:$0xf] %v10421_v20 }
 0x367 PF: > { %v9348_v6 = vld [vmem:[#allocation3 + $0xf8] sm:$0xff]  ;;  %v9489_v17 = vpack.c.bf16 %v3275_v33, %v3274_v0  ;;  %v11536_v40 = vpack.c.bf16 %v3277_v28, %v3276_v59  ;;  %v9347_v56 = vld [vmem:[#allocation3 + $0xf0] sm:$0xff]  ;;  %v9346_v0 = vld [vmem:[#allocation3 + $0xe8] sm:$0xff]  ;;  %vm3837_vm2 = vcmask 1042432   ;;  %v12502_v37 = vmax.f32 %v11370_v53, 0.0  ;;  %s9389_s8 = sshll.u32 %s10475_s22, 8 }
 0x368   : > { %v9356_v55 = vld [vmem:[#allocation3 + $0x138] sm:$0xff]  ;;  %6031 = vmatpush.bf16.msra.mxu1 %v9348_v6  ;;  %v9355_v41 = vld [vmem:[#allocation3 + $0x130] sm:$0xff]  ;;  %v9354_v34 = vld [vmem:[#allocation3 + $0x128] sm:$0xff]  ;;  %vm3886_vm3 = vsmask.f32 4352  ;;  %s8449_s14 = scalar_lea.hbm %s12488_s5, %s9389_s8  ;;  %s8450_s15 = sshll.u32 %s11524_s10, 4  ;;  %s8451_s15 = int_to_ptr.vmem [resolvable:$true] %s8450_s15 }
 0x369   : > { %v9364_v49 = vld [vmem:[#allocation3 + $0x178] sm:$0xff]  ;;  %6120 = vmatpush.bf16.msrb.mxu2 %v9356_v55  ;;  %9853 = vst [vmem:[#allocation2 + $0x20] sm:$0xff] %v9489_v17   ;;  %v9363_v22 = vld [vmem:[#allocation3 + $0x170] sm:$0xff]  ;;  %v9362_v33 = vld [vmem:[#allocation3 + $0x168] sm:$0xff]  ;;  %v9633_v58 = vunpack.c.h.b16 %v9489_v17  ;;  %v4880_v59 = vshrl.u32 %v9489_v17, 16  ;;  %v4883_v13 = vshll.u32 %v9489_v17, 16 }
 0x36a   : > { %6209 = vmatpush.bf16.msrb.mxu3 %v9364_v49  ;;  %v9324_v50 = vld [vmem:[#allocation3 + $0x38] sm:$0xff]  ;;  %9854 = vst [vmem:[#allocation2 + $0x38] sm:$0xff] %v11536_v40   ;;  %v9323_v26 = vld [vmem:[#allocation3 + $0x30] sm:$0xff]  ;;  %v9345_v28 = vld [vmem:[#allocation3 + $0xe0] sm:$0xff]  ;;  %s8452_s16 = sshll.u32 %s8449_s14, 4  ;;  %s8438_s22 = scalar_lea.sflag [#allocation5], %s232_s12  ;;  %s8453_s16 = int_to_ptr.hbm [resolvable:$true] %s8452_s16 }
 0x36b   : > { %6442 = vmatpush.bf16.msrb.mxu0 %v9324_v50  ;;  %v9322_v52 = vld [vmem:[#allocation3 + $0x28] sm:$0xff]  ;;  %v9353_v1 = vld [vmem:[#allocation3 + $0x120] sm:$0xff]  ;;  %v4719_v15 = vld [vmem:[#allocation2 + $0x28] sm:$0x1]  ;;  %v4832_v60 = vpack.c.b16 %v9633_v58, %v9633_v58  ;;  %v4882_v20 = vrot.slane %v4880_v59, 4  ;;  %v4885_v6 = vrot.slane %v4883_v13, 5 }
 0x36c   : > { %6032 = vmatpush.bf16.msra.mxu1 %v9347_v56  ;;  %v9983_v32 = vld [vmem:[#allocation2 + $0x1c] sm:$0x8]  ;;  %v9361_v54 = vld [vmem:[#allocation3 + $0x160] sm:$0xff]  ;;  %v5023_v55 = vunpack.c.l.b16 %v4719_v15  ;;  %v9869_v49 = vld [vmem:[#allocation2 + $0x8] sm:$0xff]   ;;  %s10364_s17 = sshra.s32 %s8453_s16, 4  ;;  %s10370_s13 = scalar_lea.hbm %s12488_s5, 512  ;;  %s10365_s17 = int_to_ptr.hbm [resolvable:$true] %s10364_s17 }
 0x36d   : > { %6121 = vmatpush.bf16.msrb.mxu2 %v9355_v41  ;;  %v9344_v56 = vld [vmem:[#allocation3 + $0xd8] sm:$0xff]  ;;  %v9569_v36 = vunpack.c.h.b16 %v9869_v49  ;;  %v5112_v58 = vshrl.u32 %v4832_v60, 16  ;;  %v5115_v59 = vshll.u32 %v4832_v60, 16  ;;  %v4886_v13 = vor.u32 %v4885_v6, %v4882_v20  ;;  %v9341_v27 = vld [vmem:[#allocation3 + $0xc0] sm:$0xff]  ;;  %v9318_v7 = vld [vmem:[#allocation3 + $0x8] sm:$0xff]  ;;  %s10366_s23 = scalar_lea.hbm %s10365_s17, 256  ;;  %p10371_p4 = scmp.lt.s32.totalorder %s10365_s17, %s12488_s5 }
 0x36e   : > { %6210 = vmatpush.bf16.msrb.mxu3 %v9363_v22  ;;  %v9352_v41 = vld [vmem:[#allocation3 + $0x118] sm:$0xff]  ;;  %v9321_v22 = vld [vmem:[#allocation3 + $0x20] sm:$0xff]  ;;  %p10367_p1 = scmp.ne.s32.totalorder %s10365_s17, %s10366_s23  ;;  %p10372_p7 = scmp.lt.s32.totalorder %s10370_s13, %s10366_s23 }
 0x36f   : > { %6443 = vmatpush.bf16.msrb.mxu0 %v9323_v26  ;;  %v5055_v26 = vrot.slane %v9489_v17, 5  ;;  %v10125_v30 = vld [vmem:[#allocation2 + $0x4] sm:$0xf0]   ;;  %v9343_v17 = vld [vmem:[#allocation3 + $0xd0] sm:$0xff]  ;;  %v5114_v6 = vrot.slane %v5112_v58, 3  ;;  %v5124_v63 = vshll.u32 %v4886_v13, 16 }
 0x370   : > { %6033 = vmatpush.bf16.msra.mxu1 %v9346_v0  ;;  %v10141_v19 = vld [vmem:[#allocation2 + $0x1c] sm:$0xf0]   ;;  %v5039_v0 = vpack.c.b16 %v5023_v55, %v5023_v55  ;;  %v9320_v5 = vld [vmem:[#allocation3 + $0x18] sm:$0xff]  ;;  %v9358_v58 = vld [vmem:[#allocation3 + $0x148] sm:$0xff]  ;;  %p10368_p2 = pnand %p10367_p1, %p10492_p5  ;;  %p10373_p8 = por %p10372_p7, %p10371_p4 }
 0x371   : > { %6122 = vmatpush.bf16.msrb.mxu2 %v9354_v34  ;;  %v9984_v50 = vor.u32 %v10141_v19, %v9983_v32  ;;  %v9919_v34 = vld [vmem:[#allocation2 + $0x4] sm:$0x8]  ;;  %v3614_v32 = vpack.c.b16 %v9569_v36, %v9569_v36  ;;  %v4720_v19 = vld [vmem:[#allocation2 + $0x40] sm:$0x1]  ;;  %v5130_v55 = vshrl.u32 %v5055_v26, 16  ;;  %v5133_v49 = vshll.u32 %v5055_v26, 16 }
 0x372   : > { %6211 = vmatpush.bf16.msrb.mxu3 %v9362_v33  ;;  %v9360_v33 = vld [vmem:[#allocation3 + $0x158] sm:$0xff]  ;;  %v5056_v15 = vrot.slane %v5039_v0, 5  ;;  %v9920_v12 = vor.u32 %v10125_v30, %v9919_v34  ;;  %v5121_v0 = vshrl.u32 %v4886_v13, 16  ;;  %v9319_v30 = vld [vmem:[#allocation3 + $0x10] sm:$0xff]  ;;  %v5024_v34 = vunpack.c.l.b16 %v4720_v19  ;;  %v9342_v36 = vld [vmem:[#allocation3 + $0xc8] sm:$0xff]  ;;  %p10369_p3 = pneg %p10368_p2 }
 0x373   : > { %6444 = vmatpush.bf16.msrb.mxu0 %v9322_v52  ;;  %v5104_v8 = vshrl.u32 %v9984_v50, 16  ;;  %v5107_v52 = vshll.u32 %v9984_v50, 16  ;;  %v3896_v10 = vshrl.u32 %v3614_v32, 16  ;;  %v3899_v29 = vshll.u32 %v3614_v32, 16 }
 0x374   : > { %6034 = vmatpush.bf16.msra.mxu1 %v9345_v28  ;;  %v9351_v28 = vld [vmem:[#allocation3 + $0x110] sm:$0xff]  ;;  %v3888_v50 = vshrl.u32 %v9920_v12, 16  ;;  %v5123_v19 = vrot.slane %v5121_v0, 3  ;;  %v5126_v32 = vrot.slane %v5124_v63, 4  ;;  %v9332_v63 = vld [vmem:[#allocation3 + $0x78] sm:$0xff]  ;;  %p10374_p9 = pnand %p10373_p8, %p10369_p3 }
 0x375   : > { %6123 = vmatpush.bf16.msrb.mxu2 %v9353_v1  ;;  %v5057_v1 = vsel %vm3837_vm2, %v5055_v26, %v5056_v15  ;;  %v9350_v15 = vld [vmem:[#allocation3 + $0x108] sm:$0xff]  ;;  %v9637_v26 = vunpack.c.h.b16 %v11536_v40 }
 0x376   : > { %6212 = vmatpush.bf16.msrb.mxu3 %v9361_v54  ;;  %v9359_v54 = vld [vmem:[#allocation3 + $0x150] sm:$0xff]  ;;  %v5138_v60 = vshrl.u32 %v5057_v1, 16  ;;  %v5141_v20 = vshll.u32 %v5057_v1, 16  ;;  %v5135_v1 = vrot.slane %v5133_v49, 4  ;;  %v3890_v39 = vrot.slane %v3888_v50, 3 }
 0x377   : > { %6445 = vmatpush.bf16.msrb.mxu0 %v9321_v22  ;;  %v5117_v22 = vrot.slane %v5115_v59, 4  ;;  %v5132_v59 = vrot.slane %v5130_v55, 3  ;;  %v9349_v55 = vld [vmem:[#allocation3 + $0x100] sm:$0xff] }
 0x378   : > { %6035 = vmatpush.bf16.msra.mxu1 %v9344_v56  ;;  %v5106_v56 = vrot.slane %v5104_v8, 3  ;;  %v5140_v13 = vrot.slane %v5138_v60, 3  ;;  %v3898_v60 = vrot.slane %v3896_v10, 3  ;;  %v4834_v10 = vpack.c.b16 %v9637_v26, %v9637_v26 }
 0x379   : > { %6124 = vmatpush.bf16.msrb.mxu2 %v9352_v41  ;;  %v5109_v41 = vrot.slane %v5107_v52, 4  ;;  %v11541_v8 = vor.u32 %v5117_v22, %v5114_v6  ;;  %v4888_v52 = vshrl.u32 %v11536_v40, 16  ;;  %v10142_v6 = vld [vmem:[#allocation2 + $0x34] sm:$0xf0]   ;;  %v12501_v22 = vmax.f32 %v11359_v46, 0.0 }
 0x37a   : > { %6213 = vmatpush.bf16.msrb.mxu3 %v9360_v33  ;;  %v3891_v33 = vshll.u32 %v9920_v12, 16  ;;  %v5136_v0 = vor.u32 %v5135_v1, %v5132_v59  ;;  %v10126_v59 = vld [vmem:[#allocation2 + $0x1c] sm:$0xf0]  }
 0x37b   : > { %6446 = vmatpush.bf16.msrb.mxu0 %v9320_v5  ;;  %v5143_v5 = vrot.slane %v5141_v20, 4  ;;  %v5110_v12 = vor.u32 %v5109_v41, %v5106_v56  ;;  %v3901_v20 = vrot.slane %v3899_v29, 4  ;;  %v11549_v2 = vpack.c.bf16 %v12502_v37, %v12501_v22  ;;  %v9317_v37 = vld [vmem:[#allocation3] sm:$0xff] }
 0x37c   : > { %6036 = vmatpush.bf16.msra.mxu1 %v9343_v17  ;;  %v4891_v17 = vshll.u32 %v11536_v40, 16  ;;  %v3893_v49 = vrot.slane %v3891_v33, 4  ;;  %v4890_v41 = vrot.slane %v4888_v52, 4  ;;  %v5127_v29 = vor.u32 %v5126_v32, %v5123_v19  ;;  %v9331_v52 = vld [vmem:[#allocation3 + $0x70] sm:$0xff] }
 0x37d   : > { %6125 = vmatpush.bf16.msrb.mxu2 %v9351_v28  ;;  %v5040_v28 = vpack.c.b16 %v5024_v34, %v5024_v34  ;;  %v5144_v56 = vor.u32 %v5143_v5, %v5140_v13  ;;  %v5058_v34 = vrot.slane %v11536_v40, 5  ;;  %9855 = vst [vmem:[#allocation2 + $0x50] sm:$0xff] %v11549_v2   ;;  %v5119_v53 = vsel %vm3886_vm3, %v5110_v12, %v11541_v8 }
 0x37e   : > { %6214 = vmatpush.bf16.msrb.mxu3 %v9359_v54  ;;  %v9987_v54 = vld [vmem:[#allocation2 + $0x34] sm:$0x8]  ;;  %v4893_v50 = vrot.slane %v4891_v17, 5  ;;  %v3902_v33 = vor.u32 %v3901_v20, %v3898_v60  ;;  %v5155_v5 = vshrl.u32 %v4834_v10, 16  ;;  %v4721_v17 = vld [vmem:[#allocation2 + $0x58] sm:$0x1] }
 0x37f   : > { %6447 = vmatpush.bf16.msrb.mxu0 %v9319_v30  ;;  %v9357_v30 = vld [vmem:[#allocation3 + $0x140] sm:$0xff]  ;;  %v9988_v46 = vor.u32 %v10142_v6, %v9987_v54  ;;  %v5145_v40 = vsel %vm3886_vm3, %v5136_v0, %v5144_v56  ;;  %v5158_v32 = vshll.u32 %v4834_v10, 16  ;;  %v5173_v54 = vshrl.u32 %v5058_v34, 16 }
 0x380   : > { %6037 = vmatpush.bf16.msra.mxu1 %v9342_v36  ;;  %v5059_v36 = vrot.slane %v5040_v28, 5  ;;  %v4894_v1 = vor.u32 %v4893_v50, %v4890_v41  ;;  %v5025_v20 = vunpack.c.l.b16 %v4721_v17  ;;  %v5157_v0 = vrot.slane %v5155_v5, 3 }
 0x381   : > { %6126 = vmatpush.bf16.msrb.mxu2 %v9350_v15  ;;  %v3894_v15 = vor.u32 %v3893_v49, %v3890_v39  ;;  %v5147_v12 = vshrl.u32 %v9988_v46, 16  ;;  %v5150_v19 = vshll.u32 %v9988_v46, 16  ;;  %v5160_v56 = vrot.slane %v5158_v32, 4 }
 0x382   : > { %6215 = vmatpush.bf16.msrb.mxu3 %v9358_v58  ;;  %v9923_v58 = vld [vmem:[#allocation2 + $0x1c] sm:$0x8]  ;;  %v5060_v13 = vsel %vm3837_vm2, %v5058_v34, %v5059_v36  ;;  %v5167_v60 = vshll.u32 %v4894_v1, 16  ;;  %v5175_v41 = vrot.slane %v5173_v54, 3  ;;  %v9641_v10 = vunpack.c.h.b16 %v11549_v2 }
 0x383   : > { %6448 = vmatpush.bf16.msrb.mxu0 %v9318_v7  ;;  %v12503_v7 = vmax.f32 %v11377_v47, 0.0  ;;  %v9924_v39 = vor.u32 %v10126_v59, %v9923_v58  ;;  %v3903_v28 = vsel %vm3886_vm3, %v3894_v15, %v3902_v33  ;;  %v5181_v47 = vshrl.u32 %v5060_v13, 16 }
 0x384   : > { %6038 = vmatpush.bf16.msra.mxu1 %v9341_v27  ;;  %v12504_v27 = vmax.f32 %v11386_v38, 0.0  ;;  %v5184_v49 = vshll.u32 %v5060_v13, 16  ;;  %v5164_v38 = vshrl.u32 %v4894_v1, 16  ;;  %v5169_v46 = vrot.slane %v5167_v60, 4 }
 0x385   : > { %6127 = vmatpush.bf16.msrb.mxu2 %v9349_v55  ;;  %v5176_v55 = vshll.u32 %v5058_v34, 16  ;;  %v3931_v6 = vshrl.u32 %v9924_v39, 16  ;;  %v3934_v22 = vshll.u32 %v9924_v39, 16  ;;  %v5183_v36 = vrot.slane %v5181_v47, 3  ;;  %v9927_v47 = vld [vmem:[#allocation2 + $0x34] sm:$0x8] }
 0x386   : > { %6216 = vmatpush.bf16.msrb.mxu3 %v9357_v30  ;;  %v11561_v26 = vpack.c.bf16 %v12504_v27, %v12503_v7  ;;  %v5149_v30 = vrot.slane %v5147_v12, 3  ;;  %v5166_v34 = vrot.slane %v5164_v38, 3  ;;  %v4896_v33 = vshrl.u32 %v11549_v2, 16  ;;  %v9991_v7 = vld [vmem:[#allocation2 + $0x4c] sm:$0x8] }
 0x387   : > { %6039 = vmatmul.bf16.vlgmr.msra.gmra.mxu1 %v5119_v53  ;;  %6449 = vmatpush.bf16.msrb.mxu0 %v9317_v37  ;;  %v5178_v50 = vrot.slane %v5176_v55, 4  ;;  %v5041_v53 = vpack.c.b16 %v5025_v20, %v5025_v20  ;;  %v3933_v37 = vrot.slane %v3931_v6, 3  ;;  %v3936_v15 = vrot.slane %v3934_v22, 4  ;;  %v10143_v27 = vld [vmem:[#allocation2 + $0x4c] sm:$0xf0]  }
 0x388   : > { %6531 = vmatpush.bf16.msrb.mxu1 %v9332_v63  ;;  %6128 = vmatmul.bf16.vlgmr.msrb.gmra.mxu2 %v5127_v29  ;;  %9856 = vst [vmem:[#allocation2 + $0x68] sm:$0xff] %v11561_v26   ;;  %v5152_v63 = vrot.slane %v5150_v19, 4  ;;  %v5186_v29 = vrot.slane %v5184_v49, 4  ;;  %v4899_v58 = vshll.u32 %v11549_v2, 16  ;;  %v5170_v5 = vor.u32 %v5169_v46, %v5166_v34  ;;  %v10127_v49 = vld [vmem:[#allocation2 + $0x34] sm:$0xf0]  }
 0x389   : > { %6217 = vmatmul.bf16.vlgmr.msrb.gmra.mxu3 %v5145_v40  ;;  %v11568_v40 = vor.u32 %v5160_v56, %v5157_v0  ;;  %v5179_v1 = vor.u32 %v5178_v50, %v5175_v41  ;;  %v5061_v39 = vrot.slane %v11549_v2, 5  ;;  %v3937_v17 = vor.u32 %v3936_v15, %v3933_v37  ;;  %v4722_v22 = vld [vmem:[#allocation2 + $0x70] sm:$0x1] }
 0x38a   : > { %6450 = vmatmul.bf16.vlgmr.msrb.gmra.mxu0 %v3903_v28  ;;  %v5153_v59 = vor.u32 %v5152_v63, %v5149_v30  ;;  %v5187_v13 = vor.u32 %v5186_v29, %v5183_v36  ;;  %v4836_v28 = vpack.c.b16 %v9641_v10, %v9641_v10  ;;  %v4898_v12 = vrot.slane %v4896_v33, 4 }
 0x38b   : > { %v4901_v19 = vrot.slane %v4899_v58, 5  ;;  %v9992_v54 = vor.u32 %v10143_v27, %v9991_v7  ;;  %v3946_v2 = vsel %vm3886_vm3, %v3937_v17, %v11541_v8  ;;  %v9928_v0 = vor.u32 %v10127_v49, %v9927_v47  ;;  %v9995_v49 = vld [vmem:[#allocation2 + $0x64] sm:$0x8] }
 0x38c   : > { %6532 = vmatpush.bf16.msrb.mxu1 %v9331_v52  ;;  %v5062_v52 = vrot.slane %v5041_v53, 5  ;;  %v5162_v32 = vsel %vm3886_vm3, %v5153_v59, %v11568_v40  ;;  %v5188_v55 = vsel %vm3886_vm3, %v5179_v1, %v5187_v13  ;;  %v5198_v60 = vshrl.u32 %v4836_v28, 16 }
 0x38d   : > { %v5201_v20 = vshll.u32 %v4836_v28, 16  ;;  %v4902_v6 = vor.u32 %v4901_v19, %v4898_v12  ;;  %v5190_v30 = vshrl.u32 %v9992_v54, 16  ;;  %v5193_v63 = vshll.u32 %v9992_v54, 16 }
 0x38e   : > { %v5063_v38 = vsel %vm3837_vm2, %v5061_v39, %v5062_v52  ;;  %v12505_v56 = vmax.f32 %v11391_v57, 0.0  ;;  %v12506_v41 = vmax.f32 %v11402_v14, 0.0  ;;  %v5216_v36 = vshrl.u32 %v5061_v39, 16 }
 0x38f   : > { %v5219_v29 = vshll.u32 %v5061_v39, 16  ;;  %v5224_v34 = vshrl.u32 %v5063_v38, 16  ;;  %v5227_v46 = vshll.u32 %v5063_v38, 16  ;;  %v5026_v10 = vunpack.c.l.b16 %v4722_v22  ;;  %v10144_v38 = vld [vmem:[#allocation2 + $0x64] sm:$0xf0]  }
 0x390   : > { %v11581_v50 = vpack.c.bf16 %v12506_v41, %v12505_v56  ;;  %v5200_v8 = vrot.slane %v5198_v60, 3  ;;  %v5203_v53 = vrot.slane %v5201_v20, 4  ;;  %v5207_v37 = vshrl.u32 %v4902_v6, 16 }
 0x391   : > { %v5210_v15 = vshll.u32 %v4902_v6, 16  ;;  %v5192_v33 = vrot.slane %v5190_v30, 3  ;;  %v5195_v58 = vrot.slane %v5193_v63, 4  ;;  %v3974_v59 = vshrl.u32 %v9928_v0, 16 }
 0x392   : > { %9857 = vst [vmem:[#allocation2 + $0x80] sm:$0xff] %v11581_v50   ;;  %v3977_v57 = vshll.u32 %v9928_v0, 16  ;;  %v5218_v1 = vrot.slane %v5216_v36, 3  ;;  %v5221_v14 = vrot.slane %v5219_v29, 4  ;;  %v5226_v13 = vrot.slane %v5224_v34, 3 }
 0x393   : > { %v5229_v7 = vrot.slane %v5227_v46, 4  ;;  %v4904_v27 = vshrl.u32 %v11561_v26, 16  ;;  %v5042_v39 = vpack.c.b16 %v5026_v10, %v5026_v10  ;;  %v5209_v52 = vrot.slane %v5207_v37, 3  ;;  %v9931_v36 = vld [vmem:[#allocation2 + $0x4c] sm:$0x8] }
 0x394   : > { %v5212_v17 = vrot.slane %v5210_v15, 4  ;;  %v9645_v28 = vunpack.c.h.b16 %v11561_v26  ;;  %v5196_v12 = vor.u32 %v5195_v58, %v5192_v33  ;;  %v11587_v19 = vor.u32 %v5203_v53, %v5200_v8  ;;  %v10128_v29 = vld [vmem:[#allocation2 + $0x4c] sm:$0xf0]   ;;  %v9330_v15 = vld [vmem:[#allocation3 + $0x68] sm:$0xff]  ;;  %v4723_v33 = vld [vmem:[#allocation2 + $0x88] sm:$0x1] }
 0x395   : > { %v3979_v54 = vrot.slane %v3977_v57, 4  ;;  %v5230_v47 = vor.u32 %v5229_v7, %v5226_v13  ;;  %v5064_v20 = vrot.slane %v11561_v26, 5  ;;  %v5065_v6 = vrot.slane %v5042_v39, 5  ;;  %6533 = vmatpush.bf16.msrb.mxu1 %v9330_v15 }
 0x396   : > { %v5213_v22 = vor.u32 %v5212_v17, %v5209_v52  ;;  %v4838_v30 = vpack.c.b16 %v9645_v28, %v9645_v28  ;;  %v5205_v63 = vsel %vm3886_vm3, %v5196_v12, %v11587_v19  ;;  %v9996_v56 = vor.u32 %v10144_v38, %v9995_v49 }
 0x397   : > { %6044 = vmatmul.bf16.gmra.mxu1 %v5162_v32  ;;  %v3976_v32 = vrot.slane %v3974_v59, 3  ;;  %v5066_v46 = vsel %vm3837_vm2, %v5064_v20, %v5065_v6  ;;  %v12507_v10 = vmax.f32 %v11409_v31, 0.0  ;;  %v12508_v8 = vmax.f32 %v11418_v16, 0.0 }
 0x398   : > { %6133 = vmatmul.bf16.gmra.mxu2 %v5170_v5  ;;  %v4907_v5 = vshll.u32 %v11561_v26, 16  ;;  %v5241_v53 = vshrl.u32 %v4838_v30, 16  ;;  %v5244_v37 = vshll.u32 %v4838_v30, 16  ;;  %v5233_v59 = vshrl.u32 %v9996_v56, 16 }
 0x399   : > { %6222 = vmatmul.bf16.gmra.mxu3 %v5188_v55  ;;  %v5222_v55 = vor.u32 %v5221_v14, %v5218_v1  ;;  %v3980_v0 = vor.u32 %v3979_v54, %v3976_v32  ;;  %v11598_v26 = vpack.c.bf16 %v12508_v8, %v12507_v10  ;;  %v5236_v57 = vshll.u32 %v9996_v56, 16 }
 0x39a   : > { %6455 = vmatmul.bf16.gmra.mxu0 %v3946_v2  ;;  %v4906_v2 = vrot.slane %v4904_v27, 4  ;;  %v4909_v60 = vrot.slane %v4907_v5, 5  ;;  %v9932_v1 = vor.u32 %v10128_v29, %v9931_v36  ;;  %v5259_v31 = vshrl.u32 %v5064_v20, 16  ;;  %v9999_v36 = vld [vmem:[#allocation2 + $0x7c] sm:$0x8] }
 0x39b   : > { %v5231_v41 = vsel %vm3886_vm3, %v5222_v55, %v5230_v47  ;;  %v3989_v58 = vsel %vm3886_vm3, %v3980_v0, %v11568_v40  ;;  %9858 = vst [vmem:[#allocation2 + $0x98] sm:$0xff] %v11598_v26   ;;  %v5262_v14 = vshll.u32 %v5064_v20, 16  ;;  %v5267_v16 = vshrl.u32 %v5066_v46, 16  ;;  %v10145_v29 = vld [vmem:[#allocation2 + $0x7c] sm:$0xf0]  }
 0x39c   : > { %v4910_v34 = vor.u32 %v4909_v60, %v4906_v2  ;;  %v5270_v13 = vshll.u32 %v5066_v46, 16  ;;  %v5027_v27 = vunpack.c.l.b16 %v4723_v33  ;;  %v5243_v5 = vrot.slane %v5241_v53, 3 }
 0x39d   : > { %v5246_v39 = vrot.slane %v5244_v37, 4  ;;  %v5235_v17 = vrot.slane %v5233_v59, 3  ;;  %v5238_v28 = vrot.slane %v5236_v57, 4  ;;  %v4017_v12 = vshrl.u32 %v9932_v1, 16  ;;  %v9935_v57 = vld [vmem:[#allocation2 + $0x64] sm:$0x8] }
 0x39e   : > { %v5250_v7 = vshrl.u32 %v4910_v34, 16  ;;  %v5253_v52 = vshll.u32 %v4910_v34, 16  ;;  %v4020_v40 = vshll.u32 %v9932_v1, 16  ;;  %v5261_v32 = vrot.slane %v5259_v31, 3  ;;  %v10129_v1 = vld [vmem:[#allocation2 + $0x64] sm:$0xf0]  }
 0x39f   : > { %v5264_v54 = vrot.slane %v5262_v14, 4  ;;  %v5269_v55 = vrot.slane %v5267_v16, 3  ;;  %v5272_v47 = vrot.slane %v5270_v13, 4  ;;  %v5043_v38 = vpack.c.b16 %v5027_v27, %v5027_v27 }
 0x3a0   : > { %v5252_v49 = vrot.slane %v5250_v7, 3  ;;  %v5255_v2 = vrot.slane %v5253_v52, 4  ;;  %v9649_v60 = vunpack.c.h.b16 %v11581_v50  ;;  %v4912_v20 = vshrl.u32 %v11581_v50, 16 }
 0x3a1   : > { %v4915_v6 = vshll.u32 %v11581_v50, 16  ;;  %v11606_v30 = vor.u32 %v5246_v39, %v5243_v5  ;;  %v4022_v0 = vrot.slane %v4020_v40, 4  ;;  %v5265_v56 = vor.u32 %v5264_v54, %v5261_v32  ;;  %v4724_v5 = vld [vmem:[#allocation2 + $0xa0] sm:$0x1] }
 0x3a2   : > { %v5067_v34 = vrot.slane %v11581_v50, 5  ;;  %v5068_v46 = vrot.slane %v5043_v38, 5  ;;  %v5256_v10 = vor.u32 %v5255_v2, %v5252_v49  ;;  %v4840_v8 = vpack.c.b16 %v9649_v60, %v9649_v60 }
 0x3a3   : > { %v4914_v53 = vrot.slane %v4912_v20, 4  ;;  %v4917_v37 = vrot.slane %v4915_v6, 5  ;;  %v12509_v31 = vmax.f32 %v11423_v23, 0.0  ;;  %v12510_v14 = vmax.f32 %v11430_v35, 0.0 }
 0x3a4   : > { %v5069_v50 = vsel %vm3837_vm2, %v5067_v34, %v5068_v46  ;;  %v5284_v13 = vshrl.u32 %v4840_v8, 16  ;;  %v5287_v7 = vshll.u32 %v4840_v8, 16  ;;  %v5302_v35 = vshrl.u32 %v5067_v34, 16 }
 0x3a5   : > { %v11616_v16 = vpack.c.bf16 %v12510_v14, %v12509_v31  ;;  %v4918_v27 = vor.u32 %v4917_v37, %v4914_v53  ;;  %v5313_v40 = vshll.u32 %v5069_v50, 16  ;;  %v5028_v32 = vunpack.c.l.b16 %v4724_v5 }
 0x3a6   : > { %v5286_v54 = vrot.slane %v5284_v13, 3  ;;  %v5304_v6 = vrot.slane %v5302_v35, 3 }
 0x3a7   : > { %6049 = vmatmul.bf16.gmra.mxu1 %v5205_v63  ;;  %v4019_v63 = vrot.slane %v4017_v12, 3  ;;  %9859 = vst [vmem:[#allocation2 + $0xb0] sm:$0xff] %v11616_v16   ;;  %v5310_v12 = vshrl.u32 %v5069_v50, 16  ;;  %v5296_v49 = vshll.u32 %v4918_v27, 16 }
 0x3a8   : > { %6138 = vmatmul.bf16.gmra.mxu2 %v5213_v22  ;;  %v5239_v22 = vor.u32 %v5238_v28, %v5235_v17  ;;  %v9936_v17 = vor.u32 %v10129_v1, %v9935_v57  ;;  %v5305_v28 = vshll.u32 %v5067_v34, 16  ;;  %v9653_v34 = vunpack.c.h.b16 %v11598_v26 }
 0x3a9   : > { %6227 = vmatmul.bf16.gmra.mxu3 %v5231_v41  ;;  %v5273_v41 = vor.u32 %v5272_v47, %v5269_v55  ;;  %v4023_v33 = vor.u32 %v4022_v0, %v4019_v63  ;;  %v5289_v55 = vrot.slane %v5287_v7, 4  ;;  %v5293_v47 = vshrl.u32 %v4918_v27, 16 }
 0x3aa   : > { %6460 = vmatmul.bf16.gmra.mxu0 %v3989_v58  ;;  %v5248_v15 = vsel %vm3886_vm3, %v5239_v22, %v11606_v30  ;;  %v10000_v58 = vor.u32 %v10145_v29, %v9999_v36  ;;  %v4060_v60 = vshrl.u32 %v9936_v17, 16  ;;  %v4063_v20 = vshll.u32 %v9936_v17, 16 }
 0x3ab   : > { %v5274_v59 = vsel %vm3886_vm3, %v5265_v56, %v5273_v41  ;;  %v4032_v39 = vsel %vm3886_vm3, %v4023_v33, %v11587_v19  ;;  %v5307_v22 = vrot.slane %v5305_v28, 4  ;;  %v5312_v19 = vrot.slane %v5310_v12, 3  ;;  %v10003_v33 = vld [vmem:[#allocation2 + $0x94] sm:$0x8] }
 0x3ac   : > { %v5276_v52 = vshrl.u32 %v10000_v58, 16  ;;  %v5279_v23 = vshll.u32 %v10000_v58, 16  ;;  %v5315_v63 = vrot.slane %v5313_v40, 4  ;;  %v4920_v0 = vshrl.u32 %v11598_v26, 16  ;;  %v10146_v58 = vld [vmem:[#allocation2 + $0x94] sm:$0xf0]  }
 0x3ad   : > { %v4923_v56 = vshll.u32 %v11598_v26, 16  ;;  %v5044_v41 = vpack.c.b16 %v5028_v32, %v5028_v32  ;;  %v5295_v36 = vrot.slane %v5293_v47, 3  ;;  %v5298_v29 = vrot.slane %v5296_v49, 4  ;;  %v9329_v32 = vld [vmem:[#allocation3 + $0x60] sm:$0xff] }
 0x3ae   : > { %v5278_v38 = vrot.slane %v5276_v52, 3  ;;  %v5281_v2 = vrot.slane %v5279_v23, 4  ;;  %v4062_v8 = vrot.slane %v4060_v60, 3  ;;  %v4065_v53 = vrot.slane %v4063_v20, 4  ;;  %v10130_v52 = vld [vmem:[#allocation2 + $0x7c] sm:$0xf0]   ;;  %6534 = vmatpush.bf16.msrb.mxu1 %v9329_v32 }
 0x3af   : > { %v5308_v37 = vor.u32 %v5307_v22, %v5304_v6  ;;  %v4925_v57 = vrot.slane %v4923_v56, 5  ;;  %v5070_v1 = vrot.slane %v11598_v26, 5  ;;  %v5071_v31 = vrot.slane %v5044_v41, 5  ;;  %v9943_v32 = vld [vmem:[#allocation2 + $0x94] sm:$0x8] }
 0x3b0   : > { %v5282_v46 = vor.u32 %v5281_v2, %v5278_v38  ;;  %v5299_v14 = vor.u32 %v5298_v29, %v5295_v36  ;;  %v4842_v50 = vpack.c.b16 %v9653_v34, %v9653_v34  ;;  %v4066_v7 = vor.u32 %v4065_v53, %v4062_v8 }
 0x3b1   : > { %v10004_v27 = vor.u32 %v10146_v58, %v10003_v33  ;;  %v12511_v23 = vmax.f32 %v11435_v61, 0.0  ;;  %v12512_v17 = vmax.f32 %v11440_v42, 0.0  ;;  %v5072_v26 = vsel %vm3837_vm2, %v5070_v1, %v5071_v31 }
 0x3b2   : > { %v5327_v12 = vshrl.u32 %v4842_v50, 16  ;;  %v5330_v40 = vshll.u32 %v4842_v50, 16  ;;  %v5345_v42 = vshrl.u32 %v5070_v1, 16  ;;  %v5348_v38 = vshll.u32 %v5070_v1, 16 }
 0x3b3   : > { %v11635_v35 = vpack.c.bf16 %v12512_v17, %v12511_v23  ;;  %v5319_v47 = vshrl.u32 %v10004_v27, 16  ;;  %v5322_v49 = vshll.u32 %v10004_v27, 16  ;;  %v5353_v2 = vshrl.u32 %v5072_v26, 16 }
 0x3b4   : > { %v5356_v60 = vshll.u32 %v5072_v26, 16  ;;  %v5329_v22 = vrot.slane %v5327_v12, 3  ;;  %v5347_v36 = vrot.slane %v5345_v42, 3  ;;  %v5350_v29 = vrot.slane %v5348_v38, 4 }
 0x3b5   : > { %9860 = vst [vmem:[#allocation2 + $0xc8] sm:$0xff] %v11635_v35   ;;  %v5324_v56 = vrot.slane %v5322_v49, 4  ;;  %v5355_v34 = vrot.slane %v5353_v2, 3  ;;  %v4928_v33 = vshrl.u32 %v11616_v16, 16  ;;  %v4931_v58 = vshll.u32 %v11616_v16, 16 }
 0x3b6   : > { %v5073_v27 = vrot.slane %v11616_v16, 5  ;;  %v4726_v2 = vld [vmem:[#allocation2 + $0xd0] sm:$0x1] }
 0x3b7   : > { %6054 = vmatmul.bf16.gmra.mxu1 %v5248_v15  ;;  %v5316_v15 = vor.u32 %v5315_v63, %v5312_v19  ;;  %v5332_v19 = vrot.slane %v5330_v40, 4  ;;  %v4930_v23 = vrot.slane %v4928_v33, 4  ;;  %v4933_v17 = vrot.slane %v4931_v58, 5 }
 0x3b8   : > { %6143 = vmatmul.bf16.gmra.mxu2 %v5256_v10  ;;  %v11625_v10 = vor.u32 %v5289_v55, %v5286_v54  ;;  %v4725_v54 = vld [vmem:[#allocation2 + $0xb8] sm:$0x1]  ;;  %v4075_v55 = vsel %vm3886_vm3, %v4066_v7, %v11606_v30  ;;  %v10147_v7 = vld [vmem:[#allocation2 + $0xac] sm:$0xf0]   ;;  %v4936_v33 = vshrl.u32 %v11635_v35, 16  ;;  %v4939_v58 = vshll.u32 %v11635_v35, 16 }
 0x3b9   : > { %6232 = vmatmul.bf16.gmra.mxu3 %v5274_v59  ;;  %v4922_v59 = vrot.slane %v4920_v0, 4  ;;  %v5317_v5 = vsel %vm3886_vm3, %v5308_v37, %v5316_v15  ;;  %v5029_v6 = vunpack.c.l.b16 %v4725_v54  ;;  %v5321_v0 = vrot.slane %v5319_v47, 3  ;;  %v10131_v54 = vld [vmem:[#allocation2 + $0x94] sm:$0xf0]  }
 0x3ba   : > { %6465 = vmatmul.bf16.gmra.mxu0 %v4032_v39  ;;  %v5291_v13 = vsel %vm3886_vm3, %v5282_v46, %v11625_v10  ;;  %v9939_v39 = vld [vmem:[#allocation2 + $0x7c] sm:$0x8]  ;;  %v5358_v46 = vrot.slane %v5356_v60, 4  ;;  %v9657_v15 = vunpack.c.h.b16 %v11616_v16  ;;  %v12514_v47 = vmax.f32 %v11450_v51, 0.0 }
 0x3bb   : > { %v4926_v28 = vor.u32 %v4925_v57, %v4922_v59  ;;  %v9940_v61 = vor.u32 %v10130_v52, %v9939_v39  ;;  %v5045_v53 = vpack.c.b16 %v5029_v6, %v5029_v6  ;;  %v5325_v59 = vor.u32 %v5324_v56, %v5321_v0 }
 0x3bc   : > { %v11644_v57 = vor.u32 %v5332_v19, %v5329_v22  ;;  %v5359_v50 = vor.u32 %v5358_v46, %v5355_v34  ;;  %v4844_v52 = vpack.c.b16 %v9657_v15, %v9657_v15  ;;  %v4934_v38 = vor.u32 %v4933_v17, %v4930_v23  ;;  %v10148_v23 = vld [vmem:[#allocation2 + $0xc4] sm:$0xf0]  }
 0x3bd   : > { %v5336_v20 = vshrl.u32 %v4926_v28, 16  ;;  %v5339_v63 = vshll.u32 %v4926_v28, 16  ;;  %v4103_v41 = vshrl.u32 %v9940_v61, 16  ;;  %v4106_v30 = vshll.u32 %v9940_v61, 16 }
 0x3be   : > { %v5334_v28 = vsel %vm3886_vm3, %v5325_v59, %v11644_v57  ;;  %v5370_v61 = vshrl.u32 %v4844_v52, 16  ;;  %v5373_v42 = vshll.u32 %v4844_v52, 16  ;;  %v9944_v6 = vor.u32 %v10131_v54, %v9943_v32  ;;  %v10011_v52 = vld [vmem:[#allocation2 + $0xc4] sm:$0x8] }
 0x3bf   : > { %v5338_v8 = vrot.slane %v5336_v20, 3  ;;  %v5341_v37 = vrot.slane %v5339_v63, 4  ;;  %v4105_v1 = vrot.slane %v4103_v41, 3  ;;  %v4108_v31 = vrot.slane %v4106_v30, 4 }
 0x3c0   : > { %v5388_v51 = vshrl.u32 %v5073_v27, 16  ;;  %v5391_v22 = vshll.u32 %v5073_v27, 16  ;;  %v5030_v0 = vunpack.c.l.b16 %v4726_v2  ;;  %v5372_v56 = vrot.slane %v5370_v61, 3  ;;  %v10132_v61 = vld [vmem:[#allocation2 + $0xac] sm:$0xf0]  }
 0x3c1   : > { %v5342_v39 = vor.u32 %v5341_v37, %v5338_v8  ;;  %v4109_v26 = vor.u32 %v4108_v31, %v4105_v1  ;;  %v5375_v41 = vrot.slane %v5373_v42, 4  ;;  %v5379_v30 = vshrl.u32 %v4934_v38, 16 }
 0x3c2   : > { %v4146_v46 = vshrl.u32 %v9944_v6, 16  ;;  %v4149_v8 = vshll.u32 %v9944_v6, 16  ;;  %v5393_v37 = vrot.slane %v5391_v22, 4  ;;  %v5046_v59 = vpack.c.b16 %v5030_v0, %v5030_v0  ;;  %v4727_v22 = vld [vmem:[#allocation2 + $0xe8] sm:$0x1] }
 0x3c3   : > { %v4118_v60 = vsel %vm3886_vm3, %v4109_v26, %v11625_v10  ;;  %v5381_v1 = vrot.slane %v5379_v30, 3  ;;  %v4938_v17 = vrot.slane %v4936_v33, 4  ;;  %v5076_v26 = vrot.slane %v11635_v35, 5 }
 0x3c4   : > { %v12516_v2 = vmax.f32 %v11460_v3, 0.0 }
 0x3c5   : > { %v5431_v3 = vshrl.u32 %v5076_v26, 16 }
 0x3c7   : > { %6059 = vmatmul.bf16.gmra.mxu1 %v5291_v13  ;;  %v10007_v13 = vld [vmem:[#allocation2 + $0xac] sm:$0x8] }
 0x3c8   : > { %6148 = vmatmul.bf16.gmra.mxu2 %v5299_v14  ;;  %v5351_v14 = vor.u32 %v5350_v29, %v5347_v36  ;;  %v10008_v12 = vor.u32 %v10147_v7, %v10007_v13  ;;  %v5382_v36 = vshll.u32 %v4934_v38, 16  ;;  %v11663_v13 = vor.u32 %v5375_v41, %v5372_v56 }
 0x3c9   : > { %6237 = vmatmul.bf16.gmra.mxu3 %v5317_v5  ;;  %v5074_v5 = vrot.slane %v5045_v53, 5  ;;  %v5390_v53 = vrot.slane %v5388_v51, 3  ;;  %v4148_v7 = vrot.slane %v4146_v46, 3  ;;  %v12515_v38 = vmax.f32 %v11455_v18, 0.0  ;;  %v9328_v51 = vld [vmem:[#allocation3 + $0x58] sm:$0xff] }
 0x3ca   : > { %6470 = vmatmul.bf16.gmra.mxu0 %v4075_v55  ;;  %v5360_v40 = vsel %vm3886_vm3, %v5351_v14, %v5359_v50  ;;  %v12513_v55 = vmax.f32 %v11445_v25, 0.0  ;;  %v5362_v20 = vshrl.u32 %v10008_v12, 16  ;;  %v5365_v25 = vshll.u32 %v10008_v12, 16  ;;  %6535 = vmatpush.bf16.msrb.mxu1 %v9328_v51 }
 0x3cb   : > { %v5075_v16 = vsel %vm3837_vm2, %v5073_v27, %v5074_v5  ;;  %v5384_v31 = vrot.slane %v5382_v36, 4  ;;  %v9661_v14 = vunpack.c.h.b16 %v11635_v35  ;;  %v4151_v27 = vrot.slane %v4149_v8, 4 }
 0x3cc   : > { %v11654_v49 = vpack.c.bf16 %v12514_v47, %v12513_v55  ;;  %v5396_v19 = vshrl.u32 %v5075_v16, 16  ;;  %v5399_v63 = vshll.u32 %v5075_v16, 16  ;;  %v5364_v29 = vrot.slane %v5362_v20, 3  ;;  %v9947_v16 = vld [vmem:[#allocation2 + $0xac] sm:$0x8] }
 0x3cd   : > { %v5367_v34 = vrot.slane %v5365_v25, 4  ;;  %v5394_v5 = vor.u32 %v5393_v37, %v5390_v53  ;;  %v5077_v12 = vrot.slane %v5046_v59, 5  ;;  %v4846_v32 = vpack.c.b16 %v9661_v14, %v9661_v14 }
 0x3ce   : > { %9861 = vst [vmem:[#allocation2 + $0xe0] sm:$0xff] %v11654_v49   ;;  %v5398_v10 = vrot.slane %v5396_v19, 3  ;;  %v5401_v15 = vrot.slane %v5399_v63, 4  ;;  %v4152_v55 = vor.u32 %v4151_v27, %v4148_v7  ;;  %v10012_v47 = vor.u32 %v10148_v23, %v10011_v52 }
 0x3cf   : > { %v5368_v50 = vor.u32 %v5367_v34, %v5364_v29  ;;  %v5078_v35 = vsel %vm3837_vm2, %v5076_v26, %v5077_v12  ;;  %v5413_v25 = vshrl.u32 %v4846_v32, 16  ;;  %v9948_v6 = vor.u32 %v10132_v61, %v9947_v16 }
 0x3d0   : > { %v4161_v19 = vsel %vm3886_vm3, %v4152_v55, %v11644_v57  ;;  %v5405_v63 = vshrl.u32 %v10012_v47, 16  ;;  %v5408_v0 = vshll.u32 %v10012_v47, 16  ;;  %v5416_v18 = vshll.u32 %v4846_v32, 16 }
 0x3d1   : > { %v5377_v54 = vsel %vm3886_vm3, %v5368_v50, %v11663_v13  ;;  %v5434_v56 = vshll.u32 %v5076_v26, 16  ;;  %v5439_v41 = vshrl.u32 %v5078_v35, 16  ;;  %v5442_v30 = vshll.u32 %v5078_v35, 16  ;;  %v10015_v26 = vld [vmem:[#allocation2 + $0xdc] sm:$0x8] }
 0x3d2   : > { %v5031_v29 = vunpack.c.l.b16 %v4727_v22  ;;  %v4189_v46 = vshrl.u32 %v9948_v6, 16  ;;  %v4192_v8 = vshll.u32 %v9948_v6, 16  ;;  %v5407_v53 = vrot.slane %v5405_v63, 3 }
 0x3d3   : > { %v5410_v37 = vrot.slane %v5408_v0, 4  ;;  %v5418_v57 = vrot.slane %v5416_v18, 4  ;;  %v5436_v33 = vrot.slane %v5434_v56, 4  ;;  %v5444_v59 = vrot.slane %v5442_v30, 4  ;;  %v4728_v18 = vld [vmem:[#allocation2 + $0x100] sm:$0x1] }
 0x3d4   : > { %v4947_v14 = vshll.u32 %v11654_v49, 16  ;;  %v5047_v50 = vpack.c.b16 %v5031_v29, %v5031_v29  ;;  %v4191_v27 = vrot.slane %v4189_v46, 3  ;;  %v12517_v51 = vmax.f32 %v11465_v48, 0.0 }
 0x3d5   : > { %v5411_v52 = vor.u32 %v5410_v37, %v5407_v53  ;;  %v10149_v12 = vld [vmem:[#allocation2 + $0xdc] sm:$0xf0]   ;;  %v12518_v22 = vmax.f32 %v11470_v62, 0.0 }
 0x3d6   : > { %v4949_v32 = vrot.slane %v4947_v14, 5  ;;  %v5080_v55 = vrot.slane %v5047_v50, 5 }
 0x3d7   : > { %6064 = vmatmul.bf16.gmra.mxu1 %v5334_v28  ;;  %v4941_v28 = vrot.slane %v4939_v58, 5  ;;  %v5441_v58 = vrot.slane %v5439_v41, 3 }
 0x3d8   : > { %6153 = vmatmul.bf16.gmra.mxu2 %v5342_v39  ;;  %v5402_v39 = vor.u32 %v5401_v15, %v5398_v10  ;;  %v5415_v10 = vrot.slane %v5413_v25, 3  ;;  %v5433_v15 = vrot.slane %v5431_v3, 3 }
 0x3d9   : > { %6242 = vmatmul.bf16.gmra.mxu3 %v5360_v40  ;;  %v5385_v40 = vor.u32 %v5384_v31, %v5381_v1  ;;  %v4942_v20 = vor.u32 %v4941_v28, %v4938_v17  ;;  %v4944_v31 = vshrl.u32 %v11654_v49, 16  ;;  %v5445_v28 = vor.u32 %v5444_v59, %v5441_v58 }
 0x3da   : > { %6475 = vmatmul.bf16.gmra.mxu0 %v4118_v60  ;;  %v5403_v42 = vsel %vm3886_vm3, %v5394_v5, %v5402_v39  ;;  %v11673_v60 = vpack.c.bf16 %v12516_v2, %v12515_v38  ;;  %v4194_v5 = vrot.slane %v4192_v8, 4  ;;  %v9665_v39 = vunpack.c.h.b16 %v11654_v49  ;;  %v9951_v2 = vld [vmem:[#allocation2 + $0xc4] sm:$0x8] }
 0x3db   : > { %v5422_v36 = vshrl.u32 %v4942_v20, 16  ;;  %v5425_v34 = vshll.u32 %v4942_v20, 16  ;;  %v11682_v23 = vor.u32 %v5418_v57, %v5415_v10  ;;  %v5437_v17 = vor.u32 %v5436_v33, %v5433_v15  ;;  %v10133_v20 = vld [vmem:[#allocation2 + $0xc4] sm:$0xf0]  }
 0x3dc   : > { %9862 = vst [vmem:[#allocation2 + $0xf8] sm:$0xff] %v11673_v60   ;;  %v4195_v16 = vor.u32 %v4194_v5, %v4191_v27  ;;  %v4848_v61 = vpack.c.b16 %v9665_v39, %v9665_v39  ;;  %v10016_v38 = vor.u32 %v10149_v12, %v10015_v26  ;;  %v9952_v0 = vor.u32 %v10133_v20, %v9951_v2  ;;  %v10019_v12 = vld [vmem:[#allocation2 + $0xf4] sm:$0x8] }
 0x3dd   : > { %v5424_v1 = vrot.slane %v5422_v36, 3  ;;  %v5427_v7 = vrot.slane %v5425_v34, 4  ;;  %v5446_v35 = vsel %vm3886_vm3, %v5437_v17, %v5445_v28  ;;  %v5032_v34 = vunpack.c.l.b16 %v4728_v18 }
 0x3de   : > { %v5456_v63 = vshrl.u32 %v4848_v61, 16  ;;  %v5448_v3 = vshrl.u32 %v10016_v38, 16  ;;  %v5451_v56 = vshll.u32 %v10016_v38, 16  ;;  %v5459_v41 = vshll.u32 %v4848_v61, 16 }
 0x3df   : > { %v5428_v47 = vor.u32 %v5427_v7, %v5424_v1  ;;  %v4232_v53 = vshrl.u32 %v9952_v0, 16  ;;  %v4952_v1 = vshrl.u32 %v11673_v60, 16  ;;  %v4955_v14 = vshll.u32 %v11673_v60, 16 }
 0x3e0   : > { %v5458_v46 = vrot.slane %v5456_v63, 3  ;;  %v5450_v37 = vrot.slane %v5448_v3, 3  ;;  %v5453_v10 = vrot.slane %v5451_v56, 4  ;;  %v5461_v57 = vrot.slane %v5459_v41, 4  ;;  %v9327_v41 = vld [vmem:[#allocation3 + $0x50] sm:$0xff] }
 0x3e1   : > { %v5048_v50 = vpack.c.b16 %v5032_v34, %v5032_v34  ;;  %v4234_v5 = vrot.slane %v4232_v53, 3  ;;  %v12519_v63 = vmax.f32 %v11475_v4, 0.0  ;;  %6536 = vmatpush.bf16.msrb.mxu1 %v9327_v41 }
 0x3e2   : > { %v11701_v17 = vor.u32 %v5461_v57, %v5458_v46 }
 0x3e7   : > { %6069 = vmatmul.bf16.gmra.mxu1 %v5377_v54  ;;  %v5079_v54 = vrot.slane %v11654_v49, 5  ;;  %v11693_v49 = vpack.c.bf16 %v12518_v22, %v12517_v51 }
 0x3e8   : > { %6158 = vmatmul.bf16.gmra.mxu2 %v5385_v40  ;;  %v4946_v40 = vrot.slane %v4944_v31, 4  ;;  %v9669_v31 = vunpack.c.h.b16 %v11673_v60 }
 0x3e9   : > { %6247 = vmatmul.bf16.gmra.mxu3 %v5403_v42  ;;  %v5420_v42 = vsel %vm3886_vm3, %v5411_v52, %v11682_v23  ;;  %v5081_v6 = vsel %vm3837_vm2, %v5079_v54, %v5080_v55  ;;  %v5474_v30 = vshrl.u32 %v5079_v54, 16  ;;  %9863 = vst [vmem:[#allocation2 + $0x110] sm:$0xff] %v11693_v49   ;;  %v5477_v48 = vshll.u32 %v5079_v54, 16 }
 0x3ea   : > { %6480 = vmatmul.bf16.gmra.mxu0 %v4161_v19  ;;  %v4950_v25 = vor.u32 %v4949_v32, %v4946_v40  ;;  %v4204_v19 = vsel %vm3886_vm3, %v4195_v16, %v11663_v13  ;;  %v5482_v36 = vshrl.u32 %v5081_v6, 16  ;;  %v5485_v62 = vshll.u32 %v5081_v6, 16  ;;  %v10150_v40 = vld [vmem:[#allocation2 + $0xf4] sm:$0xf0]  }
 0x3eb   : > { %v4235_v13 = vshll.u32 %v9952_v0, 16  ;;  %v5476_v15 = vrot.slane %v5474_v30, 3  ;;  %v5479_v33 = vrot.slane %v5477_v48, 4  ;;  %v5454_v52 = vor.u32 %v5453_v10, %v5450_v37  ;;  %v4729_v30 = vld [vmem:[#allocation2 + $0x118] sm:$0x1] }
 0x3ec   : > { %v5465_v29 = vshrl.u32 %v4950_v25, 16  ;;  %v5468_v8 = vshll.u32 %v4950_v25, 16  ;;  %v5484_v58 = vrot.slane %v5482_v36, 3  ;;  %v5487_v59 = vrot.slane %v5485_v62, 4  ;;  %v10134_v25 = vld [vmem:[#allocation2 + $0xdc] sm:$0xf0]  }
 0x3ed   : > { %v4237_v39 = vrot.slane %v4235_v13, 4  ;;  %v5480_v28 = vor.u32 %v5479_v33, %v5476_v15  ;;  %v4954_v32 = vrot.slane %v4952_v1, 4  ;;  %v4850_v54 = vpack.c.b16 %v9669_v31, %v9669_v31 }
 0x3ee   : > { %v5467_v7 = vrot.slane %v5465_v29, 3  ;;  %v5470_v27 = vrot.slane %v5468_v8, 4  ;;  %v5488_v26 = vor.u32 %v5487_v59, %v5484_v58  ;;  %v4957_v55 = vrot.slane %v4955_v14, 5 }
 0x3ef   : > { %v5083_v16 = vrot.slane %v5048_v50, 5  ;;  %v5463_v2 = vsel %vm3886_vm3, %v5454_v52, %v11701_v17  ;;  %v10020_v20 = vor.u32 %v10150_v40, %v10019_v12  ;;  %v5499_v51 = vshrl.u32 %v4850_v54, 16 }
 0x3f0   : > { %v5471_v61 = vor.u32 %v5470_v27, %v5467_v7  ;;  %v5489_v6 = vsel %vm3886_vm3, %v5480_v28, %v5488_v26  ;;  %v4958_v22 = vor.u32 %v4957_v55, %v4954_v32  ;;  %v5502_v3 = vshll.u32 %v4850_v54, 16 }
 0x3f1   : > { %v5491_v36 = vshrl.u32 %v10020_v20, 16  ;;  %v5494_v62 = vshll.u32 %v10020_v20, 16  ;;  %v5501_v8 = vrot.slane %v5499_v51, 3  ;;  %v9673_v52 = vunpack.c.h.b16 %v11693_v49 }
 0x3f2   : > { %v5508_v53 = vshrl.u32 %v4958_v22, 16  ;;  %v5511_v13 = vshll.u32 %v4958_v22, 16  ;;  %v5504_v57 = vrot.slane %v5502_v3, 4  ;;  %v4963_v28 = vshll.u32 %v11693_v49, 16 }
 0x3f3   : > { %v5493_v59 = vrot.slane %v5491_v36, 3  ;;  %v5496_v1 = vrot.slane %v5494_v62, 4  ;;  %v5085_v51 = vrot.slane %v11693_v49, 5 }
 0x3f4   : > { %v5513_v40 = vrot.slane %v5511_v13, 4 }
 0x3f7   : > { %6074 = vmatmul.bf16.gmra.mxu1 %v5420_v42  ;;  %v4238_v42 = vor.u32 %v4237_v39, %v4234_v5  ;;  %v4960_v5 = vshrl.u32 %v11693_v49, 16  ;;  %v5510_v39 = vrot.slane %v5508_v53, 3  ;;  %v12521_v49 = vmax.f32 %v11485_v9, 0.0 }
 0x3f8   : > { %6163 = vmatmul.bf16.gmra.mxu2 %v5428_v47  ;;  %v5082_v47 = vrot.slane %v11673_v60, 5  ;;  %v12520_v60 = vmax.f32 %v11480_v43, 0.0  ;;  %v5563_v9 = vshll.u32 %v5085_v51, 16 }
 0x3f9   : > { %6252 = vmatmul.bf16.gmra.mxu3 %v5446_v35  ;;  %v9955_v35 = vld [vmem:[#allocation2 + $0xdc] sm:$0x8]  ;;  %v4247_v18 = vsel %vm3886_vm3, %v4238_v42, %v11682_v23  ;;  %v5033_v23 = vunpack.c.l.b16 %v4729_v30  ;;  %v4962_v20 = vrot.slane %v4960_v5, 4  ;;  %v9959_v30 = vld [vmem:[#allocation2 + $0xf4] sm:$0x8] }
 0x3fa   : > { %6485 = vmatmul.bf16.gmra.mxu0 %v4204_v19  ;;  %v5084_v19 = vsel %vm3837_vm2, %v5082_v47, %v5083_v16  ;;  %v11712_v0 = vpack.c.bf16 %v12520_v60, %v12519_v63  ;;  %v9956_v56 = vor.u32 %v10134_v25, %v9955_v35  ;;  %v5517_v29 = vshrl.u32 %v5082_v47, 16 }
 0x3fb   : > { %v5520_v34 = vshll.u32 %v5082_v47, 16  ;;  %v5525_v4 = vshrl.u32 %v5084_v19, 16  ;;  %v5528_v43 = vshll.u32 %v5084_v19, 16  ;;  %v5049_v26 = vpack.c.b16 %v5033_v23, %v5033_v23 }
 0x3fc   : > { %9864 = vst [vmem:[#allocation2 + $0x128] sm:$0xff] %v11712_v0   ;;  %v4275_v15 = vshrl.u32 %v9956_v56, 16  ;;  %v4278_v33 = vshll.u32 %v9956_v56, 16  ;;  %v5519_v31 = vrot.slane %v5517_v29, 3  ;;  %v5497_v47 = vor.u32 %v5496_v1, %v5493_v59 }
 0x3fd   : > { %v5522_v14 = vrot.slane %v5520_v34, 4  ;;  %v5527_v7 = vrot.slane %v5525_v4, 3  ;;  %v5530_v27 = vrot.slane %v5528_v43, 4  ;;  %v11722_v16 = vor.u32 %v5504_v57, %v5501_v8 }
 0x3fe   : > { %v4277_v32 = vrot.slane %v4275_v15, 3  ;;  %v4280_v54 = vrot.slane %v4278_v33, 4  ;;  %v4852_v25 = vpack.c.b16 %v9673_v52, %v9673_v52  ;;  %v5086_v22 = vrot.slane %v5049_v26, 5 }
 0x3ff   : > { %v5531_v42 = vor.u32 %v5530_v27, %v5527_v7  ;;  %v5514_v60 = vor.u32 %v5513_v40, %v5510_v39  ;;  %v5506_v56 = vsel %vm3886_vm3, %v5497_v47, %v11722_v16  ;;  %v12522_v43 = vmax.f32 %v11490_v24, 0.0 }
 0x400   : > { %v5542_v29 = vshrl.u32 %v4852_v25, 16  ;;  %v5087_v4 = vsel %vm3837_vm2, %v5085_v51, %v5086_v22  ;;  %v5545_v13 = vshll.u32 %v4852_v25, 16  ;;  %v5560_v33 = vshrl.u32 %v5085_v51, 16 }
 0x401   : > { %v5568_v24 = vshrl.u32 %v5087_v4, 16 }
 0x402   : > { %v5544_v1 = vrot.slane %v5542_v29, 3  ;;  %v5547_v27 = vrot.slane %v5545_v13, 4  ;;  %v5562_v40 = vrot.slane %v5560_v33, 3 }
 0x404   : > { %v6040_v38 = vpop.f32.mrf.mxu1 }
 0x407   : > { %6079 = vmatmul.bf16.gmra.mxu1 %v5463_v2  ;;  %v6451_v48 = vpop.f32.mrf.mxu0  ;;  %v10151_v2 = vld [vmem:[#allocation2 + $0x10c] sm:$0xf0]  }
 0x408   : > { %6168 = vmatmul.bf16.gmra.mxu2 %v5471_v61  ;;  %v5523_v61 = vor.u32 %v5522_v14, %v5519_v31 }
 0x409   : > { %6257 = vmatmul.bf16.gmra.mxu3 %v5489_v6  ;;  %v4965_v6 = vrot.slane %v4963_v28, 5 }
 0x40a   : > { %6490 = vmatmul.bf16.gmra.mxu0 %v4247_v18  ;;  %v4281_v18 = vor.u32 %v4280_v54, %v4277_v32  ;;  %v5532_v62 = vsel %vm3886_vm3, %v5523_v61, %v5531_v42  ;;  %v5565_v32 = vrot.slane %v5563_v9, 4  ;;  %v4968_v61 = vshrl.u32 %v11712_v0, 16 }
 0x40b   : > { %v6129_v46 = vpop.f32.mrf.mxu2  ;;  %v4966_v34 = vor.u32 %v4965_v6, %v4962_v20 }
 0x40c   : > { %v6130_v37 = vadd.f32 %v6129_v46, %v6040_v38  ;;  %v6218_v10 = vpop.f32.mrf.mxu3  ;;  %v6042_v58 = vpop.f32.mrf.mxu1  ;;  %v10023_v38 = vld [vmem:[#allocation2 + $0x10c] sm:$0x8]  ;;  %v11733_v46 = vpack.c.bf16 %v12522_v43, %v12521_v49  ;;  %v4290_v53 = vsel %vm3886_vm3, %v4281_v18, %v11701_v17 }
 0x40d   : > { %v10024_v41 = vor.u32 %v10151_v2, %v10023_v38  ;;  %v5551_v31 = vshrl.u32 %v4966_v34, 16  ;;  %v5554_v14 = vshll.u32 %v4966_v34, 16  ;;  %v9677_v38 = vunpack.c.h.b16 %v11712_v0 }
 0x40e   : > { %v6219_v50 = vadd.f32 %v6218_v10, %v6130_v37  ;;  %v4730_v37 = vld [vmem:[#allocation2 + $0x130] sm:$0x1]  ;;  %9865 = vst [vmem:[#allocation2 + $0x140] sm:$0xff] %v11733_v46   ;;  %v4971_v2 = vshll.u32 %v11712_v0, 16 }
 0x40f   : > { %v6453_v55 = vpop.f32.mrf.mxu0  ;;  %v5534_v57 = vshrl.u32 %v10024_v41, 16  ;;  %v5537_v15 = vshll.u32 %v10024_v41, 16  ;;  %v5553_v42 = vrot.slane %v5551_v31, 3  ;;  %v5556_v25 = vrot.slane %v5554_v14, 4 }
 0x410   : > { %v11720_v12 = vadd.f32 %v6451_v48, %v6219_v50  ;;  %v10135_v48 = vld [vmem:[#allocation2 + $0xf4] sm:$0xf0]   ;;  %v5034_v50 = vunpack.c.l.b16 %v4730_v37  ;;  %v4970_v41 = vrot.slane %v4968_v61, 4  ;;  %v9963_v37 = vld [vmem:[#allocation2 + $0x10c] sm:$0x8] }
 0x411   : > { %v9960_v23 = vor.u32 %v10135_v48, %v9959_v30  ;;  %v5536_v28 = vrot.slane %v5534_v57, 3  ;;  %v5539_v26 = vrot.slane %v5537_v15, 4  ;;  %v4854_v48 = vpack.c.b16 %v9677_v38, %v9677_v38 }
 0x412   : > { %v5050_v20 = vpack.c.b16 %v5034_v50, %v5034_v50  ;;  %v5557_v49 = vor.u32 %v5556_v25, %v5553_v42 }
 0x413   : > { %v6131_v35 = vpop.f32.mrf.mxu2  ;;  %v4318_v5 = vshrl.u32 %v9960_v23, 16  ;;  %v4321_v39 = vshll.u32 %v9960_v23, 16  ;;  %v5585_v33 = vshrl.u32 %v4854_v48, 16  ;;  %v5588_v14 = vshll.u32 %v4854_v48, 16 }
 0x414   : > { %v6132_v19 = vadd.f32 %v6131_v35, %v6042_v58  ;;  %v6220_v63 = vpop.f32.mrf.mxu3  ;;  %v6045_v3 = vpop.f32.mrf.mxu1  ;;  %v5571_v58 = vshll.u32 %v5087_v4, 16  ;;  %v5089_v29 = vrot.slane %v5050_v20, 5 }
 0x415   : > { %v4320_v6 = vrot.slane %v4318_v5, 3  ;;  %v4323_v51 = vrot.slane %v4321_v39, 4  ;;  %v5590_v61 = vrot.slane %v5588_v14, 4 }
 0x416   : > { %v6221_v36 = vadd.f32 %v6220_v63, %v6132_v19  ;;  %v5573_v47 = vrot.slane %v5571_v58, 4  ;;  %v5540_v19 = vor.u32 %v5539_v26, %v5536_v28  ;;  %v11745_v63 = vor.u32 %v5547_v27, %v5544_v1 }
 0x417   : > { %6084 = vmatmul.bf16.gmra.mxu1 %v5506_v56  ;;  %v6456_v10 = vpop.f32.mrf.mxu0  ;;  %v10152_v56 = vld [vmem:[#allocation2 + $0x124] sm:$0xf0]   ;;  %v4324_v43 = vor.u32 %v4323_v51, %v4320_v6  ;;  %v12524_v58 = vmax.f32 %v11500_v44, 0.0 }
 0x418   : > { %v11735_v8 = vadd.f32 %v6453_v55, %v6221_v36  ;;  %6173 = vmatmul.bf16.gmra.mxu2 %v5514_v60  ;;  %v5570_v55 = vrot.slane %v5568_v24, 3  ;;  %v5566_v60 = vor.u32 %v5565_v32, %v5562_v40  ;;  %v4973_v36 = vrot.slane %v4971_v2, 5 }
 0x419   : > { %6262 = vmatmul.bf16.gmra.mxu3 %v5532_v62  ;;  %v5088_v62 = vrot.slane %v11712_v0, 5  ;;  %v5549_v13 = vsel %vm3886_vm3, %v5540_v19, %v11745_v63  ;;  %v12523_v0 = vmax.f32 %v11495_v21, 0.0  ;;  %v4333_v31 = vsel %vm3886_vm3, %v4324_v43, %v11722_v16 }
 0x41a   : > { %6495 = vmatmul.bf16.gmra.mxu0 %v4290_v53  ;;  %v5574_v18 = vor.u32 %v5573_v47, %v5570_v55  ;;  %v4974_v9 = vor.u32 %v4973_v36, %v4970_v41  ;;  %v5587_v40 = vrot.slane %v5585_v33, 3  ;;  %v4979_v41 = vshll.u32 %v11733_v46, 16 }
 0x41b   : > { %v6134_v59 = vpop.f32.mrf.mxu2  ;;  %v5090_v24 = vsel %vm3837_vm2, %v5088_v62, %v5089_v29  ;;  %v5603_v21 = vshrl.u32 %v5088_v62, 16  ;;  %v5091_v33 = vrot.slane %v11733_v46, 5 }
 0x41c   : > { %v6135_v7 = vadd.f32 %v6134_v59, %v6045_v3  ;;  %v6223_v17 = vpop.f32.mrf.mxu3  ;;  %v6047_v52 = vpop.f32.mrf.mxu1  ;;  %v10027_v3 = vld [vmem:[#allocation2 + $0x124] sm:$0x8]  ;;  %v5575_v15 = vsel %vm3886_vm3, %v5566_v60, %v5574_v18  ;;  %v11756_v59 = vpack.c.bf16 %v12524_v58, %v12523_v0  ;;  %v5611_v44 = vshrl.u32 %v5090_v24, 16 }
 0x41d   : > { %v10028_v23 = vor.u32 %v10152_v56, %v10027_v3  ;;  %v5614_v28 = vshll.u32 %v5090_v24, 16  ;;  %v5594_v32 = vshrl.u32 %v4974_v9, 16  ;;  %v5605_v6 = vrot.slane %v5603_v21, 3 }
 0x41e   : > { %v6224_v54 = vadd.f32 %v6223_v17, %v6135_v7  ;;  %v9326_v7 = vld [vmem:[#allocation3 + $0x48] sm:$0xff]  ;;  %v4731_v17 = vld [vmem:[#allocation2 + $0x148] sm:$0x1]  ;;  %9866 = vst [vmem:[#allocation2 + $0x158] sm:$0xff] %v11756_v59   ;;  %v5613_v19 = vrot.slane %v5611_v44, 3  ;;  %v4976_v18 = vshrl.u32 %v11733_v46, 16  ;;  %v9681_v56 = vunpack.c.h.b16 %v11733_v46 }
 0x41f   : > { %v6458_v22 = vpop.f32.mrf.mxu0  ;;  %v5577_v5 = vshrl.u32 %v10028_v23, 16  ;;  %v5580_v39 = vshll.u32 %v10028_v23, 16  ;;  %6537 = vmatpush.bf16.msrb.mxu1 %v9326_v7  ;;  %v5035_v16 = vunpack.c.l.b16 %v4731_v17  ;;  %v5616_v60 = vrot.slane %v5614_v28, 4  ;;  %v10153_v23 = vld [vmem:[#allocation2 + $0x13c] sm:$0xf0]  }
 0x420   : > { %v11743_v35 = vadd.f32 %v6456_v10, %v6224_v54  ;;  %v10136_v10 = vld [vmem:[#allocation2 + $0x10c] sm:$0xf0]   ;;  %v5597_v54 = vshll.u32 %v4974_v9, 16  ;;  %v5596_v3 = vrot.slane %v5594_v32, 3  ;;  %v9967_v17 = vld [vmem:[#allocation2 + $0x124] sm:$0x8] }
 0x421   : > { %v9964_v50 = vor.u32 %v10136_v10, %v9963_v37  ;;  %v5579_v20 = vrot.slane %v5577_v5, 3  ;;  %v5582_v25 = vrot.slane %v5580_v39, 4  ;;  %v4978_v37 = vrot.slane %v4976_v18, 4 }
 0x422   : > { %v5599_v36 = vrot.slane %v5597_v54, 4  ;;  %v12525_v46 = vmax.f32 %v11505_v45, 0.0  ;;  %v12526_v28 = vmax.f32 %v11510_v11, 0.0  ;;  %v5649_v45 = vshll.u32 %v5091_v33, 16 }
 0x423   : > { %v6136_v30 = vpop.f32.mrf.mxu2  ;;  %v4361_v42 = vshrl.u32 %v9964_v50, 16  ;;  %v4364_v38 = vshll.u32 %v9964_v50, 16 }
 0x424   : > { %v6137_v34 = vadd.f32 %v6136_v30, %v6047_v52  ;;  %v6225_v4 = vpop.f32.mrf.mxu3  ;;  %v6050_v53 = vpop.f32.mrf.mxu1  ;;  %v5606_v52 = vshll.u32 %v5088_v62, 16  ;;  %v5051_v30 = vpack.c.b16 %v5035_v16, %v5035_v16  ;;  %v5600_v58 = vor.u32 %v5599_v36, %v5596_v3 }
 0x425   : > { %v4363_v62 = vrot.slane %v4361_v42, 3  ;;  %v4366_v29 = vrot.slane %v4364_v38, 4  ;;  %v5646_v38 = vshrl.u32 %v5091_v33, 16 }
 0x426   : > { %v6226_v57 = vadd.f32 %v6225_v4, %v6137_v34  ;;  %v5608_v51 = vrot.slane %v5606_v52, 4  ;;  %v5583_v4 = vor.u32 %v5582_v25, %v5579_v20  ;;  %v5092_v9 = vrot.slane %v5051_v30, 5 }
 0x427   : > { %6089 = vmatmul.bf16.gmra.mxu1 %v5549_v13  ;;  %v6461_v27 = vpop.f32.mrf.mxu0  ;;  %v10031_v13 = vld [vmem:[#allocation2 + $0x13c] sm:$0x8]  ;;  %v5648_v36 = vrot.slane %v5646_v38, 3 }
 0x428   : > { %v11758_v1 = vadd.f32 %v6458_v22, %v6226_v57  ;;  %6178 = vmatmul.bf16.gmra.mxu2 %v5557_v49  ;;  %v11768_v49 = vor.u32 %v5590_v61, %v5587_v40  ;;  %v5609_v43 = vor.u32 %v5608_v51, %v5605_v6  ;;  %v4856_v57 = vpack.c.b16 %v9681_v56, %v9681_v56 }
 0x429   : > { %6267 = vmatmul.bf16.gmra.mxu3 %v5575_v15  ;;  %v4981_v15 = vrot.slane %v4979_v41, 5  ;;  %v10032_v7 = vor.u32 %v10153_v23, %v10031_v13  ;;  %v5093_v44 = vsel %vm3837_vm2, %v5091_v33, %v5092_v9  ;;  %v9685_v13 = vunpack.c.h.b16 %v11756_v59 }
 0x42a   : > { %6500 = vmatmul.bf16.gmra.mxu0 %v4333_v31  ;;  %v4367_v31 = vor.u32 %v4366_v29, %v4363_v62  ;;  %v5592_v50 = vsel %vm3886_vm3, %v5583_v4, %v11768_v49  ;;  %v5628_v21 = vshrl.u32 %v4856_v57, 16  ;;  %v5631_v54 = vshll.u32 %v4856_v57, 16 }
 0x42b   : > { %v6139_v26 = vpop.f32.mrf.mxu2  ;;  %v4982_v52 = vor.u32 %v4981_v15, %v4978_v37  ;;  %v5620_v61 = vshrl.u32 %v10032_v7, 16  ;;  %v5623_v42 = vshll.u32 %v10032_v7, 16  ;;  %v5654_v11 = vshrl.u32 %v5093_v44, 16 }
 0x42c   : > { %v6140_v55 = vadd.f32 %v6139_v26, %v6050_v53  ;;  %v6228_v47 = vpop.f32.mrf.mxu3  ;;  %v6052_v2 = vpop.f32.mrf.mxu1  ;;  %v5617_v53 = vor.u32 %v5616_v60, %v5613_v19  ;;  %v11779_v26 = vpack.c.bf16 %v12526_v28, %v12525_v46  ;;  %v4376_v32 = vsel %vm3886_vm3, %v4367_v31, %v11745_v63 }
 0x42d   : > { %v5630_v25 = vrot.slane %v5628_v21, 3  ;;  %v5637_v6 = vshrl.u32 %v4982_v52, 16  ;;  %v5640_v51 = vshll.u32 %v4982_v52, 16  ;;  %v5633_v60 = vrot.slane %v5631_v54, 4 }
 0x42e   : > { %v6229_v22 = vadd.f32 %v6228_v47, %v6140_v55  ;;  %v5618_v39 = vsel %vm3886_vm3, %v5609_v43, %v5617_v53  ;;  %v4732_v55 = vld [vmem:[#allocation2 + $0x160] sm:$0x1]  ;;  %9867 = vst [vmem:[#allocation2 + $0x170] sm:$0xff] %v11779_v26   ;;  %v5622_v41 = vrot.slane %v5620_v61, 3  ;;  %v5625_v30 = vrot.slane %v5623_v42, 4 }
 0x42f   : > { %v6463_v34 = vpop.f32.mrf.mxu0  ;;  %v5651_v62 = vrot.slane %v5649_v45, 4  ;;  %v4984_v43 = vshrl.u32 %v11756_v59, 16  ;;  %v5639_v53 = vrot.slane %v5637_v6, 3  ;;  %v4987_v23 = vshll.u32 %v11756_v59, 16 }
 0x430   : > { %v11766_v48 = vadd.f32 %v6461_v27, %v6229_v22  ;;  %v10137_v27 = vld [vmem:[#allocation2 + $0x124] sm:$0xf0]   ;;  %v5036_v22 = vunpack.c.l.b16 %v4732_v55  ;;  %v5642_v57 = vrot.slane %v5640_v51, 4  ;;  %v9971_v55 = vld [vmem:[#allocation2 + $0x13c] sm:$0x8] }
 0x431   : > { %v9968_v16 = vor.u32 %v10137_v27, %v9967_v17  ;;  %v4986_v7 = vrot.slane %v4984_v43, 4  ;;  %v4858_v27 = vpack.c.b16 %v9685_v13, %v9685_v13 }
 0x432   : > { %v5052_v37 = vpack.c.b16 %v5036_v22, %v5036_v22  ;;  %v5643_v46 = vor.u32 %v5642_v57, %v5639_v53 }
 0x433   : > { %v6141_v10 = vpop.f32.mrf.mxu2  ;;  %v4404_v18 = vshrl.u32 %v9968_v16, 16  ;;  %v4407_v3 = vshll.u32 %v9968_v16, 16  ;;  %v5671_v38 = vshrl.u32 %v4858_v27, 16 }
 0x434   : > { %v6142_v24 = vadd.f32 %v6141_v10, %v6052_v2  ;;  %v6230_v0 = vpop.f32.mrf.mxu3  ;;  %v6055_v14 = vpop.f32.mrf.mxu1  ;;  %v5657_v2 = vshll.u32 %v5093_v44, 16  ;;  %v5095_v21 = vrot.slane %v5052_v37, 5 }
 0x435   : > { %v4406_v15 = vrot.slane %v4404_v18, 3  ;;  %v4409_v33 = vrot.slane %v4407_v3, 4  ;;  %v9325_v18 = vld [vmem:[#allocation3 + $0x40] sm:$0xff]  ;;  %v4733_v3 = vld [vmem:[#allocation2 + $0x178] sm:$0x1]  ;;  %v5673_v43 = vrot.slane %v5671_v38, 3 }
 0x436   : > { %v6231_v5 = vadd.f32 %v6230_v0, %v6142_v24  ;;  %v5659_v4 = vrot.slane %v5657_v2, 4  ;;  %v5626_v24 = vor.u32 %v5625_v30, %v5622_v41  ;;  %v11791_v0 = vor.u32 %v5633_v60, %v5630_v25  ;;  %v12527_v2 = vld [vmem:[#allocation9_spill] sm:$0xff]  ;;  %v12529_v25 = vld [vmem:[#allocation10_spill] sm:$0xff]  ;;  %6538 = vmatpush.bf16.msrb.mxu1 %v9325_v18 }
 0x437   : > { %6094 = vmatmul.bf16.gmra.mxu1 %v5592_v50  ;;  %v6466_v47 = vpop.f32.mrf.mxu0  ;;  %v10154_v50 = vld [vmem:[#allocation2 + $0x154] sm:$0xf0]   ;;  %v4410_v28 = vor.u32 %v4409_v33, %v4406_v15  ;;  %v12530_v6 = vmax.f32 %v12529_v25, 0.0  ;;  %v5037_v13 = vunpack.c.l.b16 %v4733_v3 }
 0x438   : > { %v11781_v40 = vadd.f32 %v6463_v34, %v6231_v5  ;;  %6183 = vmatmul.bf16.gmra.mxu2 %v5600_v58  ;;  %v5656_v34 = vrot.slane %v5654_v11, 3  ;;  %v5652_v58 = vor.u32 %v5651_v62, %v5648_v36  ;;  %v4989_v5 = vrot.slane %v4987_v23, 5  ;;  %v9339_v23 = vld [vmem:[#allocation3 + $0xb0] sm:$0xff] }
 0x439   : > { %6272 = vmatmul.bf16.gmra.mxu3 %v5618_v39  ;;  %v5094_v39 = vrot.slane %v11756_v59, 5  ;;  %v5635_v54 = vsel %vm3886_vm3, %v5626_v24, %v11791_v0  ;;  %v9340_v59 = vld [vmem:[#allocation3 + $0xb8] sm:$0xff] }
 0x43a   : > { %6505 = vmatmul.bf16.gmra.mxu0 %v4376_v32  ;;  %v5660_v31 = vor.u32 %v5659_v4, %v5656_v34  ;;  %v4990_v45 = vor.u32 %v4989_v5, %v4986_v7  ;;  %6620 = vmatpush.bf16.msra.mxu2 %v9340_v59  ;;  %v4992_v5 = vshrl.u32 %v11779_v26, 16 }
 0x43b   : > { %v6144_v20 = vpop.f32.mrf.mxu2  ;;  %v5096_v11 = vsel %vm3837_vm2, %v5094_v39, %v5095_v21  ;;  %v5689_v36 = vshrl.u32 %v5094_v39, 16  ;;  %v5692_v62 = vshll.u32 %v5094_v39, 16  ;;  %v9689_v21 = vunpack.c.h.b16 %v11779_v26 }
 0x43c   : > { %v6145_v19 = vadd.f32 %v6144_v20, %v6055_v14  ;;  %v6233_v63 = vpop.f32.mrf.mxu3  ;;  %v6057_v56 = vpop.f32.mrf.mxu1  ;;  %v10035_v14 = vld [vmem:[#allocation2 + $0x154] sm:$0x8]  ;;  %v5661_v42 = vsel %vm3886_vm3, %v5652_v58, %v5660_v31  ;;  %v12528_v20 = vmax.f32 %v12527_v2, 0.0  ;;  %v5700_v34 = vshll.u32 %v5096_v11, 16 }
 0x43d   : > { %v10036_v16 = vor.u32 %v10154_v50, %v10035_v14  ;;  %v5680_v53 = vshrl.u32 %v4990_v45, 16  ;;  %v5691_v14 = vrot.slane %v5689_v36, 3  ;;  %v5694_v50 = vrot.slane %v5692_v62, 4  ;;  %v9975_v62 = vld [vmem:[#allocation2 + $0x154] sm:$0x8] }
 0x43e   : > { %v6234_v29 = vadd.f32 %v6233_v63, %v6145_v19  ;;  %v11802_v51 = vpack.c.bf16 %v12530_v6, %v12528_v20  ;;  %v4419_v19 = vsel %vm3886_vm3, %v4410_v28, %v11768_v49  ;;  %v5674_v63 = vshll.u32 %v4858_v27, 16  ;;  %6621 = vmatpush.bf16.msra.mxu2 %v9339_v23 }
 0x43f   : > { %v6468_v9 = vpop.f32.mrf.mxu0  ;;  %v5663_v41 = vshrl.u32 %v10036_v16, 16  ;;  %v5666_v30 = vshll.u32 %v10036_v16, 16  ;;  %v5683_v49 = vshll.u32 %v4990_v45, 16  ;;  %v5702_v27 = vrot.slane %v5700_v34, 4  ;;  %v10039_v45 = vld [vmem:[#allocation2 + $0x16c] sm:$0x8] }
 0x440   : > { %v11789_v10 = vadd.f32 %v6466_v47, %v6234_v29  ;;  %v10138_v47 = vld [vmem:[#allocation2 + $0x13c] sm:$0xf0]   ;;  %v5697_v29 = vshrl.u32 %v5096_v11, 16  ;;  %9868 = vst [vmem:[#allocation2 + $0x188] sm:$0xff] %v11802_v51   ;;  %v5676_v15 = vrot.slane %v5674_v63, 4  ;;  %v5682_v39 = vrot.slane %v5680_v53, 3 }
 0x441   : > { %v9972_v60 = vor.u32 %v10138_v47, %v9971_v55  ;;  %v5665_v58 = vrot.slane %v5663_v41, 3  ;;  %v5668_v31 = vrot.slane %v5666_v30, 4  ;;  %v10155_v11 = vld [vmem:[#allocation2 + $0x16c] sm:$0xf0]   ;;  %v4994_v59 = vrot.slane %v4992_v5, 4  ;;  %v9336_v53 = vld [vmem:[#allocation3 + $0x98] sm:$0xff] }
 0x442   : > { %v4860_v20 = vpack.c.b16 %v9689_v21, %v9689_v21  ;;  %v5097_v6 = vrot.slane %v11779_v26, 5  ;;  %v9337_v63 = vld [vmem:[#allocation3 + $0xa0] sm:$0xff]  ;;  %v10040_v36 = vor.u32 %v10155_v11, %v10039_v45  ;;  %v9335_v5 = vld [vmem:[#allocation3 + $0x90] sm:$0xff]  ;;  %v5000_v11 = vshrl.u32 %v11802_v51, 16 }
 0x443   : > { %v6146_v17 = vpop.f32.mrf.mxu2  ;;  %v4447_v33 = vshrl.u32 %v9972_v60, 16  ;;  %v5669_v47 = vor.u32 %v5668_v31, %v5665_v58 }
 0x444   : > { %v6147_v52 = vadd.f32 %v6146_v17, %v6057_v56  ;;  %v6235_v44 = vpop.f32.mrf.mxu3  ;;  %v6060_v32 = vpop.f32.mrf.mxu1  ;;  %v5699_v17 = vrot.slane %v5697_v29, 3  ;;  %v10139_v29 = vld [vmem:[#allocation2 + $0x154] sm:$0xf0]  }
 0x445   : > { %v9976_v23 = vor.u32 %v10139_v29, %v9975_v62 }
 0x446   : > { %v6236_v61 = vadd.f32 %v6235_v44, %v6147_v52  ;;  %v4995_v52 = vshll.u32 %v11779_v26, 16  ;;  %v5053_v44 = vpack.c.b16 %v5037_v13, %v5037_v13  ;;  %v5703_v38 = vor.u32 %v5702_v27, %v5699_v17 }
 0x447   : > { %6099 = vmatmul.bf16.gmra.mxu1 %v5635_v54  ;;  %v6471_v56 = vpop.f32.mrf.mxu0  ;;  %v4449_v54 = vrot.slane %v4447_v33, 3  ;;  %v5717_v13 = vshll.u32 %v4860_v20, 16  ;;  %v5709_v33 = vshll.u32 %v10040_v36, 16 }
 0x448   : > { %v11804_v22 = vadd.f32 %v6468_v9, %v6236_v61  ;;  %6188 = vmatmul.bf16.gmra.mxu2 %v5643_v46  ;;  %v4450_v9 = vshll.u32 %v9972_v60, 16  ;;  %v9338_v46 = vld [vmem:[#allocation3 + $0xa8] sm:$0xff]  ;;  %v11816_v61 = vor.u32 %v5676_v15, %v5673_v43  ;;  %v4997_v25 = vrot.slane %v4995_v52, 5 }
 0x449   : > { %6277 = vmatmul.bf16.gmra.mxu3 %v5661_v42  ;;  %6622 = vmatpush.bf16.msra.mxu2 %v9338_v46  ;;  %v5695_v42 = vor.u32 %v5694_v50, %v5691_v14  ;;  %v5706_v15 = vshrl.u32 %v10040_v36, 16  ;;  %v5719_v21 = vrot.slane %v5717_v13, 4  ;;  %v4490_v52 = vshrl.u32 %v9976_v23, 16 }
 0x44a   : > { %6510 = vmatmul.bf16.gmra.mxu0 %v4419_v19  ;;  %v4452_v16 = vrot.slane %v4450_v9, 4  ;;  %v5098_v19 = vrot.slane %v5053_v44, 5  ;;  %v5678_v30 = vsel %vm3886_vm3, %v5669_v47, %v11816_v61  ;;  %v4998_v26 = vor.u32 %v4997_v25, %v4994_v59 }
 0x44b   : > { %v6149_v4 = vpop.f32.mrf.mxu2  ;;  %v5704_v34 = vsel %vm3886_vm3, %v5695_v42, %v5703_v38  ;;  %v5732_v9 = vshrl.u32 %v5097_v6, 16  ;;  %v4493_v44 = vshll.u32 %v9976_v23, 16  ;;  %v5100_v23 = vrot.slane %v11802_v51, 5 }
 0x44c   : > { %v6150_v37 = vadd.f32 %v6149_v4, %v6060_v32  ;;  %v6238_v57 = vpop.f32.mrf.mxu3  ;;  %v6062_v24 = vpop.f32.mrf.mxu1  ;;  %v5685_v32 = vrot.slane %v5683_v49, 4  ;;  %v5714_v4 = vshrl.u32 %v4860_v20, 16  ;;  %v5099_v43 = vsel %vm3837_vm2, %v5097_v6, %v5098_v19 }
 0x44d   : > { %6623 = vmatpush.bf16.msra.mxu2 %v9337_v63  ;;  %v5740_v58 = vshrl.u32 %v5099_v43, 16  ;;  %v5743_v31 = vshll.u32 %v5099_v43, 16  ;;  %v5726_v17 = vshll.u32 %v4998_v26, 16  ;;  %v5003_v20 = vshll.u32 %v11802_v51, 16 }
 0x44e   : > { %v6239_v7 = vadd.f32 %v6238_v57, %v6150_v37  ;;  %v5686_v3 = vor.u32 %v5685_v32, %v5682_v39  ;;  %v4734_v37 = vld [vmem:[#allocation2 + $0x190] sm:$0x1]  ;;  %v5716_v50 = vrot.slane %v5714_v4, 3  ;;  %v5708_v32 = vrot.slane %v5706_v15, 3  ;;  %v10043_v4 = vld [vmem:[#allocation2 + $0x184] sm:$0x8] }
 0x44f   : > { %v11814_v55 = vpop.f32.mrf.mxu0  ;;  %v5038_v27 = vunpack.c.l.b16 %v4734_v37  ;;  %v5742_v38 = vrot.slane %v5740_v58, 3  ;;  %v5745_v45 = vrot.slane %v5743_v31, 4  ;;  %v5728_v63 = vrot.slane %v5726_v17, 4 }
 0x450   : > { %v11812_v28 = vadd.f32 %v6471_v56, %v6239_v7  ;;  %v4453_v56 = vor.u32 %v4452_v16, %v4449_v54  ;;  %v5723_v7 = vshrl.u32 %v4998_v26, 16  ;;  %v5711_v54 = vrot.slane %v5709_v33, 4  ;;  %v10156_v26 = vld [vmem:[#allocation2 + $0x184] sm:$0xf0]  }
 0x451   : > { %6624 = vmatpush.bf16.msra.mxu2 %v9336_v53  ;;  %v5734_v16 = vrot.slane %v5732_v9, 3  ;;  %v5054_v25 = vpack.c.b16 %v5038_v27, %v5038_v27  ;;  %v11836_v62 = vor.u32 %v5719_v21, %v5716_v50  ;;  %v5002_v43 = vrot.slane %v5000_v11, 4  ;;  %v9979_v50 = vld [vmem:[#allocation2 + $0x16c] sm:$0x8] }
 0x452   : > { %v4462_v49 = vsel %vm3886_vm3, %v4453_v56, %v11791_v0  ;;  %v5725_v59 = vrot.slane %v5723_v7, 3  ;;  %v4495_v56 = vrot.slane %v4493_v44, 4  ;;  %v5712_v36 = vor.u32 %v5711_v54, %v5708_v32  ;;  %v10140_v7 = vld [vmem:[#allocation2 + $0x16c] sm:$0xf0]   ;;  %v9380_v27 = vld [vmem:[#allocation3 + $0x1f8] sm:$0xff] }
 0x453   : > { %v6151_v2 = vpop.f32.mrf.mxu2  ;;  %v5005_v13 = vrot.slane %v5003_v20, 5  ;;  %v5101_v37 = vrot.slane %v5054_v25, 5  ;;  %v9980_v44 = vor.u32 %v10140_v7, %v9979_v50  ;;  %8159 = vmatpush.bf16.msra.mxu0 %v9380_v27 }
 0x454   : > { %v11819_v60 = vadd.f32 %v6151_v2, %v6062_v24  ;;  %v11821_v18 = vpop.f32.mrf.mxu3  ;;  %v6065_v41 = vpop.f32.mrf.mxu1  ;;  %v5735_v24 = vshll.u32 %v5097_v6, 16  ;;  %v9693_v2 = vunpack.c.h.b16 %v11802_v51  ;;  %v9334_v6 = vld [vmem:[#allocation3 + $0x88] sm:$0xff]  ;;  %v5729_v9 = vor.u32 %v5728_v63, %v5725_v59 }
 0x455   : > { %6625 = vmatpush.bf16.msra.mxu2 %v9335_v5  ;;  %v5721_v31 = vsel %vm3886_vm3, %v5712_v36, %v11836_v62  ;;  %v5006_v5 = vor.u32 %v5005_v13, %v5002_v43 }
 0x456   : > { %v5737_v47 = vrot.slane %v5735_v24, 4 }
 0x457   : > { %6104 = vmatmul.bf16.gmra.mxu1 %v5678_v30  ;;  %v6476_v57 = vpop.f32.mrf.mxu0  ;;  %v5766_v20 = vshrl.u32 %v5006_v5, 16  ;;  %v5769_v25 = vshll.u32 %v5006_v5, 16 }
 0x458   : > { %6193 = vmatmul.bf16.gmra.mxu2 %v5686_v3  ;;  %v4492_v3 = vrot.slane %v4490_v52, 3  ;;  %v5738_v29 = vor.u32 %v5737_v47, %v5734_v16  ;;  %v5775_v47 = vshrl.u32 %v5100_v23, 16 }
 0x459   : > { %6282 = vmatmul.bf16.gmra.mxu3 %v5704_v34  ;;  %6626 = vmatpush.bf16.msra.mxu2 %v9334_v6  ;;  %v5746_v34 = vor.u32 %v5745_v45, %v5742_v38  ;;  %v5768_v13 = vrot.slane %v5766_v20, 3 }
 0x45a   : > { %6515 = vmatmul.bf16.gmra.mxu0 %v4462_v49  ;;  %v4862_v49 = vpack.c.b16 %v9693_v2, %v9693_v2  ;;  %v4496_v24 = vor.u32 %v4495_v56, %v4492_v3  ;;  %v4533_v3 = vshrl.u32 %v9980_v44, 16  ;;  %v4536_v56 = vshll.u32 %v9980_v44, 16 }
 0x45b   : > { %v6154_v14 = vpop.f32.mrf.mxu2  ;;  %v5747_v17 = vsel %vm3886_vm3, %v5738_v29, %v5746_v34  ;;  %v5777_v34 = vrot.slane %v5775_v47, 3 }
 0x45c   : > { %v6155_v39 = vadd.f32 %v6154_v14, %v6065_v41  ;;  %v6243_v0 = vpop.f32.mrf.mxu3  ;;  %v6067_v46 = vpop.f32.mrf.mxu1  ;;  %v9372_v41 = vld [vmem:[#allocation3 + $0x1b8] sm:$0xff]  ;;  %v10044_v14 = vor.u32 %v10156_v26, %v10043_v4  ;;  %v5757_v51 = vshrl.u32 %v4862_v49, 16  ;;  %v4505_v21 = vsel %vm3886_vm3, %v4496_v24, %v11816_v61 }
 0x45d   : > { %8070 = vmatpush.bf16.msra.mxu3 %v9372_v41  ;;  %v5760_v52 = vshll.u32 %v4862_v49, 16  ;;  %v5771_v24 = vrot.slane %v5769_v25, 4 }
 0x45e   : > { %v6244_v42 = vadd.f32 %v6243_v0, %v6155_v39  ;;  %v5102_v39 = vsel %vm3837_vm2, %v5100_v23, %v5101_v37  ;;  %v3501_v0 = vld [vmem:[#allocation2 + $0x10] sm:$0x1]  ;;  %v5749_v54 = vshrl.u32 %v10044_v14, 16  ;;  %v5752_v16 = vshll.u32 %v10044_v14, 16 }
 0x45f   : > { %v11834_v30 = vpop.f32.mrf.mxu0  ;;  %v5783_v38 = vshrl.u32 %v5102_v39, 16  ;;  %v5786_v45 = vshll.u32 %v5102_v39, 16  ;;  %v3805_v11 = vunpack.c.l.b16 %v3501_v0  ;;  %v5759_v2 = vrot.slane %v5757_v51, 3 }
 0x460   : > { %v11832_v19 = vadd.f32 %v6476_v57, %v6244_v42  ;;  %v9333_v57 = vld [vmem:[#allocation3 + $0x80] sm:$0xff]  ;;  %v5778_v42 = vshll.u32 %v5100_v23, 16  ;;  %v5762_v63 = vrot.slane %v5760_v52, 4  ;;  %v5751_v36 = vrot.slane %v5749_v54, 3  ;;  %v10231_v23 = vld [vmem:[#allocation2 + $0x8] sm:$0xff]  }
 0x461   : > { %6627 = vmatpush.bf16.msra.mxu2 %v9333_v57  ;;  %v5754_v29 = vrot.slane %v5752_v16, 4  ;;  %v5785_v43 = vrot.slane %v5783_v38, 3  ;;  %v3821_v49 = vpack.c.b16 %v3805_v11, %v3805_v11  ;;  %v3662_v37 = vshrl.u32 %v10231_v23, 16 }
 0x462   : > { %v5780_v4 = vrot.slane %v5778_v42, 4  ;;  %v3665_v57 = vshll.u32 %v10231_v23, 16  ;;  %v5763_v7 = vor.u32 %v5762_v63, %v5759_v2  ;;  %v3838_v51 = vrot.slane %v10231_v23, 5 }
 0x463   : > { %v6156_v53 = vpop.f32.mrf.mxu2  ;;  %v5755_v50 = vor.u32 %v5754_v29, %v5751_v36  ;;  %v3839_v5 = vrot.slane %v3821_v49, 5  ;;  %v3664_v0 = vrot.slane %v3662_v37, 4  ;;  %v10232_v37 = vld [vmem:[#allocation2 + $0x20] sm:$0xff] }
 0x464   : > { %v11839_v15 = vadd.f32 %v6156_v53, %v6067_v46  ;;  %v11841_v33 = vpop.f32.mrf.mxu3  ;;  %v6070_v58 = vpop.f32.mrf.mxu1  ;;  %v9388_v46 = vld [vmem:[#allocation3 + $0x238] sm:$0xff]  ;;  %v5788_v53 = vrot.slane %v5786_v45, 4  ;;  %v3914_v2 = vshrl.u32 %v3838_v51, 16  ;;  %v3917_v20 = vshll.u32 %v3838_v51, 16 }
 0x465   : > { %8248 = vmatpush.bf16.msra.mxu1 %v9388_v46  ;;  %v5772_v46 = vor.u32 %v5771_v24, %v5768_v13  ;;  %v5764_v16 = vsel %vm3886_vm3, %v5755_v50, %v5763_v7  ;;  %v3840_v42 = vsel %vm3837_vm2, %v3838_v51, %v3839_v5  ;;  %v3502_v45 = vld [vmem:[#allocation2 + $0x28] sm:$0x1]  ;;  %v3673_v24 = vshll.u32 %v10232_v37, 16 }
 0x466   : > { %v5789_v27 = vor.u32 %v5788_v53, %v5785_v43  ;;  %v3922_v25 = vshrl.u32 %v3840_v42, 16 }
 0x467   : > { %6109 = vmatmul.bf16.gmra.mxu1 %v5721_v31  ;;  %v6481_v32 = vpop.f32.mrf.mxu0  ;;  %v4538_v31 = vrot.slane %v4536_v56, 4 }
 0x468   : > { %6198 = vmatmul.bf16.gmra.mxu2 %v5729_v9 }
 0x469   : > { %6287 = vmatmul.bf16.gmra.mxu3 %v5747_v17  ;;  %v5781_v17 = vor.u32 %v5780_v4, %v5777_v34  ;;  %v3916_v34 = vrot.slane %v3914_v2, 3  ;;  %v3919_v4 = vrot.slane %v3917_v20, 4 }
 0x46a   : > { %6520 = vmatmul.bf16.gmra.mxu0 %v4505_v21  ;;  %v3667_v21 = vrot.slane %v3665_v57, 5  ;;  %v3670_v57 = vshrl.u32 %v10232_v37, 16 }
 0x46b   : > { %v6159_v59 = vpop.f32.mrf.mxu2  ;;  %v5790_v47 = vsel %vm3886_vm3, %v5781_v17, %v5789_v27  ;;  %v3920_v50 = vor.u32 %v3919_v4, %v3916_v34  ;;  %v3841_v17 = vrot.slane %v10232_v37, 5 }
 0x46c   : > { %v6160_v6 = vadd.f32 %v6159_v59, %v6070_v58  ;;  %v6248_v61 = vpop.f32.mrf.mxu3  ;;  %v6072_v41 = vpop.f32.mrf.mxu1  ;;  %v4535_v58 = vrot.slane %v4533_v3, 3  ;;  %v3668_v38 = vor.u32 %v3667_v21, %v3664_v0  ;;  %v3672_v21 = vrot.slane %v3670_v57, 4 }
 0x46d   : > { %v3960_v2 = vshll.u32 %v3841_v17, 16 }
 0x46e   : > { %v6249_v26 = vadd.f32 %v6248_v61, %v6160_v6  ;;  %v3925_v6 = vshll.u32 %v3840_v42, 16  ;;  %v3806_v61 = vunpack.c.l.b16 %v3502_v45  ;;  %v3905_v3 = vshrl.u32 %v3668_v38, 16  ;;  %v3503_v42 = vld [vmem:[#allocation2 + $0x40] sm:$0x1] }
 0x46f   : > { %v11851_v14 = vpop.f32.mrf.mxu0  ;;  %v3908_v36 = vshll.u32 %v3668_v38, 16  ;;  %v9387_v45 = vld [vmem:[#allocation3 + $0x230] sm:$0xff]  ;;  %v3962_v34 = vrot.slane %v3960_v2, 4 }
 0x470   : > { %v11849_v9 = vadd.f32 %v6481_v32, %v6249_v26  ;;  %v4539_v32 = vor.u32 %v4538_v31, %v4535_v58  ;;  %v3924_v26 = vrot.slane %v3922_v25, 3  ;;  %v3927_v43 = vrot.slane %v3925_v6, 4  ;;  %v9371_v58 = vld [vmem:[#allocation3 + $0x1b0] sm:$0xff]  ;;  %8249 = vmatpush.bf16.msra.mxu1 %v9387_v45  ;;  %v3504_v45 = vld [vmem:[#allocation2 + $0x58] sm:$0x1] }
 0x471   : > { %v3907_v49 = vrot.slane %v3905_v3, 3  ;;  %v3910_v23 = vrot.slane %v3908_v36, 4  ;;  %8071 = vmatpush.bf16.msra.mxu3 %v9371_v58  ;;  %v3807_v6 = vunpack.c.l.b16 %v3503_v42 }
 0x472   : > { %v4548_v11 = vsel %vm3886_vm3, %v4539_v32, %v11836_v62  ;;  %v3822_v62 = vpack.c.b16 %v3806_v61, %v3806_v61  ;;  %v3928_v7 = vor.u32 %v3927_v43, %v3924_v26 }
 0x473   : > { %v6161_v39 = vpop.f32.mrf.mxu2  ;;  %v3911_v0 = vor.u32 %v3910_v23, %v3907_v49 }
 0x474   : > { %v11853_v52 = vadd.f32 %v6161_v39, %v6072_v41  ;;  %v11855_v44 = vpop.f32.mrf.mxu3  ;;  %v6075_v54 = vpop.f32.mrf.mxu1  ;;  %v3842_v27 = vrot.slane %v3822_v62, 5  ;;  %v10233_v62 = vld [vmem:[#allocation2 + $0x38] sm:$0xff] }
 0x475   : > { %v3678_v49 = vshrl.u32 %v10233_v62, 16  ;;  %v3681_v23 = vshll.u32 %v10233_v62, 16 }
 0x477   : > { %6114 = vmatmul.bf16.gmra.mxu1 %v5764_v16  ;;  %v6486_v59 = vpop.f32.mrf.mxu0  ;;  %v3843_v16 = vsel %vm3837_vm2, %v3841_v17, %v3842_v27 }
 0x478   : > { %6203 = vmatmul.bf16.gmra.mxu2 %v5772_v46  ;;  %v3675_v46 = vrot.slane %v3673_v24, 5  ;;  %v3965_v20 = vshrl.u32 %v3843_v16, 16  ;;  %v3968_v25 = vshll.u32 %v3843_v16, 16 }
 0x479   : > { %6292 = vmatmul.bf16.gmra.mxu3 %v5790_v47  ;;  %v9379_v47 = vld [vmem:[#allocation3 + $0x1f0] sm:$0xff] }
 0x47a   : > { %6525 = vmatmul.bf16.gmra.mxu0 %v4548_v11  ;;  %v3676_v38 = vor.u32 %v3675_v46, %v3672_v21  ;;  %v3967_v4 = vrot.slane %v3965_v20, 3  ;;  %v3970_v26 = vrot.slane %v3968_v25, 4  ;;  %v3683_v21 = vrot.slane %v3681_v23, 5 }
 0x47b   : > { %v6164_v63 = vpop.f32.mrf.mxu2  ;;  %8160 = vmatpush.bf16.msra.mxu0 %v9379_v47 }
 0x47c   : > { %v6165_v56 = vadd.f32 %v6164_v63, %v6075_v54  ;;  %v6253_v41 = vpop.f32.mrf.mxu3  ;;  %v6077_v29 = vpop.f32.mrf.mxu1  ;;  %v3929_v54 = vsel %vm3886_vm3, %v3920_v50, %v3928_v7  ;;  %v3971_v7 = vor.u32 %v3970_v26, %v3967_v4 }
 0x47e   : > { %v6254_v53 = vadd.f32 %v6253_v41, %v6165_v56  ;;  %v3948_v56 = vshrl.u32 %v3676_v38, 16  ;;  %v3951_v41 = vshll.u32 %v3676_v38, 16 }
 0x47f   : > { %v11864_v31 = vpop.f32.mrf.mxu0 }
 0x480   : > { %v11862_v13 = vadd.f32 %v6486_v59, %v6254_v53  ;;  %v3957_v59 = vshrl.u32 %v3841_v17, 16  ;;  %v3823_v53 = vpack.c.b16 %v3807_v6, %v3807_v6  ;;  %v3950_v57 = vrot.slane %v3948_v56, 3 }
 0x481   : > { %v3953_v24 = vrot.slane %v3951_v41, 4  ;;  %v3844_v17 = vrot.slane %v10233_v62, 5  ;;  %v3808_v6 = vunpack.c.l.b16 %v3504_v45 }
 0x482   : > { %v3845_v27 = vrot.slane %v3823_v53, 5 }
 0x483   : > { %v6166_v51 = vpop.f32.mrf.mxu2  ;;  %v4003_v2 = vshll.u32 %v3844_v17, 16  ;;  %v3824_v53 = vpack.c.b16 %v3808_v6, %v3808_v6 }
 0x484   : > { %v11866_v5 = vadd.f32 %v6166_v51, %v6077_v29  ;;  %v11868_v39 = vpop.f32.mrf.mxu3  ;;  %v6080_v32 = vpop.f32.mrf.mxu1  ;;  %v3959_v29 = vrot.slane %v3957_v59, 3  ;;  %v3846_v42 = vsel %vm3837_vm2, %v3844_v17, %v3845_v27  ;;  %v4000_v59 = vshrl.u32 %v3844_v17, 16 }
 0x485   : > { %v4008_v20 = vshrl.u32 %v3846_v42, 16  ;;  %v4011_v25 = vshll.u32 %v3846_v42, 16 }
 0x486   : > { %v3963_v50 = vor.u32 %v3962_v34, %v3959_v29  ;;  %v4002_v29 = vrot.slane %v4000_v59, 3  ;;  %v4005_v34 = vrot.slane %v4003_v2, 4 }
 0x487   : > { %6539 = vmatmul.bf16.vlgmr.msrb.gmra.mxu1 %v3911_v0  ;;  %v6491_v11 = vpop.f32.mrf.mxu0  ;;  %v3680_v0 = vrot.slane %v3678_v49, 4  ;;  %v4010_v4 = vrot.slane %v4008_v20, 3  ;;  %v4013_v26 = vrot.slane %v4011_v25, 4  ;;  %v9378_v20 = vld [vmem:[#allocation3 + $0x1e8] sm:$0xff]  ;;  %v3505_v25 = vld [vmem:[#allocation2 + $0x70] sm:$0x1] }
 0x488   : > { %6628 = vmatmul.bf16.vlgmr.msra.gmra.mxu2 %v3929_v54  ;;  %v3954_v54 = vor.u32 %v3953_v24, %v3950_v57  ;;  %v3972_v47 = vsel %vm3886_vm3, %v3963_v50, %v3971_v7  ;;  %v10234_v57 = vld [vmem:[#allocation2 + $0x50] sm:$0xff]  ;;  %v9370_v7 = vld [vmem:[#allocation3 + $0x1a8] sm:$0xff]  ;;  %v4006_v27 = vor.u32 %v4005_v34, %v4002_v29  ;;  %8161 = vmatpush.bf16.msra.mxu0 %v9378_v20  ;;  %v3809_v29 = vunpack.c.l.b16 %v3505_v25 }
 0x489   : > { %v3684_v38 = vor.u32 %v3683_v21, %v3680_v0  ;;  %v3686_v24 = vshrl.u32 %v10234_v57, 16  ;;  %v3689_v50 = vshll.u32 %v10234_v57, 16  ;;  %v3847_v0 = vrot.slane %v10234_v57, 5  ;;  %8072 = vmatpush.bf16.msra.mxu3 %v9370_v7 }
 0x48a   : > { %v3848_v21 = vrot.slane %v3824_v53, 5 }
 0x48b   : > { %v6169_v61 = vpop.f32.mrf.mxu2  ;;  %v3994_v41 = vshll.u32 %v3684_v38, 16  ;;  %v3691_v45 = vrot.slane %v3689_v50, 5 }
 0x48c   : > { %v6170_v63 = vadd.f32 %v6169_v61, %v6080_v32  ;;  %v6258_v3 = vpop.f32.mrf.mxu3  ;;  %v6082_v36 = vpop.f32.mrf.mxu1  ;;  %v3849_v2 = vsel %vm3837_vm2, %v3847_v0, %v3848_v21 }
 0x48d   : > { %v3996_v23 = vrot.slane %v3994_v41, 4  ;;  %v4051_v41 = vshrl.u32 %v3849_v2, 16 }
 0x48e   : > { %v6259_v43 = vadd.f32 %v6258_v3, %v6170_v63  ;;  %v3991_v63 = vshrl.u32 %v3684_v38, 16  ;;  %v3688_v38 = vrot.slane %v3686_v24, 4 }
 0x48f   : > { %v11874_v58 = vpop.f32.mrf.mxu0  ;;  %v4053_v24 = vrot.slane %v4051_v41, 3 }
 0x490   : > { %v11872_v37 = vadd.f32 %v6491_v11, %v6259_v43  ;;  %v3993_v62 = vrot.slane %v3991_v63, 3  ;;  %v3692_v6 = vor.u32 %v3691_v45, %v3688_v38 }
 0x492   : > { %v3997_v42 = vor.u32 %v3996_v23, %v3993_v62  ;;  %v4037_v53 = vshll.u32 %v3692_v6, 16 }
 0x493   : > { %v6171_v51 = vpop.f32.mrf.mxu2 }
 0x494   : > { %v11876_v46 = vadd.f32 %v6171_v51, %v6082_v36  ;;  %v11878_v32 = vpop.f32.mrf.mxu3  ;;  %v6085_v16 = vpop.f32.mrf.mxu1  ;;  %v4014_v51 = vor.u32 %v4013_v26, %v4010_v4  ;;  %v4039_v38 = vrot.slane %v4037_v53, 4 }
 0x496   : > { %v4015_v59 = vsel %vm3886_vm3, %v4006_v27, %v4014_v51  ;;  %v3825_v27 = vpack.c.b16 %v3809_v29, %v3809_v29  ;;  %v10235_v51 = vld [vmem:[#allocation2 + $0x68] sm:$0xff] }
 0x497   : > { %6544 = vmatmul.bf16.gmra.mxu1 %v3954_v54  ;;  %v6496_v11 = vpop.f32.mrf.mxu0  ;;  %v3694_v21 = vshrl.u32 %v10235_v51, 16 }
 0x498   : > { %6633 = vmatmul.bf16.gmra.mxu2 %v3972_v47  ;;  %v3851_v20 = vrot.slane %v3825_v27, 5 }
 0x49b   : > { %v6174_v61 = vpop.f32.mrf.mxu2 }
 0x49c   : > { %v6175_v3 = vadd.f32 %v6174_v61, %v6085_v16  ;;  %v6263_v56 = vpop.f32.mrf.mxu3  ;;  %v6087_v36 = vpop.f32.mrf.mxu1  ;;  %v9386_v61 = vld [vmem:[#allocation3 + $0x228] sm:$0xff] }
 0x49d   : > { %8250 = vmatpush.bf16.msra.mxu1 %v9386_v61 }
 0x49e   : > { %v6264_v43 = vadd.f32 %v6263_v56, %v6175_v3  ;;  %v4043_v3 = vshrl.u32 %v3847_v0, 16  ;;  %v4046_v56 = vshll.u32 %v3847_v0, 16  ;;  %v3697_v0 = vshll.u32 %v10235_v51, 16 }
 0x49f   : > { %v11884_v17 = vpop.f32.mrf.mxu0 }
 0x4a0   : > { %v11882_v49 = vadd.f32 %v6496_v11, %v6264_v43  ;;  %v4034_v43 = vshrl.u32 %v3692_v6, 16  ;;  %v4045_v23 = vrot.slane %v4043_v3, 3  ;;  %v4048_v57 = vrot.slane %v4046_v56, 4 }
 0x4a1   : > { %v3696_v6 = vrot.slane %v3694_v21, 4  ;;  %v3699_v61 = vrot.slane %v3697_v0, 5 }
 0x4a3   : > { %v6176_v54 = vpop.f32.mrf.mxu2 }
 0x4a4   : > { %v11886_v16 = vadd.f32 %v6176_v54, %v6087_v36  ;;  %v11888_v47 = vpop.f32.mrf.mxu3  ;;  %v6090_v11 = vpop.f32.mrf.mxu1  ;;  %v4054_v36 = vshll.u32 %v3849_v2, 16  ;;  %v3850_v2 = vrot.slane %v10235_v51, 5 }
 0x4a6   : > { %v4056_v50 = vrot.slane %v4054_v36, 4  ;;  %v3852_v29 = vsel %vm3837_vm2, %v3850_v2, %v3851_v20  ;;  %v4089_v53 = vshll.u32 %v3850_v2, 16 }
 0x4a7   : > { %6549 = vmatmul.bf16.gmra.mxu1 %v3997_v42  ;;  %v6501_v63 = vpop.f32.mrf.mxu0  ;;  %v4036_v42 = vrot.slane %v4034_v43, 3  ;;  %v4086_v43 = vshrl.u32 %v3850_v2, 16  ;;  %v10236_v2 = vld [vmem:[#allocation2 + $0x80] sm:$0xff] }
 0x4a8   : > { %6638 = vmatmul.bf16.gmra.mxu2 %v4015_v59  ;;  %v4057_v59 = vor.u32 %v4056_v50, %v4053_v24 }
 0x4a9   : > { %v4040_v41 = vor.u32 %v4039_v38, %v4036_v42  ;;  %v4088_v0 = vrot.slane %v4086_v43, 3  ;;  %v4091_v42 = vrot.slane %v4089_v53, 4 }
 0x4ab   : > { %v6179_v34 = vpop.f32.mrf.mxu2 }
 0x4ac   : > { %v6180_v4 = vadd.f32 %v6179_v34, %v6090_v11  ;;  %v6268_v26 = vpop.f32.mrf.mxu3  ;;  %v6092_v62 = vpop.f32.mrf.mxu1  ;;  %v4049_v11 = vor.u32 %v4048_v57, %v4045_v23  ;;  %v3700_v34 = vor.u32 %v3699_v61, %v3696_v6  ;;  %v4094_v23 = vshrl.u32 %v3852_v29, 16 }
 0x4ad   : > { %v4097_v57 = vshll.u32 %v3852_v29, 16  ;;  %v9369_v29 = vld [vmem:[#allocation3 + $0x1a0] sm:$0xff] }
 0x4ae   : > { %v6269_v7 = vadd.f32 %v6268_v26, %v6180_v4  ;;  %v3506_v4 = vld [vmem:[#allocation2 + $0x88] sm:$0x1]  ;;  %v4077_v50 = vshrl.u32 %v3700_v34, 16  ;;  %v4080_v51 = vshll.u32 %v3700_v34, 16  ;;  %v4096_v38 = vrot.slane %v4094_v23, 3  ;;  %8073 = vmatpush.bf16.msra.mxu3 %v9369_v29 }
 0x4af   : > { %v11894_v45 = vpop.f32.mrf.mxu0  ;;  %v3810_v24 = vunpack.c.l.b16 %v3506_v4  ;;  %v3853_v34 = vrot.slane %v10236_v2, 5 }
 0x4b0   : > { %v11892_v54 = vadd.f32 %v6501_v63, %v6269_v7  ;;  %12531 = vst [vmem:[#allocation11_spill] sm:$0xff] %v11894_v45  ;;  %v4058_v63 = vsel %vm3886_vm3, %v4049_v11, %v4057_v59  ;;  %v4099_v11 = vrot.slane %v4097_v57, 4  ;;  %v4082_v61 = vrot.slane %v4080_v51, 4  ;;  %v9377_v51 = vld [vmem:[#allocation3 + $0x1e0] sm:$0xff] }
 0x4b1   : > { %v3826_v20 = vpack.c.b16 %v3810_v24, %v3810_v24  ;;  %8162 = vmatpush.bf16.msra.mxu0 %v9377_v51 }
 0x4b3   : > { %v6181_v25 = vpop.f32.mrf.mxu2  ;;  %v3854_v45 = vrot.slane %v3826_v20, 5 }
 0x4b4   : > { %v11896_v3 = vadd.f32 %v6181_v25, %v6092_v62  ;;  %v11898_v56 = vpop.f32.mrf.mxu3  ;;  %v6095_v36 = vpop.f32.mrf.mxu1  ;;  %v4079_v25 = vrot.slane %v4077_v50, 3 }
 0x4b6   : > { %v4083_v57 = vor.u32 %v4082_v61, %v4079_v25 }
 0x4b7   : > { %6554 = vmatmul.bf16.gmra.mxu1 %v4040_v41  ;;  %v6506_v26 = vpop.f32.mrf.mxu0  ;;  %v3702_v41 = vshrl.u32 %v10236_v2, 16 }
 0x4b8   : > { %6643 = vmatmul.bf16.gmra.mxu2 %v4058_v63  ;;  %v3705_v63 = vshll.u32 %v10236_v2, 16 }
 0x4ba   : > { %v3707_v24 = vrot.slane %v3705_v63, 5 }
 0x4bb   : > { %v6184_v62 = vpop.f32.mrf.mxu2 }
 0x4bc   : > { %v6185_v7 = vadd.f32 %v6184_v62, %v6095_v36  ;;  %v6273_v27 = vpop.f32.mrf.mxu3  ;;  %v6097_v21 = vpop.f32.mrf.mxu1  ;;  %v4092_v36 = vor.u32 %v4091_v42, %v4088_v0  ;;  %v4100_v62 = vor.u32 %v4099_v11, %v4096_v38  ;;  %v9385_v42 = vld [vmem:[#allocation3 + $0x220] sm:$0xff]  ;;  %v4129_v11 = vshrl.u32 %v3853_v34, 16 }
 0x4bd   : > { %8251 = vmatpush.bf16.msra.mxu1 %v9385_v42 }
 0x4be   : > { %v6274_v59 = vadd.f32 %v6273_v27, %v6185_v7  ;;  %v4101_v7 = vsel %vm3886_vm3, %v4092_v36, %v4100_v62  ;;  %v3855_v27 = vsel %vm3837_vm2, %v3853_v34, %v3854_v45  ;;  %v4131_v62 = vrot.slane %v4129_v11, 3 }
 0x4bf   : > { %v11904_v4 = vpop.f32.mrf.mxu0  ;;  %v4137_v20 = vshrl.u32 %v3855_v27, 16  ;;  %v4140_v2 = vshll.u32 %v3855_v27, 16 }
 0x4c0   : > { %v11902_v6 = vadd.f32 %v6506_v26, %v6274_v59  ;;  %12533 = vst [vmem:[#allocation10_spill] sm:$0xff] %v11904_v4  ;;  %v3704_v26 = vrot.slane %v3702_v41, 4  ;;  %v3507_v59 = vld [vmem:[#allocation2 + $0xa0] sm:$0x1]  ;;  %v10237_v4 = vld [vmem:[#allocation2 + $0x98] sm:$0xff] }
 0x4c1   : > { %v3811_v25 = vunpack.c.l.b16 %v3507_v59 }
 0x4c2   : > { %12532 = vst [vmem:[#allocation9_spill] sm:$0xff] %v11902_v6  ;;  %v3708_v0 = vor.u32 %v3707_v24, %v3704_v26 }
 0x4c3   : > { %v6186_v43 = vpop.f32.mrf.mxu2  ;;  %v3827_v24 = vpack.c.b16 %v3811_v25, %v3811_v25 }
 0x4c4   : > { %v11906_v53 = vadd.f32 %v6186_v43, %v6097_v21  ;;  %v11908_v23 = vpop.f32.mrf.mxu3  ;;  %v6100_v50 = vpop.f32.mrf.mxu1  ;;  %v4132_v21 = vshll.u32 %v3853_v34, 16  ;;  %v4120_v29 = vshrl.u32 %v3708_v0, 16  ;;  %v4123_v36 = vshll.u32 %v3708_v0, 16 }
 0x4c5   : > { %12535 = vst [vmem:[#allocation13_spill] sm:$0xff] %v11908_v23  ;;  %v3710_v23 = vshrl.u32 %v10237_v4, 16  ;;  %v3713_v34 = vshll.u32 %v10237_v4, 16  ;;  %v3857_v0 = vrot.slane %v3827_v24, 5 }
 0x4c6   : > { %12534 = vst [vmem:[#allocation12_spill] sm:$0xff] %v11906_v53  ;;  %v4134_v43 = vrot.slane %v4132_v21, 4  ;;  %v4122_v27 = vrot.slane %v4120_v29, 3  ;;  %v4125_v51 = vrot.slane %v4123_v36, 4  ;;  %v3508_v36 = vld [vmem:[#allocation2 + $0xb8] sm:$0x1] }
 0x4c7   : > { %6559 = vmatmul.bf16.gmra.mxu1 %v4083_v57  ;;  %v6511_v38 = vpop.f32.mrf.mxu0  ;;  %v4139_v57 = vrot.slane %v4137_v20, 3  ;;  %v3712_v11 = vrot.slane %v3710_v23, 4  ;;  %v3715_v21 = vrot.slane %v3713_v34, 5 }
 0x4c8   : > { %6648 = vmatmul.bf16.gmra.mxu2 %v4101_v7  ;;  %v4142_v7 = vrot.slane %v4140_v2, 4  ;;  %v4126_v25 = vor.u32 %v4125_v51, %v4122_v27 }
 0x4c9   : > { %v3716_v29 = vor.u32 %v3715_v21, %v3712_v11 }
 0x4ca   : > { %v4143_v42 = vor.u32 %v4142_v7, %v4139_v57  ;;  %v3812_v7 = vunpack.c.l.b16 %v3508_v36  ;;  %v9368_v36 = vld [vmem:[#allocation3 + $0x198] sm:$0xff] }
 0x4cb   : > { %v6189_v61 = vpop.f32.mrf.mxu2  ;;  %v4166_v34 = vshll.u32 %v3716_v29, 16  ;;  %8074 = vmatpush.bf16.msra.mxu3 %v9368_v36 }
 0x4cc   : > { %v6190_v41 = vadd.f32 %v6189_v61, %v6100_v50  ;;  %v6278_v63 = vpop.f32.mrf.mxu3  ;;  %v6102_v45 = vpop.f32.mrf.mxu1  ;;  %v4135_v50 = vor.u32 %v4134_v43, %v4131_v62  ;;  %v3856_v61 = vrot.slane %v10237_v4, 5  ;;  %v3828_v21 = vpack.c.b16 %v3812_v7, %v3812_v7 }
 0x4ce   : > { %v6279_v26 = vadd.f32 %v6278_v63, %v6190_v41  ;;  %v3858_v63 = vsel %vm3837_vm2, %v3856_v61, %v3857_v0  ;;  %v4172_v4 = vshrl.u32 %v3856_v61, 16  ;;  %v4175_v43 = vshll.u32 %v3856_v61, 16  ;;  %v10238_v61 = vld [vmem:[#allocation2 + $0xb0] sm:$0xff] }
 0x4cf   : > { %v11914_v59 = vpop.f32.mrf.mxu0  ;;  %v4180_v57 = vshrl.u32 %v3858_v63, 16  ;;  %v4183_v23 = vshll.u32 %v3858_v63, 16  ;;  %v3721_v63 = vshll.u32 %v10238_v61, 16 }
 0x4d0   : > { %v11912_v53 = vadd.f32 %v6511_v38, %v6279_v26  ;;  %12537 = vst [vmem:[#allocation15_spill] sm:$0xff] %v11914_v59  ;;  %v4144_v38 = vsel %vm3886_vm3, %v4135_v50, %v4143_v42  ;;  %v4174_v51 = vrot.slane %v4172_v4, 3  ;;  %v4177_v50 = vrot.slane %v4175_v43, 4 }
 0x4d1   : > { %v4182_v42 = vrot.slane %v4180_v57, 3  ;;  %v4185_v0 = vrot.slane %v4183_v23, 4  ;;  %v4168_v59 = vrot.slane %v4166_v34, 4  ;;  %v3723_v7 = vrot.slane %v3721_v63, 5  ;;  %v9376_v34 = vld [vmem:[#allocation3 + $0x1d8] sm:$0xff] }
 0x4d2   : > { %12536 = vst [vmem:[#allocation14_spill] sm:$0xff] %v11912_v53  ;;  %v3860_v53 = vrot.slane %v3828_v21, 5  ;;  %8163 = vmatpush.bf16.msra.mxu0 %v9376_v34 }
 0x4d3   : > { %v6191_v6 = vpop.f32.mrf.mxu2 }
 0x4d4   : > { %v11916_v20 = vadd.f32 %v6191_v6, %v6102_v45  ;;  %v11918_v2 = vpop.f32.mrf.mxu3  ;;  %v6105_v41 = vpop.f32.mrf.mxu1  ;;  %v4163_v45 = vshrl.u32 %v3716_v29, 16  ;;  %v3859_v29 = vrot.slane %v10238_v61, 5 }
 0x4d5   : > { %12539 = vst [vmem:[#allocation17_spill] sm:$0xff] %v11918_v2  ;;  %v3718_v2 = vshrl.u32 %v10238_v61, 16 }
 0x4d6   : > { %12538 = vst [vmem:[#allocation16_spill] sm:$0xff] %v11916_v20 }
 0x4d7   : > { %6564 = vmatmul.bf16.gmra.mxu1 %v4126_v25  ;;  %v6516_v62 = vpop.f32.mrf.mxu0  ;;  %v4165_v25 = vrot.slane %v4163_v45, 3 }
 0x4d8   : > { %6653 = vmatmul.bf16.gmra.mxu2 %v4144_v38 }
 0x4d9   : > { %v4169_v23 = vor.u32 %v4168_v59, %v4165_v25 }
 0x4db   : > { %v6194_v6 = vpop.f32.mrf.mxu2 }
 0x4dc   : > { %v6195_v26 = vadd.f32 %v6194_v6, %v6105_v41  ;;  %v6283_v24 = vpop.f32.mrf.mxu3  ;;  %v6107_v27 = vpop.f32.mrf.mxu1  ;;  %v4178_v41 = vor.u32 %v4177_v50, %v4174_v51  ;;  %v4186_v6 = vor.u32 %v4185_v0, %v4182_v42  ;;  %v9384_v50 = vld [vmem:[#allocation3 + $0x218] sm:$0xff]  ;;  %v4215_v0 = vshrl.u32 %v3859_v29, 16 }
 0x4dd   : > { %8252 = vmatpush.bf16.msra.mxu1 %v9384_v50 }
 0x4de   : > { %v6284_v11 = vadd.f32 %v6283_v24, %v6195_v26  ;;  %v4187_v26 = vsel %vm3886_vm3, %v4178_v41, %v4186_v6  ;;  %v3861_v24 = vsel %vm3837_vm2, %v3859_v29, %v3860_v53  ;;  %v4217_v6 = vrot.slane %v4215_v0, 3 }
 0x4df   : > { %v11924_v20 = vpop.f32.mrf.mxu0  ;;  %v4223_v21 = vshrl.u32 %v3861_v24, 16  ;;  %v4226_v61 = vshll.u32 %v3861_v24, 16 }
 0x4e0   : > { %v11922_v38 = vadd.f32 %v6516_v62, %v6284_v11  ;;  %12541 = vst [vmem:[#allocation19_spill] sm:$0xff] %v11924_v20  ;;  %v3720_v62 = vrot.slane %v3718_v2, 4  ;;  %v3509_v11 = vld [vmem:[#allocation2 + $0xd0] sm:$0x1]  ;;  %v10239_v20 = vld [vmem:[#allocation2 + $0xc8] sm:$0xff] }
 0x4e1   : > { %v3813_v59 = vunpack.c.l.b16 %v3509_v11 }
 0x4e2   : > { %12540 = vst [vmem:[#allocation18_spill] sm:$0xff] %v11922_v38  ;;  %v3724_v51 = vor.u32 %v3723_v7, %v3720_v62 }
 0x4e3   : > { %v6196_v4 = vpop.f32.mrf.mxu2  ;;  %v3829_v7 = vpack.c.b16 %v3813_v59, %v3813_v59 }
 0x4e4   : > { %v11926_v43 = vadd.f32 %v6196_v4, %v6107_v27  ;;  %v11928_v57 = vpop.f32.mrf.mxu3  ;;  %v6110_v45 = vpop.f32.mrf.mxu1  ;;  %v4218_v27 = vshll.u32 %v3859_v29, 16  ;;  %v4206_v36 = vshrl.u32 %v3724_v51, 16  ;;  %v4209_v41 = vshll.u32 %v3724_v51, 16 }
 0x4e5   : > { %12543 = vst [vmem:[#allocation21_spill] sm:$0xff] %v11928_v57  ;;  %v3726_v57 = vshrl.u32 %v10239_v20, 16  ;;  %v3729_v29 = vshll.u32 %v10239_v20, 16 }
 0x4e6   : > { %12542 = vst [vmem:[#allocation20_spill] sm:$0xff] %v11926_v43  ;;  %v4220_v4 = vrot.slane %v4218_v27, 4  ;;  %v4208_v24 = vrot.slane %v4206_v36, 3  ;;  %v4211_v34 = vrot.slane %v4209_v41, 4  ;;  %v3510_v41 = vld [vmem:[#allocation2 + $0xe8] sm:$0x1] }
 0x4e7   : > { %6569 = vmatmul.bf16.gmra.mxu1 %v4169_v23  ;;  %v6521_v42 = vpop.f32.mrf.mxu0  ;;  %v4225_v23 = vrot.slane %v4223_v21, 3  ;;  %v3728_v0 = vrot.slane %v3726_v57, 4  ;;  %v3731_v27 = vrot.slane %v3729_v29, 5  ;;  %v3814_v57 = vunpack.c.l.b16 %v3510_v41 }
 0x4e8   : > { %6658 = vmatmul.bf16.gmra.mxu2 %v4187_v26  ;;  %v4228_v26 = vrot.slane %v4226_v61, 4  ;;  %v4221_v11 = vor.u32 %v4220_v4, %v4217_v6  ;;  %v4212_v59 = vor.u32 %v4211_v34, %v4208_v24 }
 0x4e9   : > { %v3732_v36 = vor.u32 %v3731_v27, %v3728_v0  ;;  %v3830_v27 = vpack.c.b16 %v3814_v57, %v3814_v57 }
 0x4ea   : > { %v4229_v50 = vor.u32 %v4228_v26, %v4225_v23 }
 0x4eb   : > { %v6199_v2 = vpop.f32.mrf.mxu2 }
 0x4ec   : > { %v6200_v25 = vadd.f32 %v6199_v2, %v6110_v45  ;;  %v6288_v63 = vpop.f32.mrf.mxu3  ;;  %v6112_v53 = vpop.f32.mrf.mxu1  ;;  %v3862_v45 = vrot.slane %v10239_v20, 5  ;;  %v3863_v2 = vrot.slane %v3829_v7, 5  ;;  %v4252_v7 = vshll.u32 %v3732_v36, 16 }
 0x4ee   : > { %v6289_v62 = vadd.f32 %v6288_v63, %v6200_v25  ;;  %v3864_v63 = vsel %vm3837_vm2, %v3862_v45, %v3863_v2  ;;  %v4258_v20 = vshrl.u32 %v3862_v45, 16  ;;  %v4261_v6 = vshll.u32 %v3862_v45, 16 }
 0x4ef   : > { %v11934_v51 = vpop.f32.mrf.mxu0  ;;  %v4266_v4 = vshrl.u32 %v3864_v63, 16  ;;  %v4269_v23 = vshll.u32 %v3864_v63, 16  ;;  %v4254_v45 = vrot.slane %v4252_v7, 4  ;;  %v10240_v63 = vld [vmem:[#allocation2 + $0xe0] sm:$0xff] }
 0x4f0   : > { %v11932_v43 = vadd.f32 %v6521_v42, %v6289_v62  ;;  %12545 = vst [vmem:[#allocation23_spill] sm:$0xff] %v11934_v51  ;;  %v4230_v42 = vsel %vm3886_vm3, %v4221_v11, %v4229_v50  ;;  %v4260_v34 = vrot.slane %v4258_v20, 3  ;;  %v4263_v11 = vrot.slane %v4261_v6, 4  ;;  %v9375_v7 = vld [vmem:[#allocation3 + $0x1d0] sm:$0xff] }
 0x4f1   : > { %v4268_v50 = vrot.slane %v4266_v4, 3  ;;  %v4271_v2 = vrot.slane %v4269_v23, 4  ;;  %v3734_v41 = vshrl.u32 %v10240_v63, 16  ;;  %8164 = vmatpush.bf16.msra.mxu0 %v9375_v7 }
 0x4f2   : > { %12544 = vst [vmem:[#allocation22_spill] sm:$0xff] %v11932_v43 }
 0x4f3   : > { %v6201_v38 = vpop.f32.mrf.mxu2  ;;  %v3736_v4 = vrot.slane %v3734_v41, 4 }
 0x4f4   : > { %v11936_v21 = vadd.f32 %v6201_v38, %v6112_v53  ;;  %v11938_v61 = vpop.f32.mrf.mxu3  ;;  %v6115_v25 = vpop.f32.mrf.mxu1  ;;  %v4249_v38 = vshrl.u32 %v3732_v36, 16  ;;  %v3865_v36 = vrot.slane %v10240_v63, 5 }
 0x4f5   : > { %12547 = vst [vmem:[#allocation25_spill] sm:$0xff] %v11938_v61  ;;  %v3737_v61 = vshll.u32 %v10240_v63, 16 }
 0x4f6   : > { %12546 = vst [vmem:[#allocation24_spill] sm:$0xff] %v11936_v21  ;;  %v3866_v21 = vrot.slane %v3830_v27, 5 }
 0x4f7   : > { %6574 = vmatmul.bf16.gmra.mxu1 %v4212_v59  ;;  %v6526_v24 = vpop.f32.mrf.mxu0  ;;  %v9367_v59 = vld [vmem:[#allocation3 + $0x190] sm:$0xff]  ;;  %v3739_v23 = vrot.slane %v3737_v61, 5 }
 0x4f8   : > { %6663 = vmatmul.bf16.gmra.mxu2 %v4230_v42  ;;  %v4251_v42 = vrot.slane %v4249_v38, 3  ;;  %8075 = vmatpush.bf16.msra.mxu3 %v9367_v59 }
 0x4fa   : > { %v4255_v6 = vor.u32 %v4254_v45, %v4251_v42 }
 0x4fb   : > { %v6204_v26 = vpop.f32.mrf.mxu2 }
 0x4fc   : > { %v6205_v53 = vadd.f32 %v6204_v26, %v6115_v25  ;;  %v6293_v62 = vpop.f32.mrf.mxu3  ;;  %v6117_v29 = vpop.f32.mrf.mxu1  ;;  %v4264_v25 = vor.u32 %v4263_v11, %v4260_v34  ;;  %v4272_v26 = vor.u32 %v4271_v2, %v4268_v50  ;;  %v3740_v34 = vor.u32 %v3739_v23, %v3736_v4  ;;  %v9383_v11 = vld [vmem:[#allocation3 + $0x210] sm:$0xff]  ;;  %v10241_v4 = vld [vmem:[#allocation2 + $0xf8] sm:$0xff] }
 0x4fd   : > { %v4301_v50 = vshrl.u32 %v3865_v36, 16  ;;  %v4304_v2 = vshll.u32 %v3865_v36, 16  ;;  %8253 = vmatpush.bf16.msra.mxu1 %v9383_v11  ;;  %v3742_v23 = vshrl.u32 %v10241_v4, 16  ;;  %v3868_v7 = vrot.slane %v10241_v4, 5 }
 0x4fe   : > { %v6294_v0 = vadd.f32 %v6293_v62, %v6205_v53  ;;  %v4273_v38 = vsel %vm3886_vm3, %v4264_v25, %v4272_v26  ;;  %v3867_v62 = vsel %vm3837_vm2, %v3865_v36, %v3866_v21  ;;  %v4292_v59 = vshrl.u32 %v3740_v34, 16 }
 0x4ff   : > { %v4303_v21 = vrot.slane %v4301_v50, 3  ;;  %v4306_v45 = vrot.slane %v4304_v2, 4  ;;  %v3744_v50 = vrot.slane %v3742_v23, 4 }
 0x500   : > { %v11942_v51 = vadd.f32 %v6526_v24, %v6294_v0  ;;  %v3511_v24 = vld [vmem:[#allocation2 + $0x100] sm:$0x1] }
 0x501   : > { %v3815_v0 = vunpack.c.l.b16 %v3511_v24 }
 0x503   : > { %v6206_v43 = vpop.f32.mrf.mxu2  ;;  %v3831_v26 = vpack.c.b16 %v3815_v0, %v3815_v0 }
 0x504   : > { %v11944_v20 = vadd.f32 %v6206_v43, %v6117_v29  ;;  %v6540_v57 = vpop.f32.mrf.mxu1  ;;  %v4309_v43 = vshrl.u32 %v3867_v62, 16  ;;  %v4312_v29 = vshll.u32 %v3867_v62, 16 }
 0x505   : > { %v6541_v53 = vadd.f32 %v6540_v57, %v11720_v12  ;;  %v4295_v12 = vshll.u32 %v3740_v34, 16  ;;  %v3745_v57 = vshll.u32 %v10241_v4, 16 }
 0x506   : > { %v4311_v63 = vrot.slane %v4309_v43, 3  ;;  %v4314_v41 = vrot.slane %v4312_v29, 4 }
 0x507   : > { %6579 = vmatmul.bf16.gmra.mxu1 %v4255_v6  ;;  %v4294_v6 = vrot.slane %v4292_v59, 3  ;;  %v4297_v36 = vrot.slane %v4295_v12, 4  ;;  %v3747_v2 = vrot.slane %v3745_v57, 5  ;;  %v4344_v12 = vshrl.u32 %v3868_v7, 16 }
 0x508   : > { %6668 = vmatmul.bf16.gmra.mxu2 %v4273_v38  ;;  %v4307_v38 = vor.u32 %v4306_v45, %v4303_v21  ;;  %v4315_v62 = vor.u32 %v4314_v41, %v4311_v63 }
 0x509   : > { %v4298_v34 = vor.u32 %v4297_v36, %v4294_v6  ;;  %v3748_v59 = vor.u32 %v3747_v2, %v3744_v50  ;;  %v4346_v4 = vrot.slane %v4344_v12, 3 }
 0x50a   : > { %v4316_v29 = vsel %vm3886_vm3, %v4307_v38, %v4315_v62 }
 0x50b   : > { %v6629_v61 = vpop.f32.mrf.mxu2  ;;  %v4338_v6 = vshll.u32 %v3748_v59, 16 }
 0x50c   : > { %v11949_v27 = vadd.f32 %v6629_v61, %v6541_v53  ;;  %v6542_v42 = vpop.f32.mrf.mxu1  ;;  %v3869_v53 = vrot.slane %v3831_v26, 5  ;;  %v3512_v61 = vld [vmem:[#allocation2 + $0x118] sm:$0x1]  ;;  %v4335_v26 = vshrl.u32 %v3748_v59, 16 }
 0x50d   : > { %v6543_v25 = vadd.f32 %v6542_v42, %v11735_v8  ;;  %v4347_v42 = vshll.u32 %v3868_v7, 16  ;;  %v3816_v63 = vunpack.c.l.b16 %v3512_v61 }
 0x50e   : > { %v3870_v0 = vsel %vm3837_vm2, %v3868_v7, %v3869_v53  ;;  %v9366_v53 = vld [vmem:[#allocation3 + $0x188] sm:$0xff]  ;;  %v10242_v7 = vld [vmem:[#allocation2 + $0x110] sm:$0xff] }
 0x50f   : > { %v4352_v21 = vshrl.u32 %v3870_v0, 16  ;;  %v4355_v45 = vshll.u32 %v3870_v0, 16  ;;  %v4349_v23 = vrot.slane %v4347_v42, 4  ;;  %v3832_v62 = vpack.c.b16 %v3816_v63, %v3816_v63  ;;  %8076 = vmatpush.bf16.msra.mxu3 %v9366_v53 }
 0x510   : > { %v3750_v50 = vshrl.u32 %v10242_v7, 16  ;;  %v3753_v2 = vshll.u32 %v10242_v7, 16 }
 0x511   : > { %v4357_v57 = vrot.slane %v4355_v45, 4  ;;  %v3872_v0 = vrot.slane %v3832_v62, 5 }
 0x512   : > { %v3752_v42 = vrot.slane %v3750_v50, 4 }
 0x513   : > { %v6631_v24 = vpop.f32.mrf.mxu2 }
 0x514   : > { %v11952_v11 = vadd.f32 %v6631_v24, %v6543_v25  ;;  %v6545_v43 = vpop.f32.mrf.mxu1  ;;  %v4337_v24 = vrot.slane %v4335_v26, 3  ;;  %v9374_v26 = vld [vmem:[#allocation3 + $0x1c8] sm:$0xff] }
 0x515   : > { %v6546_v8 = vadd.f32 %v6545_v43, %v11743_v35  ;;  %v4354_v35 = vrot.slane %v4352_v21, 3  ;;  %v4350_v43 = vor.u32 %v4349_v23, %v4346_v4  ;;  %v3755_v21 = vrot.slane %v3753_v2, 5  ;;  %v9382_v4 = vld [vmem:[#allocation3 + $0x208] sm:$0xff]  ;;  %8165 = vmatpush.bf16.msra.mxu0 %v9374_v26 }
 0x516   : > { %8254 = vmatpush.bf16.msra.mxu1 %v9382_v4 }
 0x517   : > { %6584 = vmatmul.bf16.gmra.mxu1 %v4298_v34  ;;  %v4340_v34 = vrot.slane %v4338_v6, 4  ;;  %v3513_v6 = vld [vmem:[#allocation2 + $0x130] sm:$0x1] }
 0x518   : > { %6673 = vmatmul.bf16.gmra.mxu2 %v4316_v29  ;;  %v4358_v29 = vor.u32 %v4357_v57, %v4354_v35  ;;  %v3817_v62 = vunpack.c.l.b16 %v3513_v6 }
 0x519   : > { %v4341_v12 = vor.u32 %v4340_v34, %v4337_v24 }
 0x51b   : > { %v6634_v41 = vpop.f32.mrf.mxu2 }
 0x51c   : > { %v11957_v25 = vadd.f32 %v6634_v41, %v6546_v8  ;;  %v6547_v36 = vpop.f32.mrf.mxu1  ;;  %v3871_v8 = vrot.slane %v10242_v7, 5 }
 0x51d   : > { %v6548_v38 = vadd.f32 %v6547_v36, %v11758_v1  ;;  %v4359_v1 = vsel %vm3886_vm3, %v4350_v43, %v4358_v29  ;;  %v3756_v36 = vor.u32 %v3755_v21, %v3752_v42  ;;  %v10243_v42 = vld [vmem:[#allocation2 + $0x128] sm:$0xff] }
 0x51e   : > { %v3873_v41 = vsel %vm3837_vm2, %v3871_v8, %v3872_v0  ;;  %v4387_v23 = vshrl.u32 %v3871_v8, 16  ;;  %v4390_v35 = vshll.u32 %v3871_v8, 16  ;;  %v3758_v21 = vshrl.u32 %v10243_v42, 16 }
 0x51f   : > { %v4395_v57 = vshrl.u32 %v3873_v41, 16  ;;  %v4378_v34 = vshrl.u32 %v3756_v36, 16  ;;  %v3874_v26 = vrot.slane %v10243_v42, 5 }
 0x520   : > { %v4389_v50 = vrot.slane %v4387_v23, 3  ;;  %v4392_v2 = vrot.slane %v4390_v35, 4  ;;  %v3760_v23 = vrot.slane %v3758_v21, 4 }
 0x521   : > { %v4397_v43 = vrot.slane %v4395_v57, 3 }
 0x523   : > { %v6636_v61 = vpop.f32.mrf.mxu2 }
 0x524   : > { %v11960_v59 = vadd.f32 %v6636_v61, %v6548_v38  ;;  %v6550_v45 = vpop.f32.mrf.mxu1  ;;  %v4398_v38 = vshll.u32 %v3873_v41, 16  ;;  %v3833_v61 = vpack.c.b16 %v3817_v62, %v3817_v62 }
 0x525   : > { %v6551_v63 = vadd.f32 %v6550_v45, %v11766_v48  ;;  %v4381_v48 = vshll.u32 %v3756_v36, 16  ;;  %v3761_v45 = vshll.u32 %v10243_v42, 16 }
 0x526   : > { %v4400_v29 = vrot.slane %v4398_v38, 4 }
 0x527   : > { %6589 = vmatmul.bf16.gmra.mxu1 %v4341_v12  ;;  %v4380_v12 = vrot.slane %v4378_v34, 3  ;;  %v4383_v8 = vrot.slane %v4381_v48, 4  ;;  %v3763_v35 = vrot.slane %v3761_v45, 5  ;;  %v4430_v48 = vshrl.u32 %v3874_v26, 16 }
 0x528   : > { %6678 = vmatmul.bf16.gmra.mxu2 %v4359_v1  ;;  %v4393_v1 = vor.u32 %v4392_v2, %v4389_v50  ;;  %v4401_v41 = vor.u32 %v4400_v29, %v4397_v43 }
 0x529   : > { %v4384_v36 = vor.u32 %v4383_v8, %v4380_v12  ;;  %v3764_v34 = vor.u32 %v3763_v35, %v3760_v23  ;;  %v4432_v8 = vrot.slane %v4430_v48, 3 }
 0x52a   : > { %v4402_v38 = vsel %vm3886_vm3, %v4393_v1, %v4401_v41 }
 0x52b   : > { %v6639_v53 = vpop.f32.mrf.mxu2  ;;  %v4424_v12 = vshll.u32 %v3764_v34, 16 }
 0x52c   : > { %v11965_v24 = vadd.f32 %v6639_v53, %v6551_v63  ;;  %v6552_v7 = vpop.f32.mrf.mxu1  ;;  %v3875_v63 = vrot.slane %v3833_v61, 5  ;;  %v3514_v53 = vld [vmem:[#allocation2 + $0x148] sm:$0x1]  ;;  %v4421_v61 = vshrl.u32 %v3764_v34, 16 }
 0x52d   : > { %v6553_v0 = vadd.f32 %v6552_v7, %v11781_v40  ;;  %v4433_v7 = vshll.u32 %v3874_v26, 16  ;;  %v3818_v43 = vunpack.c.l.b16 %v3514_v53  ;;  %v4426_v35 = vrot.slane %v4424_v12, 4 }
 0x52e   : > { %v3876_v62 = vsel %vm3837_vm2, %v3874_v26, %v3875_v63  ;;  %v9365_v63 = vld [vmem:[#allocation3 + $0x180] sm:$0xff]  ;;  %v4423_v23 = vrot.slane %v4421_v61, 3  ;;  %v6241_v61 = vadd.f32 %v11821_v18, %v11819_v60 }
 0x52f   : > { %v4438_v50 = vshrl.u32 %v3876_v62, 16  ;;  %v4441_v2 = vshll.u32 %v3876_v62, 16  ;;  %v4435_v21 = vrot.slane %v4433_v7, 4  ;;  %v3834_v1 = vpack.c.b16 %v3818_v43, %v3818_v43  ;;  %8077 = vmatpush.bf16.msra.mxu3 %v9365_v63  ;;  %v3515_v7 = vld [vmem:[#allocation2 + $0x160] sm:$0x1]  ;;  %v9381_v63 = vld [vmem:[#allocation3 + $0x200] sm:$0xff] }
 0x530   : > { %8255 = vmatpush.bf16.msra.mxu1 %v9381_v63 }
 0x531   : > { %v4443_v45 = vrot.slane %v4441_v2, 4  ;;  %v3878_v62 = vrot.slane %v3834_v1, 5  ;;  %v4427_v2 = vor.u32 %v4426_v35, %v4423_v23 }
 0x533   : > { %v6641_v6 = vpop.f32.mrf.mxu2 }
 0x534   : > { %v11968_v4 = vadd.f32 %v6641_v6, %v6553_v0  ;;  %v6555_v57 = vpop.f32.mrf.mxu1  ;;  %v10244_v6 = vld [vmem:[#allocation2 + $0x140] sm:$0xff] }
 0x535   : > { %v6556_v40 = vadd.f32 %v6555_v57, %v11789_v10  ;;  %v4440_v10 = vrot.slane %v4438_v50, 3  ;;  %v3769_v26 = vshll.u32 %v10244_v6, 16  ;;  %v4436_v57 = vor.u32 %v4435_v21, %v4432_v8  ;;  %v9373_v8 = vld [vmem:[#allocation3 + $0x1c0] sm:$0xff] }
 0x536   : > { %8166 = vmatpush.bf16.msra.mxu0 %v9373_v8 }
 0x537   : > { %6594 = vmatmul.bf16.gmra.mxu1 %v4384_v36  ;;  %v3766_v36 = vshrl.u32 %v10244_v6, 16  ;;  %v3771_v48 = vrot.slane %v3769_v26, 5 }
 0x538   : > { %6683 = vmatmul.bf16.gmra.mxu2 %v4402_v38  ;;  %v4444_v38 = vor.u32 %v4443_v45, %v4440_v10 }
 0x539   : > { %v3768_v34 = vrot.slane %v3766_v36, 4 }
 0x53b   : > { %v6644_v29 = vpop.f32.mrf.mxu2  ;;  %v3772_v21 = vor.u32 %v3771_v48, %v3768_v34 }
 0x53c   : > { %v11973_v0 = vadd.f32 %v6644_v29, %v6556_v40  ;;  %v6557_v42 = vpop.f32.mrf.mxu1  ;;  %v3877_v40 = vrot.slane %v10244_v6, 5  ;;  %v6474_v6 = vadd.f32 %v11814_v55, %v6241_v61  ;;  %v10157_v61 = vld [vmem:[#allocation2 + $0x34] sm:$0xf0]  }
 0x53d   : > { %v6558_v41 = vadd.f32 %v6557_v42, %v11804_v22  ;;  %v4445_v22 = vsel %vm3886_vm3, %v4436_v57, %v4444_v38  ;;  %v3819_v42 = vunpack.c.l.b16 %v3515_v7  ;;  %v4464_v26 = vshrl.u32 %v3772_v21, 16  ;;  %v10245_v57 = vld [vmem:[#allocation2 + $0x158] sm:$0xff] }
 0x53e   : > { %v3879_v29 = vsel %vm3837_vm2, %v3877_v40, %v3878_v62  ;;  %v4473_v10 = vshrl.u32 %v3877_v40, 16  ;;  %v4476_v45 = vshll.u32 %v3877_v40, 16  ;;  %v4467_v60 = vshll.u32 %v3772_v21, 16  ;;  %v11986_v40 = vld [vmem:[#allocation2 + $0x38] sm:$0xff]  }
 0x53f   : > { %v4481_v1 = vshrl.u32 %v3879_v29, 16  ;;  %v3835_v36 = vpack.c.b16 %v3819_v42, %v3819_v42  ;;  %v3774_v38 = vshrl.u32 %v10245_v57, 16  ;;  %v3777_v62 = vshll.u32 %v10245_v57, 16 }
 0x540   : > { %v4475_v18 = vrot.slane %v4473_v10, 3  ;;  %v9697_v34 = vunpack.c.h.b16 %v11986_v40  ;;  %v3880_v7 = vrot.slane %v10245_v57, 5 }
 0x541   : > { %v4483_v23 = vrot.slane %v4481_v1, 3  ;;  %v3881_v55 = vrot.slane %v3835_v36, 5  ;;  %v3776_v21 = vrot.slane %v3774_v38, 4  ;;  %v3779_v10 = vrot.slane %v3777_v62, 5 }
 0x542   : > { %v6871_v8 = vpack.c.b16 %v9697_v34, %v9697_v34  ;;  %v4516_v36 = vshrl.u32 %v3880_v7, 16 }
 0x543   : > { %v6646_v53 = vpop.f32.mrf.mxu2  ;;  %v3882_v1 = vsel %vm3837_vm2, %v3880_v7, %v3881_v55  ;;  %v3780_v57 = vor.u32 %v3779_v10, %v3776_v21  ;;  %v6246_v55 = vadd.f32 %v11841_v33, %v11839_v15 }
 0x544   : > { %v11976_v50 = vadd.f32 %v6646_v53, %v6558_v41  ;;  %v6560_v43 = vpop.f32.mrf.mxu1  ;;  %v4484_v41 = vshll.u32 %v3879_v29, 16  ;;  %v7154_v62 = vshll.u32 %v6871_v8, 16 }
 0x545   : > { %v11983_v12 = vadd.f32 %v6560_v43, %v11812_v28  ;;  %v4478_v28 = vrot.slane %v4476_v45, 4  ;;  %v4466_v43 = vrot.slane %v4464_v26, 3  ;;  %v4519_v26 = vshll.u32 %v3880_v7, 16 }
 0x546   : > { %12548 = vst [vmem:[#allocation26_spill] sm:$0xff] %v11976_v50  ;;  %v4486_v35 = vrot.slane %v4484_v41, 4  ;;  %v7151_v41 = vshrl.u32 %v6871_v8, 16  ;;  %v4507_v7 = vshrl.u32 %v3780_v57, 16  ;;  %v6479_v15 = vadd.f32 %v11834_v30, %v6246_v55  ;;  %v10158_v55 = vld [vmem:[#allocation2 + $0x4c] sm:$0xf0]  }
 0x547   : > { %12549 = vst [vmem:[#allocation27_spill] sm:$0xff] %v11983_v12  ;;  %6599 = vmatmul.bf16.gmra.mxu1 %v4427_v2  ;;  %v10047_v2 = vld [vmem:[#allocation2 + $0x34] sm:$0x8]  ;;  %v4479_v29 = vor.u32 %v4478_v28, %v4475_v18  ;;  %v3516_v18 = vld [vmem:[#allocation2 + $0x178] sm:$0x1]  ;;  %v4521_v10 = vrot.slane %v4519_v26, 4 }
 0x548   : > { %6688 = vmatmul.bf16.gmra.mxu2 %v4445_v22  ;;  %v4469_v22 = vrot.slane %v4467_v60, 4  ;;  %v4487_v42 = vor.u32 %v4486_v35, %v4483_v23  ;;  %v10048_v45 = vor.u32 %v10157_v61, %v10047_v2  ;;  %v4524_v60 = vshrl.u32 %v3882_v1, 16 }
 0x549   : > { %v4527_v35 = vshll.u32 %v3882_v1, 16  ;;  %v7153_v38 = vrot.slane %v7151_v41, 3  ;;  %v6919_v2 = vshrl.u32 %v11986_v40, 16  ;;  %v7156_v61 = vrot.slane %v7154_v62, 4  ;;  %v10246_v41 = vld [vmem:[#allocation2 + $0x170] sm:$0xff] }
 0x54a   : > { %v7143_v63 = vshrl.u32 %v10048_v45, 16  ;;  %v7146_v12 = vshll.u32 %v10048_v45, 16  ;;  %v4470_v50 = vor.u32 %v4469_v22, %v4466_v43  ;;  %v6922_v43 = vshll.u32 %v11986_v40, 16  ;;  %v10051_v62 = vld [vmem:[#allocation2 + $0x4c] sm:$0x8] }
 0x54b   : > { %v3820_v22 = vunpack.c.l.b16 %v3516_v18  ;;  %v4526_v45 = vrot.slane %v4524_v60, 3  ;;  %v4529_v8 = vrot.slane %v4527_v35, 4  ;;  %v7157_v1 = vor.u32 %v7156_v61, %v7153_v38  ;;  %v12002_v18 = vld [vmem:[#allocation2 + $0x50] sm:$0xff]  }
 0x54c   : > { %v6562_v53 = vpop.f32.mrf.mxu1  ;;  %v7145_v28 = vrot.slane %v7143_v63, 3  ;;  %v7148_v34 = vrot.slane %v7146_v12, 4  ;;  %v4510_v12 = vshll.u32 %v3780_v57, 16  ;;  %v6924_v21 = vrot.slane %v6922_v43, 5 }
 0x54d   : > { %v11989_v48 = vadd.f32 %v6562_v53, %v6474_v6  ;;  %v4488_v6 = vsel %vm3886_vm3, %v4479_v29, %v4487_v42  ;;  %v4518_v42 = vrot.slane %v4516_v36, 3  ;;  %v3782_v63 = vshrl.u32 %v10246_v41, 16 }
 0x54e   : > { %v7149_v29 = vor.u32 %v7148_v34, %v7145_v28  ;;  %v4509_v57 = vrot.slane %v4507_v7, 3  ;;  %v9701_v26 = vunpack.c.h.b16 %v12002_v18  ;;  %v4512_v35 = vrot.slane %v4510_v12, 4 }
 0x54f   : > { %12550 = vst [vmem:[#allocation28_spill] sm:$0xff] %v11989_v48  ;;  %v4522_v30 = vor.u32 %v4521_v10, %v4518_v42  ;;  %v4530_v38 = vor.u32 %v4529_v8, %v4526_v45  ;;  %v3784_v61 = vrot.slane %v3782_v63, 4 }
 0x550   : > { %v4513_v10 = vor.u32 %v4512_v35, %v4509_v57 }
 0x554   : > { %v6565_v53 = vpop.f32.mrf.mxu1 }
 0x555   : > { %v11994_v23 = vadd.f32 %v6565_v53, %v11832_v19  ;;  %v6921_v19 = vrot.slane %v6919_v2, 4  ;;  %v3785_v53 = vshll.u32 %v10246_v41, 16 }
 0x557   : > { %12551 = vst [vmem:[#allocation29_spill] sm:$0xff] %v11994_v23  ;;  %6604 = vmatmul.bf16.gmra.mxu1 %v4470_v50  ;;  %v6925_v33 = vor.u32 %v6924_v21, %v6921_v19  ;;  %v3836_v50 = vpack.c.b16 %v3820_v22, %v3820_v22  ;;  %v10052_v22 = vor.u32 %v10158_v55, %v10051_v62  ;;  %v3787_v19 = vrot.slane %v3785_v53, 5 }
 0x558   : > { %6693 = vmatmul.bf16.gmra.mxu2 %v4488_v6  ;;  %v7158_v6 = vsel %vm3886_vm3, %v7149_v29, %v7157_v1  ;;  %v6873_v29 = vpack.c.b16 %v9701_v26, %v9701_v26  ;;  %v3883_v21 = vrot.slane %v10246_v41, 5  ;;  %v4531_v41 = vsel %vm3886_vm3, %v4522_v30, %v4530_v38 }
 0x559   : > { %8078 = vmatmul.bf16.vlgmr.msra.gmra.mxu3 %v7158_v6  ;;  %v7160_v36 = vshrl.u32 %v6925_v33, 16  ;;  %v7163_v34 = vshll.u32 %v6925_v33, 16  ;;  %v3884_v7 = vrot.slane %v3836_v50, 5  ;;  %v7186_v6 = vshrl.u32 %v10052_v22, 16  ;;  %v6758_v50 = vld [vmem:[#allocation2 + $0x40] sm:$0x1] }
 0x55a   : > { %v7189_v33 = vshll.u32 %v10052_v22, 16  ;;  %v7194_v23 = vshrl.u32 %v6873_v29, 16  ;;  %v7197_v48 = vshll.u32 %v6873_v29, 16  ;;  %v3788_v53 = vor.u32 %v3787_v19, %v3784_v61 }
 0x55b   : > { %v7162_v2 = vrot.slane %v7160_v36, 3  ;;  %v7165_v43 = vrot.slane %v7163_v34, 4  ;;  %v3885_v45 = vsel %vm3837_vm2, %v3883_v21, %v3884_v7  ;;  %v6927_v36 = vshrl.u32 %v12002_v18, 16 }
 0x55c   : > { %v6567_v28 = vpop.f32.mrf.mxu1  ;;  %v7191_v12 = vrot.slane %v7189_v33, 4  ;;  %v7196_v42 = vrot.slane %v7194_v23, 3  ;;  %v7199_v8 = vrot.slane %v7197_v48, 4  ;;  %v6930_v23 = vshll.u32 %v12002_v18, 16  ;;  %v12018_v33 = vld [vmem:[#allocation2 + $0x68] sm:$0xff]  }
 0x55d   : > { %v12005_v60 = vadd.f32 %v6567_v28, %v6479_v15  ;;  %v7166_v1 = vor.u32 %v7165_v43, %v7162_v2  ;;  %v7188_v15 = vrot.slane %v7186_v6, 3  ;;  %v6251_v28 = vadd.f32 %v11855_v44, %v11853_v52 }
 0x55e   : > { %v7200_v62 = vor.u32 %v7199_v8, %v7196_v42  ;;  %v4559_v57 = vshrl.u32 %v3883_v21, 16  ;;  %v4562_v35 = vshll.u32 %v3883_v21, 16  ;;  %v4567_v48 = vshrl.u32 %v3885_v45, 16  ;;  %v10055_v8 = vld [vmem:[#allocation2 + $0x64] sm:$0x8] }
 0x55f   : > { %8167 = vmatmul.bf16.vlgmr.msra.gmra.mxu0 %v7166_v1  ;;  %v7192_v26 = vor.u32 %v7191_v12, %v7188_v15  ;;  %v6929_v55 = vrot.slane %v6927_v36, 4  ;;  %v4570_v52 = vshll.u32 %v3885_v45, 16  ;;  %v7062_v44 = vunpack.c.l.b16 %v6758_v50 }
 0x560   : > { %v6932_v30 = vrot.slane %v6930_v23, 5  ;;  %v4550_v38 = vshrl.u32 %v3788_v53, 16  ;;  %v6484_v2 = vadd.f32 %v11851_v14, %v6251_v28  ;;  %v4553_v22 = vshll.u32 %v3788_v53, 16  ;;  %v10159_v28 = vld [vmem:[#allocation2 + $0x64] sm:$0xf0]  }
 0x561   : > { %v7201_v43 = vsel %vm3886_vm3, %v7192_v26, %v7200_v62  ;;  %v4561_v29 = vrot.slane %v4559_v57, 3  ;;  %v4564_v61 = vrot.slane %v4562_v35, 4  ;;  %v4569_v19 = vrot.slane %v4567_v48, 3 }
 0x562   : > { %v4572_v7 = vrot.slane %v4570_v52, 4  ;;  %v7078_v1 = vpack.c.b16 %v7062_v44, %v7062_v44  ;;  %v4552_v12 = vrot.slane %v4550_v38, 3  ;;  %v9705_v42 = vunpack.c.h.b16 %v12018_v33 }
 0x563   : > { %v10056_v53 = vor.u32 %v10159_v28, %v10055_v8  ;;  %v7094_v26 = vrot.slane %v11986_v40, 5  ;;  %v6935_v52 = vshrl.u32 %v12018_v33, 16 }
 0x564   : > { %v6570_v63 = vpop.f32.mrf.mxu1  ;;  %v6875_v50 = vpack.c.b16 %v9705_v42, %v9705_v42  ;;  %v4573_v36 = vor.u32 %v4572_v7, %v4569_v19  ;;  %v7095_v62 = vrot.slane %v7078_v1, 5 }
 0x565   : > { %v12013_v34 = vadd.f32 %v6570_v63, %v11849_v9  ;;  %v6933_v9 = vor.u32 %v6932_v30, %v6929_v55  ;;  %v4555_v63 = vrot.slane %v4553_v22, 4  ;;  %v7229_v57 = vshrl.u32 %v10056_v53, 16 }
 0x566   : > { %v7232_v35 = vshll.u32 %v10056_v53, 16  ;;  %v7237_v48 = vshrl.u32 %v6875_v50, 16  ;;  %v7240_v55 = vshll.u32 %v6875_v50, 16  ;;  %v6937_v1 = vrot.slane %v6935_v52, 4  ;;  %v10059_v52 = vld [vmem:[#allocation2 + $0x7c] sm:$0x8] }
 0x567   : > { %6609 = vmatmul.bf16.gmra.mxu1 %v4513_v10  ;;  %v7203_v21 = vshrl.u32 %v6933_v9, 16  ;;  %v7206_v6 = vshll.u32 %v6933_v9, 16  ;;  %v7231_v44 = vrot.slane %v7229_v57, 3  ;;  %v7096_v9 = vsel %vm3837_vm2, %v7094_v26, %v7095_v62 }
 0x568   : > { %6698 = vmatmul.bf16.gmra.mxu2 %v4531_v41  ;;  %v4565_v41 = vor.u32 %v4564_v61, %v4561_v29  ;;  %v7234_v30 = vrot.slane %v7232_v35, 4  ;;  %v7239_v38 = vrot.slane %v7237_v48, 3  ;;  %v6759_v61 = vld [vmem:[#allocation2 + $0x58] sm:$0x1]  ;;  %v7172_v42 = vshll.u32 %v7094_v26, 16 }
 0x569   : > { %8083 = vmatmul.bf16.gmra.mxu3 %v7201_v43  ;;  %v7205_v14 = vrot.slane %v7203_v21, 3  ;;  %v7208_v45 = vrot.slane %v7206_v6, 4  ;;  %v4556_v43 = vor.u32 %v4555_v63, %v4552_v12  ;;  %v6938_v21 = vshll.u32 %v12018_v33, 16 }
 0x56a   : > { %v4574_v29 = vsel %vm3886_vm3, %v4565_v41, %v4573_v36  ;;  %v7235_v40 = vor.u32 %v7234_v30, %v7231_v44  ;;  %v6256_v6 = vadd.f32 %v11868_v39, %v11866_v5  ;;  %v7177_v12 = vshrl.u32 %v7096_v9, 16  ;;  %v12035_v39 = vld [vmem:[#allocation2 + $0x80] sm:$0xff]  }
 0x56b   : > { %v7209_v23 = vor.u32 %v7208_v45, %v7205_v14  ;;  %v7180_v14 = vshll.u32 %v7096_v9, 16  ;;  %v7063_v45 = vunpack.c.l.b16 %v6759_v61  ;;  %v6940_v8 = vrot.slane %v6938_v21, 5  ;;  %v10160_v44 = vld [vmem:[#allocation2 + $0x7c] sm:$0xf0]  }
 0x56c   : > { %v6572_v15 = vpop.f32.mrf.mxu1  ;;  %v7174_v53 = vrot.slane %v7172_v42, 4  ;;  %v7179_v50 = vrot.slane %v7177_v12, 3  ;;  %v9709_v57 = vunpack.c.h.b16 %v12035_v39  ;;  %v10060_v30 = vor.u32 %v10160_v44, %v10059_v52 }
 0x56d   : > { %v12021_v10 = vadd.f32 %v6572_v15, %v6484_v2  ;;  %v7242_v2 = vrot.slane %v7240_v55, 4  ;;  %v7169_v15 = vshrl.u32 %v7094_v26, 16  ;;  %v6941_v63 = vor.u32 %v6940_v8, %v6937_v1 }
 0x56e   : > { %v7182_v36 = vrot.slane %v7180_v14, 4  ;;  %v7079_v62 = vpack.c.b16 %v7063_v45, %v7063_v45  ;;  %v6943_v1 = vshrl.u32 %v12035_v39, 16 }
 0x56f   : > { %8172 = vmatmul.bf16.gmra.mxu0 %v7209_v23  ;;  %v7243_v7 = vor.u32 %v7242_v2, %v7239_v38  ;;  %v7171_v41 = vrot.slane %v7169_v15, 3  ;;  %v7246_v23 = vshrl.u32 %v6941_v63, 16  ;;  %v7249_v5 = vshll.u32 %v6941_v63, 16 }
 0x570   : > { %v6877_v38 = vpack.c.b16 %v9709_v57, %v9709_v57  ;;  %v7183_v2 = vor.u32 %v7182_v36, %v7179_v50  ;;  %v7098_v9 = vrot.slane %v7079_v62, 5 }
 0x571   : > { %v7244_v28 = vsel %vm3886_vm3, %v7235_v40, %v7243_v7  ;;  %v7248_v48 = vrot.slane %v7246_v23, 3  ;;  %v7251_v55 = vrot.slane %v7249_v5, 4  ;;  %v7275_v40 = vshll.u32 %v10060_v30, 16 }
 0x572   : > { %v7280_v61 = vshrl.u32 %v6877_v38, 16  ;;  %v7283_v7 = vshll.u32 %v6877_v38, 16 }
 0x574   : > { %v6575_v22 = vpop.f32.mrf.mxu1  ;;  %v7282_v15 = vrot.slane %v7280_v61, 3  ;;  %v7285_v42 = vrot.slane %v7283_v7, 4  ;;  %v10161_v61 = vld [vmem:[#allocation2 + $0x94] sm:$0xf0]  }
 0x575   : > { %v12028_v19 = vadd.f32 %v6575_v22, %v11862_v13  ;;  %v6489_v13 = vadd.f32 %v11864_v31, %v6256_v6  ;;  %v7175_v31 = vor.u32 %v7174_v53, %v7171_v41  ;;  %v7252_v22 = vor.u32 %v7251_v55, %v7248_v48 }
 0x576   : > { %v7277_v6 = vrot.slane %v7275_v40, 4  ;;  %v7286_v63 = vor.u32 %v7285_v42, %v7282_v15  ;;  %v6946_v41 = vshll.u32 %v12035_v39, 16  ;;  %v6261_v53 = vadd.f32 %v11878_v32, %v11876_v46  ;;  %v12052_v46 = vld [vmem:[#allocation2 + $0x98] sm:$0xff]   ;;  %v10063_v40 = vld [vmem:[#allocation2 + $0x94] sm:$0x8] }
 0x577   : > { %6614 = vmatmul.bf16.gmra.mxu1 %v4556_v43  ;;  %v7097_v43 = vrot.slane %v12002_v18, 5  ;;  %v7184_v45 = vsel %vm3886_vm3, %v7175_v31, %v7183_v2  ;;  %v6760_v18 = vld [vmem:[#allocation2 + $0x70] sm:$0x1]  ;;  %v10064_v7 = vor.u32 %v10161_v61, %v10063_v40 }
 0x578   : > { %6703 = vmatmul.bf16.gmra.mxu2 %v4574_v29  ;;  %v7272_v29 = vshrl.u32 %v10060_v30, 16  ;;  %v7064_v5 = vunpack.c.l.b16 %v6760_v18  ;;  %v6951_v18 = vshrl.u32 %v12052_v46, 16 }
 0x579   : > { %8088 = vmatmul.bf16.gmra.mxu3 %v7244_v28  ;;  %v7099_v12 = vsel %vm3837_vm2, %v7097_v43, %v7098_v9  ;;  %v7212_v50 = vshrl.u32 %v7097_v43, 16  ;;  %v7215_v36 = vshll.u32 %v7097_v43, 16  ;;  %v9713_v43 = vunpack.c.h.b16 %v12052_v46 }
 0x57a   : > { %v7274_v21 = vrot.slane %v7272_v29, 3  ;;  %v7220_v62 = vshrl.u32 %v7099_v12, 16  ;;  %v7223_v23 = vshll.u32 %v7099_v12, 16  ;;  %v7080_v30 = vpack.c.b16 %v7064_v5, %v7064_v5 }
 0x57b   : > { %v7214_v55 = vrot.slane %v7212_v50, 3  ;;  %v7217_v52 = vrot.slane %v7215_v36, 4  ;;  %v7315_v12 = vshrl.u32 %v10064_v7, 16 }
 0x57c   : > { %v6577_v26 = vpop.f32.mrf.mxu1  ;;  %v7278_v8 = vor.u32 %v7277_v6, %v7274_v21  ;;  %v7222_v44 = vrot.slane %v7220_v62, 3  ;;  %v7225_v31 = vrot.slane %v7223_v23, 4  ;;  %v7100_v6 = vrot.slane %v12018_v33, 5  ;;  %v6761_v33 = vld [vmem:[#allocation2 + $0x88] sm:$0x1] }
 0x57d   : > { %v12038_v35 = vadd.f32 %v6577_v26, %v6489_v13  ;;  %v6945_v13 = vrot.slane %v6943_v1, 4  ;;  %v6948_v26 = vrot.slane %v6946_v41, 5  ;;  %v6879_v1 = vpack.c.b16 %v9713_v43, %v9713_v43 }
 0x57e   : > { %v7287_v57 = vsel %vm3886_vm3, %v7278_v8, %v7286_v63  ;;  %v7226_v21 = vor.u32 %v7225_v31, %v7222_v44  ;;  %v7101_v15 = vrot.slane %v7080_v30, 5  ;;  %v7317_v63 = vrot.slane %v7315_v12, 3  ;;  %v10162_v12 = vld [vmem:[#allocation2 + $0xac] sm:$0xf0]  }
 0x57f   : > { %8177 = vmatmul.bf16.gmra.mxu0 %v7252_v22  ;;  %v6949_v48 = vor.u32 %v6948_v26, %v6945_v13  ;;  %v7326_v8 = vshll.u32 %v6879_v1, 16  ;;  %v7065_v30 = vunpack.c.l.b16 %v6761_v33 }
 0x580   : > { %v7102_v50 = vsel %vm3837_vm2, %v7100_v6, %v7101_v15 }
 0x581   : > { %v7289_v38 = vshrl.u32 %v6949_v48, 16  ;;  %v7292_v2 = vshll.u32 %v6949_v48, 16  ;;  %v6954_v48 = vshll.u32 %v12052_v46, 16  ;;  %v7263_v44 = vshrl.u32 %v7102_v50, 16 }
 0x582   : > { %v7266_v31 = vshll.u32 %v7102_v50, 16  ;;  %v7081_v61 = vpack.c.b16 %v7065_v30, %v7065_v30 }
 0x583   : > { %v7291_v22 = vrot.slane %v7289_v38, 3  ;;  %v7294_v29 = vrot.slane %v7292_v2, 4  ;;  %v6956_v38 = vrot.slane %v6954_v48, 5 }
 0x584   : > { %v6580_v14 = vpop.f32.mrf.mxu1  ;;  %v7268_v40 = vrot.slane %v7266_v31, 4 }
 0x585   : > { %v12045_v28 = vadd.f32 %v6580_v14, %v11872_v37  ;;  %v6494_v37 = vadd.f32 %v11874_v58, %v6261_v53  ;;  %v7218_v58 = vor.u32 %v7217_v52, %v7214_v55  ;;  %v7295_v42 = vor.u32 %v7294_v29, %v7291_v22 }
 0x586   : > { %v7318_v14 = vshll.u32 %v10064_v7, 16  ;;  %v7328_v53 = vrot.slane %v7326_v8, 4  ;;  %v7255_v55 = vshrl.u32 %v7100_v6, 16  ;;  %v7258_v52 = vshll.u32 %v7100_v6, 16 }
 0x587   : > { %8256 = vmatmul.bf16.vlgmr.msra.gmra.mxu1 %v7184_v45  ;;  %v7323_v45 = vshrl.u32 %v6879_v1, 16  ;;  %v7227_v62 = vsel %vm3886_vm3, %v7218_v58, %v7226_v21  ;;  %v7265_v29 = vrot.slane %v7263_v44, 3 }
 0x588   : > { %v7320_v13 = vrot.slane %v7318_v14, 4  ;;  %v7257_v43 = vrot.slane %v7255_v55, 3  ;;  %v7260_v22 = vrot.slane %v7258_v52, 4 }
 0x589   : > { %8093 = vmatmul.bf16.gmra.mxu3 %v7287_v57  ;;  %v7325_v41 = vrot.slane %v7323_v45, 3  ;;  %v6953_v57 = vrot.slane %v6951_v18, 4  ;;  %v7269_v8 = vor.u32 %v7268_v40, %v7265_v29  ;;  %v7103_v18 = vrot.slane %v12035_v39, 5  ;;  %v6762_v39 = vld [vmem:[#allocation2 + $0xa0] sm:$0x1] }
 0x58a   : > { %v7321_v23 = vor.u32 %v7320_v13, %v7317_v63  ;;  %v7104_v63 = vrot.slane %v7081_v61, 5  ;;  %v7066_v29 = vunpack.c.l.b16 %v6762_v39 }
 0x58b   : > { %v7329_v26 = vor.u32 %v7328_v53, %v7325_v41 }
 0x58c   : > { %v6582_v32 = vpop.f32.mrf.mxu1  ;;  %v7105_v48 = vsel %vm3837_vm2, %v7103_v18, %v7104_v63  ;;  %v10071_v63 = vld [vmem:[#allocation2 + $0xc4] sm:$0x8] }
 0x58d   : > { %v12055_v9 = vadd.f32 %v6582_v32, %v6494_v37  ;;  %v6266_v37 = vadd.f32 %v11888_v47, %v11886_v16  ;;  %v7330_v2 = vsel %vm3886_vm3, %v7321_v23, %v7329_v26  ;;  %v6957_v32 = vor.u32 %v6956_v38, %v6953_v57  ;;  %v12069_v16 = vld [vmem:[#allocation2 + $0xb0] sm:$0xff]  }
 0x58e   : > { %v9717_v1 = vunpack.c.h.b16 %v12069_v16  ;;  %v6962_v38 = vshll.u32 %v12069_v16, 16 }
 0x58f   : > { %8182 = vmatmul.bf16.gmra.mxu0 %v7295_v42  ;;  %v7332_v58 = vshrl.u32 %v6957_v32, 16  ;;  %v7335_v7 = vshll.u32 %v6957_v32, 16  ;;  %v10067_v42 = vld [vmem:[#allocation2 + $0xac] sm:$0x8]  ;;  %v7298_v32 = vshrl.u32 %v7103_v18, 16 }
 0x590   : > { %v10068_v14 = vor.u32 %v10162_v12, %v10067_v42  ;;  %v6881_v45 = vpack.c.b16 %v9717_v1, %v9717_v1  ;;  %v6964_v40 = vrot.slane %v6962_v38, 5  ;;  %v7082_v42 = vpack.c.b16 %v7066_v29, %v7066_v29 }
 0x591   : > { %v7334_v6 = vrot.slane %v7332_v58, 3  ;;  %v7337_v15 = vrot.slane %v7335_v7, 4  ;;  %v12552_v7 = vld [vmem:[#allocation11_spill] sm:$0xff] }
 0x592   : > { %v7358_v41 = vshrl.u32 %v10068_v14, 16  ;;  %v7361_v53 = vshll.u32 %v10068_v14, 16  ;;  %v7366_v50 = vshrl.u32 %v6881_v45, 16 }
 0x593   : > { %v7338_v13 = vor.u32 %v7337_v15, %v7334_v6 }
 0x594   : > { %v6585_v36 = vpop.f32.mrf.mxu1  ;;  %v7360_v23 = vrot.slane %v7358_v41, 3  ;;  %v7363_v33 = vrot.slane %v7361_v53, 4  ;;  %v7368_v26 = vrot.slane %v7366_v50, 3 }
 0x595   : > { %v12062_v5 = vadd.f32 %v6585_v36, %v11882_v49  ;;  %v6499_v49 = vadd.f32 %v11884_v17, %v6266_v37  ;;  %v7261_v17 = vor.u32 %v7260_v22, %v7257_v43  ;;  %v7369_v36 = vshll.u32 %v6881_v45, 16 }
 0x596   : > { %v7364_v52 = vor.u32 %v7363_v33, %v7360_v23  ;;  %v7306_v43 = vshrl.u32 %v7105_v48, 16  ;;  %v7309_v22 = vshll.u32 %v7105_v48, 16  ;;  %v7107_v23 = vrot.slane %v7082_v42, 5 }
 0x597   : > { %8261 = vmatmul.bf16.gmra.mxu1 %v7227_v62  ;;  %v6959_v62 = vshrl.u32 %v12069_v16, 16  ;;  %v7371_v57 = vrot.slane %v7369_v36, 4  ;;  %v7270_v55 = vsel %vm3886_vm3, %v7261_v17, %v7269_v8 }
 0x598   : > { %v7308_v6 = vrot.slane %v7306_v43, 3  ;;  %v7311_v15 = vrot.slane %v7309_v22, 4  ;;  %v12553_v43 = vld [vmem:[#allocation9_spill] sm:$0xff] }
 0x599   : > { %8098 = vmatmul.bf16.gmra.mxu3 %v7330_v2  ;;  %v7372_v31 = vor.u32 %v7371_v57, %v7368_v26  ;;  %v6961_v30 = vrot.slane %v6959_v62, 4  ;;  %v6271_v2 = vadd.f32 %v11898_v56, %v11896_v3  ;;  %v12086_v3 = vld [vmem:[#allocation2 + $0xc8] sm:$0xff]   ;;  %v7106_v62 = vrot.slane %v12052_v46, 5  ;;  %v6763_v46 = vld [vmem:[#allocation2 + $0xb8] sm:$0x1] }
 0x59a   : > { %v9721_v14 = vunpack.c.h.b16 %v12086_v3  ;;  %v7312_v36 = vor.u32 %v7311_v15, %v7308_v6  ;;  %v7067_v42 = vunpack.c.l.b16 %v6763_v46 }
 0x59b   : > { %v7373_v61 = vsel %vm3886_vm3, %v7364_v52, %v7372_v31  ;;  %v6965_v58 = vor.u32 %v6964_v40, %v6961_v30  ;;  %v7108_v38 = vsel %vm3837_vm2, %v7106_v62, %v7107_v23  ;;  %v12103_v23 = vld [vmem:[#allocation2 + $0xe0] sm:$0xff]  }
 0x59c   : > { %v6587_v47 = vpop.f32.mrf.mxu1  ;;  %v6883_v50 = vpack.c.b16 %v9721_v14, %v9721_v14  ;;  %v7349_v6 = vshrl.u32 %v7108_v38, 16  ;;  %v7352_v15 = vshll.u32 %v7108_v38, 16  ;;  %v12556_v14 = vld [vmem:[#allocation10_spill] sm:$0xff]  ;;  %v7109_v38 = vrot.slane %v12069_v16, 5  ;;  %v6764_v16 = vld [vmem:[#allocation2 + $0xd0] sm:$0x1] }
 0x59d   : > { %v12072_v21 = vadd.f32 %v6587_v47, %v6499_v49  ;;  %v7301_v49 = vshll.u32 %v7103_v18, 16  ;;  %v7300_v47 = vrot.slane %v7298_v32, 3  ;;  %v7375_v12 = vshrl.u32 %v6965_v58, 16 }
 0x59e   : > { %v7378_v17 = vshll.u32 %v6965_v58, 16  ;;  %v7409_v48 = vshrl.u32 %v6883_v50, 16  ;;  %v12554_v58 = vld [vmem:[#allocation12_spill] sm:$0xff] }
 0x59f   : > { %8187 = vmatmul.bf16.gmra.mxu0 %v7338_v13  ;;  %v7303_v1 = vrot.slane %v7301_v49, 4  ;;  %v7377_v8 = vrot.slane %v7375_v12, 3  ;;  %v10163_v13 = vld [vmem:[#allocation2 + $0xc4] sm:$0xf0]  }
 0x5a0   : > { %v7380_v18 = vrot.slane %v7378_v17, 4  ;;  %v10072_v53 = vor.u32 %v10163_v13, %v10071_v63  ;;  %v7411_v31 = vrot.slane %v7409_v48, 3  ;;  %v7351_v13 = vrot.slane %v7349_v6, 3 }
 0x5a1   : > { %v7304_v41 = vor.u32 %v7303_v1, %v7300_v47  ;;  %v7341_v47 = vshrl.u32 %v7106_v62, 16  ;;  %v7344_v1 = vshll.u32 %v7106_v62, 16 }
 0x5a2   : > { %v7381_v33 = vor.u32 %v7380_v18, %v7377_v8  ;;  %v7401_v26 = vshrl.u32 %v10072_v53, 16  ;;  %v7404_v57 = vshll.u32 %v10072_v53, 16  ;;  %v7083_v53 = vpack.c.b16 %v7067_v42, %v7067_v42  ;;  %v12557_v42 = vld [vmem:[#allocation14_spill] sm:$0xff] }
 0x5a3   : > { %v7313_v32 = vsel %vm3886_vm3, %v7304_v41, %v7312_v36  ;;  %v7343_v18 = vrot.slane %v7341_v47, 3  ;;  %v7346_v63 = vrot.slane %v7344_v1, 4  ;;  %v7354_v41 = vrot.slane %v7352_v15, 4 }
 0x5a4   : > { %v6590_v37 = vpop.f32.mrf.mxu1  ;;  %v7403_v52 = vrot.slane %v7401_v26, 3  ;;  %v7406_v39 = vrot.slane %v7404_v57, 4 }
 0x5a5   : > { %v12079_v44 = vadd.f32 %v6590_v37, %v11892_v54  ;;  %v6504_v54 = vadd.f32 %v12552_v7, %v6271_v2  ;;  %v7412_v37 = vshll.u32 %v6883_v50, 16  ;;  %v12555_v7 = vld [vmem:[#allocation13_spill] sm:$0xff] }
 0x5a6   : > { %v7407_v49 = vor.u32 %v7406_v39, %v7403_v52  ;;  %v7347_v52 = vor.u32 %v7346_v63, %v7343_v18  ;;  %v12559_v18 = vld [vmem:[#allocation17_spill] sm:$0xff] }
 0x5a7   : > { %8266 = vmatmul.bf16.gmra.mxu1 %v7270_v55  ;;  %v6967_v55 = vshrl.u32 %v12086_v3, 16  ;;  %v7414_v30 = vrot.slane %v7412_v37, 4  ;;  %v10075_v37 = vld [vmem:[#allocation2 + $0xdc] sm:$0x8] }
 0x5a9   : > { %8103 = vmatmul.bf16.gmra.mxu3 %v7373_v61  ;;  %v7415_v29 = vor.u32 %v7414_v30, %v7411_v31  ;;  %v6969_v40 = vrot.slane %v6967_v55, 4  ;;  %v6970_v61 = vshll.u32 %v12086_v3, 16  ;;  %v10164_v55 = vld [vmem:[#allocation2 + $0xdc] sm:$0xf0]   ;;  %v7355_v30 = vor.u32 %v7354_v41, %v7351_v13 }
 0x5aa   : > { %v10076_v39 = vor.u32 %v10164_v55, %v10075_v37  ;;  %v7384_v13 = vshrl.u32 %v7109_v38, 16  ;;  %v7387_v41 = vshll.u32 %v7109_v38, 16 }
 0x5ab   : > { %v6972_v12 = vrot.slane %v6970_v61, 5  ;;  %v7416_v17 = vsel %vm3886_vm3, %v7407_v49, %v7415_v29  ;;  %v7356_v6 = vsel %vm3886_vm3, %v7347_v52, %v7355_v30 }
 0x5ac   : > { %v6592_v56 = vpop.f32.mrf.mxu1  ;;  %v7444_v49 = vshrl.u32 %v10076_v39, 16  ;;  %v7447_v46 = vshll.u32 %v10076_v39, 16  ;;  %v7386_v55 = vrot.slane %v7384_v13, 3  ;;  %v7389_v52 = vrot.slane %v7387_v41, 4 }
 0x5ad   : > { %v12089_v45 = vadd.f32 %v6592_v56, %v6504_v54  ;;  %v6276_v54 = vadd.f32 %v12555_v7, %v12554_v58  ;;  %v6973_v56 = vor.u32 %v6972_v12, %v6969_v40  ;;  %v6975_v40 = vshrl.u32 %v12103_v23, 16 }
 0x5ae   : > { %v7446_v61 = vrot.slane %v7444_v49, 3  ;;  %v7449_v58 = vrot.slane %v7447_v46, 4  ;;  %v12120_v49 = vld [vmem:[#allocation2 + $0xf8] sm:$0xff]  }
 0x5af   : > { %8192 = vmatmul.bf16.gmra.mxu0 %v7381_v33  ;;  %v6509_v8 = vadd.f32 %v12556_v14, %v6276_v54  ;;  %v7418_v50 = vshrl.u32 %v6973_v56, 16  ;;  %v7421_v36 = vshll.u32 %v6973_v56, 16  ;;  %v9725_v33 = vunpack.c.h.b16 %v12103_v23 }
 0x5b0   : > { %v7450_v15 = vor.u32 %v7449_v58, %v7446_v61  ;;  %v6977_v56 = vrot.slane %v6975_v40, 4  ;;  %v6978_v14 = vshll.u32 %v12103_v23, 16  ;;  %v9729_v46 = vunpack.c.h.b16 %v12120_v49  ;;  %v10079_v61 = vld [vmem:[#allocation2 + $0xf4] sm:$0x8]  ;;  %v10165_v58 = vld [vmem:[#allocation2 + $0xf4] sm:$0xf0]  }
 0x5b1   : > { %v7420_v57 = vrot.slane %v7418_v50, 3  ;;  %v7423_v48 = vrot.slane %v7421_v36, 4  ;;  %v6885_v31 = vpack.c.b16 %v9725_v33, %v9725_v33  ;;  %v7068_v36 = vunpack.c.l.b16 %v6764_v16 }
 0x5b3   : > { %v7455_v29 = vshll.u32 %v6885_v31, 16  ;;  %v7084_v30 = vpack.c.b16 %v7068_v36, %v7068_v36 }
 0x5b4   : > { %v6595_v2 = vpop.f32.mrf.mxu1 }
 0x5b5   : > { %v12096_v22 = vadd.f32 %v6595_v2, %v12553_v43  ;;  %v7110_v2 = vrot.slane %v7083_v53, 5  ;;  %v7452_v43 = vshrl.u32 %v6885_v31, 16  ;;  %v7457_v54 = vrot.slane %v7455_v29, 4 }
 0x5b7   : > { %8271 = vmatmul.bf16.gmra.mxu1 %v7313_v32  ;;  %v7424_v32 = vor.u32 %v7423_v48, %v7420_v57  ;;  %v7454_v7 = vrot.slane %v7452_v43, 3  ;;  %v7111_v47 = vsel %vm3837_vm2, %v7109_v38, %v7110_v2  ;;  %v12560_v48 = vld [vmem:[#allocation15_spill] sm:$0xff] }
 0x5b8   : > { %v7392_v53 = vshrl.u32 %v7111_v47, 16  ;;  %v7395_v50 = vshll.u32 %v7111_v47, 16  ;;  %v6887_v47 = vpack.c.b16 %v9729_v46, %v9729_v46 }
 0x5b9   : > { %8108 = vmatmul.bf16.gmra.mxu3 %v7416_v17  ;;  %v7458_v17 = vor.u32 %v7457_v54, %v7454_v7  ;;  %v7390_v7 = vor.u32 %v7389_v52, %v7386_v55  ;;  %v10080_v54 = vor.u32 %v10165_v58, %v10079_v61  ;;  %v6986_v55 = vshll.u32 %v12120_v49, 16  ;;  %v12562_v52 = vld [vmem:[#allocation20_spill] sm:$0xff] }
 0x5ba   : > { %v7394_v39 = vrot.slane %v7392_v53, 3  ;;  %v7397_v31 = vrot.slane %v7395_v50, 4 }
 0x5bb   : > { %v7459_v33 = vsel %vm3886_vm3, %v7450_v15, %v7458_v17  ;;  %v7113_v15 = vrot.slane %v7084_v30, 5  ;;  %v7490_v17 = vshll.u32 %v10080_v54, 16 }
 0x5bc   : > { %v6597_v62 = vpop.f32.mrf.mxu1 }
 0x5bd   : > { %v12106_v26 = vadd.f32 %v6597_v62, %v6509_v8  ;;  %v12558_v8 = vld [vmem:[#allocation16_spill] sm:$0xff]  ;;  %v6980_v62 = vrot.slane %v6978_v14, 5  ;;  %v7498_v14 = vshll.u32 %v6887_v47, 16 }
 0x5be   : > { %v6281_v63 = vadd.f32 %v12559_v18, %v12558_v8  ;;  %v6983_v8 = vshrl.u32 %v12120_v49, 16 }
 0x5bf   : > { %8197 = vmatmul.bf16.gmra.mxu0 %v7424_v32  ;;  %v6981_v57 = vor.u32 %v6980_v62, %v6977_v56  ;;  %v7495_v56 = vshrl.u32 %v6887_v47, 16  ;;  %v7500_v41 = vrot.slane %v7498_v14, 4 }
 0x5c0   : > { %v6514_v37 = vadd.f32 %v12560_v48, %v6281_v63  ;;  %v7492_v63 = vrot.slane %v7490_v17, 4  ;;  %v6765_v48 = vld [vmem:[#allocation2 + $0xe8] sm:$0x1] }
 0x5c1   : > { %v7461_v2 = vshrl.u32 %v6981_v57, 16  ;;  %v7464_v32 = vshll.u32 %v6981_v57, 16  ;;  %v7497_v13 = vrot.slane %v7495_v56, 3  ;;  %v7069_v61 = vunpack.c.l.b16 %v6765_v48  ;;  %v12141_v56 = vld [vmem:[#allocation2 + $0x110] sm:$0xff]  }
 0x5c2   : > { %v7115_v48 = vrot.slane %v12103_v23, 5 }
 0x5c3   : > { %v7463_v29 = vrot.slane %v7461_v2, 3  ;;  %v7466_v40 = vrot.slane %v7464_v32, 4  ;;  %v7501_v57 = vor.u32 %v7500_v41, %v7497_v13  ;;  %v12135_v32 = vpop.f32.mrf.mxu3 }
 0x5c4   : > { %v6600_v1 = vpop.f32.mrf.mxu1 }
 0x5c5   : > { %v12113_v12 = vadd.f32 %v6600_v1, %v12557_v42  ;;  %v7398_v1 = vor.u32 %v7397_v31, %v7394_v39  ;;  %v7467_v16 = vor.u32 %v7466_v40, %v7463_v29  ;;  %v7487_v42 = vshrl.u32 %v10080_v54, 16  ;;  %v12563_v39 = vld [vmem:[#allocation21_spill] sm:$0xff]  ;;  %v12564_v54 = vld [vmem:[#allocation19_spill] sm:$0xff] }
 0x5c6   : > { %v6286_v31 = vadd.f32 %v12563_v39, %v12562_v52  ;;  %v6988_v40 = vrot.slane %v6986_v55, 5 }
 0x5c7   : > { %8276 = vmatmul.bf16.gmra.mxu1 %v7356_v6  ;;  %v7112_v6 = vrot.slane %v12086_v3, 5  ;;  %v7489_v18 = vrot.slane %v7487_v42, 3  ;;  %v7399_v50 = vsel %vm3886_vm3, %v7390_v7, %v7398_v1  ;;  %v12561_v3 = vld [vmem:[#allocation18_spill] sm:$0xff] }
 0x5c8   : > { %v6519_v47 = vadd.f32 %v12564_v54, %v6286_v31 }
 0x5c9   : > { %8113 = vmatmul.bf16.gmra.mxu3 %v7459_v33  ;;  %v7114_v36 = vsel %vm3837_vm2, %v7112_v6, %v7113_v15  ;;  %v7493_v62 = vor.u32 %v7492_v63, %v7489_v18  ;;  %v7427_v30 = vshrl.u32 %v7112_v6, 16  ;;  %v7430_v2 = vshll.u32 %v7112_v6, 16 }
 0x5ca   : > { %v7435_v46 = vshrl.u32 %v7114_v36, 16  ;;  %v7438_v29 = vshll.u32 %v7114_v36, 16  ;;  %v9733_v18 = vunpack.c.h.b16 %v12141_v56 }
 0x5cb   : > { %v7502_v58 = vsel %vm3886_vm3, %v7493_v62, %v7501_v57  ;;  %v7429_v1 = vrot.slane %v7427_v30, 3  ;;  %v7432_v15 = vrot.slane %v7430_v2, 4 }
 0x5cc   : > { %v6602_v38 = vpop.f32.mrf.mxu1  ;;  %v7440_v42 = vrot.slane %v7438_v29, 4  ;;  %v6889_v62 = vpack.c.b16 %v9733_v18, %v9733_v18 }
 0x5cd   : > { %v12123_v43 = vadd.f32 %v6602_v38, %v6514_v37  ;;  %v6985_v37 = vrot.slane %v6983_v8, 4  ;;  %v12137_v38 = vpop.f32.mrf.mxu0  ;;  %v7085_v8 = vpack.c.b16 %v7069_v61, %v7069_v61 }
 0x5ce   : > { %v7538_v2 = vshrl.u32 %v6889_v62, 16 }
 0x5cf   : > { %8202 = vmatmul.bf16.gmra.mxu0 %v7467_v16  ;;  %v6989_v7 = vor.u32 %v6988_v40, %v6985_v37  ;;  %v7437_v16 = vrot.slane %v7435_v46, 3  ;;  %v7116_v39 = vrot.slane %v7085_v8, 5  ;;  %v7541_v46 = vshll.u32 %v6889_v62, 16  ;;  %v12567_v8 = vld [vmem:[#allocation25_spill] sm:$0xff] }
 0x5d0   : > { %v7540_v61 = vrot.slane %v7538_v2, 3 }
 0x5d1   : > { %v7504_v17 = vshrl.u32 %v6989_v7, 16  ;;  %v7507_v6 = vshll.u32 %v6989_v7, 16  ;;  %v7441_v57 = vor.u32 %v7440_v42, %v7437_v16  ;;  %v7117_v23 = vsel %vm3837_vm2, %v7115_v48, %v7116_v39 }
 0x5d3   : > { %v7506_v13 = vrot.slane %v7504_v17, 3  ;;  %v7509_v41 = vrot.slane %v7507_v6, 4  ;;  %v6766_v17 = vld [vmem:[#allocation2 + $0x100] sm:$0x1]  ;;  %v6994_v6 = vshll.u32 %v12141_v56, 16 }
 0x5d4   : > { %v6605_v53 = vpop.f32.mrf.mxu1 }
 0x5d5   : > { %v12130_v33 = vadd.f32 %v6605_v53, %v12561_v3  ;;  %v10083_v53 = vld [vmem:[#allocation2 + $0x10c] sm:$0x8]  ;;  %v7433_v3 = vor.u32 %v7432_v15, %v7429_v1  ;;  %v7510_v52 = vor.u32 %v7509_v41, %v7506_v13  ;;  %v12565_v1 = vld [vmem:[#allocation22_spill] sm:$0xff]  ;;  %v7470_v13 = vshrl.u32 %v7115_v48, 16 }
 0x5d6   : > { %v7473_v41 = vshll.u32 %v7115_v48, 16 }
 0x5d7   : > { %8281 = vmatmul.bf16.gmra.mxu1 %v7399_v50  ;;  %v10166_v50 = vld [vmem:[#allocation2 + $0x10c] sm:$0xf0]   ;;  %v7442_v54 = vsel %vm3886_vm3, %v7433_v3, %v7441_v57  ;;  %v6996_v57 = vrot.slane %v6994_v6, 5  ;;  %v10167_v6 = vld [vmem:[#allocation2 + $0x124] sm:$0xf0]  }
 0x5d8   : > { %v10084_v36 = vor.u32 %v10166_v50, %v10083_v53  ;;  %v7478_v50 = vshrl.u32 %v7117_v23, 16 }
 0x5d9   : > { %8118 = vmatmul.bf16.gmra.mxu3 %v7502_v58  ;;  %v7543_v58 = vrot.slane %v7541_v46, 4  ;;  %v7472_v46 = vrot.slane %v7470_v13, 3 }
 0x5da   : > { %v7530_v31 = vshrl.u32 %v10084_v36, 16  ;;  %v7533_v30 = vshll.u32 %v10084_v36, 16  ;;  %v7481_v36 = vshll.u32 %v7117_v23, 16 }
 0x5db   : > { %v7544_v42 = vor.u32 %v7543_v58, %v7540_v61 }
 0x5dc   : > { %v6607_v14 = vpop.f32.mrf.mxu1  ;;  %v12147_v37 = vpop.f32.mrf.mxu3  ;;  %v7532_v29 = vrot.slane %v7530_v31, 3  ;;  %v7535_v40 = vrot.slane %v7533_v30, 4  ;;  %v12568_v30 = vld [vmem:[#allocation23_spill] sm:$0xff]  ;;  %v7483_v61 = vrot.slane %v7481_v36, 4 }
 0x5dd   : > { %v12144_v63 = vadd.f32 %v6607_v14, %v6519_v47  ;;  %v12149_v55 = vpop.f32.mrf.mxu0  ;;  %v6991_v47 = vshrl.u32 %v12141_v56, 16  ;;  %v12566_v14 = vld [vmem:[#allocation24_spill] sm:$0xff] }
 0x5de   : > { %v7536_v16 = vor.u32 %v7535_v40, %v7532_v29  ;;  %v6291_v18 = vadd.f32 %v12567_v8, %v12566_v14  ;;  %v7475_v29 = vrot.slane %v7473_v41, 4  ;;  %v7480_v40 = vrot.slane %v7478_v50, 3 }
 0x5df   : > { %8207 = vmatmul.bf16.gmra.mxu0 %v7510_v52  ;;  %v6993_v53 = vrot.slane %v6991_v47, 4  ;;  %v7070_v52 = vunpack.c.l.b16 %v6766_v17  ;;  %v7118_v41 = vrot.slane %v12120_v49, 5 }
 0x5e0   : > { %v7545_v39 = vsel %vm3886_vm3, %v7536_v16, %v7544_v42  ;;  %v6524_v2 = vadd.f32 %v12568_v30, %v6291_v18  ;;  %v10087_v42 = vld [vmem:[#allocation2 + $0x124] sm:$0x8]  ;;  %v7476_v18 = vor.u32 %v7475_v29, %v7472_v46  ;;  %v7484_v13 = vor.u32 %v7483_v61, %v7480_v40 }
 0x5e1   : > { %v6997_v31 = vor.u32 %v6996_v57, %v6993_v53  ;;  %v7086_v23 = vpack.c.b16 %v7070_v52, %v7070_v52  ;;  %v10088_v14 = vor.u32 %v10167_v6, %v10087_v42  ;;  %v6296_v42 = vadd.f32 %v12135_v32, %v11944_v20 }
 0x5e2   : > { %v7485_v46 = vsel %vm3886_vm3, %v7476_v18, %v7484_v13  ;;  %v7513_v6 = vshrl.u32 %v7118_v41, 16 }
 0x5e3   : > { %v7547_v48 = vshrl.u32 %v6997_v31, 16  ;;  %v7550_v58 = vshll.u32 %v6997_v31, 16  ;;  %v7119_v57 = vrot.slane %v7086_v23, 5  ;;  %v7573_v52 = vshrl.u32 %v10088_v14, 16 }
 0x5e4   : > { %v6610_v7 = vpop.f32.mrf.mxu1  ;;  %v12160_v62 = vpop.f32.mrf.mxu3 }
 0x5e5   : > { %v12155_v15 = vadd.f32 %v6610_v7, %v12565_v1  ;;  %v12162_v3 = vpop.f32.mrf.mxu0  ;;  %v12166_v7 = vld [vmem:[#allocation2 + $0x128] sm:$0xff]   ;;  %v7549_v17 = vrot.slane %v7547_v48, 3  ;;  %v7552_v16 = vrot.slane %v7550_v58, 4  ;;  %v7120_v49 = vsel %vm3837_vm2, %v7118_v41, %v7119_v57 }
 0x5e6   : > { %v9737_v47 = vunpack.c.h.b16 %v12166_v7  ;;  %v6999_v29 = vshrl.u32 %v12166_v7, 16  ;;  %v7521_v18 = vshrl.u32 %v7120_v49, 16  ;;  %v7524_v13 = vshll.u32 %v7120_v49, 16 }
 0x5e7   : > { %8286 = vmatmul.bf16.gmra.mxu1 %v7442_v54  ;;  %v7553_v36 = vor.u32 %v7552_v16, %v7549_v17  ;;  %v6767_v17 = vld [vmem:[#allocation2 + $0x118] sm:$0x1]  ;;  %v7002_v16 = vshll.u32 %v12166_v7, 16 }
 0x5e8   : > { %v6891_v8 = vpack.c.b16 %v9737_v47, %v9737_v47  ;;  %v7523_v20 = vrot.slane %v7521_v18, 3  ;;  %v7526_v32 = vrot.slane %v7524_v13, 4 }
 0x5e9   : > { %8123 = vmatmul.bf16.gmra.mxu3 %v7545_v39  ;;  %v7576_v39 = vshll.u32 %v10088_v14, 16  ;;  %v7516_v14 = vshll.u32 %v7118_v41, 16 }
 0x5ea   : > { %v7581_v31 = vshrl.u32 %v6891_v8, 16  ;;  %v7584_v30 = vshll.u32 %v6891_v8, 16  ;;  %v7001_v8 = vrot.slane %v6999_v29, 4 }
 0x5eb   : > { %v7578_v48 = vrot.slane %v7576_v39, 4 }
 0x5ec   : > { %v6612_v54 = vpop.f32.mrf.mxu1  ;;  %v12172_v53 = vpop.f32.mrf.mxu3  ;;  %v7583_v58 = vrot.slane %v7581_v31, 3 }
 0x5ed   : > { %v12169_v1 = vadd.f32 %v6612_v54, %v6524_v2  ;;  %v12174_v50 = vpop.f32.mrf.mxu0  ;;  %v7575_v2 = vrot.slane %v7573_v52, 3  ;;  %v7586_v54 = vrot.slane %v7584_v30, 4  ;;  %v7071_v52 = vunpack.c.l.b16 %v6767_v17 }
 0x5ee   : > { %v6529_v30 = vadd.f32 %v12137_v38, %v6296_v42 }
 0x5ef   : > { %8212 = vmatmul.bf16.gmra.mxu0 %v7553_v36  ;;  %v7579_v61 = vor.u32 %v7578_v48, %v7575_v2  ;;  %v7587_v23 = vor.u32 %v7586_v54, %v7583_v58  ;;  %v7515_v2 = vrot.slane %v7513_v6, 3  ;;  %v7518_v48 = vrot.slane %v7516_v14, 4  ;;  %v12191_v54 = vld [vmem:[#allocation2 + $0x140] sm:$0xff]  }
 0x5f0   : > { %v9741_v49 = vunpack.c.h.b16 %v12191_v54  ;;  %v7527_v14 = vor.u32 %v7526_v32, %v7523_v20 }
 0x5f1   : > { %v7588_v39 = vsel %vm3886_vm3, %v7579_v61, %v7587_v23  ;;  %v10091_v23 = vld [vmem:[#allocation2 + $0x13c] sm:$0x8]  ;;  %v7519_v6 = vor.u32 %v7518_v48, %v7515_v2 }
 0x5f2   : > { %v6893_v42 = vpack.c.b16 %v9741_v49, %v9741_v49 }
 0x5f4   : > { %v6615_v47 = vpop.f32.mrf.mxu1  ;;  %v12185_v36 = vpop.f32.mrf.mxu3 }
 0x5f5   : > { %v12180_v40 = vadd.f32 %v6615_v47, %v11942_v51  ;;  %v12187_v57 = vpop.f32.mrf.mxu0  ;;  %v7004_v51 = vrot.slane %v7002_v16, 5  ;;  %v10168_v16 = vld [vmem:[#allocation2 + $0x13c] sm:$0xf0]  }
 0x5f6   : > { %v10092_v38 = vor.u32 %v10168_v16, %v10091_v23  ;;  %v6768_v23 = vld [vmem:[#allocation2 + $0x130] sm:$0x1]  ;;  %v7010_v16 = vshll.u32 %v12191_v54, 16 }
 0x5f7   : > { %8291 = vmatmul.bf16.gmra.mxu1 %v7485_v46  ;;  %v7005_v31 = vor.u32 %v7004_v51, %v7001_v8  ;;  %v7087_v46 = vpack.c.b16 %v7071_v52, %v7071_v52  ;;  %v7121_v8 = vrot.slane %v12141_v56, 5  ;;  %v7528_v56 = vsel %vm3886_vm3, %v7519_v6, %v7527_v14 }
 0x5f9   : > { %v7590_v41 = vshrl.u32 %v7005_v31, 16  ;;  %v7593_v58 = vshll.u32 %v7005_v31, 16  ;;  %8128 = vmatmul.bf16.gmra.mxu3 %v7588_v39  ;;  %v7122_v52 = vrot.slane %v7087_v46, 5  ;;  %v7616_v39 = vshrl.u32 %v10092_v38, 16 }
 0x5fa   : > { %v7619_v31 = vshll.u32 %v10092_v38, 16  ;;  %v7556_v38 = vshrl.u32 %v7121_v8, 16 }
 0x5fb   : > { %v7592_v17 = vrot.slane %v7590_v41, 3  ;;  %v7595_v61 = vrot.slane %v7593_v58, 4  ;;  %v8169_v41 = vadd.f32 %v12149_v55, %v12147_v37  ;;  %v7627_v58 = vshll.u32 %v6893_v42, 16 }
 0x5fc   : > { %v6617_v47 = vpop.f32.mrf.mxu1  ;;  %v12197_v18 = vpop.f32.mrf.mxu3  ;;  %v7621_v49 = vrot.slane %v7619_v31, 4  ;;  %v7123_v32 = vsel %vm3837_vm2, %v7121_v8, %v7122_v52 }
 0x5fd   : > { %v12194_v29 = vadd.f32 %v6617_v47, %v6529_v30  ;;  %v12199_v13 = vpop.f32.mrf.mxu0  ;;  %v7596_v51 = vor.u32 %v7595_v61, %v7592_v17  ;;  %v7624_v30 = vshrl.u32 %v6893_v42, 16  ;;  %v7618_v47 = vrot.slane %v7616_v39, 3  ;;  %v12209_v61 = vld [vmem:[%s12487_s4] ss:$0 sm:$0xff] }
 0x5fe   : > { %v7629_v48 = vrot.slane %v7627_v58, 4  ;;  %v7007_v17 = vshrl.u32 %v12191_v54, 16  ;;  %v7559_v42 = vshll.u32 %v7121_v8, 16  ;;  %v7564_v14 = vshrl.u32 %v7123_v32, 16 }
 0x5ff   : > { %8217 = vmatmul.bf16.gmra.mxu0 %v7596_v51  ;;  %v7626_v2 = vrot.slane %v7624_v30, 3  ;;  %v7622_v37 = vor.u32 %v7621_v49, %v7618_v47  ;;  %v7567_v52 = vshll.u32 %v7123_v32, 16  ;;  %v7012_v30 = vrot.slane %v7010_v16, 5 }
 0x600   : > { %v7009_v51 = vrot.slane %v7007_v17, 4  ;;  %v8171_v8 = vadd.f32 %v12162_v3, %v12160_v62  ;;  %v12222_v17 = vld [vmem:[#allocation2 + $0x158] sm:$0xff]  }
 0x601   : > { %v7630_v55 = vor.u32 %v7629_v48, %v7626_v2  ;;  %v7558_v2 = vrot.slane %v7556_v38, 3  ;;  %v7561_v48 = vrot.slane %v7559_v42, 4  ;;  %v9745_v16 = vunpack.c.h.b16 %v12222_v17 }
 0x602   : > { %v7013_v49 = vor.u32 %v7012_v30, %v7009_v51  ;;  %v10095_v51 = vld [vmem:[#allocation2 + $0x154] sm:$0x8]  ;;  %v10169_v30 = vld [vmem:[#allocation2 + $0x154] sm:$0xf0]  }
 0x603   : > { %v7631_v47 = vsel %vm3886_vm3, %v7622_v37, %v7630_v55  ;;  %v7562_v62 = vor.u32 %v7561_v48, %v7558_v2  ;;  %v10096_v3 = vor.u32 %v10169_v30, %v10095_v51  ;;  %v6895_v38 = vpack.c.b16 %v9745_v16, %v9745_v16  ;;  %v12235_v16 = vpop.f32.mrf.mxu2 }
 0x604   : > { %v8257_v20 = vpop.f32.mrf.mxu1  ;;  %v12213_v39 = vpop.f32.mrf.mxu3  ;;  %v7636_v32 = vshll.u32 %v7013_v49, 16  ;;  %v8174_v2 = vadd.f32 %v12174_v50, %v12172_v53  ;;  %v7018_v53 = vshll.u32 %v12222_v17, 16 }
 0x605   : > { %v8258_v46 = vadd.f32 %v8257_v20, %v8169_v41  ;;  %v12215_v31 = vpop.f32.mrf.mxu0  ;;  %v7072_v41 = vunpack.c.l.b16 %v6768_v23  ;;  %v7569_v20 = vrot.slane %v7567_v52, 4  ;;  %v7124_v52 = vrot.slane %v12166_v7, 5 }
 0x606   : > { %v7638_v55 = vrot.slane %v7636_v32, 4  ;;  %v7667_v32 = vshrl.u32 %v6895_v38, 16 }
 0x607   : > { %v8337_v6 = vadd.f32 %v8258_v46, %v11949_v27  ;;  %8296 = vmatmul.bf16.gmra.mxu1 %v7528_v56  ;;  %v7566_v27 = vrot.slane %v7564_v14, 3  ;;  %v7633_v56 = vshrl.u32 %v7013_v49, 16  ;;  %v7088_v23 = vpack.c.b16 %v7072_v41, %v7072_v41 }
 0x609   : > { %v8373_v58 = vadd.f32 %v12209_v61, %v8337_v6  ;;  %8133 = vmatmul.bf16.gmra.mxu3 %v7631_v47  ;;  %v7635_v37 = vrot.slane %v7633_v56, 3  ;;  %v7570_v14 = vor.u32 %v7569_v20, %v7566_v27  ;;  %v7125_v49 = vrot.slane %v7088_v23, 5 }
 0x60a   : > { %v7662_v56 = vshll.u32 %v10096_v3, 16  ;;  %v7669_v20 = vrot.slane %v7667_v32, 3 }
 0x60b   : > { %8405 = vst [vmem:[%s11524_s10] sm:$0xff] %v8373_v58  ;;  %v7639_v41 = vor.u32 %v7638_v55, %v7635_v37  ;;  %v7571_v23 = vsel %vm3886_vm3, %v7562_v62, %v7570_v14  ;;  %v7126_v37 = vsel %vm3837_vm2, %v7124_v52, %v7125_v49  ;;  %v7015_v55 = vshrl.u32 %v12222_v17, 16 }
 0x60c   : > { %v8259_v46 = vpop.f32.mrf.mxu1  ;;  %v12227_v58 = vpop.f32.mrf.mxu3  ;;  %v7664_v27 = vrot.slane %v7662_v56, 4  ;;  %v7602_v56 = vshll.u32 %v7124_v52, 16  ;;  %v7607_v32 = vshrl.u32 %v7126_v37, 16  ;;  %v7610_v62 = vshll.u32 %v7126_v37, 16  ;;  %v12251_v37 = vld [vmem:[#allocation2 + $0x170] sm:$0xff]  }
 0x60d   : > { %v8260_v6 = vadd.f32 %v8259_v46, %v8171_v8  ;;  %v12229_v47 = vpop.f32.mrf.mxu0  ;;  %v7659_v8 = vshrl.u32 %v10096_v3, 16  ;;  %v7670_v46 = vshll.u32 %v6895_v38, 16  ;;  %v6769_v3 = vld [vmem:[#allocation2 + $0x148] sm:$0x1]  ;;  %v7599_v38 = vshrl.u32 %v7124_v52, 16 }
 0x60e   : > { %v7604_v52 = vrot.slane %v7602_v56, 4 }
 0x60f   : > { %v8338_v42 = vadd.f32 %v8260_v6, %v11952_v11  ;;  %8222 = vmatmul.bf16.gmra.mxu0 %v7639_v41  ;;  %v7661_v11 = vrot.slane %v7659_v8, 3  ;;  %v7672_v7 = vrot.slane %v7670_v46, 4  ;;  %v7020_v41 = vrot.slane %v7018_v53, 5 }
 0x611   : > { %v8374_v48 = vadd.f32 %v12209_v61, %v8338_v42  ;;  %v7665_v51 = vor.u32 %v7664_v27, %v7661_v11  ;;  %v7673_v30 = vor.u32 %v7672_v7, %v7669_v20  ;;  %v7017_v42 = vrot.slane %v7015_v55, 4 }
 0x612   : > { %v8176_v27 = vadd.f32 %v12187_v57, %v12185_v36  ;;  %v12254_v36 = vpop.f32.mrf.mxu2 }
 0x613   : > { %8406 = vst [vmem:[%s11524_s10 + $0x8] sm:$0xff] %v8374_v48  ;;  %v7073_v48 = vunpack.c.l.b16 %v6769_v3  ;;  %v7021_v46 = vor.u32 %v7020_v41, %v7017_v42  ;;  %v7674_v11 = vsel %vm3886_vm3, %v7665_v51, %v7673_v30  ;;  %v9749_v42 = vunpack.c.h.b16 %v12251_v37  ;;  %v10099_v30 = vld [vmem:[#allocation2 + $0x16c] sm:$0x8]  ;;  %v10170_v41 = vld [vmem:[#allocation2 + $0x16c] sm:$0xf0]  }
 0x614   : > { %v8262_v6 = vpop.f32.mrf.mxu1  ;;  %v12242_v14 = vpop.f32.mrf.mxu3 }
 0x615   : > { %v8263_v50 = vadd.f32 %v8262_v6, %v8174_v2  ;;  %v12244_v49 = vpop.f32.mrf.mxu0  ;;  %v7676_v20 = vshrl.u32 %v7021_v46, 16  ;;  %v7679_v7 = vshll.u32 %v7021_v46, 16  ;;  %v7609_v6 = vrot.slane %v7607_v32, 3 }
 0x616   : > { %v7089_v53 = vpack.c.b16 %v7073_v48, %v7073_v48  ;;  %v7127_v46 = vrot.slane %v12191_v54, 5 }
 0x617   : > { %v8339_v8 = vadd.f32 %v8263_v50, %v11957_v25  ;;  %8301 = vmatmul.bf16.gmra.mxu1 %v7571_v23  ;;  %v7601_v25 = vrot.slane %v7599_v38, 3  ;;  %v7612_v23 = vrot.slane %v7610_v62, 4  ;;  %v7678_v50 = vrot.slane %v7676_v20, 3 }
 0x618   : > { %v7681_v3 = vrot.slane %v7679_v7, 4  ;;  %v6897_v38 = vpack.c.b16 %v9749_v42, %v9749_v42  ;;  %v7023_v42 = vshrl.u32 %v12251_v37, 16 }
 0x619   : > { %v8375_v2 = vadd.f32 %v12209_v61, %v8339_v8  ;;  %8138 = vmatmul.bf16.gmra.mxu3 %v7674_v11  ;;  %v10100_v8 = vor.u32 %v10170_v41, %v10099_v30  ;;  %v7605_v32 = vor.u32 %v7604_v52, %v7601_v25  ;;  %v7613_v62 = vor.u32 %v7612_v23, %v7609_v6  ;;  %v6770_v41 = vld [vmem:[#allocation2 + $0x160] sm:$0x1] }
 0x61a   : > { %v7682_v57 = vor.u32 %v7681_v3, %v7678_v50  ;;  %v7128_v11 = vrot.slane %v7089_v53, 5  ;;  %v7710_v7 = vshrl.u32 %v6897_v38, 16  ;;  %v7713_v3 = vshll.u32 %v6897_v38, 16 }
 0x61b   : > { %8407 = vst [vmem:[%s11524_s10 + $0x10] sm:$0xff] %v8375_v2  ;;  %v7705_v20 = vshll.u32 %v10100_v8, 16  ;;  %v7614_v23 = vsel %vm3886_vm3, %v7605_v32, %v7613_v62 }
 0x61c   : > { %v8264_v55 = vpop.f32.mrf.mxu1  ;;  %v12258_v48 = vpop.f32.mrf.mxu3  ;;  %v7712_v52 = vrot.slane %v7710_v7, 3  ;;  %v7715_v54 = vrot.slane %v7713_v3, 4  ;;  %v7129_v53 = vsel %vm3837_vm2, %v7127_v46, %v7128_v11 }
 0x61d   : > { %v8265_v51 = vadd.f32 %v8264_v55, %v8176_v27  ;;  %v12260_v2 = vpop.f32.mrf.mxu0  ;;  %v7702_v27 = vshrl.u32 %v10100_v8, 16  ;;  %v8179_v55 = vadd.f32 %v12199_v13, %v12197_v18  ;;  %v7707_v25 = vrot.slane %v7705_v20, 4  ;;  %v12275_v7 = vpop.f32.mrf.mxu2 }
 0x61e   : > { %v7716_v13 = vor.u32 %v7715_v54, %v7712_v52  ;;  %v7642_v8 = vshrl.u32 %v7127_v46, 16  ;;  %v7650_v20 = vshrl.u32 %v7129_v53, 16  ;;  %v7653_v32 = vshll.u32 %v7129_v53, 16  ;;  %v12282_v53 = vld [vmem:[#allocation2 + $0x188] sm:$0xff]  }
 0x61f   : > { %v8340_v56 = vadd.f32 %v8265_v51, %v11960_v59  ;;  %8227 = vmatmul.bf16.gmra.mxu0 %v7682_v57  ;;  %v7704_v59 = vrot.slane %v7702_v27, 3  ;;  %v7026_v51 = vshll.u32 %v12251_v37, 16  ;;  %v7025_v57 = vrot.slane %v7023_v42, 4 }
 0x620   : > { %v7645_v27 = vshll.u32 %v7127_v46, 16  ;;  %v7644_v46 = vrot.slane %v7642_v8, 3 }
 0x621   : > { %v8376_v50 = vadd.f32 %v12209_v61, %v8340_v56  ;;  %v7708_v18 = vor.u32 %v7707_v25, %v7704_v59  ;;  %v7028_v38 = vrot.slane %v7026_v51, 5  ;;  %v8181_v25 = vadd.f32 %v12215_v31, %v12213_v39 }
 0x622   : > { %v7647_v54 = vrot.slane %v7645_v27, 4 }
 0x623   : > { %8408 = vst [vmem:[%s11524_s10 + $0x18] sm:$0xff] %v8376_v50  ;;  %v7029_v50 = vor.u32 %v7028_v38, %v7025_v57  ;;  %v7717_v59 = vsel %vm3886_vm3, %v7708_v18, %v7716_v13  ;;  %v9753_v57 = vunpack.c.h.b16 %v12282_v53  ;;  %v10103_v13 = vld [vmem:[#allocation2 + $0x184] sm:$0x8]  ;;  %v10171_v38 = vld [vmem:[#allocation2 + $0x184] sm:$0xf0]  }
 0x624   : > { %v8267_v6 = vpop.f32.mrf.mxu1  ;;  %v12271_v62 = vpop.f32.mrf.mxu3  ;;  %v10104_v31 = vor.u32 %v10171_v38, %v10103_v13  ;;  %v7648_v27 = vor.u32 %v7647_v54, %v7644_v46  ;;  %v6771_v38 = vld [vmem:[#allocation2 + $0x178] sm:$0x1] }
 0x625   : > { %v8268_v30 = vadd.f32 %v8267_v6, %v8179_v55  ;;  %v12273_v11 = vpop.f32.mrf.mxu0  ;;  %v7074_v55 = vunpack.c.l.b16 %v6770_v41  ;;  %v7722_v52 = vshll.u32 %v7029_v50, 16  ;;  %v7652_v6 = vrot.slane %v7650_v20, 3 }
 0x627   : > { %v8341_v56 = vadd.f32 %v8268_v30, %v11965_v24  ;;  %8306 = vmatmul.bf16.gmra.mxu1 %v7614_v23  ;;  %v7719_v24 = vshrl.u32 %v7029_v50, 16  ;;  %v7655_v23 = vrot.slane %v7653_v32, 4  ;;  %v7090_v51 = vpack.c.b16 %v7074_v55, %v7074_v55 }
 0x628   : > { %v7724_v41 = vrot.slane %v7722_v52, 4  ;;  %v7130_v32 = vrot.slane %v12222_v17, 5  ;;  %v8184_v52 = vadd.f32 %v12229_v47, %v12227_v58  ;;  %v7034_v58 = vshll.u32 %v12282_v53, 16 }
 0x629   : > { %v8377_v3 = vadd.f32 %v12209_v61, %v8341_v56  ;;  %8143 = vmatmul.bf16.gmra.mxu3 %v7717_v59  ;;  %v7721_v30 = vrot.slane %v7719_v24, 3  ;;  %v6899_v56 = vpack.c.b16 %v9753_v57, %v9753_v57  ;;  %v7656_v20 = vor.u32 %v7655_v23, %v7652_v6 }
 0x62a   : > { %v7745_v59 = vshrl.u32 %v10104_v31, 16  ;;  %v7748_v24 = vshll.u32 %v10104_v31, 16  ;;  %v7031_v57 = vshrl.u32 %v12282_v53, 16 }
 0x62b   : > { %8409 = vst [vmem:[%s11524_s10 + $0x20] sm:$0xff] %v8377_v3  ;;  %v7725_v39 = vor.u32 %v7724_v41, %v7721_v30  ;;  %v7131_v3 = vrot.slane %v7090_v51, 5  ;;  %v7756_v30 = vshll.u32 %v6899_v56, 16  ;;  %v7657_v51 = vsel %vm3886_vm3, %v7648_v27, %v7656_v20 }
 0x62c   : > { %v8269_v42 = vpop.f32.mrf.mxu1  ;;  %v12287_v50 = vpop.f32.mrf.mxu3  ;;  %v7747_v46 = vrot.slane %v7745_v59, 3  ;;  %v7750_v54 = vrot.slane %v7748_v24, 4  ;;  %v7033_v31 = vrot.slane %v7031_v57, 4  ;;  %v7688_v59 = vshll.u32 %v7130_v32, 16 }
 0x62d   : > { %v8270_v18 = vadd.f32 %v8269_v42, %v8181_v25  ;;  %v12289_v55 = vpop.f32.mrf.mxu0  ;;  %v7753_v25 = vshrl.u32 %v6899_v56, 16  ;;  %v7758_v6 = vrot.slane %v7756_v30, 4  ;;  %v7132_v41 = vsel %vm3837_vm2, %v7130_v32, %v7131_v3 }
 0x62e   : > { %v7693_v24 = vshrl.u32 %v7132_v41, 16  ;;  %v7696_v3 = vshll.u32 %v7132_v41, 16  ;;  %v7075_v30 = vunpack.c.l.b16 %v6771_v38 }
 0x62f   : > { %v8342_v8 = vadd.f32 %v8270_v18, %v11968_v4  ;;  %v12294_v4 = vpop.f32.mrf.mxu2  ;;  %8232 = vmatmul.bf16.gmra.mxu0 %v7725_v39  ;;  %v7755_v17 = vrot.slane %v7753_v25, 3  ;;  %v7751_v18 = vor.u32 %v7750_v54, %v7747_v46  ;;  %v7036_v39 = vrot.slane %v7034_v58, 5 }
 0x630   : > { %v7698_v57 = vrot.slane %v7696_v3, 4  ;;  %v7091_v38 = vpack.c.b16 %v7075_v30, %v7075_v30 }
 0x631   : > { %v8378_v42 = vadd.f32 %v12209_v61, %v8342_v8  ;;  %v7759_v13 = vor.u32 %v7758_v6, %v7755_v17  ;;  %v7685_v8 = vshrl.u32 %v7130_v32, 16  ;;  %v7037_v25 = vor.u32 %v7036_v39, %v7033_v31  ;;  %v10107_v31 = vld [vmem:[#allocation2 + $0x19c] sm:$0x8]  ;;  %v10172_v39 = vld [vmem:[#allocation2 + $0x19c] sm:$0xf0]  }
 0x632   : > { %v7690_v32 = vrot.slane %v7688_v59, 4  ;;  %v7695_v6 = vrot.slane %v7693_v24, 3  ;;  %v12569_v59 = vld [vmem:[#allocation26_spill] sm:$0xff] }
 0x633   : > { %8410 = vst [vmem:[%s11524_s10 + $0x28] sm:$0xff] %v8378_v42  ;;  %v7760_v42 = vsel %vm3886_vm3, %v7751_v18, %v7759_v13  ;;  %v7762_v46 = vshrl.u32 %v7037_v25, 16  ;;  %v7765_v54 = vshll.u32 %v7037_v25, 16  ;;  %v7687_v17 = vrot.slane %v7685_v8, 3 }
 0x634   : > { %v8272_v23 = vpop.f32.mrf.mxu1  ;;  %v12302_v27 = vpop.f32.mrf.mxu3  ;;  %v8189_v8 = vadd.f32 %v12260_v2, %v12258_v48 }
 0x635   : > { %v8273_v47 = vadd.f32 %v8272_v23, %v8184_v52  ;;  %v12304_v20 = vpop.f32.mrf.mxu0  ;;  %v12311_v23 = vld [vmem:[#allocation2 + $0x1a0] sm:$0xff]   ;;  %v7764_v58 = vrot.slane %v7762_v46, 3  ;;  %v7691_v25 = vor.u32 %v7690_v32, %v7687_v17 }
 0x636   : > { %v9757_v18 = vunpack.c.h.b16 %v12311_v23  ;;  %v12570_v32 = vld [vmem:[#allocation27_spill] sm:$0xff] }
 0x637   : > { %v8343_v56 = vadd.f32 %v8273_v47, %v11973_v0  ;;  %8311 = vmatmul.bf16.gmra.mxu1 %v7657_v51  ;;  %v8186_v0 = vadd.f32 %v12244_v49, %v12242_v14  ;;  %v12313_v51 = vpop.f32.mrf.mxu2  ;;  %v7767_v47 = vrot.slane %v7765_v54, 4  ;;  %v10108_v49 = vor.u32 %v10172_v39, %v10107_v31 }
 0x638   : > { %v7042_v39 = vshll.u32 %v12311_v23, 16 }
 0x639   : > { %v8379_v52 = vadd.f32 %v12209_v61, %v8343_v56  ;;  %8148 = vmatmul.bf16.gmra.mxu3 %v7760_v42  ;;  %v7768_v14 = vor.u32 %v7767_v47, %v7764_v58  ;;  %v6901_v56 = vpack.c.b16 %v9757_v18, %v9757_v18  ;;  %v7699_v42 = vor.u32 %v7698_v57, %v7695_v6 }
 0x63a   : > { %v7788_v46 = vshrl.u32 %v10108_v49, 16  ;;  %v7791_v54 = vshll.u32 %v10108_v49, 16  ;;  %v7134_v58 = vrot.slane %v7091_v38, 5  ;;  %v7039_v57 = vshrl.u32 %v12311_v23, 16 }
 0x63b   : > { %8411 = vst [vmem:[%s11524_s10 + $0x30] sm:$0xff] %v8379_v52  ;;  %v7796_v30 = vshrl.u32 %v6901_v56, 16  ;;  %v7799_v47 = vshll.u32 %v6901_v56, 16  ;;  %v7700_v6 = vsel %vm3886_vm3, %v7691_v25, %v7699_v42 }
 0x63c   : > { %v8274_v41 = vpop.f32.mrf.mxu1  ;;  %v12319_v3 = vpop.f32.mrf.mxu3  ;;  %v7790_v48 = vrot.slane %v7788_v46, 3  ;;  %v7793_v2 = vrot.slane %v7791_v54, 4  ;;  %v7044_v46 = vrot.slane %v7042_v39, 5 }
 0x63d   : > { %v8275_v13 = vadd.f32 %v8274_v41, %v8186_v0  ;;  %v12321_v52 = vpop.f32.mrf.mxu0  ;;  %v7133_v41 = vrot.slane %v12251_v37, 5  ;;  %v7798_v18 = vrot.slane %v7796_v30, 3  ;;  %v7801_v17 = vrot.slane %v7799_v47, 4 }
 0x63e   : > { %v7794_v38 = vor.u32 %v7793_v2, %v7790_v48 }
 0x63f   : > { %v8344_v24 = vadd.f32 %v8275_v13, %v12569_v59  ;;  %8237 = vmatmul.bf16.gmra.mxu0 %v7768_v14  ;;  %v6650_v13 = vadd.f32 %v12235_v16, %v12570_v32  ;;  %v7135_v37 = vsel %vm3837_vm2, %v7133_v41, %v7134_v58  ;;  %v7802_v14 = vor.u32 %v7801_v17, %v7798_v18  ;;  %v12332_v56 = vpop.f32.mrf.mxu2  ;;  %v6772_v59 = vld [vmem:[#allocation2 + $0x190] sm:$0x1] }
 0x640   : > { %v7728_v16 = vshrl.u32 %v7133_v41, 16  ;;  %v7731_v30 = vshll.u32 %v7133_v41, 16  ;;  %v7076_v2 = vunpack.c.l.b16 %v6772_v59  ;;  %v8191_v32 = vadd.f32 %v12273_v11, %v12271_v62 }
 0x641   : > { %v8380_v0 = vadd.f32 %v12209_v61, %v8344_v24  ;;  %v7041_v24 = vrot.slane %v7039_v57, 4  ;;  %v7803_v48 = vsel %vm3886_vm3, %v7794_v38, %v7802_v14 }
 0x642   : > { %v7733_v41 = vrot.slane %v7731_v30, 4  ;;  %v7092_v14 = vpack.c.b16 %v7076_v2, %v7076_v2  ;;  %v12572_v2 = vld [vmem:[#allocation29_spill] sm:$0xff] }
 0x643   : > { %8412 = vst [vmem:[%s11524_s10 + $0x38] sm:$0xff] %v8380_v0  ;;  %v7736_v0 = vshrl.u32 %v7135_v37, 16  ;;  %v7045_v47 = vor.u32 %v7044_v46, %v7041_v24 }
 0x644   : > { %v8277_v31 = vpop.f32.mrf.mxu1  ;;  %v12334_v25 = vpop.f32.mrf.mxu3 }
 0x645   : > { %v8278_v49 = vadd.f32 %v8277_v31, %v8189_v8  ;;  %v12336_v42 = vpop.f32.mrf.mxu0  ;;  %v7739_v8 = vshll.u32 %v7135_v37, 16  ;;  %v7805_v18 = vshrl.u32 %v7045_v47, 16  ;;  %v7808_v17 = vshll.u32 %v7045_v47, 16  ;;  %v12571_v37 = vld [vmem:[#allocation28_spill] sm:$0xff] }
 0x646   : > { %v6652_v24 = vadd.f32 %v12254_v36, %v12571_v37  ;;  %v7136_v47 = vrot.slane %v12282_v53, 5  ;;  %v7137_v36 = vrot.slane %v7092_v14, 5 }
 0x647   : > { %v8345_v54 = vadd.f32 %v8278_v49, %v6650_v13  ;;  %8316 = vmatmul.bf16.gmra.mxu1 %v7700_v6  ;;  %v7730_v13 = vrot.slane %v7728_v16, 3  ;;  %v7738_v6 = vrot.slane %v7736_v0, 3  ;;  %v7741_v57 = vrot.slane %v7739_v8, 4  ;;  %v12349_v11 = vpop.f32.mrf.mxu2 }
 0x648   : > { %v7807_v39 = vrot.slane %v7805_v18, 3  ;;  %v7810_v49 = vrot.slane %v7808_v17, 4  ;;  %v8194_v0 = vadd.f32 %v12289_v55, %v12287_v50  ;;  %v6655_v18 = vadd.f32 %v12275_v7, %v12572_v2 }
 0x649   : > { %v8381_v58 = vadd.f32 %v12209_v61, %v8345_v54  ;;  %8153 = vmatmul.bf16.gmra.mxu3 %v7803_v48  ;;  %v7734_v16 = vor.u32 %v7733_v41, %v7730_v13  ;;  %v7742_v30 = vor.u32 %v7741_v57, %v7738_v6  ;;  %v6773_v13 = vld [vmem:[#allocation2 + $0x1a8] sm:$0x1]  ;;  %v7771_v55 = vshrl.u32 %v7136_v47, 16 }
 0x64a   : > { %v7811_v59 = vor.u32 %v7810_v49, %v7807_v39  ;;  %v7774_v53 = vshll.u32 %v7136_v47, 16  ;;  %v7077_v49 = vunpack.c.l.b16 %v6773_v13  ;;  %v8196_v7 = vadd.f32 %v12304_v20, %v12302_v27 }
 0x64b   : > { %8413 = vst [vmem:[%s11524_s10 + $0x40] sm:$0xff] %v8381_v58  ;;  %v7743_v48 = vsel %vm3886_vm3, %v7734_v16, %v7742_v30  ;;  %v6657_v16 = vadd.f32 %v12294_v4, %v12005_v60  ;;  %v7139_v20 = vrot.slane %v12311_v23, 5  ;;  %v6660_v4 = vadd.f32 %v12313_v51, %v12013_v34 }
 0x64c   : > { %v8279_v31 = vpop.f32.mrf.mxu1  ;;  %v12345_v54 = vpop.f32.mrf.mxu3  ;;  %v7776_v14 = vrot.slane %v7774_v53, 4 }
 0x64d   : > { %v8280_v38 = vadd.f32 %v8279_v31, %v8191_v32  ;;  %v12347_v62 = vpop.f32.mrf.mxu0  ;;  %v7138_v32 = vsel %vm3837_vm2, %v7136_v47, %v7137_v36 }
 0x64e   : > { %v7779_v31 = vshrl.u32 %v7138_v32, 16  ;;  %v7782_v6 = vshll.u32 %v7138_v32, 16 }
 0x64f   : > { %v8346_v46 = vadd.f32 %v8280_v38, %v6652_v24  ;;  %8242 = vmatmul.bf16.gmra.mxu0 %v7811_v59  ;;  %v12365_v37 = vpop.f32.mrf.mxu2  ;;  %v7773_v38 = vrot.slane %v7771_v55, 3  ;;  %v7817_v55 = vshll.u32 %v7139_v20, 16 }
 0x650   : > { %v7781_v59 = vrot.slane %v7779_v31, 3 }
 0x651   : > { %v8382_v8 = vadd.f32 %v12209_v61, %v8346_v46  ;;  %v7784_v46 = vrot.slane %v7782_v6, 4  ;;  %v7777_v47 = vor.u32 %v7776_v14, %v7773_v38  ;;  %v8201_v6 = vadd.f32 %v12336_v42, %v12334_v25 }
 0x652   : > { %v7819_v34 = vrot.slane %v7817_v55, 4  ;;  %v6662_v14 = vadd.f32 %v12332_v56, %v12021_v10  ;;  %v8204_v25 = vadd.f32 %v12347_v62, %v12345_v54 }
 0x653   : > { %8414 = vst [vmem:[%s11524_s10 + $0x48] sm:$0xff] %v8382_v8  ;;  %v7785_v36 = vor.u32 %v7784_v46, %v7781_v59 }
 0x654   : > { %v8282_v58 = vpop.f32.mrf.mxu1  ;;  %v12360_v50 = vpop.f32.mrf.mxu3 }
 0x655   : > { %v8283_v17 = vadd.f32 %v8282_v58, %v8194_v0  ;;  %v12362_v57 = vpop.f32.mrf.mxu0  ;;  %v7093_v0 = vpack.c.b16 %v7077_v49, %v7077_v49  ;;  %v8199_v58 = vadd.f32 %v12321_v52, %v12319_v3  ;;  %v7786_v60 = vsel %vm3886_vm3, %v7777_v47, %v7785_v36 }
 0x656   : > { %v7814_v52 = vshrl.u32 %v7139_v20, 16  ;;  %v6665_v36 = vadd.f32 %v12349_v11, %v12028_v19  ;;  %v8206_v54 = vadd.f32 %v12362_v57, %v12360_v50 }
 0x657   : > { %v8347_v41 = vadd.f32 %v8283_v17, %v6655_v18  ;;  %8321 = vmatmul.bf16.gmra.mxu1 %v7743_v48  ;;  %v7140_v48 = vrot.slane %v7093_v0, 5  ;;  %v6669_v17 = vpop.f32.mrf.mxu2 }
 0x658   : > { %v6670_v55 = vadd.f32 %v6669_v17, %v12045_v28 }
 0x659   : > { %v8383_v39 = vadd.f32 %v12209_v61, %v8347_v41  ;;  %v7141_v41 = vsel %vm3837_vm2, %v7139_v20, %v7140_v48 }
 0x65a   : > { %v7822_v23 = vshrl.u32 %v7141_v41, 16  ;;  %v7825_v53 = vshll.u32 %v7141_v41, 16 }
 0x65b   : > { %8415 = vst [vmem:[%s11524_s10 + $0x50] sm:$0xff] %v8383_v39 }
 0x65c   : > { %v8284_v24 = vpop.f32.mrf.mxu1  ;;  %v8119_v2 = vpop.f32.mrf.mxu3  ;;  %v7824_v51 = vrot.slane %v7822_v23, 3 }
 0x65d   : > { %v8285_v30 = vadd.f32 %v8284_v24, %v8196_v7  ;;  %v8208_v18 = vpop.f32.mrf.mxu0  ;;  %v7816_v7 = vrot.slane %v7814_v52, 3  ;;  %v7827_v24 = vrot.slane %v7825_v53, 4 }
 0x65f   : > { %v8348_v8 = vadd.f32 %v8285_v30, %v6657_v16  ;;  %v6671_v46 = vpop.f32.mrf.mxu2  ;;  %v7820_v30 = vor.u32 %v7819_v34, %v7816_v7  ;;  %v7828_v0 = vor.u32 %v7827_v24, %v7824_v51 }
 0x661   : > { %v8384_v27 = vadd.f32 %v12209_v61, %v8348_v8  ;;  %v7829_v47 = vsel %vm3886_vm3, %v7820_v30, %v7828_v0 }
 0x663   : > { %8416 = vst [vmem:[%s11524_s10 + $0x58] sm:$0xff] %v8384_v27 }
 0x664   : > { %v8287_v32 = vpop.f32.mrf.mxu1  ;;  %v8121_v39 = vpop.f32.mrf.mxu3 }
 0x665   : > { %v8288_v13 = vadd.f32 %v8287_v32, %v8199_v58  ;;  %v8210_v38 = vpop.f32.mrf.mxu0  ;;  %v6667_v32 = vadd.f32 %v12365_v37, %v12038_v35 }
 0x666   : > { %v8211_v37 = vadd.f32 %v8210_v38, %v8121_v39 }
 0x667   : > { %v8349_v3 = vadd.f32 %v8288_v13, %v6660_v4  ;;  %8326 = vmatmul.bf16.gmra.mxu1 %v7786_v60  ;;  %v6674_v20 = vpop.f32.mrf.mxu2  ;;  %v8209_v13 = vadd.f32 %v8208_v18, %v8119_v2  ;;  %v6672_v2 = vadd.f32 %v6671_v46, %v12055_v9 }
 0x668   : > { %v6675_v24 = vadd.f32 %v6674_v20, %v12062_v5 }
 0x669   : > { %v8385_v31 = vadd.f32 %v12209_v61, %v8349_v3 }
 0x66b   : > { %8417 = vst [vmem:[%s11524_s10 + $0x60] sm:$0xff] %v8385_v31 }
 0x66c   : > { %v8289_v49 = vpop.f32.mrf.mxu1  ;;  %v8124_v10 = vpop.f32.mrf.mxu3 }
 0x66d   : > { %v8290_v59 = vadd.f32 %v8289_v49, %v8201_v6  ;;  %v8213_v56 = vpop.f32.mrf.mxu0 }
 0x66e   : > { %v8214_v7 = vadd.f32 %v8213_v56, %v8124_v10 }
 0x66f   : > { %v8350_v16 = vadd.f32 %v8290_v59, %v6662_v14  ;;  %v6676_v3 = vpop.f32.mrf.mxu2 }
 0x670   : > { %v6677_v46 = vadd.f32 %v6676_v3, %v12072_v21 }
 0x671   : > { %v8386_v42 = vadd.f32 %v12209_v61, %v8350_v16 }
 0x673   : > { %8418 = vst [vmem:[%s11524_s10 + $0x68] sm:$0xff] %v8386_v42 }
 0x674   : > { %v8292_v8 = vpop.f32.mrf.mxu1  ;;  %v8126_v11 = vpop.f32.mrf.mxu3 }
 0x675   : > { %v8293_v58 = vadd.f32 %v8292_v8, %v8204_v25  ;;  %v8215_v4 = vpop.f32.mrf.mxu0 }
 0x676   : > { %v8216_v16 = vadd.f32 %v8215_v4, %v8126_v11 }
 0x677   : > { %v8351_v27 = vadd.f32 %v8293_v58, %v6665_v36  ;;  %8331 = vmatmul.bf16.gmra.mxu1 %v7829_v47  ;;  %v6679_v31 = vpop.f32.mrf.mxu2 }
 0x678   : > { %v6680_v58 = vadd.f32 %v6679_v31, %v12079_v44 }
 0x679   : > { %v8387_v48 = vadd.f32 %v12209_v61, %v8351_v27 }
 0x67b   : > { %8419 = vst [vmem:[%s11524_s10 + $0x70] sm:$0xff] %v8387_v48 }
 0x67c   : > { %v8294_v62 = vpop.f32.mrf.mxu1  ;;  %v8129_v53 = vpop.f32.mrf.mxu3 }
 0x67d   : > { %v8295_v60 = vadd.f32 %v8294_v62, %v8206_v54  ;;  %v8218_v35 = vpop.f32.mrf.mxu0 }
 0x67e   : > { %v8219_v47 = vadd.f32 %v8218_v35, %v8129_v53 }
 0x67f   : > { %v8352_v19 = vadd.f32 %v8295_v60, %v6667_v32  ;;  %v6681_v39 = vpop.f32.mrf.mxu2 }
 0x680   : > { %v6682_v32 = vadd.f32 %v6681_v39, %v12089_v45 }
 0x681   : > { %v8388_v41 = vadd.f32 %v12209_v61, %v8352_v19 }
 0x683   : > { %8420 = vst [vmem:[%s11524_s10 + $0x78] sm:$0xff] %v8388_v41 }
 0x684   : > { %v8297_v52 = vpop.f32.mrf.mxu1  ;;  %v8131_v28 = vpop.f32.mrf.mxu3 }
 0x685   : > { %v8298_v50 = vadd.f32 %v8297_v52, %v8209_v13  ;;  %v8220_v51 = vpop.f32.mrf.mxu0 }
 0x686   : > { %v8221_v54 = vadd.f32 %v8220_v51, %v8131_v28 }
 0x687   : > { %v8353_v57 = vadd.f32 %v8298_v50, %v6670_v55  ;;  %v6684_v8 = vpop.f32.mrf.mxu2 }
 0x688   : > { %v6685_v52 = vadd.f32 %v6684_v8, %v12096_v22 }
 0x689   : > { %v8389_v23 = vadd.f32 %v12209_v61, %v8353_v57 }
 0x68b   : > { %8421 = vst [vmem:[%s11524_s10 + $0x80] sm:$0xff] %v8389_v23 }
 0x68c   : > { %v8299_v6 = vpop.f32.mrf.mxu1  ;;  %v8134_v0 = vpop.f32.mrf.mxu3 }
 0x68d   : > { %v8300_v18 = vadd.f32 %v8299_v6, %v8211_v37  ;;  %v8223_v25 = vpop.f32.mrf.mxu0 }
 0x68e   : > { %v8224_v11 = vadd.f32 %v8223_v25, %v8134_v0 }
 0x68f   : > { %v8354_v49 = vadd.f32 %v8300_v18, %v6672_v2  ;;  %v6686_v48 = vpop.f32.mrf.mxu2 }
 0x690   : > { %v6687_v37 = vadd.f32 %v6686_v48, %v12106_v26 }
 0x691   : > { %v8390_v34 = vadd.f32 %v12209_v61, %v8354_v49 }
 0x693   : > { %8422 = vst [vmem:[%s11524_s10 + $0x88] sm:$0xff] %v8390_v34 }
 0x694   : > { %v8302_v17 = vpop.f32.mrf.mxu1  ;;  %v8136_v27 = vpop.f32.mrf.mxu3 }
 0x695   : > { %v8303_v14 = vadd.f32 %v8302_v17, %v8214_v7  ;;  %v8225_v20 = vpop.f32.mrf.mxu0 }
 0x696   : > { %v8226_v23 = vadd.f32 %v8225_v20, %v8136_v27 }
 0x697   : > { %v8355_v38 = vadd.f32 %v8303_v14, %v6675_v24  ;;  %v6689_v41 = vpop.f32.mrf.mxu2 }
 0x698   : > { %v6690_v7 = vadd.f32 %v6689_v41, %v12113_v12 }
 0x699   : > { %v8391_v59 = vadd.f32 %v12209_v61, %v8355_v38 }
 0x69b   : > { %8423 = vst [vmem:[%s11524_s10 + $0x90] sm:$0xff] %v8391_v59 }
 0x69c   : > { %v8304_v9 = vpop.f32.mrf.mxu1  ;;  %v8139_v44 = vpop.f32.mrf.mxu3 }
 0x69d   : > { %v8305_v30 = vadd.f32 %v8304_v9, %v8216_v16  ;;  %v8228_v13 = vpop.f32.mrf.mxu0 }
 0x69e   : > { %v8229_v18 = vadd.f32 %v8228_v13, %v8139_v44 }
 0x69f   : > { %v8356_v42 = vadd.f32 %v8305_v30, %v6677_v46  ;;  %v6691_v6 = vpop.f32.mrf.mxu2 }
 0x6a0   : > { %v6692_v38 = vadd.f32 %v6691_v6, %v12123_v43 }
 0x6a1   : > { %v8392_v5 = vadd.f32 %v12209_v61, %v8356_v42 }
 0x6a3   : > { %8424 = vst [vmem:[%s11524_s10 + $0x98] sm:$0xff] %v8392_v5 }
 0x6a4   : > { %v8307_v36 = vpop.f32.mrf.mxu1  ;;  %v8141_v45 = vpop.f32.mrf.mxu3 }
 0x6a5   : > { %v8308_v10 = vadd.f32 %v8307_v36, %v8219_v47  ;;  %v8230_v35 = vpop.f32.mrf.mxu0 }
 0x6a6   : > { %v8231_v26 = vadd.f32 %v8230_v35, %v8141_v45 }
 0x6a7   : > { %v8357_v56 = vadd.f32 %v8308_v10, %v6680_v58  ;;  %v6694_v24 = vpop.f32.mrf.mxu2 }
 0x6a8   : > { %v6695_v42 = vadd.f32 %v6694_v24, %v12130_v33 }
 0x6a9   : > { %v8393_v21 = vadd.f32 %v12209_v61, %v8357_v56 }
 0x6ab   : > { %8425 = vst [vmem:[%s11524_s10 + $0xa0] sm:$0xff] %v8393_v21 }
 0x6ac   : > { %v8309_v62 = vpop.f32.mrf.mxu1  ;;  %v8144_v28 = vpop.f32.mrf.mxu3 }
 0x6ad   : > { %v8310_v60 = vadd.f32 %v8309_v62, %v8221_v54  ;;  %v8233_v17 = vpop.f32.mrf.mxu0 }
 0x6ae   : > { %v8234_v30 = vadd.f32 %v8233_v17, %v8144_v28 }
 0x6af   : > { %v8358_v19 = vadd.f32 %v8310_v60, %v6682_v32  ;;  %v6696_v0 = vpop.f32.mrf.mxu2 }
 0x6b0   : > { %v6697_v27 = vadd.f32 %v6696_v0, %v12144_v63  ;;  %v10247_v63 = vld [vmem:[%s12487_s4] ss:$0 sm:$0xff] }
 0x6b1   : > { %v8394_v4 = vadd.f32 %v12209_v61, %v8358_v19 }
 0x6b3   : > { %8426 = vst [vmem:[%s11524_s10 + $0xa8] sm:$0xff] %v8394_v4 }
 0x6b4   : > { %v8312_v3 = vpop.f32.mrf.mxu1  ;;  %v8146_v9 = vpop.f32.mrf.mxu3 }
 0x6b5   : > { %v8313_v55 = vadd.f32 %v8312_v3, %v8224_v11  ;;  %v8235_v46 = vpop.f32.mrf.mxu0 }
 0x6b6   : > { %v8236_v58 = vadd.f32 %v8235_v46, %v8146_v9 }
 0x6b7   : > { %v8359_v50 = vadd.f32 %v8313_v55, %v6685_v52  ;;  %v6699_v10 = vpop.f32.mrf.mxu2 }
 0x6b8   : > { %v6700_v60 = vadd.f32 %v6699_v10, %v12155_v15 }
 0x6b9   : > { %v8395_v57 = vadd.f32 %v12209_v61, %v8359_v50 }
 0x6bb   : > { %8427 = vst [vmem:[%s11524_s10 + $0xb0] sm:$0xff] %v8395_v57 }
 0x6bc   : > { %v8314_v53 = vpop.f32.mrf.mxu1  ;;  %v8149_v36 = vpop.f32.mrf.mxu3 }
 0x6bd   : > { %v8315_v31 = vadd.f32 %v8314_v53, %v8226_v23  ;;  %v8238_v43 = vpop.f32.mrf.mxu0 }
 0x6be   : > { %v8239_v48 = vadd.f32 %v8238_v43, %v8149_v36 }
 0x6bf   : > { %v8360_v2 = vadd.f32 %v8315_v31, %v6687_v37  ;;  %v6701_v11 = vpop.f32.mrf.mxu2 }
 0x6c1   : > { %v8396_v49 = vadd.f32 %v12209_v61, %v8360_v2 }
 0x6c3   : > { %8428 = vst [vmem:[%s11524_s10 + $0xb8] sm:$0xff] %v8396_v49 }
 0x6c4   : > { %v8317_v22 = vpop.f32.mrf.mxu1  ;;  %v8151_v33 = vpop.f32.mrf.mxu3 }
 0x6c5   : > { %v8318_v34 = vadd.f32 %v8317_v22, %v8229_v18  ;;  %v8240_v62 = vpop.f32.mrf.mxu0 }
 0x6c6   : > { %v8241_v13 = vadd.f32 %v8240_v62, %v8151_v33 }
 0x6c7   : > { %v8361_v51 = vadd.f32 %v8318_v34, %v6690_v7  ;;  %v6704_v15 = vpop.f32.mrf.mxu2 }
 0x6c8   : > { %v6705_v53 = vadd.f32 %v6704_v15, %v12180_v40 }
 0x6c9   : > { %v8397_v14 = vadd.f32 %v12209_v61, %v8361_v51 }
 0x6cb   : > { %8429 = vst [vmem:[%s11524_s10 + $0xc0] sm:$0xff] %v8397_v14 }
 0x6cc   : > { %v8319_v39 = vpop.f32.mrf.mxu1  ;;  %v8154_v52 = vpop.f32.mrf.mxu3 }
 0x6cd   : > { %v8320_v59 = vadd.f32 %v8319_v39, %v8231_v26  ;;  %v8243_v55 = vpop.f32.mrf.mxu0 }
 0x6ce   : > { %v8244_v57 = vadd.f32 %v8243_v55, %v8154_v52 }
 0x6cf   : > { %v8362_v16 = vadd.f32 %v8320_v59, %v6692_v38  ;;  %v6706_v2 = vpop.f32.mrf.mxu2 }
 0x6d0   : > { %v6707_v22 = vadd.f32 %v6706_v2, %v12194_v29 }
 0x6d1   : > { %v8398_v12 = vadd.f32 %v12209_v61, %v8362_v16 }
 0x6d3   : > { %8430 = vst [vmem:[%s11524_s10 + $0xc8] sm:$0xff] %v8398_v12 }
 0x6d4   : > { %v8322_v25 = vpop.f32.mrf.mxu1  ;;  %v8156_v31 = vpop.f32.mrf.mxu3 }
 0x6d5   : > { %v8323_v8 = vadd.f32 %v8322_v25, %v8234_v30  ;;  %v8245_v6 = vpop.f32.mrf.mxu0 }
 0x6d6   : > { %v8246_v18 = vadd.f32 %v8245_v6, %v8156_v31 }
 0x6d7   : > { %v8363_v47 = vadd.f32 %v8323_v8, %v6695_v42 }
 0x6d9   : > { %v8399_v5 = vadd.f32 %v12209_v61, %v8363_v47 }
 0x6db   : > { %8431 = vst [vmem:[%s11524_s10 + $0xd0] sm:$0xff] %v8399_v5 }
 0x6dc   : > { %v8324_v56 = vpop.f32.mrf.mxu1 }
 0x6dd   : > { %v8325_v20 = vadd.f32 %v8324_v56, %v8236_v58 }
 0x6df   : > { %v8364_v21 = vadd.f32 %v8325_v20, %v6697_v27 }
 0x6e1   : > { %v8400_v54 = vadd.f32 %v12209_v61, %v8364_v21  ;;  %v6702_v61 = vadd.f32 %v6701_v11, %v12169_v1 }
 0x6e3   : > { %8432 = vst [vmem:[%s11524_s10 + $0xd8] sm:$0xff] %v8400_v54 }
 0x6e4   : > { %v8327_v32 = vpop.f32.mrf.mxu1 }
 0x6e5   : > { %v8328_v19 = vadd.f32 %v8327_v32, %v8239_v48 }
 0x6e7   : > { %v8365_v4 = vadd.f32 %v8328_v19, %v6700_v60 }
 0x6e9   : > { %v8401_v44 = vadd.f32 %v10247_v63, %v8365_v4 }
 0x6eb   : > { %8433 = vst [vmem:[%s11524_s10 + $0xe0] sm:$0xff] %v8401_v44 }
 0x6ec   : > { %v8329_v41 = vpop.f32.mrf.mxu1 }
 0x6ed   : > { %v8330_v3 = vadd.f32 %v8329_v41, %v8241_v13 }
 0x6ef   : > { %v8366_v50 = vadd.f32 %v8330_v3, %v6702_v61 }
 0x6f1   : > { %v8402_v23 = vadd.f32 %v10247_v63, %v8366_v50 }
 0x6f3   : > { %8434 = vst [vmem:[%s11524_s10 + $0xe8] sm:$0xff] %v8402_v23 }
 0x6f4   : > { %v8332_v45 = vpop.f32.mrf.mxu1 }
 0x6f5   : > { %v8333_v35 = vadd.f32 %v8332_v45, %v8244_v57 }
 0x6f7   : > { %v8367_v37 = vadd.f32 %v8333_v35, %v6705_v53 }
 0x6f9   : > { %v8403_v1 = vadd.f32 %v10247_v63, %v8367_v37 }
 0x6fb   : > { %8435 = vst [vmem:[%s11524_s10 + $0xf0] sm:$0xff] %v8403_v1 }
 0x6fc   : > { %v8334_v49 = vpop.f32.mrf.mxu1 }
 0x6fd   : > { %v8335_v40 = vadd.f32 %v8334_v49, %v8246_v18 }
 0x6ff   : > { %v8368_v7 = vadd.f32 %v8335_v40, %v6707_v22 }
 0x701   : > { %v8404_v34 = vadd.f32 %v10247_v63, %v8368_v7 }
 0x703   : > { %8436 = vst [vmem:[%s11524_s10 + $0xf8] sm:$0xff] %v8404_v34 }
 0x704   : > { %10377 = shalt.err (!%p10374_p9)
}
 0x705   : > { %s10422_s12 = smov 128   ;;  %s10423_s10 = smov 8  }
 0x706   : > { %10178 = dma.vmem_to_hbm [thread:$0]  (%p10492_p5), %s8451_s15, 4096, %s8453_s16, %s8438_s22, %s10422_s12, %s10422_s12, %s10423_s10  }
 0x707 PF: > { %p10190_p10 = scmp.ge.s32.totalorder %s10416_s21, 2  ;;  %s8467_s7 = sand.u32 1, %s10404_s18  }
 0x708   : > { %s8468_s8 = scalar_lea.sflag [#allocation5], %s8467_s7 }
 0x709   : > { %p10185_p11 = pnand %p10190_p10, %p10496_p6 }
 0x70b   : > { %p10186_p12 = pneg %p10185_p11 }
 0x70d   : > { %10399 = dma.done.wait (%p10186_p12), %s8468_s8, 4096  }
 0x70e   : > { %10401 = vsyncadd (%p10186_p12), %s8468_s8, 4294963200  ;;  %p16_p13 = scmp.ge.s32.totalorder %s10479_s24, 4   ;;  %s12573_s18 = smov %s10408_s19 }
 0x70f   : > { %s12574_s19 = smov %s10412_s20  ;;  %s12575_s20 = smov %s10490_s27 }
 0x710   : > { %s12576_s21 = smov %s10479_s24  ;;  %18 = sbr.rel (!%p16_p13) target bundleno = 4 (0x4), region = 90 }
 0x715   :  { %8474 = vsyncpa [#allocation4], 1 }
 0x716   :  { %8476 = vsyncpa [#allocation4 + $0x1], 1 }
 0x717   :  { %8477 = vsyncpa [#allocation5], 1 }
 0x718   :  { %8479 = vsyncpa [#allocation5 + $0x1], 1 }

</bundles_post_ra>
